<compile_context>
chip_gen: v7x
topology: tpu7x:2x2x1
jax: 0.10.0
libtpu: 0.0.40
codegen_flags: <defaults>
</compile_context>

<pallas_src>
import jax
import jax.numpy as jnp
from jax import lax
from jax.experimental import pallas as pl
from jax.experimental.pallas import tpu as pltpu

H_IN = 28  # implied by fc1: ((28 - 2) - 2) // 2 = 12 and 12 * 12 * 1 = 144


def _conv3x3_phases(src_e, src_o, taps, bias, h_out, w_out):
    """3x3 valid conv (1->1 channel) on a column-polyphase pair, fused ReLU.

    src_e/src_o: (H_in, W_in//2, TB) even/odd column phases, batch on lanes.
    Returns (out_e, out_o), each (h_out, w_out, TB): even/odd column phases of the
    conv output, so downstream 2x pooling over columns is a plain elementwise max.
    """
    out_e = None
    out_o = None
    for di in range(3):
        e0 = src_e[di:di + h_out, 0:w_out]
        e1 = src_e[di:di + h_out, 1:w_out + 1]
        o0 = src_o[di:di + h_out, 0:w_out]
        o1 = src_o[di:di + h_out, 1:w_out + 1]
        k0, k1, k2 = taps[di]
        te = e0 * k0 + o0 * k1 + e1 * k2   # output columns 2j   (taps dj = 0, 1, 2)
        to = o0 * k0 + e1 * k1 + o1 * k2   # output columns 2j+1 (taps dj = 0, 1, 2)
        out_e = te if out_e is None else out_e + te
        out_o = to if out_o is None else out_o + to
    out_e = jnp.maximum(out_e + bias, 0.0)
    out_o = jnp.maximum(out_o + bias, 0.0)
    return out_e, out_o


def _net_kernel(c1w_ref, c2w_ref, cb_ref,                        # SMEM scalars
                xe_ref, xo_ref, w1_ref, b1_ref, w2_ref, b2_ref,  # VMEM
                out_ref):
    # Hoist all 18 scalar SMEM tap reads out of the accumulate chains.
    k1 = [[c1w_ref[i, j] for j in range(3)] for i in range(3)]
    k2 = [[c2w_ref[i, j] for j in range(3)] for i in range(3)]

    xe = xe_ref[...]                                   # (28, 14, TB) even image columns
    xo = xo_ref[...]                                   # (28, 14, TB) odd image columns

    # conv1 + ReLU -> 26x26, kept as column phases (26, 13, TB) x 2
    h1e, h1o = _conv3x3_phases(xe, xo, k1, cb_ref[0], 26, 13)
    # conv2 + ReLU -> 24x24, kept as column phases (24, 12, TB) x 2
    h2e, h2o = _conv3x3_phases(h1e, h1o, k2, cb_ref[1], 24, 12)

    # 2x2 max-pool stride 2: columns are handled by the even/odd phases,
    # rows by pairing adjacent leading-dim slices (no strided gathers, no matmuls).
    cw = jnp.maximum(h2e, h2o)                         # (24, 12, TB)

    # dropout1 / dropout2: identity (eval-mode semantics)
    # TODO(synk): training-mode dropout (Bernoulli masks via pltpu.prng_*) not implemented.

    # fc1: (10,144) @ (144,TB), decomposed over the 12 pooled rows and fused with
    # the row half of the max-pool.  HIGHEST precision kept here because the fc
    # matmuls are a negligible fraction of the per-step (VPU-dominated) work.
    b1 = b1_ref[...]                                   # (10, 1)
    acc = None
    for i in range(12):
        row = jnp.maximum(cw[2 * i], cw[2 * i + 1])    # pooled row i: (12, TB)
        t = jnp.dot(w1_ref[i], row,
                    preferred_element_type=jnp.float32,
                    precision=lax.Precision.HIGHEST)
        acc = t if acc is None else acc + t
    y1 = jnp.maximum(acc + b1, 0.0)                    # (10, TB)

    # fc2
    logits = jnp.dot(w2_ref[...], y1,
                     preferred_element_type=jnp.float32,
                     precision=lax.Precision.HIGHEST) + b2_ref[...]   # (10, TB)

    # log_softmax over the class (sublane) axis; batch stays on lanes.
    mx = jnp.max(logits, axis=0, keepdims=True)
    lse = mx + jnp.log(jnp.sum(jnp.exp(logits - mx), axis=0, keepdims=True))
    out_ref[...] = logits - lse                        # (10, TB) lane-dense store


def net_forward(x_nchw, params, *, tb=512):
    n = x_nchw.shape[0]
    n_pad128 = ((n + 127) // 128) * 128
    tb = min(tb, n_pad128)
    tb = max(128, (tb // 128) * 128)                   # lane-aligned batch tile
    n_pad = pl.cdiv(n, tb) * tb

    x = x_nchw[:, 0, :, :].astype(jnp.float32)         # (N, 28, 28)
    if n_pad != n:
        x = jnp.pad(x, ((0, n_pad - n), (0, 0), (0, 0)))
    xb = jnp.transpose(x, (1, 2, 0))                   # (28, 28, N_pad) batch-last
    xe = xb[:, 0::2, :]                                # (28, 14, N_pad) even columns
    xo = xb[:, 1::2, :]                                # (28, 14, N_pad) odd columns

    c1w = params["conv1_w"].reshape(3, 3).astype(jnp.float32)
    c2w = params["conv2_w"].reshape(3, 3).astype(jnp.float32)
    cb = jnp.stack([params["conv1_b"].reshape(()),
                    params["conv2_b"].reshape(())]).astype(jnp.float32)
    # w1r[i, o, j] = fc1_w[o, i*12 + j]  (row-major flatten over (12, 12))
    w1r = jnp.transpose(params["fc1_w"].reshape(10, 12, 12), (1, 0, 2))  # (12, 10, 12)
    b1 = params["fc1_b"].reshape(10, 1)
    w2 = params["fc2_w"]                                # (10, 10), used class-major as-is
    b2 = params["fc2_b"].reshape(10, 1)

    out = pl.pallas_call(
        _net_kernel,
        out_shape=jax.ShapeDtypeStruct((10, n_pad), jnp.float32),
        grid=(n_pad // tb,),
        in_specs=[
            pl.BlockSpec(memory_space=pltpu.MemorySpace.SMEM),   # conv1 weight (3, 3)
            pl.BlockSpec(memory_space=pltpu.MemorySpace.SMEM),   # conv2 weight (3, 3)
            pl.BlockSpec(memory_space=pltpu.MemorySpace.SMEM),   # conv biases (2,)
            pl.BlockSpec((28, 14, tb), lambda i: (0, 0, i)),     # even image columns
            pl.BlockSpec((28, 14, tb), lambda i: (0, 0, i)),     # odd image columns
            pl.BlockSpec((12, 10, 12), lambda i: (0, 0, 0)),     # fc1 weight (reordered)
            pl.BlockSpec((10, 1), lambda i: (0, 0)),             # fc1 bias
            pl.BlockSpec((10, 10), lambda i: (0, 0)),            # fc2 weight
            pl.BlockSpec((10, 1), lambda i: (0, 0)),             # fc2 bias
        ],
        out_specs=pl.BlockSpec((10, tb), lambda i: (0, i)),      # lane-dense logits
        compiler_params=pltpu.CompilerParams(
            dimension_semantics=("parallel",)),                  # shard batch tiles on v7x
    )(c1w, c2w, cb, xe, xo, w1r, b1, w2, b2)

    return jnp.transpose(out)[:n]                                # (N, 10)


def net_reference(x_nchw, params):
    """Pure-JAX reference (same eval-mode semantics) for verification."""
    x = x_nchw.astype(jnp.float32)
    dn = lax.conv_dimension_numbers(x.shape, params["conv1_w"].shape,
                                    ("NCHW", "OIHW", "NCHW"))
    x = lax.conv_general_dilated(x, params["conv1_w"], (1, 1), "VALID",
                                 dimension_numbers=dn,
                                 precision=lax.Precision.HIGHEST)
    x = jnp.maximum(x + params["conv1_b"].reshape(1, 1, 1, 1), 0.0)
    x = lax.conv_general_dilated(x, params["conv2_w"], (1, 1), "VALID",
                                 dimension_numbers=dn,
                                 precision=lax.Precision.HIGHEST)
    x = jnp.maximum(x + params["conv2_b"].reshape(1, 1, 1, 1), 0.0)
    x = lax.reduce_window(x, -jnp.inf, lax.max, (1, 1, 2, 2), (1, 1, 2, 2), "VALID")
    x = x.reshape(x.shape[0], -1)
    x = jnp.maximum(jnp.dot(x, params["fc1_w"].T, precision=lax.Precision.HIGHEST)
                    + params["fc1_b"], 0.0)
    x = jnp.dot(x, params["fc2_w"].T, precision=lax.Precision.HIGHEST) + params["fc2_b"]
    return jax.nn.log_softmax(x, axis=1)


def init_params(key):
    ks = jax.random.split(key, 8)

    def u(k, shape, fan_in):
        bound = 1.0 / jnp.sqrt(jnp.float32(fan_in))
        return jax.random.uniform(k, shape, jnp.float32, -bound, bound)

    return {
        "conv1_w": u(ks[0], (1, 1, 3, 3), 9),
        "conv1_b": u(ks[1], (1,), 9),
        "conv2_w": u(ks[2], (1, 1, 3, 3), 9),
        "conv2_b": u(ks[3], (1,), 9),
        "fc1_w": u(ks[4], (10, 144), 144),
        "fc1_b": u(ks[5], (10,), 144),
        "fc2_w": u(ks[6], (10, 10), 10),
        "fc2_b": u(ks[7], (10,), 10),
    }


if __name__ == "__main__":
    key = jax.random.PRNGKey(0)
    pkey, xkey = jax.random.split(key)
    params = init_params(pkey)
    x = jax.random.normal(xkey, (2, 1, 28, 28), jnp.float32)  # NCHW, MNIST-sized

    out = net_forward(x, params)
    out = jax.block_until_ready(out)
    assert out.shape == (2, 10)

    ref = net_reference(x, params)
    assert jnp.allclose(out, ref, atol=1e-3, rtol=1e-3), (out, ref)

    print("KERNEL_OK")
</pallas_src>

<mosaic_0001>
module attributes {stable_mosaic.version = 11 : i64} {
  func.func @_net_kernel(%arg0: i32, %arg1: memref<3x3xf32, #tpu.memory_space<smem>>, %arg2: memref<3x3xf32, #tpu.memory_space<smem>>, %arg3: memref<2xf32, #tpu.memory_space<smem>>, %arg4: memref<28x14x128xf32, #tpu.memory_space<vmem>>, %arg5: memref<28x14x128xf32, #tpu.memory_space<vmem>>, %arg6: memref<12x10x12xf32, #tpu.memory_space<vmem>>, %arg7: memref<10x1xf32, #tpu.memory_space<vmem>>, %arg8: memref<10x10xf32, #tpu.memory_space<vmem>>, %arg9: memref<10x1xf32, #tpu.memory_space<vmem>>, %arg10: memref<10x128xf32, #tpu.memory_space<vmem>>) attributes {dimension_semantics = [#tpu.dimension_semantics<parallel>], iteration_bounds = array<i64: 1>, scalar_prefetch = 0 : i64, scratch_operands = 0 : i64, tpu.core_type = #tpu.core_type<tc>, window_params = [{transform_indices = @transform_0, window_bounds = array<i64: 3, 3>}, {transform_indices = @transform_1, window_bounds = array<i64: 3, 3>}, {transform_indices = @transform_2, window_bounds = array<i64: 2>}, {transform_indices = @transform_3, window_bounds = array<i64: 28, 14, 128>}, {transform_indices = @transform_4, window_bounds = array<i64: 28, 14, 128>}, {pipeline_mode = #tpu.pipeline_mode<synchronous>, transform_indices = @transform_5, window_bounds = array<i64: 12, 10, 12>}, {pipeline_mode = #tpu.pipeline_mode<synchronous>, transform_indices = @transform_6, window_bounds = array<i64: 10, 1>}, {pipeline_mode = #tpu.pipeline_mode<synchronous>, transform_indices = @transform_7, window_bounds = array<i64: 10, 10>}, {pipeline_mode = #tpu.pipeline_mode<synchronous>, transform_indices = @transform_8, window_bounds = array<i64: 10, 1>}, {transform_indices = @transform_9, window_bounds = array<i64: 10, 128>}]} {
    %c0 = arith.constant 0 : index
    %c0_0 = arith.constant 0 : index
    %0 = memref.load %arg1[%c0, %c0_0] : memref<3x3xf32, #tpu.memory_space<smem>>
    %c0_1 = arith.constant 0 : index
    %c1 = arith.constant 1 : index
    %1 = memref.load %arg1[%c0_1, %c1] : memref<3x3xf32, #tpu.memory_space<smem>>
    %c0_2 = arith.constant 0 : index
    %c2 = arith.constant 2 : index
    %2 = memref.load %arg1[%c0_2, %c2] : memref<3x3xf32, #tpu.memory_space<smem>>
    %c1_3 = arith.constant 1 : index
    %c0_4 = arith.constant 0 : index
    %3 = memref.load %arg1[%c1_3, %c0_4] : memref<3x3xf32, #tpu.memory_space<smem>>
    %c1_5 = arith.constant 1 : index
    %c1_6 = arith.constant 1 : index
    %4 = memref.load %arg1[%c1_5, %c1_6] : memref<3x3xf32, #tpu.memory_space<smem>>
    %c1_7 = arith.constant 1 : index
    %c2_8 = arith.constant 2 : index
    %5 = memref.load %arg1[%c1_7, %c2_8] : memref<3x3xf32, #tpu.memory_space<smem>>
    %c2_9 = arith.constant 2 : index
    %c0_10 = arith.constant 0 : index
    %6 = memref.load %arg1[%c2_9, %c0_10] : memref<3x3xf32, #tpu.memory_space<smem>>
    %c2_11 = arith.constant 2 : index
    %c1_12 = arith.constant 1 : index
    %7 = memref.load %arg1[%c2_11, %c1_12] : memref<3x3xf32, #tpu.memory_space<smem>>
    %c2_13 = arith.constant 2 : index
    %c2_14 = arith.constant 2 : index
    %8 = memref.load %arg1[%c2_13, %c2_14] : memref<3x3xf32, #tpu.memory_space<smem>>
    %c0_15 = arith.constant 0 : index
    %c0_16 = arith.constant 0 : index
    %9 = memref.load %arg2[%c0_15, %c0_16] : memref<3x3xf32, #tpu.memory_space<smem>>
    %c0_17 = arith.constant 0 : index
    %c1_18 = arith.constant 1 : index
    %10 = memref.load %arg2[%c0_17, %c1_18] : memref<3x3xf32, #tpu.memory_space<smem>>
    %c0_19 = arith.constant 0 : index
    %c2_20 = arith.constant 2 : index
    %11 = memref.load %arg2[%c0_19, %c2_20] : memref<3x3xf32, #tpu.memory_space<smem>>
    %c1_21 = arith.constant 1 : index
    %c0_22 = arith.constant 0 : index
    %12 = memref.load %arg2[%c1_21, %c0_22] : memref<3x3xf32, #tpu.memory_space<smem>>
    %c1_23 = arith.constant 1 : index
    %c1_24 = arith.constant 1 : index
    %13 = memref.load %arg2[%c1_23, %c1_24] : memref<3x3xf32, #tpu.memory_space<smem>>
    %c1_25 = arith.constant 1 : index
    %c2_26 = arith.constant 2 : index
    %14 = memref.load %arg2[%c1_25, %c2_26] : memref<3x3xf32, #tpu.memory_space<smem>>
    %c2_27 = arith.constant 2 : index
    %c0_28 = arith.constant 0 : index
    %15 = memref.load %arg2[%c2_27, %c0_28] : memref<3x3xf32, #tpu.memory_space<smem>>
    %c2_29 = arith.constant 2 : index
    %c1_30 = arith.constant 1 : index
    %16 = memref.load %arg2[%c2_29, %c1_30] : memref<3x3xf32, #tpu.memory_space<smem>>
    %c2_31 = arith.constant 2 : index
    %c2_32 = arith.constant 2 : index
    %17 = memref.load %arg2[%c2_31, %c2_32] : memref<3x3xf32, #tpu.memory_space<smem>>
    %c0_33 = arith.constant 0 : index
    %c0_34 = arith.constant 0 : index
    %c0_35 = arith.constant 0 : index
    %18 = vector.load %arg4[%c0_33, %c0_34, %c0_35] : memref<28x14x128xf32, #tpu.memory_space<vmem>>, vector<28x14x128xf32>
    %c0_36 = arith.constant 0 : index
    %c0_37 = arith.constant 0 : index
    %c0_38 = arith.constant 0 : index
    %19 = vector.load %arg5[%c0_36, %c0_37, %c0_38] : memref<28x14x128xf32, #tpu.memory_space<vmem>>, vector<28x14x128xf32>
    %c0_39 = arith.constant 0 : index
    %20 = memref.load %arg3[%c0_39] : memref<2xf32, #tpu.memory_space<smem>>
    %21 = vector.extract_strided_slice %18 {offsets = [0, 0, 0], sizes = [26, 13, 128], strides = [1, 1, 1]} : vector<28x14x128xf32> to vector<26x13x128xf32>
    %22 = vector.extract_strided_slice %18 {offsets = [0, 1, 0], sizes = [26, 13, 128], strides = [1, 1, 1]} : vector<28x14x128xf32> to vector<26x13x128xf32>
    %23 = vector.extract_strided_slice %19 {offsets = [0, 0, 0], sizes = [26, 13, 128], strides = [1, 1, 1]} : vector<28x14x128xf32> to vector<26x13x128xf32>
    %24 = vector.extract_strided_slice %19 {offsets = [0, 1, 0], sizes = [26, 13, 128], strides = [1, 1, 1]} : vector<28x14x128xf32> to vector<26x13x128xf32>
    %25 = vector.broadcast %0 : f32 to vector<26x13x128xf32>
    %26 = arith.mulf %21, %25 : vector<26x13x128xf32>
    %27 = vector.broadcast %1 : f32 to vector<26x13x128xf32>
    %28 = arith.mulf %23, %27 : vector<26x13x128xf32>
    %29 = arith.addf %26, %28 : vector<26x13x128xf32>
    %30 = vector.broadcast %2 : f32 to vector<26x13x128xf32>
    %31 = arith.mulf %22, %30 : vector<26x13x128xf32>
    %32 = arith.addf %29, %31 : vector<26x13x128xf32>
    %33 = vector.broadcast %0 : f32 to vector<26x13x128xf32>
    %34 = arith.mulf %23, %33 : vector<26x13x128xf32>
    %35 = vector.broadcast %1 : f32 to vector<26x13x128xf32>
    %36 = arith.mulf %22, %35 : vector<26x13x128xf32>
    %37 = arith.addf %34, %36 : vector<26x13x128xf32>
    %38 = vector.broadcast %2 : f32 to vector<26x13x128xf32>
    %39 = arith.mulf %24, %38 : vector<26x13x128xf32>
    %40 = arith.addf %37, %39 : vector<26x13x128xf32>
    %41 = vector.extract_strided_slice %18 {offsets = [1, 0, 0], sizes = [26, 13, 128], strides = [1, 1, 1]} : vector<28x14x128xf32> to vector<26x13x128xf32>
    %42 = vector.extract_strided_slice %18 {offsets = [1, 1, 0], sizes = [26, 13, 128], strides = [1, 1, 1]} : vector<28x14x128xf32> to vector<26x13x128xf32>
    %43 = vector.extract_strided_slice %19 {offsets = [1, 0, 0], sizes = [26, 13, 128], strides = [1, 1, 1]} : vector<28x14x128xf32> to vector<26x13x128xf32>
    %44 = vector.extract_strided_slice %19 {offsets = [1, 1, 0], sizes = [26, 13, 128], strides = [1, 1, 1]} : vector<28x14x128xf32> to vector<26x13x128xf32>
    %45 = vector.broadcast %3 : f32 to vector<26x13x128xf32>
    %46 = arith.mulf %41, %45 : vector<26x13x128xf32>
    %47 = vector.broadcast %4 : f32 to vector<26x13x128xf32>
    %48 = arith.mulf %43, %47 : vector<26x13x128xf32>
    %49 = arith.addf %46, %48 : vector<26x13x128xf32>
    %50 = vector.broadcast %5 : f32 to vector<26x13x128xf32>
    %51 = arith.mulf %42, %50 : vector<26x13x128xf32>
    %52 = arith.addf %49, %51 : vector<26x13x128xf32>
    %53 = vector.broadcast %3 : f32 to vector<26x13x128xf32>
    %54 = arith.mulf %43, %53 : vector<26x13x128xf32>
    %55 = vector.broadcast %4 : f32 to vector<26x13x128xf32>
    %56 = arith.mulf %42, %55 : vector<26x13x128xf32>
    %57 = arith.addf %54, %56 : vector<26x13x128xf32>
    %58 = vector.broadcast %5 : f32 to vector<26x13x128xf32>
    %59 = arith.mulf %44, %58 : vector<26x13x128xf32>
    %60 = arith.addf %57, %59 : vector<26x13x128xf32>
    %61 = arith.addf %32, %52 : vector<26x13x128xf32>
    %62 = arith.addf %40, %60 : vector<26x13x128xf32>
    %63 = vector.extract_strided_slice %18 {offsets = [2, 0, 0], sizes = [26, 13, 128], strides = [1, 1, 1]} : vector<28x14x128xf32> to vector<26x13x128xf32>
    %64 = vector.extract_strided_slice %18 {offsets = [2, 1, 0], sizes = [26, 13, 128], strides = [1, 1, 1]} : vector<28x14x128xf32> to vector<26x13x128xf32>
    %65 = vector.extract_strided_slice %19 {offsets = [2, 0, 0], sizes = [26, 13, 128], strides = [1, 1, 1]} : vector<28x14x128xf32> to vector<26x13x128xf32>
    %66 = vector.extract_strided_slice %19 {offsets = [2, 1, 0], sizes = [26, 13, 128], strides = [1, 1, 1]} : vector<28x14x128xf32> to vector<26x13x128xf32>
    %67 = vector.broadcast %6 : f32 to vector<26x13x128xf32>
    %68 = arith.mulf %63, %67 : vector<26x13x128xf32>
    %69 = vector.broadcast %7 : f32 to vector<26x13x128xf32>
    %70 = arith.mulf %65, %69 : vector<26x13x128xf32>
    %71 = arith.addf %68, %70 : vector<26x13x128xf32>
    %72 = vector.broadcast %8 : f32 to vector<26x13x128xf32>
    %73 = arith.mulf %64, %72 : vector<26x13x128xf32>
    %74 = arith.addf %71, %73 : vector<26x13x128xf32>
    %75 = vector.broadcast %6 : f32 to vector<26x13x128xf32>
    %76 = arith.mulf %65, %75 : vector<26x13x128xf32>
    %77 = vector.broadcast %7 : f32 to vector<26x13x128xf32>
    %78 = arith.mulf %64, %77 : vector<26x13x128xf32>
    %79 = arith.addf %76, %78 : vector<26x13x128xf32>
    %80 = vector.broadcast %8 : f32 to vector<26x13x128xf32>
    %81 = arith.mulf %66, %80 : vector<26x13x128xf32>
    %82 = arith.addf %79, %81 : vector<26x13x128xf32>
    %83 = arith.addf %61, %74 : vector<26x13x128xf32>
    %84 = arith.addf %62, %82 : vector<26x13x128xf32>
    %85 = vector.broadcast %20 : f32 to vector<26x13x128xf32>
    %86 = arith.addf %83, %85 : vector<26x13x128xf32>
    %cst = arith.constant 0.000000e+00 : f32
    %87 = vector.broadcast %cst : f32 to vector<26x13x128xf32>
    %88 = arith.maximumf %86, %87 : vector<26x13x128xf32>
    %89 = vector.broadcast %20 : f32 to vector<26x13x128xf32>
    %90 = arith.addf %84, %89 : vector<26x13x128xf32>
    %cst_40 = arith.constant 0.000000e+00 : f32
    %91 = vector.broadcast %cst_40 : f32 to vector<26x13x128xf32>
    %92 = arith.maximumf %90, %91 : vector<26x13x128xf32>
    %c1_41 = arith.constant 1 : index
    %93 = memref.load %arg3[%c1_41] : memref<2xf32, #tpu.memory_space<smem>>
    %94 = vector.extract_strided_slice %88 {offsets = [0, 0, 0], sizes = [24, 12, 128], strides = [1, 1, 1]} : vector<26x13x128xf32> to vector<24x12x128xf32>
    %95 = vector.extract_strided_slice %88 {offsets = [0, 1, 0], sizes = [24, 12, 128], strides = [1, 1, 1]} : vector<26x13x128xf32> to vector<24x12x128xf32>
    %96 = vector.extract_strided_slice %92 {offsets = [0, 0, 0], sizes = [24, 12, 128], strides = [1, 1, 1]} : vector<26x13x128xf32> to vector<24x12x128xf32>
    %97 = vector.extract_strided_slice %92 {offsets = [0, 1, 0], sizes = [24, 12, 128], strides = [1, 1, 1]} : vector<26x13x128xf32> to vector<24x12x128xf32>
    %98 = vector.broadcast %9 : f32 to vector<24x12x128xf32>
    %99 = arith.mulf %94, %98 : vector<24x12x128xf32>
    %100 = vector.broadcast %10 : f32 to vector<24x12x128xf32>
    %101 = arith.mulf %96, %100 : vector<24x12x128xf32>
    %102 = arith.addf %99, %101 : vector<24x12x128xf32>
    %103 = vector.broadcast %11 : f32 to vector<24x12x128xf32>
    %104 = arith.mulf %95, %103 : vector<24x12x128xf32>
    %105 = arith.addf %102, %104 : vector<24x12x128xf32>
    %106 = vector.broadcast %9 : f32 to vector<24x12x128xf32>
    %107 = arith.mulf %96, %106 : vector<24x12x128xf32>
    %108 = vector.broadcast %10 : f32 to vector<24x12x128xf32>
    %109 = arith.mulf %95, %108 : vector<24x12x128xf32>
    %110 = arith.addf %107, %109 : vector<24x12x128xf32>
    %111 = vector.broadcast %11 : f32 to vector<24x12x128xf32>
    %112 = arith.mulf %97, %111 : vector<24x12x128xf32>
    %113 = arith.addf %110, %112 : vector<24x12x128xf32>
    %114 = vector.extract_strided_slice %88 {offsets = [1, 0, 0], sizes = [24, 12, 128], strides = [1, 1, 1]} : vector<26x13x128xf32> to vector<24x12x128xf32>
    %115 = vector.extract_strided_slice %88 {offsets = [1, 1, 0], sizes = [24, 12, 128], strides = [1, 1, 1]} : vector<26x13x128xf32> to vector<24x12x128xf32>
    %116 = vector.extract_strided_slice %92 {offsets = [1, 0, 0], sizes = [24, 12, 128], strides = [1, 1, 1]} : vector<26x13x128xf32> to vector<24x12x128xf32>
    %117 = vector.extract_strided_slice %92 {offsets = [1, 1, 0], sizes = [24, 12, 128], strides = [1, 1, 1]} : vector<26x13x128xf32> to vector<24x12x128xf32>
    %118 = vector.broadcast %12 : f32 to vector<24x12x128xf32>
    %119 = arith.mulf %114, %118 : vector<24x12x128xf32>
    %120 = vector.broadcast %13 : f32 to vector<24x12x128xf32>
    %121 = arith.mulf %116, %120 : vector<24x12x128xf32>
    %122 = arith.addf %119, %121 : vector<24x12x128xf32>
    %123 = vector.broadcast %14 : f32 to vector<24x12x128xf32>
    %124 = arith.mulf %115, %123 : vector<24x12x128xf32>
    %125 = arith.addf %122, %124 : vector<24x12x128xf32>
    %126 = vector.broadcast %12 : f32 to vector<24x12x128xf32>
    %127 = arith.mulf %116, %126 : vector<24x12x128xf32>
    %128 = vector.broadcast %13 : f32 to vector<24x12x128xf32>
    %129 = arith.mulf %115, %128 : vector<24x12x128xf32>
    %130 = arith.addf %127, %129 : vector<24x12x128xf32>
    %131 = vector.broadcast %14 : f32 to vector<24x12x128xf32>
    %132 = arith.mulf %117, %131 : vector<24x12x128xf32>
    %133 = arith.addf %130, %132 : vector<24x12x128xf32>
    %134 = arith.addf %105, %125 : vector<24x12x128xf32>
    %135 = arith.addf %113, %133 : vector<24x12x128xf32>
    %136 = vector.extract_strided_slice %88 {offsets = [2, 0, 0], sizes = [24, 12, 128], strides = [1, 1, 1]} : vector<26x13x128xf32> to vector<24x12x128xf32>
    %137 = vector.extract_strided_slice %88 {offsets = [2, 1, 0], sizes = [24, 12, 128], strides = [1, 1, 1]} : vector<26x13x128xf32> to vector<24x12x128xf32>
    %138 = vector.extract_strided_slice %92 {offsets = [2, 0, 0], sizes = [24, 12, 128], strides = [1, 1, 1]} : vector<26x13x128xf32> to vector<24x12x128xf32>
    %139 = vector.extract_strided_slice %92 {offsets = [2, 1, 0], sizes = [24, 12, 128], strides = [1, 1, 1]} : vector<26x13x128xf32> to vector<24x12x128xf32>
    %140 = vector.broadcast %15 : f32 to vector<24x12x128xf32>
    %141 = arith.mulf %136, %140 : vector<24x12x128xf32>
    %142 = vector.broadcast %16 : f32 to vector<24x12x128xf32>
    %143 = arith.mulf %138, %142 : vector<24x12x128xf32>
    %144 = arith.addf %141, %143 : vector<24x12x128xf32>
    %145 = vector.broadcast %17 : f32 to vector<24x12x128xf32>
    %146 = arith.mulf %137, %145 : vector<24x12x128xf32>
    %147 = arith.addf %144, %146 : vector<24x12x128xf32>
    %148 = vector.broadcast %15 : f32 to vector<24x12x128xf32>
    %149 = arith.mulf %138, %148 : vector<24x12x128xf32>
    %150 = vector.broadcast %16 : f32 to vector<24x12x128xf32>
    %151 = arith.mulf %137, %150 : vector<24x12x128xf32>
    %152 = arith.addf %149, %151 : vector<24x12x128xf32>
    %153 = vector.broadcast %17 : f32 to vector<24x12x128xf32>
    %154 = arith.mulf %139, %153 : vector<24x12x128xf32>
    %155 = arith.addf %152, %154 : vector<24x12x128xf32>
    %156 = arith.addf %134, %147 : vector<24x12x128xf32>
    %157 = arith.addf %135, %155 : vector<24x12x128xf32>
    %158 = vector.broadcast %93 : f32 to vector<24x12x128xf32>
    %159 = arith.addf %156, %158 : vector<24x12x128xf32>
    %cst_42 = arith.constant 0.000000e+00 : f32
    %160 = vector.broadcast %cst_42 : f32 to vector<24x12x128xf32>
    %161 = arith.maximumf %159, %160 : vector<24x12x128xf32>
    %162 = vector.broadcast %93 : f32 to vector<24x12x128xf32>
    %163 = arith.addf %157, %162 : vector<24x12x128xf32>
    %cst_43 = arith.constant 0.000000e+00 : f32
    %164 = vector.broadcast %cst_43 : f32 to vector<24x12x128xf32>
    %165 = arith.maximumf %163, %164 : vector<24x12x128xf32>
    %166 = arith.maximumf %161, %165 : vector<24x12x128xf32>
    %c0_44 = arith.constant 0 : index
    %c0_45 = arith.constant 0 : index
    %167 = vector.load %arg7[%c0_44, %c0_45] : memref<10x1xf32, #tpu.memory_space<vmem>>, vector<10x1xf32>
    %168 = vector.extract_strided_slice %166 {offsets = [0, 0, 0], sizes = [1, 12, 128], strides = [1, 1, 1]} : vector<24x12x128xf32> to vector<1x12x128xf32>
    %169 = vector.shape_cast %168 : vector<1x12x128xf32> to vector<12x128xf32>
    %170 = vector.extract_strided_slice %166 {offsets = [1, 0, 0], sizes = [1, 12, 128], strides = [1, 1, 1]} : vector<24x12x128xf32> to vector<1x12x128xf32>
    %171 = vector.shape_cast %170 : vector<1x12x128xf32> to vector<12x128xf32>
    %172 = arith.maximumf %169, %171 : vector<12x128xf32>
    %c0_46 = arith.constant 0 : index
    %c0_47 = arith.constant 0 : index
    %c0_48 = arith.constant 0 : index
    %173 = vector.load %arg6[%c0_46, %c0_47, %c0_48] : memref<12x10x12xf32, #tpu.memory_space<vmem>>, vector<1x10x12xf32>
    %174 = vector.shape_cast %173 : vector<1x10x12xf32> to vector<10x12xf32>
    %cst_49 = arith.constant dense<0.000000e+00> : vector<10x128xf32>
    %175 = tpu.matmul %174, %172, %cst_49 {dimension_numbers = #tpu.dot_dimension_numbers<[1], [0], [0], [1], [0, 0, 1, 1], [], []>, precision = #tpu.contract_precision<fp32>} : vector<10x12xf32>, vector<12x128xf32>, vector<10x128xf32> -> vector<10x128xf32>
    %176 = vector.extract_strided_slice %166 {offsets = [2, 0, 0], sizes = [1, 12, 128], strides = [1, 1, 1]} : vector<24x12x128xf32> to vector<1x12x128xf32>
    %177 = vector.shape_cast %176 : vector<1x12x128xf32> to vector<12x128xf32>
    %178 = vector.extract_strided_slice %166 {offsets = [3, 0, 0], sizes = [1, 12, 128], strides = [1, 1, 1]} : vector<24x12x128xf32> to vector<1x12x128xf32>
    %179 = vector.shape_cast %178 : vector<1x12x128xf32> to vector<12x128xf32>
    %180 = arith.maximumf %177, %179 : vector<12x128xf32>
    %c1_50 = arith.constant 1 : index
    %c0_51 = arith.constant 0 : index
    %c0_52 = arith.constant 0 : index
    %181 = vector.load %arg6[%c1_50, %c0_51, %c0_52] : memref<12x10x12xf32, #tpu.memory_space<vmem>>, vector<1x10x12xf32>
    %182 = vector.shape_cast %181 : vector<1x10x12xf32> to vector<10x12xf32>
    %cst_53 = arith.constant dense<0.000000e+00> : vector<10x128xf32>
    %183 = tpu.matmul %182, %180, %cst_53 {dimension_numbers = #tpu.dot_dimension_numbers<[1], [0], [0], [1], [0, 0, 1, 1], [], []>, precision = #tpu.contract_precision<fp32>} : vector<10x12xf32>, vector<12x128xf32>, vector<10x128xf32> -> vector<10x128xf32>
    %184 = arith.addf %175, %183 : vector<10x128xf32>
    %185 = vector.extract_strided_slice %166 {offsets = [4, 0, 0], sizes = [1, 12, 128], strides = [1, 1, 1]} : vector<24x12x128xf32> to vector<1x12x128xf32>
    %186 = vector.shape_cast %185 : vector<1x12x128xf32> to vector<12x128xf32>
    %187 = vector.extract_strided_slice %166 {offsets = [5, 0, 0], sizes = [1, 12, 128], strides = [1, 1, 1]} : vector<24x12x128xf32> to vector<1x12x128xf32>
    %188 = vector.shape_cast %187 : vector<1x12x128xf32> to vector<12x128xf32>
    %189 = arith.maximumf %186, %188 : vector<12x128xf32>
    %c2_54 = arith.constant 2 : index
    %c0_55 = arith.constant 0 : index
    %c0_56 = arith.constant 0 : index
    %190 = vector.load %arg6[%c2_54, %c0_55, %c0_56] : memref<12x10x12xf32, #tpu.memory_space<vmem>>, vector<1x10x12xf32>
    %191 = vector.shape_cast %190 : vector<1x10x12xf32> to vector<10x12xf32>
    %cst_57 = arith.constant dense<0.000000e+00> : vector<10x128xf32>
    %192 = tpu.matmul %191, %189, %cst_57 {dimension_numbers = #tpu.dot_dimension_numbers<[1], [0], [0], [1], [0, 0, 1, 1], [], []>, precision = #tpu.contract_precision<fp32>} : vector<10x12xf32>, vector<12x128xf32>, vector<10x128xf32> -> vector<10x128xf32>
    %193 = arith.addf %184, %192 : vector<10x128xf32>
    %194 = vector.extract_strided_slice %166 {offsets = [6, 0, 0], sizes = [1, 12, 128], strides = [1, 1, 1]} : vector<24x12x128xf32> to vector<1x12x128xf32>
    %195 = vector.shape_cast %194 : vector<1x12x128xf32> to vector<12x128xf32>
    %196 = vector.extract_strided_slice %166 {offsets = [7, 0, 0], sizes = [1, 12, 128], strides = [1, 1, 1]} : vector<24x12x128xf32> to vector<1x12x128xf32>
    %197 = vector.shape_cast %196 : vector<1x12x128xf32> to vector<12x128xf32>
    %198 = arith.maximumf %195, %197 : vector<12x128xf32>
    %c3 = arith.constant 3 : index
    %c0_58 = arith.constant 0 : index
    %c0_59 = arith.constant 0 : index
    %199 = vector.load %arg6[%c3, %c0_58, %c0_59] : memref<12x10x12xf32, #tpu.memory_space<vmem>>, vector<1x10x12xf32>
    %200 = vector.shape_cast %199 : vector<1x10x12xf32> to vector<10x12xf32>
    %cst_60 = arith.constant dense<0.000000e+00> : vector<10x128xf32>
    %201 = tpu.matmul %200, %198, %cst_60 {dimension_numbers = #tpu.dot_dimension_numbers<[1], [0], [0], [1], [0, 0, 1, 1], [], []>, precision = #tpu.contract_precision<fp32>} : vector<10x12xf32>, vector<12x128xf32>, vector<10x128xf32> -> vector<10x128xf32>
    %202 = arith.addf %193, %201 : vector<10x128xf32>
    %203 = vector.extract_strided_slice %166 {offsets = [8, 0, 0], sizes = [1, 12, 128], strides = [1, 1, 1]} : vector<24x12x128xf32> to vector<1x12x128xf32>
    %204 = vector.shape_cast %203 : vector<1x12x128xf32> to vector<12x128xf32>
    %205 = vector.extract_strided_slice %166 {offsets = [9, 0, 0], sizes = [1, 12, 128], strides = [1, 1, 1]} : vector<24x12x128xf32> to vector<1x12x128xf32>
    %206 = vector.shape_cast %205 : vector<1x12x128xf32> to vector<12x128xf32>
    %207 = arith.maximumf %204, %206 : vector<12x128xf32>
    %c4 = arith.constant 4 : index
    %c0_61 = arith.constant 0 : index
    %c0_62 = arith.constant 0 : index
    %208 = vector.load %arg6[%c4, %c0_61, %c0_62] : memref<12x10x12xf32, #tpu.memory_space<vmem>>, vector<1x10x12xf32>
    %209 = vector.shape_cast %208 : vector<1x10x12xf32> to vector<10x12xf32>
    %cst_63 = arith.constant dense<0.000000e+00> : vector<10x128xf32>
    %210 = tpu.matmul %209, %207, %cst_63 {dimension_numbers = #tpu.dot_dimension_numbers<[1], [0], [0], [1], [0, 0, 1, 1], [], []>, precision = #tpu.contract_precision<fp32>} : vector<10x12xf32>, vector<12x128xf32>, vector<10x128xf32> -> vector<10x128xf32>
    %211 = arith.addf %202, %210 : vector<10x128xf32>
    %212 = vector.extract_strided_slice %166 {offsets = [10, 0, 0], sizes = [1, 12, 128], strides = [1, 1, 1]} : vector<24x12x128xf32> to vector<1x12x128xf32>
    %213 = vector.shape_cast %212 : vector<1x12x128xf32> to vector<12x128xf32>
    %214 = vector.extract_strided_slice %166 {offsets = [11, 0, 0], sizes = [1, 12, 128], strides = [1, 1, 1]} : vector<24x12x128xf32> to vector<1x12x128xf32>
    %215 = vector.shape_cast %214 : vector<1x12x128xf32> to vector<12x128xf32>
    %216 = arith.maximumf %213, %215 : vector<12x128xf32>
    %c5 = arith.constant 5 : index
    %c0_64 = arith.constant 0 : index
    %c0_65 = arith.constant 0 : index
    %217 = vector.load %arg6[%c5, %c0_64, %c0_65] : memref<12x10x12xf32, #tpu.memory_space<vmem>>, vector<1x10x12xf32>
    %218 = vector.shape_cast %217 : vector<1x10x12xf32> to vector<10x12xf32>
    %cst_66 = arith.constant dense<0.000000e+00> : vector<10x128xf32>
    %219 = tpu.matmul %218, %216, %cst_66 {dimension_numbers = #tpu.dot_dimension_numbers<[1], [0], [0], [1], [0, 0, 1, 1], [], []>, precision = #tpu.contract_precision<fp32>} : vector<10x12xf32>, vector<12x128xf32>, vector<10x128xf32> -> vector<10x128xf32>
    %220 = arith.addf %211, %219 : vector<10x128xf32>
    %221 = vector.extract_strided_slice %166 {offsets = [12, 0, 0], sizes = [1, 12, 128], strides = [1, 1, 1]} : vector<24x12x128xf32> to vector<1x12x128xf32>
    %222 = vector.shape_cast %221 : vector<1x12x128xf32> to vector<12x128xf32>
    %223 = vector.extract_strided_slice %166 {offsets = [13, 0, 0], sizes = [1, 12, 128], strides = [1, 1, 1]} : vector<24x12x128xf32> to vector<1x12x128xf32>
    %224 = vector.shape_cast %223 : vector<1x12x128xf32> to vector<12x128xf32>
    %225 = arith.maximumf %222, %224 : vector<12x128xf32>
    %c6 = arith.constant 6 : index
    %c0_67 = arith.constant 0 : index
    %c0_68 = arith.constant 0 : index
    %226 = vector.load %arg6[%c6, %c0_67, %c0_68] : memref<12x10x12xf32, #tpu.memory_space<vmem>>, vector<1x10x12xf32>
    %227 = vector.shape_cast %226 : vector<1x10x12xf32> to vector<10x12xf32>
    %cst_69 = arith.constant dense<0.000000e+00> : vector<10x128xf32>
    %228 = tpu.matmul %227, %225, %cst_69 {dimension_numbers = #tpu.dot_dimension_numbers<[1], [0], [0], [1], [0, 0, 1, 1], [], []>, precision = #tpu.contract_precision<fp32>} : vector<10x12xf32>, vector<12x128xf32>, vector<10x128xf32> -> vector<10x128xf32>
    %229 = arith.addf %220, %228 : vector<10x128xf32>
    %230 = vector.extract_strided_slice %166 {offsets = [14, 0, 0], sizes = [1, 12, 128], strides = [1, 1, 1]} : vector<24x12x128xf32> to vector<1x12x128xf32>
    %231 = vector.shape_cast %230 : vector<1x12x128xf32> to vector<12x128xf32>
    %232 = vector.extract_strided_slice %166 {offsets = [15, 0, 0], sizes = [1, 12, 128], strides = [1, 1, 1]} : vector<24x12x128xf32> to vector<1x12x128xf32>
    %233 = vector.shape_cast %232 : vector<1x12x128xf32> to vector<12x128xf32>
    %234 = arith.maximumf %231, %233 : vector<12x128xf32>
    %c7 = arith.constant 7 : index
    %c0_70 = arith.constant 0 : index
    %c0_71 = arith.constant 0 : index
    %235 = vector.load %arg6[%c7, %c0_70, %c0_71] : memref<12x10x12xf32, #tpu.memory_space<vmem>>, vector<1x10x12xf32>
    %236 = vector.shape_cast %235 : vector<1x10x12xf32> to vector<10x12xf32>
    %cst_72 = arith.constant dense<0.000000e+00> : vector<10x128xf32>
    %237 = tpu.matmul %236, %234, %cst_72 {dimension_numbers = #tpu.dot_dimension_numbers<[1], [0], [0], [1], [0, 0, 1, 1], [], []>, precision = #tpu.contract_precision<fp32>} : vector<10x12xf32>, vector<12x128xf32>, vector<10x128xf32> -> vector<10x128xf32>
    %238 = arith.addf %229, %237 : vector<10x128xf32>
    %239 = vector.extract_strided_slice %166 {offsets = [16, 0, 0], sizes = [1, 12, 128], strides = [1, 1, 1]} : vector<24x12x128xf32> to vector<1x12x128xf32>
    %240 = vector.shape_cast %239 : vector<1x12x128xf32> to vector<12x128xf32>
    %241 = vector.extract_strided_slice %166 {offsets = [17, 0, 0], sizes = [1, 12, 128], strides = [1, 1, 1]} : vector<24x12x128xf32> to vector<1x12x128xf32>
    %242 = vector.shape_cast %241 : vector<1x12x128xf32> to vector<12x128xf32>
    %243 = arith.maximumf %240, %242 : vector<12x128xf32>
    %c8 = arith.constant 8 : index
    %c0_73 = arith.constant 0 : index
    %c0_74 = arith.constant 0 : index
    %244 = vector.load %arg6[%c8, %c0_73, %c0_74] : memref<12x10x12xf32, #tpu.memory_space<vmem>>, vector<1x10x12xf32>
    %245 = vector.shape_cast %244 : vector<1x10x12xf32> to vector<10x12xf32>
    %cst_75 = arith.constant dense<0.000000e+00> : vector<10x128xf32>
    %246 = tpu.matmul %245, %243, %cst_75 {dimension_numbers = #tpu.dot_dimension_numbers<[1], [0], [0], [1], [0, 0, 1, 1], [], []>, precision = #tpu.contract_precision<fp32>} : vector<10x12xf32>, vector<12x128xf32>, vector<10x128xf32> -> vector<10x128xf32>
    %247 = arith.addf %238, %246 : vector<10x128xf32>
    %248 = vector.extract_strided_slice %166 {offsets = [18, 0, 0], sizes = [1, 12, 128], strides = [1, 1, 1]} : vector<24x12x128xf32> to vector<1x12x128xf32>
    %249 = vector.shape_cast %248 : vector<1x12x128xf32> to vector<12x128xf32>
    %250 = vector.extract_strided_slice %166 {offsets = [19, 0, 0], sizes = [1, 12, 128], strides = [1, 1, 1]} : vector<24x12x128xf32> to vector<1x12x128xf32>
    %251 = vector.shape_cast %250 : vector<1x12x128xf32> to vector<12x128xf32>
    %252 = arith.maximumf %249, %251 : vector<12x128xf32>
    %c9 = arith.constant 9 : index
    %c0_76 = arith.constant 0 : index
    %c0_77 = arith.constant 0 : index
    %253 = vector.load %arg6[%c9, %c0_76, %c0_77] : memref<12x10x12xf32, #tpu.memory_space<vmem>>, vector<1x10x12xf32>
    %254 = vector.shape_cast %253 : vector<1x10x12xf32> to vector<10x12xf32>
    %cst_78 = arith.constant dense<0.000000e+00> : vector<10x128xf32>
    %255 = tpu.matmul %254, %252, %cst_78 {dimension_numbers = #tpu.dot_dimension_numbers<[1], [0], [0], [1], [0, 0, 1, 1], [], []>, precision = #tpu.contract_precision<fp32>} : vector<10x12xf32>, vector<12x128xf32>, vector<10x128xf32> -> vector<10x128xf32>
    %256 = arith.addf %247, %255 : vector<10x128xf32>
    %257 = vector.extract_strided_slice %166 {offsets = [20, 0, 0], sizes = [1, 12, 128], strides = [1, 1, 1]} : vector<24x12x128xf32> to vector<1x12x128xf32>
    %258 = vector.shape_cast %257 : vector<1x12x128xf32> to vector<12x128xf32>
    %259 = vector.extract_strided_slice %166 {offsets = [21, 0, 0], sizes = [1, 12, 128], strides = [1, 1, 1]} : vector<24x12x128xf32> to vector<1x12x128xf32>
    %260 = vector.shape_cast %259 : vector<1x12x128xf32> to vector<12x128xf32>
    %261 = arith.maximumf %258, %260 : vector<12x128xf32>
    %c10 = arith.constant 10 : index
    %c0_79 = arith.constant 0 : index
    %c0_80 = arith.constant 0 : index
    %262 = vector.load %arg6[%c10, %c0_79, %c0_80] : memref<12x10x12xf32, #tpu.memory_space<vmem>>, vector<1x10x12xf32>
    %263 = vector.shape_cast %262 : vector<1x10x12xf32> to vector<10x12xf32>
    %cst_81 = arith.constant dense<0.000000e+00> : vector<10x128xf32>
    %264 = tpu.matmul %263, %261, %cst_81 {dimension_numbers = #tpu.dot_dimension_numbers<[1], [0], [0], [1], [0, 0, 1, 1], [], []>, precision = #tpu.contract_precision<fp32>} : vector<10x12xf32>, vector<12x128xf32>, vector<10x128xf32> -> vector<10x128xf32>
    %265 = arith.addf %256, %264 : vector<10x128xf32>
    %266 = vector.extract_strided_slice %166 {offsets = [22, 0, 0], sizes = [1, 12, 128], strides = [1, 1, 1]} : vector<24x12x128xf32> to vector<1x12x128xf32>
    %267 = vector.shape_cast %266 : vector<1x12x128xf32> to vector<12x128xf32>
    %268 = vector.extract_strided_slice %166 {offsets = [23, 0, 0], sizes = [1, 12, 128], strides = [1, 1, 1]} : vector<24x12x128xf32> to vector<1x12x128xf32>
    %269 = vector.shape_cast %268 : vector<1x12x128xf32> to vector<12x128xf32>
    %270 = arith.maximumf %267, %269 : vector<12x128xf32>
    %c11 = arith.constant 11 : index
    %c0_82 = arith.constant 0 : index
    %c0_83 = arith.constant 0 : index
    %271 = vector.load %arg6[%c11, %c0_82, %c0_83] : memref<12x10x12xf32, #tpu.memory_space<vmem>>, vector<1x10x12xf32>
    %272 = vector.shape_cast %271 : vector<1x10x12xf32> to vector<10x12xf32>
    %cst_84 = arith.constant dense<0.000000e+00> : vector<10x128xf32>
    %273 = tpu.matmul %272, %270, %cst_84 {dimension_numbers = #tpu.dot_dimension_numbers<[1], [0], [0], [1], [0, 0, 1, 1], [], []>, precision = #tpu.contract_precision<fp32>} : vector<10x12xf32>, vector<12x128xf32>, vector<10x128xf32> -> vector<10x128xf32>
    %274 = arith.addf %265, %273 : vector<10x128xf32>
    %275 = vector.broadcast %167 : vector<10x1xf32> to vector<10x128xf32>
    %276 = arith.addf %274, %275 : vector<10x128xf32>
    %cst_85 = arith.constant 0.000000e+00 : f32
    %277 = vector.broadcast %cst_85 : f32 to vector<10x128xf32>
    %278 = arith.maximumf %276, %277 : vector<10x128xf32>
    %c0_86 = arith.constant 0 : index
    %c0_87 = arith.constant 0 : index
    %279 = vector.load %arg8[%c0_86, %c0_87] : memref<10x10xf32, #tpu.memory_space<vmem>>, vector<10x10xf32>
    %cst_88 = arith.constant dense<0.000000e+00> : vector<10x128xf32>
    %280 = tpu.matmul %279, %278, %cst_88 {dimension_numbers = #tpu.dot_dimension_numbers<[1], [0], [0], [1], [0, 0, 1, 1], [], []>, precision = #tpu.contract_precision<fp32>} : vector<10x10xf32>, vector<10x128xf32>, vector<10x128xf32> -> vector<10x128xf32>
    %c0_89 = arith.constant 0 : index
    %c0_90 = arith.constant 0 : index
    %281 = vector.load %arg9[%c0_89, %c0_90] : memref<10x1xf32, #tpu.memory_space<vmem>>, vector<10x1xf32>
    %282 = vector.broadcast %281 : vector<10x1xf32> to vector<10x128xf32>
    %283 = arith.addf %280, %282 : vector<10x128xf32>
    %cst_91 = arith.constant dense<0xFF800000> : vector<128xf32>
    %284 = vector.multi_reduction <maximumf>, %283, %cst_91 [0] : vector<10x128xf32> to vector<128xf32>
    %285 = vector.shape_cast %284 : vector<128xf32> to vector<1x128xf32>
    %286 = vector.broadcast %285 : vector<1x128xf32> to vector<10x128xf32>
    %287 = arith.subf %283, %286 : vector<10x128xf32>
    %288 = math.exp %287 : vector<10x128xf32>
    %cst_92 = arith.constant dense<0.000000e+00> : vector<128xf32>
    %289 = vector.multi_reduction <add>, %288, %cst_92 [0] : vector<10x128xf32> to vector<128xf32>
    %290 = vector.shape_cast %289 : vector<128xf32> to vector<1x128xf32>
    %291 = math.log %290 : vector<1x128xf32>
    %292 = arith.addf %285, %291 : vector<1x128xf32>
    %293 = vector.broadcast %292 : vector<1x128xf32> to vector<10x128xf32>
    %294 = arith.subf %283, %293 : vector<10x128xf32>
    %c0_93 = arith.constant 0 : index
    %c0_94 = arith.constant 0 : index
    %295 = vector.load %arg10[%c0_93, %c0_94] : memref<10x128xf32, #tpu.memory_space<vmem>>, vector<10x128xf32>
    tpu.vector_store %arg10[%c0_93, %c0_94], %294 {strides = array<i32>} : memref<10x128xf32, #tpu.memory_space<vmem>>, vector<10x128xf32>,
    return
  }
  func.func @transform_0(%arg0: i32) -> (i32, i32) {
    %c0_i32 = arith.constant 0 : i32
    %c0_i32_0 = arith.constant 0 : i32
    %c0_i32_1 = arith.constant 0 : i32
    return %c0_i32, %c0_i32_0 : i32, i32
  }
  func.func @transform_1(%arg0: i32) -> (i32, i32) {
    %c0_i32 = arith.constant 0 : i32
    %c0_i32_0 = arith.constant 0 : i32
    %c0_i32_1 = arith.constant 0 : i32
    return %c0_i32, %c0_i32_0 : i32, i32
  }
  func.func @transform_2(%arg0: i32) -> i32 {
    %c0_i32 = arith.constant 0 : i32
    %c0_i32_0 = arith.constant 0 : i32
    return %c0_i32 : i32
  }
  func.func @transform_3(%arg0: i32) -> (i32, i32, i32) {
    %c0_i32 = arith.constant 0 : i32
    %c0_i32_0 = arith.constant 0 : i32
    %c0_i32_1 = arith.constant 0 : i32
    return %c0_i32, %c0_i32_0, %arg0 : i32, i32, i32
  }
  func.func @transform_4(%arg0: i32) -> (i32, i32, i32) {
    %c0_i32 = arith.constant 0 : i32
    %c0_i32_0 = arith.constant 0 : i32
    %c0_i32_1 = arith.constant 0 : i32
    return %c0_i32, %c0_i32_0, %arg0 : i32, i32, i32
  }
  func.func @transform_5(%arg0: i32) -> (i32, i32, i32) {
    %c0_i32 = arith.constant 0 : i32
    %c0_i32_0 = arith.constant 0 : i32
    %c0_i32_1 = arith.constant 0 : i32
    %c0_i32_2 = arith.constant 0 : i32
    return %c0_i32, %c0_i32_0, %c0_i32_1 : i32, i32, i32
  }
  func.func @transform_6(%arg0: i32) -> (i32, i32) {
    %c0_i32 = arith.constant 0 : i32
    %c0_i32_0 = arith.constant 0 : i32
    %c0_i32_1 = arith.constant 0 : i32
    return %c0_i32, %c0_i32_0 : i32, i32
  }
  func.func @transform_7(%arg0: i32) -> (i32, i32) {
    %c0_i32 = arith.constant 0 : i32
    %c0_i32_0 = arith.constant 0 : i32
    %c0_i32_1 = arith.constant 0 : i32
    return %c0_i32, %c0_i32_0 : i32, i32
  }
  func.func @transform_8(%arg0: i32) -> (i32, i32) {
    %c0_i32 = arith.constant 0 : i32
    %c0_i32_0 = arith.constant 0 : i32
    %c0_i32_1 = arith.constant 0 : i32
    return %c0_i32, %c0_i32_0 : i32, i32
  }
  func.func @transform_9(%arg0: i32) -> (i32, i32) {
    %c0_i32 = arith.constant 0 : i32
    %c0_i32_0 = arith.constant 0 : i32
    return %c0_i32, %arg0 : i32, i32
  }
}

</mosaic_0001>

<bundles_post_ra>
// kernel: tpu_custom_call.1
= control target key start
LH: loop header
LB: loop body
LE: loop exit
PB: predicated region body
PF: predicated region fallthrough
CT: control target
= control target key end

     0   :  { %14 = vsyncpa [#allocation5], 0  ;;  %s22504_s0 = inlined_call_operand.vmem [shape: f32[3,3], index: 0, kind: input, shape index: {}]   ;;  %s22505_s1 = inlined_call_operand.vmem [shape: f32[3,3], index: 1, kind: input, shape index: {}]   ;;  %s22506_s2 = inlined_call_operand.vmem [shape: f32[2], index: 2, kind: input, shape index: {}]   ;;  %s22507_s3 = inlined_call_operand.hbm [shape: f32[28,14,128], index: 3, kind: input, shape index: {}]   ;;  %s22508_s4 = inlined_call_operand.hbm [shape: f32[28,14,128], index: 4, kind: input, shape index: {}]   ;;  %s22509_s5 = inlined_call_operand.vmem [shape: f32[12,10,12], index: 5, kind: input, shape index: {}]   ;;  %s22510_s6 = inlined_call_operand.vmem [shape: f32[10,1], index: 6, kind: input, shape index: {}]   ;;  %s22511_s7 = inlined_call_operand.vmem [shape: f32[10,10], index: 7, kind: input, shape index: {}]   ;;  %s22512_s8 = inlined_call_operand.vmem [shape: f32[10,1], index: 8, kind: input, shape index: {}]   ;;  %s22513_s9 = inlined_call_operand.hbm [shape: f32[10,128], index: 9, kind: output, shape index: {}]  }
   0x1   :  { %15 = vsyncpa [#allocation7], 0 }
   0x2   :  { %16 = vsyncpa [#allocation3], 0 }
   0x3   :  { %17 = vsyncpa [#allocation11], 0  ;;  %s35_s11 = sshll.u32 %s22505_s1, 4  ;;  %s36_s11 = int_to_ptr.vmem [resolvable:$true] %s35_s11 }
   0x4   :  { %18 = vsyncpa [#allocation4], 0  ;;  %s25_s14 = sshll.u32 %s22504_s0, 4  ;;  %s15505_s15 = scalar_lea.vmem %s36_s11, 64  ;;  %s26_s14 = int_to_ptr.vmem [resolvable:$true] %s25_s14 }
   0x5   :  { %p15506_p0 = scmp.ne.s32.totalorder %s36_s11, %s15505_s15  ;;  %p15510_p1 = scmp.lt.s32.totalorder %s36_s11, %s36_s11 }
   0x6   :  { %p15511_p2 = scmp.lt.s32.totalorder %s15505_s15, %s15505_s15 }
   0x8   :  { %p15512_p3 = por %p15511_p2, %p15510_p1 }
   0xa   :  { %p15513_p4 = pnand %p15512_p3, %p15506_p0 }
   0xc   :  { %15516 = shalt.err (!%p15513_p4)
}
   0xd   :  { %s15617_s16 = smov [#allocation6]   ;;  %s15517_s17 = scalar_lea.vmem %s26_s14, 64 }
   0xe   :  { %38 = dma.vmem_to_smem %s36_s11, 64, %s15617_s16, [#allocation7]  }
   0xf   :  { %p15518_p5 = scmp.ne.s32.totalorder %s26_s14, %s15517_s17  ;;  %p15522_p6 = scmp.lt.s32.totalorder %s26_s14, %s26_s14 }
  0x10   :  { %p15523_p7 = scmp.lt.s32.totalorder %s15517_s17, %s15517_s17 }
  0x12   :  { %p15524_p8 = por %p15523_p7, %p15522_p6 }
  0x14   :  { %p15525_p9 = pnand %p15524_p8, %p15518_p5 }
  0x16   :  { %15528 = shalt.err (!%p15525_p9)
}
  0x17   :  { %s15618_s1 = smov [#allocation2]   ;;  %s45_s19 = sshll.u32 %s22506_s2, 4  ;;  %s46_s19 = int_to_ptr.vmem [resolvable:$true] %s45_s19 }
  0x18   :  { %28 = dma.vmem_to_smem %s26_s14, 64, %s15618_s1, [#allocation5]  }
  0x19   :  { %s15529_s20 = scalar_lea.vmem %s46_s19, 16  ;;  %p15534_p11 = scmp.lt.s32.totalorder %s46_s19, %s46_s19 }
  0x1a   :  { %p15530_p10 = scmp.ne.s32.totalorder %s46_s19, %s15529_s20  ;;  %p15535_p12 = scmp.lt.s32.totalorder %s15529_s20, %s15529_s20 }
  0x1c   :  { %p15536_p13 = por %p15535_p12, %p15534_p11 }
  0x1e   :  { %p15537_p0 = pnand %p15536_p13, %p15530_p10 }
  0x20   :  { %15540 = shalt.err (!%p15537_p0)
}
  0x21   :  { %s15619_s21 = smov [#allocation8]   ;;  %s15620_s22 = smov [#allocation9]  }
  0x22   :  { %48 = dma.vmem_to_smem %s46_s19, 16, %s15619_s21, [#allocation7]  }
  0x23   :  { %s54_s23 = sshll.u32 %s15620_s22, 4  ;;  %s15541_s26 = scalar_lea.hbm %s22507_s3, 7168  ;;  %s55_s23 = int_to_ptr.vmem [resolvable:$true] %s54_s23 }
  0x24   :  { %p15542_p1 = scmp.ne.s32.totalorder %s22507_s3, %s15541_s26  ;;  %p15545_p2 = scmp.lt.u32.totalorder %s15541_s26, %s22507_s3 }
  0x26   :  { %p15547_p3 = pnand %p15545_p2, %p15542_p1 }
  0x28   :  { %15550 = shalt.err (!%p15547_p3)
}
  0x29   :  { %s15551_s30 = scalar_lea.vmem %s55_s23, 7168  ;;  %p15556_p5 = scmp.lt.s32.totalorder %s55_s23, %s55_s23 }
  0x2a   :  { %p15552_p4 = scmp.ne.s32.totalorder %s55_s23, %s15551_s30  ;;  %p15557_p6 = scmp.lt.s32.totalorder %s15551_s30, %s15551_s30 }
  0x2c   :  { %p15558_p7 = por %p15557_p6, %p15556_p5 }
  0x2e   :  { %p15559_p8 = pnand %p15558_p7, %p15552_p4 }
  0x30   :  { %15562 = shalt.err (!%p15559_p8)
}
  0x31   :  { %s15621_s10 = smov 128   ;;  %s15622_s11 = smov 8  }
  0x32   :  { %60 = dma.hbm_to_vmem [thread:$0]  %s22507_s3, 7168, %s55_s23, [#allocation3], %s15621_s10, %s15621_s10, %s15622_s11  }
  0x33   :  { %s15623_s14 = smov [#allocation10]   ;;  %s15563_s1 = scalar_lea.hbm %s22508_s4, 7168 }
  0x34   :  { %s66_s15 = sshll.u32 %s15623_s14, 4  ;;  %p15564_p9 = scmp.ne.s32.totalorder %s22508_s4, %s15563_s1  ;;  %s67_s15 = int_to_ptr.vmem [resolvable:$true] %s66_s15 }
  0x35   :  { %p15567_p10 = scmp.lt.u32.totalorder %s15563_s1, %s22508_s4 }
  0x37   :  { %p15569_p11 = pnand %p15567_p10, %p15564_p9 }
  0x39   :  { %15572 = shalt.err (!%p15569_p11)
}
  0x3a   :  { %s15573_s21 = scalar_lea.vmem %s67_s15, 7168  ;;  %p15578_p13 = scmp.lt.s32.totalorder %s67_s15, %s67_s15 }
  0x3b   :  { %p15574_p12 = scmp.ne.s32.totalorder %s67_s15, %s15573_s21  ;;  %p15579_p0 = scmp.lt.s32.totalorder %s15573_s21, %s15573_s21 }
  0x3d   :  { %p15580_p1 = por %p15579_p0, %p15578_p13 }
  0x3f   :  { %p15581_p2 = pnand %p15580_p1, %p15574_p12 }
  0x41   :  { %15584 = shalt.err (!%p15581_p2)
}
  0x42   :  { %72 = dma.hbm_to_vmem [thread:$0]  %s22508_s4, 7168, %s67_s15, [#allocation11], %s15621_s10, %s15621_s10, %s15622_s11  }
  0x43   :  { %15607 = dma.done.wait [#allocation5], 64  }
  0x44   :  { %15608 = vsyncadd [#allocation5], 4294967232 }
  0x45   :  { %15609 = dma.done.wait [#allocation7], 80  }
  0x46   :  { %15610 = vsyncadd [#allocation7], 4294967216 }
  0x47   :  { %15611 = dma.done.wait [#allocation3], 7168  }
  0x48   :  { %15612 = vsyncadd [#allocation3], 4294960128 }
  0x49   :  { %15613 = dma.done.wait [#allocation11], 7168  }
  0x4a   :  { %15614 = vsyncadd [#allocation11], 4294960128 }
  0x4b   :  { %96 = sfence }
  0x4c   :  { %s97_s23 = sld [smem:[#allocation2]]  ;;  %s14053_s24 = sld [smem:[#allocation2 + $0x1]]  ;;  %v119_v0 = vld [vmem:[#allocation9 + $0x20] sm:$0xff]  ;;  %v120_v1 = vld [vmem:[#allocation9 + $0x28] sm:$0x3f]  ;;  %v15715_v2 = vld [vmem:[#allocation9 + $0x30] sm:$0xff] }
  0x4d   :  { %s14054_s25 = sld [smem:[#allocation2 + $0x2]]  ;;  %v15717_v3 = vld [vmem:[#allocation9 + $0x38] sm:$0x3f]  ;;  %v15719_v4 = vld [vmem:[#allocation9 + $0x40] sm:$0xff]  ;;  %v15721_v5 = vld [vmem:[#allocation9 + $0x48] sm:$0x3f] }
  0x4e   :  { %v15727_v8 = vld [vmem:[#allocation9 + $0x50] sm:$0xff]  ;;  %v15729_v9 = vld [vmem:[#allocation9 + $0x58] sm:$0x3f]  ;;  %v15745_v18 = vld [vmem:[#allocation10 + $0x20] sm:$0xff]  ;;  %vm491_vm0 = vcmask 1046528   ;;  %s15855_s4 = sld [smem:[#allocation2 + $0x80]] }
  0x4f   :  { %22843 = vst [vmem:[#allocation20_spill] sm:$0xff] %v15729_v9  ;;  %v15747_v19 = vld [vmem:[#allocation10 + $0x28] sm:$0x3f]  ;;  %v15749_v20 = vld [vmem:[#allocation10 + $0x30] sm:$0xff]  ;;  %v15763_v25 = vld [vmem:[#allocation10 + $0x38] sm:$0x3f] }
  0x50   :  { %v15765_v26 = vld [vmem:[#allocation10 + $0x40] sm:$0xff]  ;;  %v15767_v27 = vld [vmem:[#allocation10 + $0x48] sm:$0x3f]  ;;  %v15776_v32 = vld [vmem:[#allocation10 + $0x50] sm:$0xff]  ;;  %s15857_s26 = sld [smem:[#allocation2 + $0x81]]  ;;  %s15885_s27 = sld [smem:[#allocation2 + $0x82]] }
  0x51   :  { %v15778_v33 = vld [vmem:[#allocation10 + $0x58] sm:$0x3f]  ;;  %s16023_s28 = sld [smem:[#allocation2 + $0x100]]  ;;  %s16033_s2 = sld [smem:[#allocation2 + $0x101]]  ;;  %vm7266_vm1 = vcmask 1043456   ;;  %vm7259_vm2 = vcmask 97280  }
  0x52   :  { %v15723_v6 = vstv %s97_s23  ;;  %v15725_v7 = vstv %s14053_s24  ;;  %s16037_s29 = sld [smem:[#allocation2 + $0x102]]  ;;  %s16227_s30 = sld [smem:[#allocation6]]  ;;  %vm13491_vm3 = vcmask 80896   ;;  %vm13498_vm4 = vcmask 1041408  }
  0x53   :  { %22841 = vst [vmem:[#allocation18_spill] sm:$0xff] %v15723_v6  ;;  %22842 = vst [vmem:[#allocation19_spill] sm:$0xff] %v15725_v7  ;;  %v233_v10 = vmul.f32 %v15723_v6, %v119_v0  ;;  %v234_v11 = vmul.f32 %v15723_v6, %v120_v1  ;;  %v235_v12 = vmul.f32 %v15723_v6, %v15715_v2  ;;  %v15751_v21 = vstv %s14054_s25  ;;  %s16229_s12 = sld [smem:[#allocation6 + $0x1]]  ;;  %s16239_s13 = sld [smem:[#allocation6 + $0x2]] }
  0x54   :  { %v236_v13 = vmul.f32 %v15723_v6, %v15717_v3  ;;  %v237_v14 = vmul.f32 %v15723_v6, %v15719_v4  ;;  %v238_v15 = vmul.f32 %v15723_v6, %v15721_v5  ;;  %v239_v16 = vmul.f32 %v15723_v6, %v15727_v8  ;;  %22844 = vst [vmem:[#allocation21_spill] sm:$0xff] %v15751_v21  ;;  %s16241_s14 = sld [smem:[#allocation8]]  ;;  %s16371_s16 = sld [smem:[#allocation6 + $0x81]] }
  0x55   :  { %v240_v17 = vmul.f32 %v15723_v6, %v15729_v9  ;;  %v15754_v22 = vmul.f32 %v15725_v7, %v119_v0  ;;  %v15757_v23 = vmul.f32 %v15725_v7, %v120_v1  ;;  %v15761_v24 = vmul.f32 %v15725_v7, %v15715_v2  ;;  %s16355_s15 = sld [smem:[#allocation6 + $0x80]]  ;;  %s16389_s17 = sld [smem:[#allocation6 + $0x82]] }
  0x56   :  { %v286_v28 = vmul.f32 %v15725_v7, %v15745_v18  ;;  %v287_v29 = vmul.f32 %v15725_v7, %v15747_v19  ;;  %v288_v30 = vmul.f32 %v15725_v7, %v15749_v20  ;;  %v391_v31 = vmul.f32 %v15751_v21, %v119_v0  ;;  %s16454_s1 = sld [smem:[#allocation6 + $0x100]]  ;;  %s16460_s0 = sld [smem:[#allocation6 + $0x101]] }
  0x57   :  { %v289_v34 = vmul.f32 %v15725_v7, %v15763_v25  ;;  %v290_v35 = vmul.f32 %v15725_v7, %v15765_v26  ;;  %v291_v36 = vmul.f32 %v15725_v7, %v15767_v27  ;;  %v392_v37 = vmul.f32 %v15751_v21, %v120_v1  ;;  %s16467_s18 = sld [smem:[#allocation6 + $0x102]]  ;;  %s16545_s19 = sld [smem:[#allocation8 + $0x1]] }
  0x58   :  { %v292_v38 = vmul.f32 %v15725_v7, %v15776_v32  ;;  %v293_v39 = vmul.f32 %v15725_v7, %v15778_v33  ;;  %v338_v40 = vadd.f32 %v286_v28, %v233_v10  ;;  %v339_v41 = vadd.f32 %v287_v29, %v234_v11 }
  0x59   :  { %v340_v42 = vadd.f32 %v288_v30, %v235_v12  ;;  %v341_v43 = vadd.f32 %v289_v34, %v236_v13  ;;  %v342_v44 = vadd.f32 %v290_v35, %v237_v14  ;;  %v343_v45 = vadd.f32 %v291_v36, %v238_v15 }
  0x5a   :  { %v344_v46 = vadd.f32 %v292_v38, %v239_v16  ;;  %v345_v47 = vadd.f32 %v293_v39, %v240_v17  ;;  %v393_v48 = vmul.f32 %v15751_v21, %v15715_v2  ;;  %v394_v49 = vmul.f32 %v15751_v21, %v15717_v3 }
  0x5b   :  { %v395_v50 = vmul.f32 %v15751_v21, %v15719_v4  ;;  %v396_v51 = vmul.f32 %v15751_v21, %v15721_v5  ;;  %v397_v52 = vmul.f32 %v15751_v21, %v15727_v8  ;;  %v398_v53 = vmul.f32 %v15751_v21, %v15729_v9 }
  0x5c   :  { %v498_v54 = vrot.slane %v391_v31, 1  ;;  %v499_v55 = vrot.slane %v392_v37, 1  ;;  %v501_v56 = vrot.slane %v393_v48, 1  ;;  %v502_v57 = vrot.slane %v394_v49, 1 }
  0x5d   :  { %v504_v58 = vrot.slane %v395_v50, 1  ;;  %v505_v59 = vrot.slane %v396_v51, 1  ;;  %v507_v60 = vrot.slane %v397_v52, 1  ;;  %v508_v62 = vrot.slane %v398_v53, 1 }
  0x5e   :  { %v500_v61 = vsel %vm491_vm0, %v498_v54, %v499_v55  ;;  %v15804_v63 = vadd.f32 %v499_v55, %v339_v41  ;;  %v678_v0 = vmul.f32 %v15723_v6, %v15745_v18  ;;  %v503_v1 = vsel %vm491_vm0, %v501_v56, %v502_v57 }
  0x5f   :  { %v506_v10 = vsel %vm491_vm0, %v504_v58, %v505_v59  ;;  %v15810_v11 = vadd.f32 %v500_v61, %v338_v40  ;;  %v15812_v12 = vadd.f32 %v502_v57, %v341_v43  ;;  %v509_v13 = vsel %vm491_vm0, %v507_v60, %v508_v62 }
  0x60   :  { %v15815_v14 = vadd.f32 %v503_v1, %v340_v42  ;;  %v15817_v15 = vadd.f32 %v506_v10, %v342_v44  ;;  %v15819_v16 = vadd.f32 %v505_v59, %v343_v45  ;;  %v15821_v17 = vadd.f32 %v509_v13, %v344_v46 }
  0x61   :  { %v15823_v28 = vadd.f32 %v508_v62, %v345_v47  ;;  %v679_v29 = vmul.f32 %v15723_v6, %v15747_v19  ;;  %v680_v30 = vmul.f32 %v15723_v6, %v15749_v20  ;;  %v681_v31 = vmul.f32 %v15723_v6, %v15763_v25 }
  0x62   :  { %v682_v34 = vmul.f32 %v15723_v6, %v15765_v26  ;;  %v683_v35 = vmul.f32 %v15723_v6, %v15767_v27  ;;  %v684_v36 = vmul.f32 %v15723_v6, %v15776_v32  ;;  %v685_v37 = vmul.f32 %v15723_v6, %v15778_v33 }
  0x63   :  { %v733_v38 = vmul.f32 %v15725_v7, %v15717_v3  ;;  %v734_v39 = vmul.f32 %v15725_v7, %v15719_v4  ;;  %v735_v40 = vmul.f32 %v15725_v7, %v15721_v5  ;;  %v736_v41 = vmul.f32 %v15725_v7, %v15727_v8 }
  0x64   :  { %v737_v42 = vmul.f32 %v15725_v7, %v15729_v9  ;;  %v836_v43 = vrot.slane %v15754_v22, 1  ;;  %v837_v44 = vrot.slane %v15757_v23, 1  ;;  %v839_v45 = vrot.slane %v15761_v24, 1 }
  0x65   :  { %v840_v46 = vrot.slane %v733_v38, 1  ;;  %v842_v47 = vrot.slane %v734_v39, 1  ;;  %v843_v48 = vrot.slane %v735_v40, 1  ;;  %v845_v50 = vrot.slane %v736_v41, 1 }
  0x66   :  { %v838_v49 = vsel %vm491_vm0, %v836_v43, %v837_v44  ;;  %v846_v51 = vrot.slane %v737_v42, 1  ;;  %v965_v52 = vadd.f32 %v837_v44, %v679_v29  ;;  %v1016_v60 = vmul.f32 %v15751_v21, %v15745_v18  ;;  %v15887_v44 = vld [vmem:[#allocation9 + $0x60] sm:$0xff] }
  0x67   :  { %v841_v53 = vsel %vm491_vm0, %v839_v45, %v840_v46  ;;  %v844_v54 = vsel %vm491_vm0, %v842_v47, %v843_v48  ;;  %v964_v55 = vadd.f32 %v838_v49, %v678_v0  ;;  %v967_v56 = vadd.f32 %v840_v46, %v681_v31  ;;  %22845 = vst [vmem:[#allocation22_spill] sm:$0xff] %v15887_v44  ;;  %v15889_v45 = vld [vmem:[#allocation9 + $0x68] sm:$0x3f] }
  0x68   :  { %v847_v22 = vsel %vm491_vm0, %v845_v50, %v846_v51  ;;  %v966_v23 = vadd.f32 %v841_v53, %v680_v30  ;;  %v968_v24 = vadd.f32 %v844_v54, %v682_v34  ;;  %v969_v57 = vadd.f32 %v843_v48, %v683_v35  ;;  %v15908_v54 = vld [vmem:[#allocation10 + $0x60] sm:$0xff] }
  0x69   :  { %v970_v58 = vadd.f32 %v847_v22, %v684_v36  ;;  %v971_v59 = vadd.f32 %v846_v51, %v685_v37  ;;  %v1017_v61 = vmul.f32 %v15751_v21, %v15747_v19  ;;  %v1018_v62 = vmul.f32 %v15751_v21, %v15749_v20 }
  0x6a   :  { %v1019_v0 = vmul.f32 %v15751_v21, %v15763_v25  ;;  %v1020_v1 = vmul.f32 %v15751_v21, %v15765_v26  ;;  %v1021_v10 = vmul.f32 %v15751_v21, %v15767_v27  ;;  %v1022_v13 = vmul.f32 %v15751_v21, %v15776_v32 }
  0x6b   :  { %v1023_v18 = vmul.f32 %v15751_v21, %v15778_v33  ;;  %v1122_v29 = vrot.slane %v1016_v60, 1  ;;  %v1123_v19 = vrot.slane %v1017_v61, 1  ;;  %v1125_v30 = vrot.slane %v1018_v62, 1 }
  0x6c   :  { %v1126_v31 = vrot.slane %v1019_v0, 1  ;;  %v1128_v34 = vrot.slane %v1020_v1, 1  ;;  %v1129_v35 = vrot.slane %v1021_v10, 1  ;;  %v1131_v37 = vrot.slane %v1022_v13, 1 }
  0x6d   :  { %v1124_v36 = vsel %vm491_vm0, %v1122_v29, %v1123_v19  ;;  %v1132_v38 = vrot.slane %v1023_v18, 1  ;;  %v15877_v39 = vadd.f32 %v1123_v19, %v965_v52  ;;  %v15903_v52 = vstv %s15855_s4 }
  0x6e   :  { %v1127_v40 = vsel %vm491_vm0, %v1125_v30, %v1126_v31  ;;  %v1130_v41 = vsel %vm491_vm0, %v1128_v34, %v1129_v35  ;;  %v15881_v42 = vadd.f32 %v1124_v36, %v964_v55  ;;  %v15883_v43 = vadd.f32 %v1126_v31, %v967_v56  ;;  %22850 = vst [vmem:[#allocation27_spill] sm:$0xff] %v15903_v52  ;;  %v15910_v55 = vld [vmem:[#allocation10 + $0x68] sm:$0x3f] }
  0x6f   :  { %v1133_v46 = vsel %vm491_vm0, %v1131_v37, %v1132_v38  ;;  %v15892_v47 = vadd.f32 %v1127_v40, %v966_v23  ;;  %v15894_v48 = vadd.f32 %v1130_v41, %v968_v24  ;;  %v15896_v49 = vadd.f32 %v1129_v35, %v969_v57 }
  0x70   :  { %v15898_v50 = vadd.f32 %v1133_v46, %v970_v58  ;;  %v15900_v51 = vadd.f32 %v1132_v38, %v971_v59  ;;  %v15906_v53 = vstv %s15857_s26  ;;  %v1303_v56 = vmul.f32 %v15903_v52, %v15715_v2 }
  0x71   :  { %22846 = vst [vmem:[#allocation23_spill] sm:$0xff] %v15894_v48  ;;  %22847 = vst [vmem:[#allocation24_spill] sm:$0xff] %v15896_v49  ;;  %v1304_v22 = vmul.f32 %v15903_v52, %v15717_v3  ;;  %v1305_v23 = vmul.f32 %v15903_v52, %v15719_v4  ;;  %v1306_v24 = vmul.f32 %v15903_v52, %v15721_v5  ;;  %v15945_v40 = vstv %s15885_s27 }
  0x72   :  { %22848 = vst [vmem:[#allocation25_spill] sm:$0xff] %v15898_v50  ;;  %22849 = vst [vmem:[#allocation26_spill] sm:$0xff] %v15900_v51  ;;  %v1307_v57 = vmul.f32 %v15903_v52, %v15727_v8  ;;  %v1308_v58 = vmul.f32 %v15903_v52, %v15729_v9  ;;  %v1309_v59 = vmul.f32 %v15903_v52, %v15887_v44 }
  0x73   :  { %22851 = vst [vmem:[#allocation28_spill] sm:$0xff] %v15906_v53  ;;  %v1310_v60 = vmul.f32 %v15903_v52, %v15889_v45  ;;  %v1356_v61 = vmul.f32 %v15906_v53, %v15749_v20  ;;  %v1357_v62 = vmul.f32 %v15906_v53, %v15763_v25  ;;  %v1358_v0 = vmul.f32 %v15906_v53, %v15765_v26 }
  0x74   :  { %v1359_v1 = vmul.f32 %v15906_v53, %v15767_v27  ;;  %v1360_v10 = vmul.f32 %v15906_v53, %v15776_v32  ;;  %v1361_v13 = vmul.f32 %v15906_v53, %v15778_v33  ;;  %v1362_v18 = vmul.f32 %v15906_v53, %v15908_v54  ;;  %22852 = vst [vmem:[#allocation29_spill] sm:$0xff] %v15945_v40 }
  0x75   :  { %v1363_v29 = vmul.f32 %v15906_v53, %v15910_v55  ;;  %v1408_v19 = vadd.f32 %v1356_v61, %v1303_v56  ;;  %v1409_v30 = vadd.f32 %v1357_v62, %v1304_v22  ;;  %v1410_v31 = vadd.f32 %v1358_v0, %v1305_v23 }
  0x76   :  { %v1411_v34 = vadd.f32 %v1359_v1, %v1306_v24  ;;  %v1412_v35 = vadd.f32 %v1360_v10, %v1307_v57  ;;  %v1413_v36 = vadd.f32 %v1361_v13, %v1308_v58  ;;  %v1414_v37 = vadd.f32 %v1362_v18, %v1309_v59 }
  0x77   :  { %v1415_v38 = vadd.f32 %v1363_v29, %v1310_v60  ;;  %v1747_v41 = vmul.f32 %v15903_v52, %v15749_v20  ;;  %v1748_v46 = vmul.f32 %v15903_v52, %v15763_v25  ;;  %v1749_v21 = vmul.f32 %v15903_v52, %v15765_v26 }
  0x78   :  { %v1461_v56 = vmul.f32 %v15945_v40, %v15715_v2  ;;  %v1462_v22 = vmul.f32 %v15945_v40, %v15717_v3  ;;  %v1463_v23 = vmul.f32 %v15945_v40, %v15719_v4  ;;  %v1464_v24 = vmul.f32 %v15945_v40, %v15721_v5 }
  0x79   :  { %v1465_v57 = vmul.f32 %v15945_v40, %v15727_v8  ;;  %v1466_v58 = vmul.f32 %v15945_v40, %v15729_v9  ;;  %v1467_v59 = vmul.f32 %v15945_v40, %v15887_v44  ;;  %v1468_v60 = vmul.f32 %v15945_v40, %v15889_v45 }
  0x7a   :  { %v1567_v61 = vrot.slane %v1461_v56, 1  ;;  %v1568_v62 = vrot.slane %v1462_v22, 1  ;;  %v1570_v0 = vrot.slane %v1463_v23, 1  ;;  %v1571_v1 = vrot.slane %v1464_v24, 1 }
  0x7b   :  { %v1573_v10 = vrot.slane %v1465_v57, 1  ;;  %v1574_v13 = vrot.slane %v1466_v58, 1  ;;  %v1576_v18 = vrot.slane %v1467_v59, 1  ;;  %v1577_v29 = vrot.slane %v1468_v60, 1 }
  0x7c   :  { %v1569_v7 = vsel %vm491_vm0, %v1567_v61, %v1568_v62  ;;  %v1572_v6 = vsel %vm491_vm0, %v1570_v0, %v1571_v1  ;;  %v15971_v51 = vadd.f32 %v1568_v62, %v1409_v30  ;;  %v15973_v50 = vadd.f32 %v1571_v1, %v1411_v34 }
  0x7d   :  { %v1575_v49 = vsel %vm491_vm0, %v1573_v10, %v1574_v13  ;;  %v1578_v48 = vsel %vm491_vm0, %v1576_v18, %v1577_v29  ;;  %v1695_v56 = vadd.f32 %v1569_v7, %v1408_v19  ;;  %v15977_v22 = vadd.f32 %v1572_v6, %v1410_v31 }
  0x7e   :  { %v15979_v23 = vadd.f32 %v1575_v49, %v1412_v35  ;;  %v15981_v24 = vadd.f32 %v1574_v13, %v1413_v36  ;;  %v15983_v57 = vadd.f32 %v1578_v48, %v1414_v37  ;;  %v15985_v58 = vadd.f32 %v1577_v29, %v1415_v38 }
  0x7f   :  { %v1750_v30 = vmul.f32 %v15903_v52, %v15767_v27  ;;  %v1751_v34 = vmul.f32 %v15903_v52, %v15776_v32  ;;  %v1752_v59 = vmul.f32 %v15903_v52, %v15778_v33  ;;  %v1753_v6 = vmul.f32 %v15903_v52, %v15908_v54 }
  0x80   :  { %v1754_v7 = vmul.f32 %v15903_v52, %v15910_v55  ;;  %v1799_v48 = vmul.f32 %v15906_v53, %v15715_v2  ;;  %v1800_v49 = vmul.f32 %v15906_v53, %v15717_v3  ;;  %v1801_v19 = vmul.f32 %v15906_v53, %v15719_v4 }
  0x81   :  { %v1802_v31 = vmul.f32 %v15906_v53, %v15721_v5  ;;  %v1803_v35 = vmul.f32 %v15906_v53, %v15727_v8  ;;  %v1804_v36 = vmul.f32 %v15906_v53, %v15729_v9  ;;  %v1805_v37 = vmul.f32 %v15906_v53, %v15887_v44 }
  0x82   :  { %v1806_v2 = vmul.f32 %v15906_v53, %v15889_v45  ;;  %v1905_v38 = vrot.slane %v1799_v48, 1  ;;  %v1906_v3 = vrot.slane %v1800_v49, 1  ;;  %v1908_v60 = vrot.slane %v1801_v19, 1 }
  0x83   :  { %v1909_v61 = vrot.slane %v1802_v31, 1  ;;  %v1911_v62 = vrot.slane %v1803_v35, 1  ;;  %v1912_v0 = vrot.slane %v1804_v36, 1  ;;  %v1914_v1 = vrot.slane %v1805_v37, 1 }
  0x84   :  { %v1907_v10 = vsel %vm491_vm0, %v1905_v38, %v1906_v3  ;;  %v1915_v13 = vrot.slane %v1806_v2, 1  ;;  %v2034_v18 = vadd.f32 %v1906_v3, %v1748_v46  ;;  %v2085_v29 = vmul.f32 %v15945_v40, %v15749_v20 }
  0x85   :  { %v1910_v52 = vsel %vm491_vm0, %v1908_v60, %v1909_v61  ;;  %v1913_v44 = vsel %vm491_vm0, %v1911_v62, %v1912_v0  ;;  %v2033_v9 = vadd.f32 %v1907_v10, %v1747_v41  ;;  %v2036_v53 = vadd.f32 %v1909_v61, %v1750_v30 }
  0x86   :  { %v1916_v48 = vsel %vm491_vm0, %v1914_v1, %v1915_v13  ;;  %v2035_v49 = vadd.f32 %v1910_v52, %v1749_v21  ;;  %v2037_v19 = vadd.f32 %v1913_v44, %v1751_v34  ;;  %v2038_v31 = vadd.f32 %v1912_v0, %v1752_v59 }
  0x87   :  { %v2039_v35 = vadd.f32 %v1916_v48, %v1753_v6  ;;  %v2040_v36 = vadd.f32 %v1915_v13, %v1754_v7  ;;  %v2086_v37 = vmul.f32 %v15945_v40, %v15763_v25  ;;  %v2087_v46 = vmul.f32 %v15945_v40, %v15765_v26 }
  0x88   :  { %v2088_v20 = vmul.f32 %v15945_v40, %v15767_v27  ;;  %v2089_v41 = vmul.f32 %v15945_v40, %v15776_v32  ;;  %v2090_v21 = vmul.f32 %v15945_v40, %v15778_v33  ;;  %v2091_v44 = vmul.f32 %v15945_v40, %v15908_v54 }
  0x89   :  { %v2092_v25 = vmul.f32 %v15945_v40, %v15910_v55  ;;  %v2191_v52 = vrot.slane %v2085_v29, 1  ;;  %v2192_v30 = vrot.slane %v2086_v37, 1  ;;  %v2194_v34 = vrot.slane %v2087_v46, 1 }
  0x8a   :  { %v2195_v59 = vrot.slane %v2088_v20, 1  ;;  %v2197_v6 = vrot.slane %v2089_v41, 1  ;;  %v2198_v7 = vrot.slane %v2090_v21, 1  ;;  %v2200_v2 = vrot.slane %v2091_v44, 1  ;;  %v22862_v21 = vld [vmem:[#allocation20_spill] sm:$0xff] }
  0x8b   :  { %v2193_v38 = vsel %vm491_vm0, %v2191_v52, %v2192_v30  ;;  %v2201_v3 = vrot.slane %v2092_v25, 1  ;;  %v2320_v60 = vadd.f32 %v2192_v30, %v2034_v18  ;;  %v16041_v61 = vadd.f32 %v1695_v56, %v15810_v11  ;;  %v22863_v25 = vld [vmem:[#allocation22_spill] sm:$0xff] }
  0x8c   :  { %v2196_v62 = vsel %vm491_vm0, %v2194_v34, %v2195_v59  ;;  %v2199_v0 = vsel %vm491_vm0, %v2197_v6, %v2198_v7  ;;  %v2319_v1 = vadd.f32 %v2193_v38, %v2033_v9  ;;  %v2322_v10 = vadd.f32 %v2195_v59, %v2036_v53 }
  0x8d   :  { %v2202_v13 = vsel %vm491_vm0, %v2200_v2, %v2201_v3  ;;  %v2321_v29 = vadd.f32 %v2196_v62, %v2035_v49  ;;  %v2323_v48 = vadd.f32 %v2199_v0, %v2037_v19  ;;  %v2324_v37 = vadd.f32 %v2198_v7, %v2038_v31  ;;  %v16113_v19 = vld [vmem:[#allocation10 + $0x78] sm:$0x3f] }
  0x8e   :  { %v2325_v46 = vadd.f32 %v2202_v13, %v2039_v35  ;;  %v2326_v20 = vadd.f32 %v2201_v3, %v2040_v36  ;;  %v16048_v41 = vadd.f32 %v15971_v51, %v15804_v63  ;;  %v16052_v11 = vadd.f32 %v15977_v22, %v15815_v14  ;;  %v16083_v51 = vld [vmem:[#allocation9 + $0x70] sm:$0xff]  ;;  %v22853_v22 = vld [vmem:[#allocation23_spill] sm:$0xff] }
  0x8f   :  { %v16056_v9 = vadd.f32 %v15973_v50, %v15812_v12  ;;  %v16060_v53 = vadd.f32 %v15979_v23, %v15817_v15  ;;  %v16064_v56 = vadd.f32 %v15981_v24, %v15819_v16  ;;  %v16068_v63 = vadd.f32 %v15983_v57, %v15821_v17  ;;  %v16085_v16 = vld [vmem:[#allocation9 + $0x78] sm:$0x3f] }
  0x90   :  { %v16072_v14 = vadd.f32 %v15985_v58, %v15823_v28  ;;  %v16075_v12 = vadd.f32 %v2319_v1, %v15881_v42  ;;  %v16078_v50 = vadd.f32 %v2320_v60, %v15877_v39  ;;  %v16081_v15 = vadd.f32 %v2321_v29, %v15892_v47  ;;  %v22854_v28 = vld [vmem:[#allocation24_spill] sm:$0xff]  ;;  %v22855_v42 = vld [vmem:[#allocation25_spill] sm:$0xff]  ;;  %v22857_v39 = vld [vmem:[#allocation26_spill] sm:$0xff] }
  0x91   :  { %v16088_v17 = vadd.f32 %v2322_v10, %v15883_v43  ;;  %v16091_v23 = vadd.f32 %v2323_v48, %v22853_v22  ;;  %v16094_v24 = vadd.f32 %v2324_v37, %v22854_v28  ;;  %v16097_v57 = vadd.f32 %v2325_v46, %v22855_v42  ;;  %v16111_v43 = vld [vmem:[#allocation10 + $0x70] sm:$0xff] }
  0x92   :  { %v16100_v58 = vadd.f32 %v2326_v20, %v22857_v39  ;;  %v16103_v47 = vstv %s16023_s28  ;;  %v16106_v18 = vstv %s16033_s2  ;;  %v16109_v49 = vstv %s16037_s29 }
  0x93   :  { %22856 = vst [vmem:[#allocation23_spill] sm:$0xff] %v16097_v57  ;;  %22859 = vst [vmem:[#allocation25_spill] sm:$0xff] %v16103_v47  ;;  %v2476_v31 = vmul.f32 %v16103_v47, %v15719_v4  ;;  %v2477_v35 = vmul.f32 %v16103_v47, %v15721_v5  ;;  %v2478_v36 = vmul.f32 %v16103_v47, %v15727_v8 }
  0x94   :  { %22858 = vst [vmem:[#allocation24_spill] sm:$0xff] %v16100_v58  ;;  %22860 = vst [vmem:[#allocation26_spill] sm:$0xff] %v16106_v18  ;;  %v2479_v44 = vmul.f32 %v16103_v47, %v22862_v21  ;;  %v2480_v52 = vmul.f32 %v16103_v47, %v22863_v25  ;;  %v2481_v30 = vmul.f32 %v16103_v47, %v15889_v45 }
  0x95   :  { %22861 = vst [vmem:[#allocation30_spill] sm:$0xff] %v16109_v49  ;;  %v2482_v34 = vmul.f32 %v16103_v47, %v16083_v51  ;;  %v2483_v59 = vmul.f32 %v16103_v47, %v16085_v16  ;;  %v2529_v6 = vmul.f32 %v16106_v18, %v15765_v26  ;;  %v2530_v7 = vmul.f32 %v16106_v18, %v15767_v27 }
  0x96   :  { %v2531_v2 = vmul.f32 %v16106_v18, %v15776_v32  ;;  %v2532_v38 = vmul.f32 %v16106_v18, %v15778_v33  ;;  %v2533_v3 = vmul.f32 %v16106_v18, %v15908_v54  ;;  %v2534_v60 = vmul.f32 %v16106_v18, %v15910_v55 }
  0x97   :  { %v2535_v62 = vmul.f32 %v16106_v18, %v16111_v43  ;;  %v2536_v0 = vmul.f32 %v16106_v18, %v16113_v19  ;;  %v2581_v1 = vadd.f32 %v2529_v6, %v2476_v31  ;;  %v2582_v10 = vadd.f32 %v2530_v7, %v2477_v35 }
  0x98   :  { %v2583_v13 = vadd.f32 %v2531_v2, %v2478_v36  ;;  %v2584_v29 = vadd.f32 %v2532_v38, %v2479_v44  ;;  %v2585_v48 = vadd.f32 %v2533_v3, %v2480_v52  ;;  %v2586_v37 = vadd.f32 %v2534_v60, %v2481_v30 }
  0x99   :  { %v2587_v46 = vadd.f32 %v2535_v62, %v2482_v34  ;;  %v2588_v20 = vadd.f32 %v2536_v0, %v2483_v59  ;;  %v2634_v22 = vmul.f32 %v16109_v49, %v15719_v4  ;;  %v2635_v28 = vmul.f32 %v16109_v49, %v15721_v5 }
  0x9a   :  { %v2636_v42 = vmul.f32 %v16109_v49, %v15727_v8  ;;  %v2637_v39 = vmul.f32 %v16109_v49, %v22862_v21  ;;  %v2638_v31 = vmul.f32 %v16109_v49, %v22863_v25  ;;  %v2639_v35 = vmul.f32 %v16109_v49, %v15889_v45 }
  0x9b   :  { %v2640_v36 = vmul.f32 %v16109_v49, %v16083_v51  ;;  %v2641_v44 = vmul.f32 %v16109_v49, %v16085_v16  ;;  %v2740_v52 = vrot.slane %v2634_v22, 1  ;;  %v2741_v30 = vrot.slane %v2635_v28, 1 }
  0x9c   :  { %v2743_v34 = vrot.slane %v2636_v42, 1  ;;  %v2744_v59 = vrot.slane %v2637_v39, 1  ;;  %v2746_v6 = vrot.slane %v2638_v31, 1  ;;  %v2747_v7 = vrot.slane %v2639_v35, 1 }
  0x9d   :  { %v2749_v2 = vrot.slane %v2640_v36, 1  ;;  %v2750_v38 = vrot.slane %v2641_v44, 1  ;;  %v2742_v3 = vsel %vm491_vm0, %v2740_v52, %v2741_v30  ;;  %v16165_v62 = vadd.f32 %v2741_v30, %v2582_v10 }
  0x9e   :  { %v2745_v60 = vsel %vm491_vm0, %v2743_v34, %v2744_v59  ;;  %v16167_v0 = vadd.f32 %v2744_v59, %v2584_v29  ;;  %v2748_v40 = vsel %vm491_vm0, %v2746_v6, %v2747_v7  ;;  %v16171_v22 = vadd.f32 %v2742_v3, %v2581_v1 }
  0x9f   :  { %v2751_v58 = vsel %vm491_vm0, %v2749_v2, %v2750_v38  ;;  %v16173_v28 = vadd.f32 %v2745_v60, %v2583_v13  ;;  %v16175_v42 = vadd.f32 %v2748_v40, %v2585_v48  ;;  %v16177_v39 = vadd.f32 %v2747_v7, %v2586_v37 }
  0xa0   :  { %v16179_v31 = vadd.f32 %v2751_v58, %v2587_v46  ;;  %v16181_v35 = vadd.f32 %v2750_v38, %v2588_v20  ;;  %v2920_v10 = vmul.f32 %v16103_v47, %v15765_v26  ;;  %v2921_v29 = vmul.f32 %v16103_v47, %v15767_v27 }
  0xa1   :  { %v2922_v1 = vmul.f32 %v16103_v47, %v15776_v32  ;;  %v2923_v13 = vmul.f32 %v16103_v47, %v15778_v33  ;;  %v2924_v40 = vmul.f32 %v16103_v47, %v15908_v54  ;;  %v2925_v58 = vmul.f32 %v16103_v47, %v15910_v55 }
  0xa2   :  { %v2926_v48 = vmul.f32 %v16103_v47, %v16111_v43  ;;  %v2927_v37 = vmul.f32 %v16103_v47, %v16113_v19  ;;  %v2972_v46 = vmul.f32 %v16106_v18, %v15719_v4  ;;  %v2973_v20 = vmul.f32 %v16106_v18, %v15721_v5 }
  0xa3   :  { %v2974_v36 = vmul.f32 %v16106_v18, %v15727_v8  ;;  %v2975_v44 = vmul.f32 %v16106_v18, %v22862_v21  ;;  %v2976_v52 = vmul.f32 %v16106_v18, %v22863_v25  ;;  %v2977_v30 = vmul.f32 %v16106_v18, %v15889_v45 }
  0xa4   :  { %v2978_v34 = vmul.f32 %v16106_v18, %v16083_v51  ;;  %v2979_v4 = vmul.f32 %v16106_v18, %v16085_v16  ;;  %v3078_v59 = vrot.slane %v2972_v46, 1  ;;  %v3079_v5 = vrot.slane %v2973_v20, 1 }
  0xa5   :  { %v3081_v6 = vrot.slane %v2974_v36, 1  ;;  %v3082_v7 = vrot.slane %v2975_v44, 1  ;;  %v3084_v8 = vrot.slane %v2976_v52, 1  ;;  %v3085_v2 = vrot.slane %v2977_v30, 1 }
  0xa6   :  { %v3087_v38 = vrot.slane %v2978_v34, 1  ;;  %v3088_v21 = vrot.slane %v2979_v4, 1  ;;  %v3080_v3 = vsel %vm491_vm0, %v3078_v59, %v3079_v5  ;;  %v3207_v60 = vadd.f32 %v3079_v5, %v2921_v29 }
  0xa7   :  { %v3083_v25 = vsel %vm491_vm0, %v3081_v6, %v3082_v7  ;;  %v3209_v45 = vadd.f32 %v3082_v7, %v2923_v13  ;;  %v3086_v47 = vsel %vm491_vm0, %v3084_v8, %v3085_v2  ;;  %v3206_v57 = vadd.f32 %v3080_v3, %v2920_v10 }
  0xa8   :  { %v3089_v51 = vsel %vm491_vm0, %v3087_v38, %v3088_v21  ;;  %v3208_v16 = vadd.f32 %v3083_v25, %v2922_v1  ;;  %v3210_v46 = vadd.f32 %v3086_v47, %v2924_v40  ;;  %v3211_v20 = vadd.f32 %v3085_v2, %v2925_v58 }
  0xa9   :  { %v3212_v36 = vadd.f32 %v3089_v51, %v2926_v48  ;;  %v3213_v44 = vadd.f32 %v3088_v21, %v2927_v37  ;;  %v3258_v52 = vmul.f32 %v16109_v49, %v15765_v26  ;;  %v3259_v30 = vmul.f32 %v16109_v49, %v15767_v27 }
  0xaa   :  { %v3260_v29 = vmul.f32 %v16109_v49, %v15776_v32  ;;  %v3261_v13 = vmul.f32 %v16109_v49, %v15778_v33  ;;  %v3262_v47 = vmul.f32 %v16109_v49, %v15908_v54  ;;  %v3263_v10 = vmul.f32 %v16109_v49, %v15910_v55 }
  0xab   :  { %v3264_v26 = vmul.f32 %v16109_v49, %v16111_v43  ;;  %v3265_v27 = vmul.f32 %v16109_v49, %v16113_v19  ;;  %v3364_v32 = vrot.slane %v3258_v52, 1  ;;  %v3365_v33 = vrot.slane %v3259_v30, 1 }
  0xac   :  { %v3367_v1 = vrot.slane %v3260_v29, 1  ;;  %v3368_v40 = vrot.slane %v3261_v13, 1  ;;  %v3370_v58 = vrot.slane %v3262_v47, 1  ;;  %v3371_v48 = vrot.slane %v3263_v10, 1 }
  0xad   :  { %v3373_v54 = vrot.slane %v3264_v26, 1  ;;  %v3374_v37 = vrot.slane %v3265_v27, 1  ;;  %v3366_v55 = vsel %vm491_vm0, %v3364_v32, %v3365_v33  ;;  %v3493_v43 = vadd.f32 %v3365_v33, %v3207_v60 }
  0xae   :  { %v3369_v34 = vsel %vm491_vm0, %v3367_v1, %v3368_v40  ;;  %v3495_v4 = vadd.f32 %v3368_v40, %v3209_v45  ;;  %v3372_v19 = vsel %vm491_vm0, %v3370_v58, %v3371_v48  ;;  %v3492_v5 = vadd.f32 %v3366_v55, %v3206_v57 }
  0xaf   :  { %v3375_v59 = vsel %vm491_vm0, %v3373_v54, %v3374_v37  ;;  %v3494_v6 = vadd.f32 %v3369_v34, %v3208_v16  ;;  %v3496_v7 = vadd.f32 %v3372_v19, %v3210_v46  ;;  %v3497_v8 = vadd.f32 %v3371_v48, %v3211_v20 }
  0xb0   :  { %v3498_v2 = vadd.f32 %v3375_v59, %v3212_v36  ;;  %v3499_v38 = vadd.f32 %v3374_v37, %v3213_v44  ;;  %v3544_v21 = vadd.f32 %v16171_v22, %v16041_v61  ;;  %v3545_v3 = vadd.f32 %v16165_v62, %v16048_v41 }
  0xb1   :  { %v3546_v25 = vadd.f32 %v16173_v28, %v16052_v11  ;;  %v3547_v57 = vadd.f32 %v16167_v0, %v16056_v9  ;;  %v3548_v60 = vadd.f32 %v16175_v42, %v16060_v53  ;;  %v3549_v45 = vadd.f32 %v16177_v39, %v16064_v56  ;;  %v22864_v28 = vld [vmem:[#allocation23_spill] sm:$0xff]  ;;  %v22865_v42 = vld [vmem:[#allocation24_spill] sm:$0xff] }
  0xb2   :  { %v3550_v61 = vadd.f32 %v16179_v31, %v16068_v63  ;;  %v3551_v41 = vadd.f32 %v16181_v35, %v16072_v14  ;;  %v3596_v62 = vadd.f32 %v3492_v5, %v16075_v12  ;;  %v3597_v11 = vadd.f32 %v3493_v43, %v16078_v50 }
  0xb3   :  { %v3598_v22 = vadd.f32 %v3494_v6, %v16081_v15  ;;  %v3599_v9 = vadd.f32 %v3495_v4, %v16088_v17  ;;  %v3600_v0 = vadd.f32 %v3496_v7, %v16091_v23  ;;  %v3601_v53 = vadd.f32 %v3497_v8, %v16094_v24 }
  0xb4   :  { %v3602_v56 = vadd.f32 %v3498_v2, %v22864_v28  ;;  %v3603_v39 = vadd.f32 %v3499_v38, %v22865_v42  ;;  %v16272_v63 = vstv %s16241_s14  ;;  %v16275_v31 = vstv %s16227_s30 }
  0xb5   :  { %22866 = vst [vmem:[#allocation20_spill] sm:$0xff] %v16272_v63  ;;  %22867 = vst [vmem:[#allocation22_spill] sm:$0xff] %v16275_v31  ;;  %v16278_v14 = vstv %s16229_s12  ;;  %v16281_v12 = vstv %s16239_s13  ;;  %v3649_v50 = vadd.f32 %v16272_v63, %v3544_v21  ;;  %v3650_v15 = vadd.f32 %v16272_v63, %v3545_v3 }
  0xb6   :  { %22868 = vst [vmem:[#allocation23_spill] sm:$0xff] %v16278_v14  ;;  %22869 = vst [vmem:[#allocation24_spill] sm:$0xff] %v16281_v12  ;;  %v3651_v17 = vadd.f32 %v16272_v63, %v3546_v25  ;;  %v3652_v23 = vadd.f32 %v16272_v63, %v3547_v57  ;;  %v3653_v24 = vadd.f32 %v16272_v63, %v3548_v60 }
  0xb7   :  { %v3654_v35 = vadd.f32 %v16272_v63, %v3549_v45  ;;  %v3655_v51 = vadd.f32 %v16272_v63, %v3550_v61  ;;  %v3656_v16 = vadd.f32 %v16272_v63, %v3551_v41  ;;  %v16291_v46 = vmax.f32 %v3649_v50, 0.0 }
  0xb8   :  { %v16293_v20 = vmax.f32 %v3650_v15, 0.0  ;;  %v16295_v36 = vmax.f32 %v3651_v17, 0.0  ;;  %v16297_v44 = vmax.f32 %v3652_v23, 0.0  ;;  %v16299_v52 = vmax.f32 %v3653_v24, 0.0 }
  0xb9   :  { %22870 = vst [vmem:[#allocation31_spill] sm:$0xff] %v16291_v46  ;;  %v16301_v30 = vmax.f32 %v3654_v35, 0.0  ;;  %v16303_v29 = vmax.f32 %v3655_v51, 0.0  ;;  %v16305_v13 = vmax.f32 %v3656_v16, 0.0  ;;  %v3753_v47 = vadd.f32 %v16272_v63, %v3596_v62 }
  0xba   :  { %22871 = vst [vmem:[#allocation32_spill] sm:$0xff] %v16293_v20  ;;  %22872 = vst [vmem:[#allocation33_spill] sm:$0xff] %v16295_v36  ;;  %v3754_v10 = vadd.f32 %v16272_v63, %v3597_v11  ;;  %v3755_v26 = vadd.f32 %v16272_v63, %v3598_v22  ;;  %v3756_v27 = vadd.f32 %v16272_v63, %v3599_v9 }
  0xbb   :  { %22873 = vst [vmem:[#allocation34_spill] sm:$0xff] %v16297_v44  ;;  %22874 = vst [vmem:[#allocation35_spill] sm:$0xff] %v16299_v52  ;;  %v3757_v32 = vadd.f32 %v16272_v63, %v3600_v0  ;;  %v3758_v33 = vadd.f32 %v16272_v63, %v3601_v53  ;;  %v3759_v1 = vadd.f32 %v16272_v63, %v3602_v56  ;;  %v16315_v58 = vmax.f32 %v3753_v47, 0.0 }
  0xbc   :  { %22875 = vst [vmem:[#allocation36_spill] sm:$0xff] %v16301_v30  ;;  %22876 = vst [vmem:[#allocation37_spill] sm:$0xff] %v16303_v29  ;;  %v3760_v40 = vadd.f32 %v16272_v63, %v3603_v39  ;;  %v16317_v48 = vmax.f32 %v3754_v10, 0.0  ;;  %v16319_v54 = vmax.f32 %v3755_v26, 0.0  ;;  %v16321_v37 = vmax.f32 %v3756_v27, 0.0 }
  0xbd   :  { %22877 = vst [vmem:[#allocation38_spill] sm:$0xff] %v16305_v13  ;;  %22878 = vst [vmem:[#allocation39_spill] sm:$0xff] %v16315_v58  ;;  %v16323_v55 = vmax.f32 %v3757_v32, 0.0  ;;  %v16325_v34 = vmax.f32 %v3758_v33, 0.0  ;;  %v16327_v43 = vmax.f32 %v3759_v1, 0.0  ;;  %v3859_v19 = vmul.f32 %v16275_v31, %v16291_v46 }
  0xbe   :  { %22879 = vst [vmem:[#allocation40_spill] sm:$0xff] %v16317_v48  ;;  %22880 = vst [vmem:[#allocation41_spill] sm:$0xff] %v16319_v54  ;;  %v16329_v4 = vmax.f32 %v3760_v40, 0.0  ;;  %v3860_v59 = vmul.f32 %v16275_v31, %v16293_v20  ;;  %v3861_v5 = vmul.f32 %v16275_v31, %v16295_v36  ;;  %v3862_v6 = vmul.f32 %v16275_v31, %v16297_v44 }
  0xbf   :  { %22881 = vst [vmem:[#allocation42_spill] sm:$0xff] %v16321_v37  ;;  %22882 = vst [vmem:[#allocation43_spill] sm:$0xff] %v16323_v55  ;;  %v3908_v7 = vmul.f32 %v16278_v14, %v16315_v58  ;;  %v3909_v8 = vmul.f32 %v16278_v14, %v16317_v48  ;;  %v3910_v2 = vmul.f32 %v16278_v14, %v16319_v54 }
  0xc0   :  { %22883 = vst [vmem:[#allocation44_spill] sm:$0xff] %v16325_v34  ;;  %22884 = vst [vmem:[#allocation45_spill] sm:$0xff] %v16327_v43  ;;  %v3911_v38 = vmul.f32 %v16278_v14, %v16321_v37  ;;  %v4005_v21 = vmul.f32 %v16281_v12, %v16291_v46  ;;  %v4006_v3 = vmul.f32 %v16281_v12, %v16293_v20 }
  0xc1   :  { %22885 = vst [vmem:[#allocation46_spill] sm:$0xff] %v16329_v4  ;;  %v4007_v25 = vmul.f32 %v16281_v12, %v16295_v36  ;;  %v4008_v57 = vmul.f32 %v16281_v12, %v16297_v44  ;;  %v3956_v60 = vadd.f32 %v3908_v7, %v3859_v19  ;;  %v3957_v45 = vadd.f32 %v3909_v8, %v3860_v59 }
  0xc2   :  { %v3958_v61 = vadd.f32 %v3910_v2, %v3861_v5  ;;  %v3959_v41 = vadd.f32 %v3911_v38, %v3862_v6  ;;  %v4103_v62 = vrot.slane %v4005_v21, 1  ;;  %v4104_v11 = vrot.slane %v4006_v3, 1 }
  0xc3   :  { %v4106_v22 = vrot.slane %v4007_v25, 1  ;;  %v4107_v9 = vrot.slane %v4008_v57, 1  ;;  %v4269_v0 = vmul.f32 %v16275_v31, %v16315_v58  ;;  %v4270_v53 = vmul.f32 %v16275_v31, %v16317_v48 }
  0xc4   :  { %v4271_v28 = vmul.f32 %v16275_v31, %v16319_v54  ;;  %v4272_v56 = vmul.f32 %v16275_v31, %v16321_v37  ;;  %v4105_v42 = vsel %vm491_vm0, %v4103_v62, %v4104_v11  ;;  %v16367_v50 = vadd.f32 %v4104_v11, %v3957_v45 }
  0xc5   :  { %v4108_v39 = vsel %vm491_vm0, %v4106_v22, %v4107_v9  ;;  %v16369_v15 = vadd.f32 %v4107_v9, %v3959_v41  ;;  %v16373_v17 = vadd.f32 %v4105_v42, %v3956_v60  ;;  %v4317_v24 = vmul.f32 %v16278_v14, %v16291_v46 }
  0xc6   :  { %v16375_v23 = vadd.f32 %v4108_v39, %v3958_v61  ;;  %v4318_v35 = vmul.f32 %v16278_v14, %v16293_v20  ;;  %v4319_v51 = vmul.f32 %v16278_v14, %v16295_v36  ;;  %v4320_v16 = vmul.f32 %v16278_v14, %v16297_v44 }
  0xc7   :  { %v4581_v47 = vmul.f32 %v16281_v12, %v16315_v58  ;;  %v4582_v10 = vmul.f32 %v16281_v12, %v16317_v48  ;;  %v4415_v26 = vrot.slane %v4317_v24, 1  ;;  %v4583_v32 = vmul.f32 %v16281_v12, %v16319_v54  ;;  %v22901_v48 = vld [vmem:[#allocation21_spill] sm:$0xff] }
  0xc8   :  { %v4416_v27 = vrot.slane %v4318_v35, 1  ;;  %v4584_v33 = vmul.f32 %v16281_v12, %v16321_v37  ;;  %v4418_v1 = vrot.slane %v4319_v51, 1  ;;  %v4419_v40 = vrot.slane %v4320_v16, 1  ;;  %v22908_v12 = vld [vmem:[#allocation29_spill] sm:$0xff] }
  0xc9   :  { %v4679_v19 = vrot.slane %v4581_v47, 1  ;;  %v4680_v59 = vrot.slane %v4582_v10, 1  ;;  %v4682_v7 = vrot.slane %v4583_v32, 1  ;;  %v16402_v45 = vstv %s16355_s15 }
  0xca   :  { %v4417_v5 = vsel %vm491_vm0, %v4415_v26, %v4416_v27  ;;  %v4534_v6 = vadd.f32 %v4416_v27, %v4270_v53  ;;  %v4683_v8 = vrot.slane %v4584_v33, 1  ;;  %v4420_v2 = vsel %vm491_vm0, %v4418_v1, %v4419_v40  ;;  %22886 = vst [vmem:[#allocation47_spill] sm:$0xff] %v16402_v45 }
  0xcb   :  { %v4533_v38 = vadd.f32 %v4417_v5, %v4269_v0  ;;  %v4536_v21 = vadd.f32 %v4419_v40, %v4272_v56  ;;  %v4681_v3 = vsel %vm491_vm0, %v4679_v19, %v4680_v59  ;;  %v4535_v25 = vadd.f32 %v4420_v2, %v4271_v28 }
  0xcc   :  { %v4684_v57 = vsel %vm491_vm0, %v4682_v7, %v4683_v8  ;;  %v16399_v60 = vadd.f32 %v4680_v59, %v4534_v6  ;;  %v4846_v62 = vmul.f32 %v16402_v45, %v16295_v36  ;;  %v4847_v11 = vmul.f32 %v16402_v45, %v16297_v44 }
  0xcd   :  { %v16404_v61 = vadd.f32 %v4681_v3, %v4533_v38  ;;  %v16406_v41 = vadd.f32 %v4683_v8, %v4536_v21  ;;  %v16412_v22 = vadd.f32 %v4684_v57, %v4535_v25  ;;  %v4848_v9 = vmul.f32 %v16402_v45, %v16299_v52 }
  0xce   :  { %v4849_v0 = vmul.f32 %v16402_v45, %v16301_v30  ;;  %v16419_v53 = vstv %s16371_s16  ;;  %v16430_v24 = vstv %s16389_s17  ;;  %v5256_v35 = vmul.f32 %v16402_v45, %v16319_v54 }
  0xcf   :  { %22887 = vst [vmem:[#allocation48_spill] sm:$0xff] %v16419_v53  ;;  %v4895_v28 = vmul.f32 %v16419_v53, %v16319_v54  ;;  %v4896_v56 = vmul.f32 %v16419_v53, %v16321_v37  ;;  %v4897_v42 = vmul.f32 %v16419_v53, %v16323_v55  ;;  %v4898_v39 = vmul.f32 %v16419_v53, %v16325_v34 }
  0xd0   :  { %22888 = vst [vmem:[#allocation49_spill] sm:$0xff] %v16430_v24  ;;  %v5257_v51 = vmul.f32 %v16402_v45, %v16321_v37  ;;  %v5258_v16 = vmul.f32 %v16402_v45, %v16323_v55  ;;  %v4992_v32 = vmul.f32 %v16430_v24, %v16295_v36  ;;  %v4993_v33 = vmul.f32 %v16430_v24, %v16297_v44 }
  0xd1   :  { %v4943_v47 = vadd.f32 %v4895_v28, %v4846_v62  ;;  %v4944_v10 = vadd.f32 %v4896_v56, %v4847_v11  ;;  %v4945_v26 = vadd.f32 %v4897_v42, %v4848_v9  ;;  %v4946_v27 = vadd.f32 %v4898_v39, %v4849_v0 }
  0xd2   :  { %v4994_v1 = vmul.f32 %v16430_v24, %v16299_v52  ;;  %v4995_v40 = vmul.f32 %v16430_v24, %v16301_v30  ;;  %v5259_v19 = vmul.f32 %v16402_v45, %v16325_v34  ;;  %v5304_v59 = vmul.f32 %v16419_v53, %v16295_v36 }
  0xd3   :  { %v5305_v5 = vmul.f32 %v16419_v53, %v16297_v44  ;;  %v5306_v6 = vmul.f32 %v16419_v53, %v16299_v52  ;;  %v5090_v7 = vrot.slane %v4992_v32, 1  ;;  %v5091_v8 = vrot.slane %v4993_v33, 1 }
  0xd4   :  { %v5093_v2 = vrot.slane %v4994_v1, 1  ;;  %v5094_v38 = vrot.slane %v4995_v40, 1  ;;  %v5307_v21 = vmul.f32 %v16419_v53, %v16301_v30  ;;  %v5402_v3 = vrot.slane %v5304_v59, 1 }
  0xd5   :  { %v5403_v25 = vrot.slane %v5305_v5, 1  ;;  %v5405_v57 = vrot.slane %v5306_v6, 1  ;;  %v5092_v62 = vsel %vm491_vm0, %v5090_v7, %v5091_v8  ;;  %v5209_v9 = vadd.f32 %v5091_v8, %v4944_v10 }
  0xd6   :  { %v5095_v11 = vsel %vm491_vm0, %v5093_v2, %v5094_v38  ;;  %v5211_v0 = vadd.f32 %v5094_v38, %v4946_v27  ;;  %v5208_v28 = vadd.f32 %v5092_v62, %v4943_v47  ;;  %v5406_v39 = vrot.slane %v5307_v21, 1 }
  0xd7   :  { %v5210_v56 = vadd.f32 %v5095_v11, %v4945_v26  ;;  %v5404_v42 = vsel %vm491_vm0, %v5402_v3, %v5403_v25  ;;  %v5521_v33 = vadd.f32 %v5403_v25, %v5257_v51  ;;  %v5568_v1 = vmul.f32 %v16430_v24, %v16319_v54 }
  0xd8   :  { %v5520_v32 = vadd.f32 %v5404_v42, %v5256_v35  ;;  %v5569_v40 = vmul.f32 %v16430_v24, %v16321_v37  ;;  %v5407_v10 = vsel %vm491_vm0, %v5405_v57, %v5406_v39  ;;  %v5523_v27 = vadd.f32 %v5406_v39, %v5259_v19 }
  0xd9   :  { %v5570_v47 = vmul.f32 %v16430_v24, %v16323_v55  ;;  %v5571_v26 = vmul.f32 %v16430_v24, %v16325_v34  ;;  %v5522_v35 = vadd.f32 %v5407_v10, %v5258_v16  ;;  %v5666_v51 = vrot.slane %v5568_v1, 1 }
  0xda   :  { %v5667_v59 = vrot.slane %v5569_v40, 1  ;;  %v16475_v5 = vadd.f32 %v5208_v28, %v16373_v17  ;;  %v16478_v8 = vadd.f32 %v5209_v9, %v16367_v50  ;;  %v16481_v2 = vadd.f32 %v5210_v56, %v16375_v23 }
  0xdb   :  { %v5669_v6 = vrot.slane %v5570_v47, 1  ;;  %v5670_v7 = vrot.slane %v5571_v26, 1  ;;  %v16485_v21 = vadd.f32 %v5211_v0, %v16369_v15  ;;  %v16488_v16 = vstv %s16454_s1 }
  0xdc   :  { %v5668_v19 = vsel %vm491_vm0, %v5666_v51, %v5667_v59  ;;  %v5785_v38 = vadd.f32 %v5667_v59, %v5521_v33  ;;  %22889 = vst [vmem:[#allocation50_spill] sm:$0xff] %v16488_v16  ;;  %v5929_v50 = vmul.f32 %v16488_v16, %v16299_v52  ;;  %v5930_v62 = vmul.f32 %v16488_v16, %v16301_v30 }
  0xdd   :  { %v5671_v17 = vsel %vm491_vm0, %v5669_v6, %v5670_v7  ;;  %v5784_v3 = vadd.f32 %v5668_v19, %v5520_v32  ;;  %v5787_v25 = vadd.f32 %v5670_v7, %v5523_v27  ;;  %v5931_v15 = vmul.f32 %v16488_v16, %v16303_v29 }
  0xde   :  { %v5786_v57 = vadd.f32 %v5671_v17, %v5522_v35  ;;  %v16494_v23 = vadd.f32 %v5785_v38, %v16399_v60  ;;  %v5932_v0 = vmul.f32 %v16488_v16, %v16305_v13  ;;  %v16509_v28 = vstv %s16460_s0 }
  0xdf   :  { %v16501_v11 = vadd.f32 %v5784_v3, %v16404_v61  ;;  %v16504_v9 = vadd.f32 %v5787_v25, %v16406_v41  ;;  %22890 = vst [vmem:[#allocation51_spill] sm:$0xff] %v16509_v28  ;;  %v5978_v56 = vmul.f32 %v16509_v28, %v16323_v55  ;;  %v5979_v42 = vmul.f32 %v16509_v28, %v16325_v34 }
  0xe0   :  { %v16512_v60 = vadd.f32 %v5786_v57, %v16412_v22  ;;  %v5980_v61 = vmul.f32 %v16509_v28, %v16327_v43  ;;  %v5981_v41 = vmul.f32 %v16509_v28, %v16329_v4  ;;  %v16523_v39 = vstv %s16467_s18 }
  0xe1   :  { %22891 = vst [vmem:[#allocation52_spill] sm:$0xff] %v16523_v39  ;;  %v6339_v32 = vmul.f32 %v16488_v16, %v16323_v55  ;;  %v6340_v22 = vmul.f32 %v16488_v16, %v16325_v34  ;;  %v6026_v33 = vadd.f32 %v5978_v56, %v5929_v50  ;;  %v6027_v1 = vadd.f32 %v5979_v42, %v5930_v62 }
  0xe2   :  { %v6028_v40 = vadd.f32 %v5980_v61, %v5931_v15  ;;  %v6075_v10 = vmul.f32 %v16523_v39, %v16299_v52  ;;  %v6029_v27 = vadd.f32 %v5981_v41, %v5932_v0  ;;  %v6076_v47 = vmul.f32 %v16523_v39, %v16301_v30 }
  0xe3   :  { %v6077_v26 = vmul.f32 %v16523_v39, %v16303_v29  ;;  %v6078_v35 = vmul.f32 %v16523_v39, %v16305_v13  ;;  %v6341_v59 = vmul.f32 %v16488_v16, %v16327_v43  ;;  %v6342_v6 = vmul.f32 %v16488_v16, %v16329_v4 }
  0xe4   :  { %v6173_v51 = vrot.slane %v6075_v10, 1  ;;  %v6387_v7 = vmul.f32 %v16509_v28, %v16299_v52  ;;  %v6174_v19 = vrot.slane %v6076_v47, 1  ;;  %v6388_v3 = vmul.f32 %v16509_v28, %v16301_v30 }
  0xe5   :  { %v6176_v38 = vrot.slane %v6077_v26, 1  ;;  %v6177_v17 = vrot.slane %v6078_v35, 1  ;;  %v6389_v25 = vmul.f32 %v16509_v28, %v16303_v29  ;;  %v6390_v50 = vmul.f32 %v16509_v28, %v16305_v13 }
  0xe6   :  { %v6485_v57 = vrot.slane %v6387_v7, 1  ;;  %v6651_v62 = vmul.f32 %v16523_v39, %v16323_v55  ;;  %v6175_v15 = vsel %vm491_vm0, %v6173_v51, %v6174_v19  ;;  %v6292_v56 = vadd.f32 %v6174_v19, %v6027_v1 }
  0xe7   :  { %v6178_v0 = vsel %vm491_vm0, %v6176_v38, %v6177_v17  ;;  %v6294_v42 = vadd.f32 %v6177_v17, %v6029_v27  ;;  %v6291_v61 = vadd.f32 %v6175_v15, %v6026_v33  ;;  %v6486_v10 = vrot.slane %v6388_v3, 1 }
  0xe8   :  { %v6293_v41 = vadd.f32 %v6178_v0, %v6028_v40  ;;  %v6488_v47 = vrot.slane %v6389_v25, 1  ;;  %v6489_v26 = vrot.slane %v6390_v50, 1  ;;  %v6652_v35 = vmul.f32 %v16523_v39, %v16325_v34 }
  0xe9   :  { %v6653_v7 = vmul.f32 %v16523_v39, %v16327_v43  ;;  %v6654_v55 = vmul.f32 %v16523_v39, %v16329_v4  ;;  %v6487_v51 = vsel %vm491_vm0, %v6485_v57, %v6486_v10  ;;  %v6604_v13 = vadd.f32 %v6486_v10, %v6340_v22 }
  0xea   :  { %v6749_v38 = vrot.slane %v6651_v62, 1  ;;  %v6915_v1 = vadd.f32 %v6291_v61, %v16475_v5  ;;  %v6490_v33 = vsel %vm491_vm0, %v6488_v47, %v6489_v26  ;;  %v6603_v40 = vadd.f32 %v6487_v51, %v6339_v32 }
  0xeb   :  { %v6606_v27 = vadd.f32 %v6489_v26, %v6342_v6  ;;  %v6750_v19 = vrot.slane %v6652_v35, 1  ;;  %v6605_v17 = vadd.f32 %v6490_v33, %v6341_v59  ;;  %v6752_v3 = vrot.slane %v6653_v7, 1  ;;  %v16583_v26 = vld [vmem:[#allocation9 + $0xa8] sm:$0x3f]  ;;  %v16585_v35 = vld [vmem:[#allocation9 + $0xb0] sm:$0xff] }
  0xec   :  { %v6753_v25 = vrot.slane %v6654_v55, 1  ;;  %v6916_v50 = vadd.f32 %v6292_v56, %v16478_v8  ;;  %v6917_v57 = vadd.f32 %v6293_v41, %v16481_v2  ;;  %v6918_v22 = vadd.f32 %v6294_v42, %v16485_v21  ;;  %v16579_v56 = vld [vmem:[#allocation9 + $0xa0] sm:$0xff] }
  0xed   :  { %v6751_v15 = vsel %vm491_vm0, %v6749_v38, %v6750_v19  ;;  %v6868_v0 = vadd.f32 %v6750_v19, %v6604_v13  ;;  %v16570_v10 = vstv %s16545_s19  ;;  %v16589_v38 = vld [vmem:[#allocation9 + $0xb8] sm:$0x3f]  ;;  %v407_v58 = vmul.f32 %v22901_v48, %v16579_v56 }
  0xee   :  { %v6754_v5 = vsel %vm491_vm0, %v6752_v3, %v6753_v25  ;;  %v6867_v62 = vadd.f32 %v6751_v15, %v6603_v40  ;;  %v6870_v61 = vadd.f32 %v6753_v25, %v6606_v27  ;;  %22892 = vst [vmem:[#allocation53_spill] sm:$0xff] %v16570_v10  ;;  %v7012_v55 = vadd.f32 %v16570_v10, %v6915_v1  ;;  %v16591_v1 = vld [vmem:[#allocation9 + $0xc0] sm:$0xff]  ;;  %v16594_v40 = vld [vmem:[#allocation9 + $0xc8] sm:$0x3f]  ;;  %v22895_v27 = vld [vmem:[#allocation18_spill] sm:$0xff] }
  0xef   :  { %v6869_v32 = vadd.f32 %v6754_v5, %v6605_v17  ;;  %v6964_v59 = vadd.f32 %v6868_v0, %v16494_v23  ;;  %v7013_v8 = vadd.f32 %v16570_v10, %v6916_v50  ;;  %v7014_v2 = vadd.f32 %v16570_v10, %v6917_v57  ;;  %22893 = vst [vmem:[#allocation54_spill] sm:$0xff] %v16591_v1  ;;  %v16598_v25 = vld [vmem:[#allocation9 + $0xd0] sm:$0xff]  ;;  %v16600_v50 = vld [vmem:[#allocation10 + $0xa0] sm:$0xff]  ;;  %v16602_v15 = vld [vmem:[#allocation10 + $0xa8] sm:$0x3f] }
  0xf0   :  { %v6963_v6 = vadd.f32 %v6867_v62, %v16501_v11  ;;  %v6966_v13 = vadd.f32 %v6870_v61, %v16504_v9  ;;  %v7015_v21 = vadd.f32 %v16570_v10, %v6918_v22  ;;  %v7060_v41 = vmax.f32 %v7012_v55, 0.0  ;;  %22894 = vst [vmem:[#allocation55_spill] sm:$0xff] %v16594_v40  ;;  %22896 = vst [vmem:[#allocation56_spill] sm:$0xff] %v16598_v25  ;;  %v16608_v62 = vld [vmem:[#allocation10 + $0xb0] sm:$0xff]  ;;  %v16610_v61 = vld [vmem:[#allocation10 + $0xb8] sm:$0x3f] }
  0xf1   :  { %v6965_v42 = vadd.f32 %v6869_v32, %v16512_v60  ;;  %v7061_v47 = vmax.f32 %v7013_v8, 0.0  ;;  %v7109_v23 = vadd.f32 %v16570_v10, %v6964_v59  ;;  %v7062_v7 = vmax.f32 %v7014_v2, 0.0  ;;  %v16612_v32 = vld [vmem:[#allocation10 + $0xc0] sm:$0xff]  ;;  %v16620_v2 = vld [vmem:[#allocation10 + $0xc8] sm:$0x3f] }
  0xf2   :  { %v7063_v11 = vmax.f32 %v7015_v21, 0.0  ;;  %v7108_v9 = vadd.f32 %v16570_v10, %v6963_v6  ;;  %v7111_v51 = vadd.f32 %v16570_v10, %v6966_v13  ;;  %v249_v19 = vmul.f32 %v22895_v27, %v16579_v56  ;;  %v16618_v13 = vld [vmem:[#allocation9 + $0xd8] sm:$0x3f] }
  0xf3   :  { %v7110_v60 = vadd.f32 %v16570_v10, %v6965_v42  ;;  %v7157_v33 = vmax.f32 %v7109_v23, 0.0  ;;  %v250_v0 = vmul.f32 %v22895_v27, %v16583_v26  ;;  %v251_v57 = vmul.f32 %v22895_v27, %v16585_v35  ;;  %22897 = vst [vmem:[#allocation57_spill] sm:$0xff] %v16618_v13 }
  0xf4   :  { %v7156_v17 = vmax.f32 %v7108_v9, 0.0  ;;  %v7159_v3 = vmax.f32 %v7111_v51, 0.0  ;;  %v252_v59 = vmul.f32 %v22895_v27, %v16589_v38  ;;  %v253_v55 = vmul.f32 %v22895_v27, %v16591_v1  ;;  %v22898_v9 = vld [vmem:[#allocation19_spill] sm:$0xff] }
  0xf5   :  { %v7158_v22 = vmax.f32 %v7110_v60, 0.0  ;;  %v7205_v5 = vmax.f32 %v7061_v47, %v7157_v33  ;;  %v254_v21 = vmul.f32 %v22895_v27, %v16594_v40  ;;  %v255_v42 = vmul.f32 %v22895_v27, %v16598_v25  ;;  %v16632_v60 = vld [vmem:[#allocation10 + $0xd0] sm:$0xff]  ;;  %v16634_v33 = vld [vmem:[#allocation10 + $0xd8] sm:$0x3f] }
  0xf6   :  { %v7204_v8 = vmax.f32 %v7060_v41, %v7156_v17  ;;  %v7207_v6 = vmax.f32 %v7063_v11, %v7159_v3  ;;  %v256_v23 = vmul.f32 %v22895_v27, %v16618_v13  ;;  %v302_v51 = vmul.f32 %v22898_v9, %v16600_v50 }
  0xf7   :  { %v7206_v47 = vmax.f32 %v7062_v7, %v7158_v22  ;;  %v303_v41 = vmul.f32 %v22898_v9, %v16602_v15  ;;  %v304_v17 = vmul.f32 %v22898_v9, %v16608_v62  ;;  %v305_v7 = vmul.f32 %v22898_v9, %v16610_v61 }
  0xf8   :  { %v7255_v11 = vmax.f32 %v7205_v5, %v7207_v6  ;;  %v306_v3 = vmul.f32 %v22898_v9, %v16612_v32  ;;  %v307_v4 = vmul.f32 %v22898_v9, %v16620_v2  ;;  %v308_v5 = vmul.f32 %v22898_v9, %v16632_v60 }
  0xf9   :  { %v16642_v22 = vmax.f32 %v7204_v8, %v7206_v47  ;;  %v309_v6 = vmul.f32 %v22898_v9, %v16634_v33  ;;  %v354_v34 = vadd.f32 %v302_v51, %v249_v19  ;;  %v355_v29 = vadd.f32 %v303_v41, %v250_v0 }
  0xfa   :  { %v16651_v43 = vsel %vm7266_vm1, %v7255_v11, 0  ;;  %v356_v30 = vadd.f32 %v304_v17, %v251_v57  ;;  %v357_v47 = vadd.f32 %v305_v7, %v252_v59  ;;  %v358_v37 = vadd.f32 %v306_v3, %v253_v55 }
  0xfb   :  { %22899 = vst [vmem:[#allocation58_spill] sm:$0xff] %v16642_v22  ;;  %22900 = vst [vmem:[#allocation59_spill] sm:$0xff] %v16651_v43  ;;  %v22561_v52 = vand.u32 4294901760, %v16642_v22  ;;  %v22560_v8 = vand.u32 4294901760, %v16651_v43  ;;  %v359_v54 = vadd.f32 %v307_v4, %v254_v21  ;;  %v360_v44 = vadd.f32 %v308_v5, %v255_v42 }
  0xfc   :  { %v361_v36 = vadd.f32 %v309_v6, %v256_v23  ;;  %v408_v19 = vmul.f32 %v22901_v48, %v16583_v26  ;;  %v409_v0 = vmul.f32 %v22901_v48, %v16585_v35  ;;  %v410_v4 = vmul.f32 %v22901_v48, %v16589_v38 }
  0xfd   :  { %v16661_v11 = vpack.c.bf16 %v22560_v8, %v22561_v52  ;;  %v411_v57 = vmul.f32 %v22901_v48, %v16591_v1  ;;  %v412_v59 = vmul.f32 %v22901_v48, %v16594_v40  ;;  %v413_v55 = vmul.f32 %v22901_v48, %v16598_v25 }
  0xfe   :  { %v414_v21 = vmul.f32 %v22901_v48, %v16618_v13  ;;  %v522_v42 = vrot.slane %v407_v58, 1  ;;  %v523_v23 = vrot.slane %v408_v19, 1  ;;  %v525_v51 = vrot.slane %v409_v0, 1 }
  0xff   :  { %22902 = vst [vmem:[#allocation60_spill] sm:$0xff] %v16661_v11  ;;  %14951 = vmatprep.subr.bf16.mxu1 %v16661_v11  ;;  %v526_v41 = vrot.slane %v410_v4, 1  ;;  %v528_v17 = vrot.slane %v411_v57, 1  ;;  %v529_v7 = vrot.slane %v412_v59, 1  ;;  %v531_v3 = vrot.slane %v413_v55, 1 }
 0x100   :  { %v532_v5 = vrot.slane %v414_v21, 1  ;;  %14953 = vmatpush3.bf16.msra.mxu1 %v16661_v11  ;;  %v524_v6 = vsel %vm491_vm0, %v522_v42, %v523_v23  ;;  %v16681_v52 = vadd.f32 %v523_v23, %v355_v29  ;;  %v694_v29 = vmul.f32 %v22895_v27, %v16600_v50 }
 0x101   :  { %v527_v8 = vsel %vm491_vm0, %v525_v51, %v526_v41  ;;  %v16683_v20 = vadd.f32 %v526_v41, %v357_v47  ;;  %v530_v46 = vsel %vm491_vm0, %v528_v17, %v529_v7  ;;  %v16687_v19 = vadd.f32 %v524_v6, %v354_v34 }
 0x102   :  { %v533_v58 = vsel %vm491_vm0, %v531_v3, %v532_v5  ;;  %v16689_v0 = vadd.f32 %v527_v8, %v356_v30  ;;  %v16691_v4 = vadd.f32 %v530_v46, %v358_v37  ;;  %v16693_v57 = vadd.f32 %v529_v7, %v359_v54 }
 0x103   :  { %v16695_v59 = vadd.f32 %v533_v58, %v360_v44  ;;  %v16697_v55 = vadd.f32 %v532_v5, %v361_v36  ;;  %v695_v47 = vmul.f32 %v22895_v27, %v16602_v15  ;;  %v696_v34 = vmul.f32 %v22895_v27, %v16608_v62 }
 0x104   :  { %v697_v30 = vmul.f32 %v22895_v27, %v16610_v61  ;;  %v698_v46 = vmul.f32 %v22895_v27, %v16612_v32  ;;  %v699_v44 = vmul.f32 %v22895_v27, %v16620_v2  ;;  %v700_v36 = vmul.f32 %v22895_v27, %v16632_v60 }
 0x105   :  { %v701_v54 = vmul.f32 %v22895_v27, %v16634_v33  ;;  %v746_v37 = vmul.f32 %v22898_v9, %v16579_v56  ;;  %v747_v8 = vmul.f32 %v22898_v9, %v16583_v26  ;;  %v748_v21 = vmul.f32 %v22898_v9, %v16585_v35 }
 0x106   :  { %v749_v42 = vmul.f32 %v22898_v9, %v16589_v38  ;;  %v750_v23 = vmul.f32 %v22898_v9, %v16591_v1  ;;  %v751_v51 = vmul.f32 %v22898_v9, %v16594_v40  ;;  %v752_v41 = vmul.f32 %v22898_v9, %v16598_v25 }
 0x107   :  { %v753_v56 = vmul.f32 %v22898_v9, %v16618_v13  ;;  %v860_v17 = vrot.slane %v746_v37, 1  ;;  %v861_v26 = vrot.slane %v747_v8, 1  ;;  %v863_v7 = vrot.slane %v748_v21, 1 }
 0x108   :  { %v864_v3 = vrot.slane %v749_v42, 1  ;;  %v866_v5 = vrot.slane %v750_v23, 1  ;;  %v867_v6 = vrot.slane %v751_v51, 1  ;;  %v869_v58 = vrot.slane %v752_v41, 1 }
 0x109   :  { %v870_v11 = vrot.slane %v753_v56, 1  ;;  %v862_v27 = vsel %vm491_vm0, %v860_v17, %v861_v26  ;;  %v981_v22 = vadd.f32 %v861_v26, %v695_v47  ;;  %v1032_v23 = vmul.f32 %v22901_v48, %v16600_v50  ;;  %v16757_v26 = vld [vmem:[#allocation9 + $0xe0] sm:$0xff] }
 0x10a   :  { %v865_v43 = vsel %vm491_vm0, %v863_v7, %v864_v3  ;;  %v983_v10 = vadd.f32 %v864_v3, %v697_v30  ;;  %v868_v39 = vsel %vm491_vm0, %v866_v5, %v867_v6  ;;  %v980_v16 = vadd.f32 %v862_v27, %v694_v29  ;;  %22903 = vst [vmem:[#allocation61_spill] sm:$0xff] %v16757_v26  ;;  %v16759_v7 = vld [vmem:[#allocation9 + $0xe8] sm:$0x3f] }
 0x10b   :  { %v871_v28 = vsel %vm491_vm0, %v869_v58, %v870_v11  ;;  %v982_v9 = vadd.f32 %v865_v43, %v696_v34  ;;  %v984_v37 = vadd.f32 %v868_v39, %v698_v46  ;;  %v985_v8 = vadd.f32 %v867_v6, %v699_v44 }
 0x10c   :  { %v986_v21 = vadd.f32 %v871_v28, %v700_v36  ;;  %v987_v42 = vadd.f32 %v870_v11, %v701_v54  ;;  %v1033_v51 = vmul.f32 %v22901_v48, %v16602_v15  ;;  %v1034_v47 = vmul.f32 %v22901_v48, %v16608_v62 }
 0x10d   :  { %v1035_v30 = vmul.f32 %v22901_v48, %v16610_v61  ;;  %v1036_v27 = vmul.f32 %v22901_v48, %v16612_v32  ;;  %v1037_v43 = vmul.f32 %v22901_v48, %v16620_v2  ;;  %v1038_v28 = vmul.f32 %v22901_v48, %v16632_v60 }
 0x10e   :  { %v1039_v39 = vmul.f32 %v22901_v48, %v16634_v33  ;;  %v1146_v50 = vrot.slane %v1032_v23, 1  ;;  %v1147_v15 = vrot.slane %v1033_v51, 1  ;;  %v1149_v11 = vrot.slane %v1034_v47, 1  ;;  %v16775_v47 = vld [vmem:[#allocation10 + $0xe0] sm:$0xff] }
 0x10f   :  { %v1150_v29 = vrot.slane %v1035_v30, 1  ;;  %v1152_v34 = vrot.slane %v1036_v27, 1  ;;  %v1153_v46 = vrot.slane %v1037_v43, 1  ;;  %v1155_v44 = vrot.slane %v1038_v28, 1  ;;  %v16777_v30 = vld [vmem:[#allocation10 + $0xe8] sm:$0x3f] }
 0x110   :  { %v1156_v36 = vrot.slane %v1039_v39, 1  ;;  %v1148_v54 = vsel %vm491_vm0, %v1146_v50, %v1147_v15  ;;  %v16753_v56 = vadd.f32 %v1147_v15, %v981_v22  ;;  %v22906_v27 = vld [vmem:[#allocation27_spill] sm:$0xff]  ;;  %v22907_v39 = vld [vmem:[#allocation28_spill] sm:$0xff]  ;;  %v1477_v14 = vmul.f32 %v22908_v12, %v16585_v35 }
 0x111   :  { %v1151_v41 = vsel %vm491_vm0, %v1149_v11, %v1150_v29  ;;  %v16755_v17 = vadd.f32 %v1150_v29, %v983_v10  ;;  %v1154_v3 = vsel %vm491_vm0, %v1152_v34, %v1153_v46  ;;  %v16763_v6 = vadd.f32 %v1148_v54, %v980_v16 }
 0x112   :  { %v1157_v5 = vsel %vm491_vm0, %v1155_v44, %v1156_v36  ;;  %v16765_v58 = vadd.f32 %v1151_v41, %v982_v9  ;;  %v16767_v23 = vadd.f32 %v1154_v3, %v984_v37  ;;  %v16769_v51 = vadd.f32 %v1153_v46, %v985_v8 }
 0x113   :  { %v16771_v22 = vadd.f32 %v1157_v5, %v986_v21  ;;  %v16773_v10 = vadd.f32 %v1156_v36, %v987_v42  ;;  %v1319_v43 = vmul.f32 %v22906_v27, %v16585_v35  ;;  %v1320_v16 = vmul.f32 %v22906_v27, %v16589_v38 }
 0x114   :  { %v1321_v9 = vmul.f32 %v22906_v27, %v16591_v1  ;;  %v1322_v37 = vmul.f32 %v22906_v27, %v16594_v40  ;;  %v1323_v8 = vmul.f32 %v22906_v27, %v16598_v25  ;;  %v1324_v21 = vmul.f32 %v22906_v27, %v16618_v13 }
 0x115   :  { %22904 = vst [vmem:[#allocation62_spill] sm:$0xff] %v16771_v22  ;;  %22905 = vst [vmem:[#allocation63_spill] sm:$0xff] %v16773_v10  ;;  %v1325_v42 = vmul.f32 %v22906_v27, %v16757_v26  ;;  %v1326_v28 = vmul.f32 %v22906_v27, %v16759_v7  ;;  %v1372_v50 = vmul.f32 %v22907_v39, %v16608_v62 }
 0x116   :  { %v1373_v15 = vmul.f32 %v22907_v39, %v16610_v61  ;;  %v1374_v11 = vmul.f32 %v22907_v39, %v16612_v32  ;;  %v1375_v29 = vmul.f32 %v22907_v39, %v16620_v2  ;;  %v1376_v34 = vmul.f32 %v22907_v39, %v16632_v60 }
 0x117   :  { %v1377_v46 = vmul.f32 %v22907_v39, %v16634_v33  ;;  %v1378_v44 = vmul.f32 %v22907_v39, %v16775_v47  ;;  %v1379_v36 = vmul.f32 %v22907_v39, %v16777_v30  ;;  %v1424_v54 = vadd.f32 %v1372_v50, %v1319_v43 }
 0x118   :  { %v1425_v41 = vadd.f32 %v1373_v15, %v1320_v16  ;;  %v1426_v3 = vadd.f32 %v1374_v11, %v1321_v9  ;;  %v1427_v5 = vadd.f32 %v1375_v29, %v1322_v37  ;;  %v1428_v48 = vadd.f32 %v1376_v34, %v1323_v8 }
 0x119   :  { %v1429_v24 = vadd.f32 %v1377_v46, %v1324_v21  ;;  %v1430_v53 = vadd.f32 %v1378_v44, %v1325_v42  ;;  %v1431_v45 = vadd.f32 %v1379_v36, %v1326_v28  ;;  %v1478_v31 = vmul.f32 %v22908_v12, %v16589_v38 }
 0x11a   :  { %v1479_v63 = vmul.f32 %v22908_v12, %v16591_v1  ;;  %v1480_v49 = vmul.f32 %v22908_v12, %v16594_v40  ;;  %v1481_v43 = vmul.f32 %v22908_v12, %v16598_v25  ;;  %v1482_v16 = vmul.f32 %v22908_v12, %v16618_v13 }
 0x11b   :  { %v1483_v9 = vmul.f32 %v22908_v12, %v16757_v26  ;;  %v1484_v37 = vmul.f32 %v22908_v12, %v16759_v7  ;;  %v1591_v8 = vrot.slane %v1477_v14, 1  ;;  %v1592_v21 = vrot.slane %v1478_v31, 1 }
 0x11c   :  { %v1594_v42 = vrot.slane %v1479_v63, 1  ;;  %v1595_v28 = vrot.slane %v1480_v49, 1  ;;  %v1597_v50 = vrot.slane %v1481_v43, 1  ;;  %v1598_v15 = vrot.slane %v1482_v16, 1 }
 0x11d   :  { %v1600_v11 = vrot.slane %v1483_v9, 1  ;;  %v1601_v29 = vrot.slane %v1484_v37, 1  ;;  %v1593_v34 = vsel %vm491_vm0, %v1591_v8, %v1592_v21  ;;  %v16829_v44 = vadd.f32 %v1592_v21, %v1425_v41 }
 0x11e   :  { %v1596_v46 = vsel %vm491_vm0, %v1594_v42, %v1595_v28  ;;  %v16831_v36 = vadd.f32 %v1595_v28, %v1427_v5  ;;  %v1599_v18 = vsel %vm491_vm0, %v1597_v50, %v1598_v15  ;;  %v16835_v14 = vadd.f32 %v1593_v34, %v1424_v54 }
 0x11f   :  { %v1602_v10 = vsel %vm491_vm0, %v1600_v11, %v1601_v29  ;;  %v16837_v63 = vadd.f32 %v1596_v46, %v1426_v3  ;;  %v16839_v49 = vadd.f32 %v1599_v18, %v1428_v48  ;;  %v16841_v31 = vadd.f32 %v1598_v15, %v1429_v24 }
 0x120   :  { %v16843_v43 = vadd.f32 %v1602_v10, %v1430_v53  ;;  %v16845_v16 = vadd.f32 %v1601_v29, %v1431_v45  ;;  %v1763_v41 = vmul.f32 %v22906_v27, %v16608_v62  ;;  %v1764_v5 = vmul.f32 %v22906_v27, %v16610_v61 }
 0x121   :  { %v1765_v54 = vmul.f32 %v22906_v27, %v16612_v32  ;;  %v1766_v3 = vmul.f32 %v22906_v27, %v16620_v2  ;;  %v1767_v18 = vmul.f32 %v22906_v27, %v16632_v60  ;;  %v1768_v48 = vmul.f32 %v22906_v27, %v16634_v33 }
 0x122   :  { %v1769_v45 = vmul.f32 %v22906_v27, %v16775_v47  ;;  %v1770_v53 = vmul.f32 %v22906_v27, %v16777_v30  ;;  %v1815_v24 = vmul.f32 %v22907_v39, %v16585_v35  ;;  %v1816_v10 = vmul.f32 %v22907_v39, %v16589_v38 }
 0x123   :  { %v1817_v9 = vmul.f32 %v22907_v39, %v16591_v1  ;;  %v1818_v37 = vmul.f32 %v22907_v39, %v16594_v40  ;;  %v1819_v8 = vmul.f32 %v22907_v39, %v16598_v25  ;;  %v1820_v21 = vmul.f32 %v22907_v39, %v16618_v13 }
 0x124   :  { %v1821_v42 = vmul.f32 %v22907_v39, %v16757_v26  ;;  %v1822_v35 = vmul.f32 %v22907_v39, %v16759_v7  ;;  %v1929_v28 = vrot.slane %v1815_v24, 1  ;;  %v1930_v38 = vrot.slane %v1816_v10, 1 }
 0x125   :  { %v1932_v50 = vrot.slane %v1817_v9, 1  ;;  %v1933_v15 = vrot.slane %v1818_v37, 1  ;;  %v1935_v11 = vrot.slane %v1819_v8, 1  ;;  %v1936_v29 = vrot.slane %v1820_v21, 1 }
 0x126   :  { %v1938_v34 = vrot.slane %v1821_v42, 1  ;;  %v1939_v46 = vrot.slane %v1822_v35, 1  ;;  %v1931_v27 = vsel %vm491_vm0, %v1929_v28, %v1930_v38  ;;  %v2050_v40 = vadd.f32 %v1930_v38, %v1764_v5 }
 0x127   :  { %v1934_v25 = vsel %vm491_vm0, %v1932_v50, %v1933_v15  ;;  %v2052_v13 = vadd.f32 %v1933_v15, %v1766_v3  ;;  %v1937_v1 = vsel %vm491_vm0, %v1935_v11, %v1936_v29  ;;  %v2049_v22 = vadd.f32 %v1931_v27, %v1763_v41 }
 0x128   :  { %v1940_v26 = vsel %vm491_vm0, %v1938_v34, %v1939_v46  ;;  %v2051_v39 = vadd.f32 %v1934_v25, %v1765_v54  ;;  %v2053_v24 = vadd.f32 %v1937_v1, %v1767_v18  ;;  %v2054_v10 = vadd.f32 %v1936_v29, %v1768_v48 }
 0x129   :  { %v2055_v9 = vadd.f32 %v1940_v26, %v1769_v45  ;;  %v2056_v37 = vadd.f32 %v1939_v46, %v1770_v53  ;;  %v2101_v8 = vmul.f32 %v22908_v12, %v16608_v62  ;;  %v2102_v21 = vmul.f32 %v22908_v12, %v16610_v61 }
 0x12a   :  { %v2103_v5 = vmul.f32 %v22908_v12, %v16612_v32  ;;  %v2104_v3 = vmul.f32 %v22908_v12, %v16620_v2  ;;  %v2105_v27 = vmul.f32 %v22908_v12, %v16632_v60  ;;  %v2106_v1 = vmul.f32 %v22908_v12, %v16634_v33 }
 0x12b   :  { %v2107_v25 = vmul.f32 %v22908_v12, %v16775_v47  ;;  %v2108_v62 = vmul.f32 %v22908_v12, %v16777_v30  ;;  %v2215_v26 = vrot.slane %v2101_v8, 1  ;;  %v2216_v61 = vrot.slane %v2102_v21, 1 }
 0x12c   :  { %v2218_v41 = vrot.slane %v2103_v5, 1  ;;  %v2219_v54 = vrot.slane %v2104_v3, 1  ;;  %v2221_v18 = vrot.slane %v2105_v27, 1  ;;  %v2222_v48 = vrot.slane %v2106_v1, 1 }
 0x12d   :  { %v2224_v45 = vrot.slane %v2107_v25, 1  ;;  %v2225_v53 = vrot.slane %v2108_v62, 1  ;;  %v2217_v42 = vsel %vm491_vm0, %v2215_v26, %v2216_v61  ;;  %v2336_v28 = vadd.f32 %v2216_v61, %v2050_v40  ;;  %v22920_v26 = vld [vmem:[#allocation26_spill] sm:$0xff] }
 0x12e   :  { %v2220_v35 = vsel %vm491_vm0, %v2218_v41, %v2219_v54  ;;  %v2338_v38 = vadd.f32 %v2219_v54, %v2052_v13  ;;  %v2223_v50 = vsel %vm491_vm0, %v2221_v18, %v2222_v48  ;;  %v2335_v11 = vadd.f32 %v2217_v42, %v2049_v22 }
 0x12f   :  { %v2226_v15 = vsel %vm491_vm0, %v2224_v45, %v2225_v53  ;;  %v2337_v29 = vadd.f32 %v2220_v35, %v2051_v39  ;;  %v2339_v34 = vadd.f32 %v2223_v50, %v2053_v24  ;;  %v2340_v46 = vadd.f32 %v2222_v48, %v2054_v10  ;;  %v16935_v39 = vld [vmem:[#allocation9 + $0xf0] sm:$0xff]  ;;  %v22917_v24 = vld [vmem:[#allocation56_spill] sm:$0xff]  ;;  %v22918_v10 = vld [vmem:[#allocation57_spill] sm:$0xff] }
 0x130   :  { %v2341_v8 = vadd.f32 %v2226_v15, %v2055_v9  ;;  %v2342_v21 = vadd.f32 %v2225_v53, %v2056_v37  ;;  %v16905_v5 = vadd.f32 %v16835_v14, %v16687_v19  ;;  %v16909_v3 = vadd.f32 %v16829_v44, %v16681_v52  ;;  %22909 = vst [vmem:[#allocation64_spill] sm:$0xff] %v16935_v39  ;;  %v22910_v14 = vld [vmem:[#allocation62_spill] sm:$0xff]  ;;  %v22919_v37 = vld [vmem:[#allocation61_spill] sm:$0xff] }
 0x131   :  { %v16913_v40 = vadd.f32 %v16837_v63, %v16689_v0  ;;  %v16917_v13 = vadd.f32 %v16831_v36, %v16683_v20  ;;  %v16921_v22 = vadd.f32 %v16839_v49, %v16691_v4  ;;  %v16925_v19 = vadd.f32 %v16841_v31, %v16693_v57  ;;  %v16937_v20 = vld [vmem:[#allocation9 + $0xf8] sm:$0x3f] }
 0x132   :  { %v16929_v52 = vadd.f32 %v16843_v43, %v16695_v59  ;;  %v16933_v0 = vadd.f32 %v16845_v16, %v16697_v55  ;;  %v16940_v44 = vadd.f32 %v2335_v11, %v16763_v6  ;;  %v16943_v4 = vadd.f32 %v2336_v28, %v16753_v56  ;;  %v22912_v6 = vld [vmem:[#allocation63_spill] sm:$0xff]  ;;  %v16963_v56 = vld [vmem:[#allocation10 + $0xf0] sm:$0xff]  ;;  %v22915_v43 = vld [vmem:[#allocation25_spill] sm:$0xff] }
 0x133   :  { %v16946_v57 = vadd.f32 %v2337_v29, %v16765_v58  ;;  %v16949_v59 = vadd.f32 %v2338_v38, %v16755_v17  ;;  %v16952_v36 = vadd.f32 %v2339_v34, %v16767_v23  ;;  %v16955_v55 = vadd.f32 %v2340_v46, %v16769_v51  ;;  %v16965_v31 = vld [vmem:[#allocation10 + $0xf8] sm:$0x3f]  ;;  %v22914_v58 = vld [vmem:[#allocation54_spill] sm:$0xff] }
 0x134   :  { %v16958_v63 = vadd.f32 %v2341_v8, %v22910_v14  ;;  %v16961_v49 = vadd.f32 %v2342_v21, %v22912_v6  ;;  %v2492_v17 = vmul.f32 %v22915_v43, %v22914_v58  ;;  %v22916_v16 = vld [vmem:[#allocation55_spill] sm:$0xff]  ;;  %v2494_v51 = vmul.f32 %v22915_v43, %v22917_v24  ;;  %v22921_v46 = vld [vmem:[#allocation30_spill] sm:$0xff] }
 0x135   :  { %v2493_v23 = vmul.f32 %v22915_v43, %v22916_v16  ;;  %v2495_v9 = vmul.f32 %v22915_v43, %v22918_v10  ;;  %v2496_v27 = vmul.f32 %v22915_v43, %v22919_v37  ;;  %v2497_v1 = vmul.f32 %v22915_v43, %v16759_v7 }
 0x136   :  { %22911 = vst [vmem:[#allocation62_spill] sm:$0xff] %v16958_v63  ;;  %22913 = vst [vmem:[#allocation63_spill] sm:$0xff] %v16961_v49  ;;  %v2498_v25 = vmul.f32 %v22915_v43, %v16935_v39  ;;  %v2499_v62 = vmul.f32 %v22915_v43, %v16937_v20  ;;  %v2545_v61 = vmul.f32 %v22920_v26, %v16612_v32 }
 0x137   :  { %v2546_v41 = vmul.f32 %v22920_v26, %v16620_v2  ;;  %v2547_v54 = vmul.f32 %v22920_v26, %v16632_v60  ;;  %v2548_v18 = vmul.f32 %v22920_v26, %v16634_v33  ;;  %v2549_v48 = vmul.f32 %v22920_v26, %v16775_v47 }
 0x138   :  { %v2550_v45 = vmul.f32 %v22920_v26, %v16777_v30  ;;  %v2551_v53 = vmul.f32 %v22920_v26, %v16963_v56  ;;  %v2552_v42 = vmul.f32 %v22920_v26, %v16965_v31  ;;  %v2597_v35 = vadd.f32 %v2545_v61, %v2492_v17 }
 0x139   :  { %v2598_v28 = vadd.f32 %v2546_v41, %v2493_v23  ;;  %v2599_v38 = vadd.f32 %v2547_v54, %v2494_v51  ;;  %v2600_v50 = vadd.f32 %v2548_v18, %v2495_v9  ;;  %v2601_v15 = vadd.f32 %v2549_v48, %v2496_v27 }
 0x13a   :  { %v2602_v11 = vadd.f32 %v2550_v45, %v2497_v1  ;;  %v2603_v29 = vadd.f32 %v2551_v53, %v2498_v25  ;;  %v2604_v34 = vadd.f32 %v2552_v42, %v2499_v62  ;;  %v2650_v8 = vmul.f32 %v22921_v46, %v22914_v58 }
 0x13b   :  { %v2651_v21 = vmul.f32 %v22921_v46, %v22916_v16  ;;  %v2652_v14 = vmul.f32 %v22921_v46, %v22917_v24  ;;  %v2653_v6 = vmul.f32 %v22921_v46, %v22918_v10  ;;  %v2654_v17 = vmul.f32 %v22921_v46, %v22919_v37 }
 0x13c   :  { %v2655_v23 = vmul.f32 %v22921_v46, %v16759_v7  ;;  %v2656_v51 = vmul.f32 %v22921_v46, %v16935_v39  ;;  %v2657_v9 = vmul.f32 %v22921_v46, %v16937_v20  ;;  %v2764_v27 = vrot.slane %v2650_v8, 1 }
 0x13d   :  { %v2765_v1 = vrot.slane %v2651_v21, 1  ;;  %v2767_v25 = vrot.slane %v2652_v14, 1  ;;  %v2768_v62 = vrot.slane %v2653_v6, 1  ;;  %v2770_v61 = vrot.slane %v2654_v17, 1 }
 0x13e   :  { %v2771_v41 = vrot.slane %v2655_v23, 1  ;;  %v2773_v54 = vrot.slane %v2656_v51, 1  ;;  %v2774_v18 = vrot.slane %v2657_v9, 1  ;;  %v2990_v51 = vmul.f32 %v22920_v26, %v22917_v24 }
 0x13f   :  { %v2766_v48 = vsel %vm491_vm0, %v2764_v27, %v2765_v1  ;;  %v2769_v45 = vsel %vm491_vm0, %v2767_v25, %v2768_v62  ;;  %v17017_v53 = vadd.f32 %v2765_v1, %v2598_v28  ;;  %v17019_v42 = vadd.f32 %v2768_v62, %v2600_v50 }
 0x140   :  { %v2772_v12 = vsel %vm491_vm0, %v2770_v61, %v2771_v41  ;;  %v2775_v49 = vsel %vm491_vm0, %v2773_v54, %v2774_v18  ;;  %v17023_v8 = vadd.f32 %v2766_v48, %v2597_v35  ;;  %v17025_v21 = vadd.f32 %v2769_v45, %v2599_v38 }
 0x141   :  { %v17027_v14 = vadd.f32 %v2772_v12, %v2601_v15  ;;  %v17029_v6 = vadd.f32 %v2771_v41, %v2602_v11  ;;  %v17031_v17 = vadd.f32 %v2775_v49, %v2603_v29  ;;  %v17033_v23 = vadd.f32 %v2774_v18, %v2604_v34 }
 0x142   :  { %v2936_v28 = vmul.f32 %v22915_v43, %v16612_v32  ;;  %v2937_v50 = vmul.f32 %v22915_v43, %v16620_v2  ;;  %v2938_v35 = vmul.f32 %v22915_v43, %v16632_v60  ;;  %v2939_v38 = vmul.f32 %v22915_v43, %v16634_v33 }
 0x143   :  { %v2940_v12 = vmul.f32 %v22915_v43, %v16775_v47  ;;  %v2941_v49 = vmul.f32 %v22915_v43, %v16777_v30  ;;  %v2942_v15 = vmul.f32 %v22915_v43, %v16963_v56  ;;  %v2943_v11 = vmul.f32 %v22915_v43, %v16965_v31 }
 0x144   :  { %v2988_v29 = vmul.f32 %v22920_v26, %v22914_v58  ;;  %v2989_v34 = vmul.f32 %v22920_v26, %v22916_v16  ;;  %v2991_v9 = vmul.f32 %v22920_v26, %v22918_v10  ;;  %v2992_v27 = vmul.f32 %v22920_v26, %v22919_v37 }
 0x145   :  { %v2993_v1 = vmul.f32 %v22920_v26, %v16759_v7  ;;  %v2994_v25 = vmul.f32 %v22920_v26, %v16935_v39  ;;  %v2995_v58 = vmul.f32 %v22920_v26, %v16937_v20  ;;  %v3105_v61 = vrot.slane %v2990_v51, 1 }
 0x146   :  { %v3102_v62 = vrot.slane %v2988_v29, 1  ;;  %v3103_v16 = vrot.slane %v2989_v34, 1  ;;  %v3106_v41 = vrot.slane %v2991_v9, 1  ;;  %v3108_v24 = vrot.slane %v2992_v27, 1 }
 0x147   :  { %v3109_v54 = vrot.slane %v2993_v1, 1  ;;  %v3111_v18 = vrot.slane %v2994_v25, 1  ;;  %v3112_v10 = vrot.slane %v2995_v58, 1  ;;  %v3274_v27 = vmul.f32 %v22921_v46, %v16612_v32 }
 0x148   :  { %v3104_v48 = vsel %vm491_vm0, %v3102_v62, %v3103_v16  ;;  %v3107_v37 = vsel %vm491_vm0, %v3105_v61, %v3106_v41  ;;  %v3223_v45 = vadd.f32 %v3103_v16, %v2937_v50  ;;  %v3225_v7 = vadd.f32 %v3106_v41, %v2939_v38 }
 0x149   :  { %v3110_v43 = vsel %vm491_vm0, %v3108_v24, %v3109_v54  ;;  %v3113_v39 = vsel %vm491_vm0, %v3111_v18, %v3112_v10  ;;  %v3222_v63 = vadd.f32 %v3104_v48, %v2936_v28  ;;  %v3224_v26 = vadd.f32 %v3107_v37, %v2938_v35 }
 0x14a   :  { %v3226_v29 = vadd.f32 %v3110_v43, %v2940_v12  ;;  %v3227_v34 = vadd.f32 %v3109_v54, %v2941_v49  ;;  %v3228_v51 = vadd.f32 %v3113_v39, %v2942_v15  ;;  %v3229_v9 = vadd.f32 %v3112_v10, %v2943_v11 }
 0x14b   :  { %v3275_v1 = vmul.f32 %v22921_v46, %v16620_v2  ;;  %v3276_v50 = vmul.f32 %v22921_v46, %v16632_v60  ;;  %v3277_v38 = vmul.f32 %v22921_v46, %v16634_v33  ;;  %v3278_v28 = vmul.f32 %v22921_v46, %v16775_v47 }
 0x14c   :  { %v3279_v43 = vmul.f32 %v22921_v46, %v16777_v30  ;;  %v3280_v39 = vmul.f32 %v22921_v46, %v16963_v56  ;;  %v3281_v32 = vmul.f32 %v22921_v46, %v16965_v31  ;;  %v3388_v35 = vrot.slane %v3274_v27, 1 }
 0x14d   :  { %v3389_v2 = vrot.slane %v3275_v1, 1  ;;  %v3391_v12 = vrot.slane %v3276_v50, 1  ;;  %v3392_v49 = vrot.slane %v3277_v38, 1  ;;  %v3394_v60 = vrot.slane %v3278_v28, 1 }
 0x14e   :  { %v3395_v15 = vrot.slane %v3279_v43, 1  ;;  %v3397_v11 = vrot.slane %v3280_v39, 1  ;;  %v3398_v33 = vrot.slane %v3281_v32, 1  ;;  %v3560_v48 = vadd.f32 %v17023_v8, %v16905_v5  ;;  %v22922_v8 = vld [vmem:[#allocation62_spill] sm:$0xff] }
 0x14f   :  { %v3390_v25 = vsel %vm491_vm0, %v3388_v35, %v3389_v2  ;;  %v3393_v47 = vsel %vm491_vm0, %v3391_v12, %v3392_v49  ;;  %v3509_v58 = vadd.f32 %v3389_v2, %v3223_v45  ;;  %v3511_v30 = vadd.f32 %v3392_v49, %v3225_v7 }
 0x150   :  { %v3396_v62 = vsel %vm491_vm0, %v3394_v60, %v3395_v15  ;;  %v3399_v16 = vsel %vm491_vm0, %v3397_v11, %v3398_v33  ;;  %v3508_v61 = vadd.f32 %v3390_v25, %v3222_v63  ;;  %v3510_v41 = vadd.f32 %v3393_v47, %v3224_v26 }
 0x151   :  { %v3512_v24 = vadd.f32 %v3396_v62, %v3226_v29  ;;  %v3513_v54 = vadd.f32 %v3395_v15, %v3227_v34  ;;  %v3514_v18 = vadd.f32 %v3399_v16, %v3228_v51  ;;  %v3515_v10 = vadd.f32 %v3398_v33, %v3229_v9 }
 0x152   :  { %v3561_v37 = vadd.f32 %v17017_v53, %v16909_v3  ;;  %v3562_v45 = vadd.f32 %v17025_v21, %v16913_v40  ;;  %v3563_v7 = vadd.f32 %v17019_v42, %v16917_v13  ;;  %v3564_v63 = vadd.f32 %v17027_v14, %v16921_v22  ;;  %v22923_v21 = vld [vmem:[#allocation63_spill] sm:$0xff] }
 0x153   :  { %v3565_v26 = vadd.f32 %v17029_v6, %v16925_v19  ;;  %v3566_v29 = vadd.f32 %v17031_v17, %v16929_v52  ;;  %v3567_v5 = vadd.f32 %v17033_v23, %v16933_v0  ;;  %v3612_v3 = vadd.f32 %v3508_v61, %v16940_v44  ;;  %v22924_v52 = vld [vmem:[#allocation20_spill] sm:$0xff] }
 0x154   :  { %v3613_v53 = vadd.f32 %v3509_v58, %v16943_v4  ;;  %v3614_v40 = vadd.f32 %v3510_v41, %v16946_v57  ;;  %v3615_v13 = vadd.f32 %v3511_v30, %v16949_v59  ;;  %v3616_v42 = vadd.f32 %v3512_v24, %v16952_v36  ;;  %v22933_v30 = vld [vmem:[#allocation22_spill] sm:$0xff]  ;;  %v22934_v24 = vld [vmem:[#allocation23_spill] sm:$0xff] }
 0x155   :  { %v3617_v22 = vadd.f32 %v3513_v54, %v16955_v55  ;;  %v3618_v19 = vadd.f32 %v3514_v18, %v22922_v8  ;;  %v3619_v14 = vadd.f32 %v3515_v10, %v22923_v21  ;;  %v3665_v6 = vadd.f32 %v22924_v52, %v3560_v48 }
 0x156   :  { %v3666_v0 = vadd.f32 %v22924_v52, %v3561_v37  ;;  %v3667_v44 = vadd.f32 %v22924_v52, %v3562_v45  ;;  %v3668_v4 = vadd.f32 %v22924_v52, %v3563_v7  ;;  %v3669_v57 = vadd.f32 %v22924_v52, %v3564_v63  ;;  %v22935_v37 = vld [vmem:[#allocation24_spill] sm:$0xff] }
 0x157   :  { %v3670_v59 = vadd.f32 %v22924_v52, %v3565_v26  ;;  %v3671_v36 = vadd.f32 %v22924_v52, %v3566_v29  ;;  %v3672_v55 = vadd.f32 %v22924_v52, %v3567_v5  ;;  %v17123_v17 = vmax.f32 %v3665_v6, 0.0 }
 0x158   :  { %v17125_v23 = vmax.f32 %v3666_v0, 0.0  ;;  %v17127_v34 = vmax.f32 %v3667_v44, 0.0  ;;  %v17129_v51 = vmax.f32 %v3668_v4, 0.0  ;;  %v17131_v9 = vmax.f32 %v3669_v57, 0.0 }
 0x159   :  { %22925 = vst [vmem:[#allocation54_spill] sm:$0xff] %v17123_v17  ;;  %v17133_v27 = vmax.f32 %v3670_v59, 0.0  ;;  %v17135_v1 = vmax.f32 %v3671_v36, 0.0  ;;  %v17137_v50 = vmax.f32 %v3672_v55, 0.0  ;;  %v3769_v38 = vadd.f32 %v22924_v52, %v3612_v3 }
 0x15a   :  { %22926 = vst [vmem:[#allocation55_spill] sm:$0xff] %v17125_v23  ;;  %22927 = vst [vmem:[#allocation56_spill] sm:$0xff] %v17127_v34  ;;  %v3770_v28 = vadd.f32 %v22924_v52, %v3613_v53  ;;  %v3771_v43 = vadd.f32 %v22924_v52, %v3614_v40  ;;  %v3772_v39 = vadd.f32 %v22924_v52, %v3615_v13 }
 0x15b   :  { %22928 = vst [vmem:[#allocation57_spill] sm:$0xff] %v17129_v51  ;;  %v3773_v32 = vadd.f32 %v22924_v52, %v3616_v42  ;;  %v3774_v35 = vadd.f32 %v22924_v52, %v3617_v22  ;;  %v3775_v2 = vadd.f32 %v22924_v52, %v3618_v19  ;;  %v3776_v12 = vadd.f32 %v22924_v52, %v3619_v14 }
 0x15c   :  { %v17147_v49 = vmax.f32 %v3769_v38, 0.0  ;;  %v17149_v60 = vmax.f32 %v3770_v28, 0.0  ;;  %v17151_v15 = vmax.f32 %v3771_v43, 0.0  ;;  %v17153_v11 = vmax.f32 %v3772_v39, 0.0 }
 0x15d   :  { %v17155_v33 = vmax.f32 %v3773_v32, 0.0  ;;  %v17157_v25 = vmax.f32 %v3774_v35, 0.0  ;;  %v17159_v47 = vmax.f32 %v3775_v2, 0.0  ;;  %v17161_v58 = vmax.f32 %v3776_v12, 0.0 }
 0x15e   :  { %22929 = vst [vmem:[#allocation61_spill] sm:$0xff] %v17147_v49  ;;  %22930 = vst [vmem:[#allocation62_spill] sm:$0xff] %v17149_v60  ;;  %v3875_v62 = vmul.f32 %v22933_v30, %v17123_v17  ;;  %v3876_v16 = vmul.f32 %v22933_v30, %v17125_v23  ;;  %v3877_v61 = vmul.f32 %v22933_v30, %v17127_v34 }
 0x15f   :  { %22931 = vst [vmem:[#allocation63_spill] sm:$0xff] %v17151_v15  ;;  %22932 = vst [vmem:[#allocation65_spill] sm:$0xff] %v17153_v11  ;;  %v3878_v41 = vmul.f32 %v22933_v30, %v17129_v51  ;;  %v3924_v54 = vmul.f32 %v22934_v24, %v17147_v49  ;;  %v3925_v18 = vmul.f32 %v22934_v24, %v17149_v60 }
 0x160   :  { %v3926_v10 = vmul.f32 %v22934_v24, %v17151_v15  ;;  %v3927_v48 = vmul.f32 %v22934_v24, %v17153_v11  ;;  %v4021_v45 = vmul.f32 %v22935_v37, %v17123_v17  ;;  %v4022_v7 = vmul.f32 %v22935_v37, %v17125_v23 }
 0x161   :  { %v4023_v63 = vmul.f32 %v22935_v37, %v17127_v34  ;;  %v4024_v26 = vmul.f32 %v22935_v37, %v17129_v51  ;;  %v3972_v29 = vadd.f32 %v3924_v54, %v3875_v62  ;;  %v3973_v5 = vadd.f32 %v3925_v18, %v3876_v16 }
 0x162   :  { %v3974_v3 = vadd.f32 %v3926_v10, %v3877_v61  ;;  %v3975_v53 = vadd.f32 %v3927_v48, %v3878_v41  ;;  %v4127_v40 = vrot.slane %v4021_v45, 1  ;;  %v4128_v13 = vrot.slane %v4022_v7, 1 }
 0x163   :  { %v4130_v42 = vrot.slane %v4023_v63, 1  ;;  %v4131_v22 = vrot.slane %v4024_v26, 1  ;;  %v4285_v8 = vmul.f32 %v22933_v30, %v17147_v49  ;;  %v4286_v19 = vmul.f32 %v22933_v30, %v17149_v60 }
 0x164   :  { %v4287_v21 = vmul.f32 %v22933_v30, %v17151_v15  ;;  %v4288_v14 = vmul.f32 %v22933_v30, %v17153_v11  ;;  %v4129_v6 = vsel %vm491_vm0, %v4127_v40, %v4128_v13  ;;  %v17197_v44 = vadd.f32 %v4128_v13, %v3973_v5 }
 0x165   :  { %v4132_v0 = vsel %vm491_vm0, %v4130_v42, %v4131_v22  ;;  %v17199_v4 = vadd.f32 %v4131_v22, %v3975_v53  ;;  %v17201_v57 = vadd.f32 %v4129_v6, %v3972_v29  ;;  %v4333_v36 = vmul.f32 %v22934_v24, %v17123_v17  ;;  %v22936_v53 = vld [vmem:[#allocation47_spill] sm:$0xff] }
 0x166   :  { %v17203_v59 = vadd.f32 %v4132_v0, %v3974_v3  ;;  %v4334_v55 = vmul.f32 %v22934_v24, %v17125_v23  ;;  %v4335_v38 = vmul.f32 %v22934_v24, %v17127_v34  ;;  %v4336_v28 = vmul.f32 %v22934_v24, %v17129_v51 }
 0x167   :  { %v4597_v43 = vmul.f32 %v22935_v37, %v17147_v49  ;;  %v4598_v39 = vmul.f32 %v22935_v37, %v17149_v60  ;;  %v4439_v32 = vrot.slane %v4333_v36, 1  ;;  %v4599_v2 = vmul.f32 %v22935_v37, %v17151_v15 }
 0x168   :  { %v4440_v35 = vrot.slane %v4334_v55, 1  ;;  %v4600_v12 = vmul.f32 %v22935_v37, %v17153_v11  ;;  %v4442_v62 = vrot.slane %v4335_v38, 1  ;;  %v4443_v16 = vrot.slane %v4336_v28, 1  ;;  %v22938_v38 = vld [vmem:[#allocation49_spill] sm:$0xff] }
 0x169   :  { %v4703_v61 = vrot.slane %v4597_v43, 1  ;;  %v4704_v41 = vrot.slane %v4598_v39, 1  ;;  %v4706_v10 = vrot.slane %v4599_v2, 1  ;;  %v4862_v40 = vmul.f32 %v22936_v53, %v17127_v34 }
 0x16a   :  { %v4441_v54 = vsel %vm491_vm0, %v4439_v32, %v4440_v35  ;;  %v4550_v18 = vadd.f32 %v4440_v35, %v4286_v19  ;;  %v4707_v48 = vrot.slane %v4600_v12, 1  ;;  %v4444_v45 = vsel %vm491_vm0, %v4442_v62, %v4443_v16 }
 0x16b   :  { %v4549_v7 = vadd.f32 %v4441_v54, %v4285_v8  ;;  %v4552_v63 = vadd.f32 %v4443_v16, %v4288_v14  ;;  %v4705_v26 = vsel %vm491_vm0, %v4703_v61, %v4704_v41  ;;  %v4551_v29 = vadd.f32 %v4444_v45, %v4287_v21  ;;  %v22937_v14 = vld [vmem:[#allocation48_spill] sm:$0xff] }
 0x16c   :  { %v4708_v5 = vsel %vm491_vm0, %v4706_v10, %v4707_v48  ;;  %v17225_v3 = vadd.f32 %v4704_v41, %v4550_v18  ;;  %v4863_v22 = vmul.f32 %v22936_v53, %v17129_v51  ;;  %v4864_v8 = vmul.f32 %v22936_v53, %v17131_v9 }
 0x16d   :  { %v17229_v13 = vadd.f32 %v4705_v26, %v4549_v7  ;;  %v17231_v42 = vadd.f32 %v4707_v48, %v4552_v63  ;;  %v17237_v19 = vadd.f32 %v4708_v5, %v4551_v29  ;;  %v4865_v21 = vmul.f32 %v22936_v53, %v17133_v27 }
 0x16e   :  { %v4911_v6 = vmul.f32 %v22937_v14, %v17151_v15  ;;  %v4912_v0 = vmul.f32 %v22937_v14, %v17153_v11  ;;  %v4913_v36 = vmul.f32 %v22937_v14, %v17155_v33  ;;  %v4914_v55 = vmul.f32 %v22937_v14, %v17157_v25 }
 0x16f   :  { %v5008_v28 = vmul.f32 %v22938_v38, %v17127_v34  ;;  %v5009_v43 = vmul.f32 %v22938_v38, %v17129_v51  ;;  %v5010_v35 = vmul.f32 %v22938_v38, %v17131_v9  ;;  %v5011_v2 = vmul.f32 %v22938_v38, %v17133_v27 }
 0x170   :  { %v4959_v39 = vadd.f32 %v4911_v6, %v4862_v40  ;;  %v4960_v32 = vadd.f32 %v4912_v0, %v4863_v22  ;;  %v4961_v12 = vadd.f32 %v4913_v36, %v4864_v8  ;;  %v4962_v62 = vadd.f32 %v4914_v55, %v4865_v21 }
 0x171   :  { %v5114_v16 = vrot.slane %v5008_v28, 1  ;;  %v5115_v61 = vrot.slane %v5009_v43, 1  ;;  %v5117_v41 = vrot.slane %v5010_v35, 1  ;;  %v5118_v54 = vrot.slane %v5011_v2, 1 }
 0x172   :  { %v5272_v18 = vmul.f32 %v22936_v53, %v17151_v15  ;;  %v5273_v10 = vmul.f32 %v22936_v53, %v17153_v11  ;;  %v5274_v7 = vmul.f32 %v22936_v53, %v17155_v33  ;;  %v5275_v63 = vmul.f32 %v22936_v53, %v17157_v25 }
 0x173   :  { %v5116_v48 = vsel %vm491_vm0, %v5114_v16, %v5115_v61  ;;  %v5225_v45 = vadd.f32 %v5115_v61, %v4960_v32  ;;  %v5119_v26 = vsel %vm491_vm0, %v5117_v41, %v5118_v54  ;;  %v5227_v5 = vadd.f32 %v5118_v54, %v4962_v62 }
 0x174   :  { %v5224_v29 = vadd.f32 %v5116_v48, %v4959_v39  ;;  %v5320_v40 = vmul.f32 %v22937_v14, %v17127_v34  ;;  %v5226_v22 = vadd.f32 %v5119_v26, %v4961_v12  ;;  %v5321_v8 = vmul.f32 %v22937_v14, %v17129_v51 }
 0x175   :  { %v5322_v21 = vmul.f32 %v22937_v14, %v17131_v9  ;;  %v5323_v6 = vmul.f32 %v22937_v14, %v17133_v27  ;;  %v5584_v36 = vmul.f32 %v22938_v38, %v17151_v15  ;;  %v5585_v55 = vmul.f32 %v22938_v38, %v17153_v11 }
 0x176   :  { %v5426_v0 = vrot.slane %v5320_v40, 1  ;;  %v5586_v28 = vmul.f32 %v22938_v38, %v17155_v33  ;;  %v5427_v43 = vrot.slane %v5321_v8, 1  ;;  %v5587_v35 = vmul.f32 %v22938_v38, %v17157_v25 }
 0x177   :  { %v5429_v39 = vrot.slane %v5322_v21, 1  ;;  %v5430_v32 = vrot.slane %v5323_v6, 1  ;;  %v5690_v2 = vrot.slane %v5584_v36, 1  ;;  %v5691_v12 = vrot.slane %v5585_v55, 1 }
 0x178   :  { %v5693_v62 = vrot.slane %v5586_v28, 1  ;;  %v17284_v16 = vadd.f32 %v5224_v29, %v17201_v57  ;;  %v5428_v61 = vsel %vm491_vm0, %v5426_v0, %v5427_v43  ;;  %v5537_v54 = vadd.f32 %v5427_v43, %v5273_v10 }
 0x179   :  { %v5431_v41 = vsel %vm491_vm0, %v5429_v39, %v5430_v32  ;;  %v5539_v48 = vadd.f32 %v5430_v32, %v5275_v63  ;;  %v5536_v26 = vadd.f32 %v5428_v61, %v5272_v18  ;;  %v5692_v8 = vsel %vm491_vm0, %v5690_v2, %v5691_v12  ;;  %v22939_v18 = vld [vmem:[#allocation50_spill] sm:$0xff]  ;;  %v22941_v32 = vld [vmem:[#allocation52_spill] sm:$0xff] }
 0x17a   :  { %v5538_v40 = vadd.f32 %v5431_v41, %v5274_v7  ;;  %v5694_v21 = vrot.slane %v5587_v35, 1  ;;  %v5801_v6 = vadd.f32 %v5691_v12, %v5537_v54  ;;  %v17290_v11 = vadd.f32 %v5225_v45, %v17197_v44 }
 0x17b   :  { %v17293_v36 = vadd.f32 %v5226_v22, %v17203_v59  ;;  %v17296_v57 = vadd.f32 %v5227_v5, %v17199_v4  ;;  %v5800_v0 = vadd.f32 %v5692_v8, %v5536_v26  ;;  %v5945_v7 = vmul.f32 %v22939_v18, %v17131_v9  ;;  %v22940_v22 = vld [vmem:[#allocation51_spill] sm:$0xff] }
 0x17c   :  { %v5695_v29 = vsel %vm491_vm0, %v5693_v62, %v5694_v21  ;;  %v5803_v10 = vadd.f32 %v5694_v21, %v5539_v48  ;;  %v17302_v55 = vadd.f32 %v5801_v6, %v17225_v3  ;;  %v5946_v44 = vmul.f32 %v22939_v18, %v17133_v27 }
 0x17d   :  { %v5802_v63 = vadd.f32 %v5695_v29, %v5538_v40  ;;  %v5947_v59 = vmul.f32 %v22939_v18, %v17135_v1  ;;  %v17309_v4 = vadd.f32 %v5800_v0, %v17229_v13  ;;  %v5948_v5 = vmul.f32 %v22939_v18, %v17137_v50 }
 0x17e   :  { %v17312_v45 = vadd.f32 %v5803_v10, %v17231_v42  ;;  %v5994_v28 = vmul.f32 %v22940_v22, %v17155_v33  ;;  %v5995_v43 = vmul.f32 %v22940_v22, %v17157_v25  ;;  %v5996_v39 = vmul.f32 %v22940_v22, %v17159_v47 }
 0x17f   :  { %v17319_v3 = vadd.f32 %v5802_v63, %v17237_v19  ;;  %v5997_v13 = vmul.f32 %v22940_v22, %v17161_v58  ;;  %v6091_v35 = vmul.f32 %v22941_v32, %v17131_v9  ;;  %v6092_v2 = vmul.f32 %v22941_v32, %v17133_v27 }
 0x180   :  { %v6042_v42 = vadd.f32 %v5994_v28, %v5945_v7  ;;  %v6093_v19 = vmul.f32 %v22941_v32, %v17135_v1  ;;  %v6043_v12 = vadd.f32 %v5995_v43, %v5946_v44  ;;  %v6044_v62 = vadd.f32 %v5996_v39, %v5947_v59 }
 0x181   :  { %v6045_v61 = vadd.f32 %v5997_v13, %v5948_v5  ;;  %v6094_v41 = vmul.f32 %v22941_v32, %v17137_v50  ;;  %v6197_v54 = vrot.slane %v6091_v35, 1  ;;  %v6198_v48 = vrot.slane %v6092_v2, 1 }
 0x182   :  { %v6200_v26 = vrot.slane %v6093_v19, 1  ;;  %v6355_v40 = vmul.f32 %v22939_v18, %v17155_v33  ;;  %v6356_v21 = vmul.f32 %v22939_v18, %v17157_v25  ;;  %v6357_v6 = vmul.f32 %v22939_v18, %v17159_v47 }
 0x183   :  { %v6201_v8 = vrot.slane %v6094_v41, 1  ;;  %v6358_v29 = vmul.f32 %v22939_v18, %v17161_v58  ;;  %v6199_v0 = vsel %vm491_vm0, %v6197_v54, %v6198_v48  ;;  %v6308_v10 = vadd.f32 %v6198_v48, %v6043_v12 }
 0x184   :  { %v6403_v7 = vmul.f32 %v22940_v22, %v17131_v9  ;;  %v6404_v63 = vmul.f32 %v22940_v22, %v17133_v27  ;;  %v6307_v59 = vadd.f32 %v6199_v0, %v6042_v42  ;;  %v6405_v28 = vmul.f32 %v22940_v22, %v17135_v1 }
 0x185   :  { %v6202_v44 = vsel %vm491_vm0, %v6200_v26, %v6201_v8  ;;  %v6310_v5 = vadd.f32 %v6201_v8, %v6045_v61  ;;  %v6406_v39 = vmul.f32 %v22940_v22, %v17137_v50  ;;  %v6667_v19 = vmul.f32 %v22941_v32, %v17155_v33 }
 0x186   :  { %v6309_v43 = vadd.f32 %v6202_v44, %v6044_v62  ;;  %v6509_v13 = vrot.slane %v6403_v7, 1  ;;  %v6510_v35 = vrot.slane %v6404_v63, 1  ;;  %v6512_v2 = vrot.slane %v6405_v28, 1 }
 0x187   :  { %v6668_v12 = vmul.f32 %v22941_v32, %v17157_v25  ;;  %v6669_v42 = vmul.f32 %v22941_v32, %v17159_v47  ;;  %v6513_v41 = vrot.slane %v6406_v39, 1  ;;  %v6670_v62 = vmul.f32 %v22941_v32, %v17161_v58 }
 0x188   :  { %v6511_v61 = vsel %vm491_vm0, %v6509_v13, %v6510_v35  ;;  %v6620_v54 = vadd.f32 %v6510_v35, %v6356_v21  ;;  %v6773_v26 = vrot.slane %v6667_v19, 1  ;;  %v6931_v28 = vadd.f32 %v6307_v59, %v17284_v16 }
 0x189   :  { %v6619_v48 = vadd.f32 %v6511_v61, %v6355_v40  ;;  %v6774_v8 = vrot.slane %v6668_v12, 1  ;;  %v6776_v0 = vrot.slane %v6669_v42, 1  ;;  %v6514_v7 = vsel %vm491_vm0, %v6512_v2, %v6513_v41  ;;  %v22942_v2 = vld [vmem:[#allocation53_spill] sm:$0xff] }
 0x18a   :  { %v6622_v63 = vadd.f32 %v6513_v41, %v6358_v29  ;;  %v6777_v44 = vrot.slane %v6670_v62, 1  ;;  %v6621_v15 = vadd.f32 %v6514_v7, %v6357_v6  ;;  %v6932_v39 = vadd.f32 %v6308_v10, %v17290_v11 }
 0x18b   :  { %v6775_v51 = vsel %vm491_vm0, %v6773_v26, %v6774_v8  ;;  %v6884_v34 = vadd.f32 %v6774_v8, %v6620_v54  ;;  %v6933_v40 = vadd.f32 %v6309_v43, %v17293_v36  ;;  %v6934_v12 = vadd.f32 %v6310_v5, %v17296_v57  ;;  %v14078_v57 = vld [vmem:[%s22509_s5 + $0x50] sm:$0xff]  ;;  %v14079_v54 = vld [vmem:[%s22509_s5 + $0x58] sm:$0x3] }
 0x18c   :  { %v6778_v21 = vsel %vm491_vm0, %v6776_v0, %v6777_v44  ;;  %v6883_v13 = vadd.f32 %v6775_v51, %v6619_v48  ;;  %v6886_v35 = vadd.f32 %v6777_v44, %v6622_v63  ;;  %v7028_v42 = vadd.f32 %v22942_v2, %v6931_v28 }
 0x18d   :  { %v6885_v19 = vadd.f32 %v6778_v21, %v6621_v15  ;;  %v6980_v29 = vadd.f32 %v6884_v34, %v17302_v55  ;;  %v7029_v59 = vadd.f32 %v22942_v2, %v6932_v39  ;;  %v7030_v11 = vadd.f32 %v22942_v2, %v6933_v40  ;;  %v14070_v34 = vld [vmem:[%s22509_s5 + $0x10] sm:$0xff] }
 0x18e   :  { %v6979_v16 = vadd.f32 %v6883_v13, %v17309_v4  ;;  %v6982_v6 = vadd.f32 %v6886_v35, %v17312_v45  ;;  %v7031_v10 = vadd.f32 %v22942_v2, %v6934_v12  ;;  %v7076_v36 = vmax.f32 %v7028_v42, 0.0 }
 0x18f   :  { %v6981_v51 = vadd.f32 %v6885_v19, %v17319_v3  ;;  %v7125_v15 = vadd.f32 %v22942_v2, %v6980_v29  ;;  %v7077_v55 = vmax.f32 %v7029_v59, 0.0  ;;  %v7078_v4 = vmax.f32 %v7030_v11, 0.0  ;;  %v14071_v3 = vld [vmem:[%s22509_s5 + $0x18] sm:$0x3] }
 0x190   :  { %v7124_v45 = vadd.f32 %v22942_v2, %v6979_v16  ;;  %v7127_v5 = vadd.f32 %v22942_v2, %v6982_v6  ;;  %v7079_v43 = vmax.f32 %v7031_v10, 0.0  ;;  %v7261_v26 = vsel %vm7259_vm2, %v14070_v34, 0  ;;  %v22947_v16 = vld [vmem:[#allocation58_spill] sm:$0xff]  ;;  %v22950_v11 = vld [vmem:[#allocation59_spill] sm:$0xff] }
 0x191   :  { %v7126_v61 = vadd.f32 %v22942_v2, %v6981_v51  ;;  %v7173_v41 = vmax.f32 %v7125_v15, 0.0  ;;  %v9843_v8 = vsel %vm7259_vm2, %v14078_v57, 0  ;;  %v17395_v63 = vand.u32 4294901760, %v7261_v26 }
 0x192   :  { %v7172_v62 = vmax.f32 %v7124_v45, 0.0  ;;  %v7175_v48 = vmax.f32 %v7127_v5, 0.0  ;;  %v17397_v44 = vand.u32 4294901760, %v9843_v8  ;;  %v7264_v21 = vsel %vm7259_vm2, %v14071_v3, 0 }
 0x193   :  { %v7174_v0 = vmax.f32 %v7126_v61, 0.0  ;;  %v7221_v7 = vmax.f32 %v7077_v55, %v7173_v41  ;;  %v9846_v13 = vsel %vm7259_vm2, %v14079_v54, 0  ;;  %v17402_v40 = vsub.f32 %v7261_v26, %v17395_v63 }
 0x194   :  { %22943 = vst [vmem:[#allocation50_spill] sm:$0xff] %v17397_v44  ;;  %v7220_v28 = vmax.f32 %v7076_v36, %v7172_v62  ;;  %v7223_v39 = vmax.f32 %v7079_v43, %v7175_v48  ;;  %v17405_v19 = vsub.f32 %v9843_v8, %v17397_v44  ;;  %v17407_v12 = vand.u32 4294901760, %v7264_v21 }
 0x195   :  { %v7222_v35 = vmax.f32 %v7078_v4, %v7174_v0  ;;  %v17409_v42 = vand.u32 4294901760, %v9846_v13  ;;  %v22948_v6 = vand.u32 4294901760, %v22947_v16  ;;  %v22951_v51 = vand.u32 4294901760, %v22950_v11 }
 0x196   :  { %22944 = vst [vmem:[#allocation51_spill] sm:$0xff] %v17405_v19  ;;  %22945 = vst [vmem:[#allocation66_spill] sm:$0xff] %v17407_v12  ;;  %v9838_v29 = vmax.f32 %v7221_v7, %v7223_v39  ;;  %v22629_v15 = vand.u32 4294901760, %v17402_v40  ;;  %v9920_v34 = vand.u32 4294901760, %v17405_v19  ;;  %v17424_v57 = vsub.f32 %v7264_v21, %v17407_v12 }
 0x197   :  { %22946 = vst [vmem:[#allocation67_spill] sm:$0xff] %v17409_v42  ;;  %v17414_v59 = vsub.f32 %v22947_v16, %v22948_v6  ;;  %v17419_v10 = vsub.f32 %v22950_v11, %v22951_v51  ;;  %v9837_v36 = vmax.f32 %v7220_v28, %v7222_v35  ;;  %v17428_v4 = vsub.f32 %v9846_v13, %v17409_v42  ;;  %v15433_v6 = vld [vmem:[#allocation9 + $0xe0] sm:$0xff]  ;;  %v22959_v11 = vld [vmem:[#allocation18_spill] sm:$0xff] }
 0x198   :  { %v9849_v55 = vsel %vm7266_vm1, %v9838_v29, 0  ;;  %v7340_v61 = vsub.f32 %v17402_v40, %v22629_v15  ;;  %14639 = vmatprep.mubr.f32.mxu0 %v9920_v34  ;;  %v22628_v41 = vand.u32 4294901760, %v17424_v57  ;;  %v17450_v28 = vsub.f32 %v17405_v19, %v9920_v34 }
 0x199   :  { %22949 = vst [vmem:[#allocation58_spill] sm:$0xff] %v17414_v59  ;;  %22952 = vst [vmem:[#allocation59_spill] sm:$0xff] %v17419_v10  ;;  %v22627_v45 = vand.u32 4294901760, %v17414_v59  ;;  %v22626_v5 = vand.u32 4294901760, %v17419_v10  ;;  %v9852_v3 = vand.u32 4294901760, %v9837_v36  ;;  %v9855_v43 = vand.u32 4294901760, %v9849_v55 }
 0x19a   :  { %22953 = vst [vmem:[#allocation68_spill] sm:$0xff] %v17428_v4  ;;  %v9930_v54 = vand.u32 4294901760, %v17428_v4  ;;  %v7341_v8 = vand.u32 4294901760, %v7340_v61  ;;  %22957 = vst [vmem:[#allocation72_spill] sm:$0xff] %v17450_v28  ;;  %v7350_v39 = vsub.f32 %v17424_v57, %v22628_v41  ;;  %v257_v51 = vmul.f32 %v15433_v6, %v22959_v11  ;;  %v15436_v41 = vld [vmem:[#allocation10 + $0xe8] sm:$0x3f] }
 0x19b   :  { %v7361_v62 = vsub.f32 %v17414_v59, %v22627_v45  ;;  %v7368_v48 = vsub.f32 %v17419_v10, %v22626_v5  ;;  %v17443_v26 = vpack.c.bf16 %v9855_v43, %v9852_v3  ;;  %v17445_v0 = vsub.f32 %v9837_v36, %v9852_v3  ;;  %v14080_v36 = vld [vmem:[%s22509_s5 + $0x60] sm:$0xff] }
 0x19c   :  { %v17447_v7 = vsub.f32 %v9849_v55, %v9855_v43  ;;  %14408 = vmatprep.mubr.f32.mxu1 %v7341_v8  ;;  %v17457_v35 = vsub.f32 %v17428_v4, %v9930_v54  ;;  %v7351_v34 = vand.u32 4294901760, %v7350_v39  ;;  %v14958_v3 = vpack.c.bf16 %v17419_v10, %v17414_v59  ;;  %v15434_v43 = vld [vmem:[#allocation9 + $0xe8] sm:$0x3f]  ;;  %v15435_v45 = vld [vmem:[#allocation10 + $0xe0] sm:$0xff]  ;;  %v22961_v39 = vld [vmem:[#allocation19_spill] sm:$0xff] }
 0x19d   :  { %22954 = vst [vmem:[#allocation69_spill] sm:$0xff] %v17443_v26  ;;  %22955 = vst [vmem:[#allocation70_spill] sm:$0xff] %v17445_v0  ;;  %v7362_v21 = vand.u32 4294901760, %v7361_v62  ;;  %v7369_v13 = vand.u32 4294901760, %v7368_v48  ;;  %15083 = vmatprep.subr.bf16.mxu0 %v17443_v26  ;;  %v22631_v29 = vand.u32 4294901760, %v17445_v0  ;;  %v258_v61 = vmul.f32 %v15434_v43, %v22959_v11  ;;  %v22960_v48 = vld [vmem:[#allocation64_spill] sm:$0xff] }
 0x19e   :  { %22956 = vst [vmem:[#allocation71_spill] sm:$0xff] %v17447_v7  ;;  %22958 = vst [vmem:[#allocation73_spill] sm:$0xff] %v17457_v35  ;;  %v22630_v16 = vand.u32 4294901760, %v17447_v7  ;;  %15085 = vmatpush3.bf16.msra.mxu0 %v17443_v26  ;;  %v259_v8 = vmul.f32 %v22959_v11, %v22960_v48  ;;  %v260_v5 = vmul.f32 %v22959_v11, %v16937_v20  ;;  %14409 = vmatmul.mubr.f32.vlgmr.msra.gmra.mrb[0].mxu1 %v7351_v34  ;;  %v22963_v35 = vld [vmem:[#allocation21_spill] sm:$0xff] }
 0x19f   :  { %v14954_v55 = vpack.c.bf16 %v7369_v13, %v7362_v21  ;;  %v310_v21 = vmul.f32 %v15435_v45, %v22961_v39  ;;  %v14081_v13 = vld [vmem:[%s22509_s5 + $0x68] sm:$0x3]  ;;  %v311_v15 = vmul.f32 %v15436_v41, %v22961_v39  ;;  %v17487_v4 = vsel %vm7259_vm2, %v14080_v36, 0  ;;  %14415 = vmatprep.mubr.f32.mxu1 %v17395_v63 }
 0x1a0   :  { %v15086_v62 = vpack.c.bf16 %v22630_v16, %v22631_v29  ;;  %v312_v16 = vmul.f32 %v22961_v39, %v16963_v56  ;;  %v313_v29 = vmul.f32 %v22961_v39, %v16965_v31  ;;  %22962 = vst [vmem:[#allocation64_spill] sm:$0xff] %v17487_v4  ;;  %v415_v7 = vmul.f32 %v15433_v6, %v22963_v35 }
 0x1a1   :  { %14955 = vmatprep.subr.bf16.mxu1 %v14954_v55  ;;  %14640 = vmatmul.mubr.f32.vlgmr.msra.gmra.mrb[0].mxu0 %v9930_v54  ;;  %v362_v19 = vadd.f32 %v310_v21, %v257_v51  ;;  %v416_v34 = vmul.f32 %v15434_v43, %v22963_v35  ;;  %v17492_v0 = vand.u32 4294901760, %v17487_v4  ;;  %v363_v28 = vadd.f32 %v311_v15, %v258_v61 }
 0x1a2   :  { %15087 = vmatprep.subr.bf16.mxu0 %v15086_v62  ;;  %14957 = vmatpush3.bf16.msra.mxu1 %v14954_v55  ;;  %v364_v60 = vadd.f32 %v312_v16, %v259_v8  ;;  %v365_v49 = vadd.f32 %v313_v29, %v260_v5  ;;  %v17495_v23 = vsel %vm7259_vm2, %v14081_v13, 0  ;;  %v417_v54 = vmul.f32 %v22963_v35, %v22960_v48 }
 0x1a3   :  { %22964 = vst [vmem:[#allocation74_spill] sm:$0xff] %v17492_v0  ;;  %15089 = vmatpush3.bf16.msra.mxu0 %v15086_v62  ;;  %22965 = vst [vmem:[#allocation75_spill] sm:$0xff] %v17495_v23  ;;  %14646 = vmatprep.mubr.f32.mxu0 %v17397_v44  ;;  %v418_v51 = vmul.f32 %v22963_v35, %v16937_v20  ;;  %v534_v36 = vrot.slane %v415_v7, 1  ;;  %v535_v21 = vrot.slane %v416_v34, 1  ;;  %v17509_v16 = vand.u32 4294901760, %v17495_v23 }
 0x1a4   :  { %14959 = vmatprep.subr.bf16.mxu1 %v14958_v3  ;;  %15091 = vmatprep.subr.bf16.mxu0 %v17443_v26  ;;  %v702_v15 = vmul.f32 %v15435_v45, %v22959_v11  ;;  %v703_v5 = vmul.f32 %v15436_v41, %v22959_v11  ;;  %v704_v29 = vmul.f32 %v22959_v11, %v16963_v56  ;;  %v537_v61 = vrot.slane %v417_v54, 1 }
 0x1a5   :  { %22966 = vst [vmem:[#allocation76_spill] sm:$0xff] %v17509_v16  ;;  %v536_v55 = vsel %vm491_vm0, %v534_v36, %v535_v21  ;;  %v538_v62 = vrot.slane %v418_v51, 1  ;;  %v17512_v8 = vadd.f32 %v535_v21, %v363_v28  ;;  %v705_v13 = vmul.f32 %v22959_v11, %v16965_v31 }
 0x1a6   :  { %v17514_v7 = vadd.f32 %v536_v55, %v362_v19  ;;  %v754_v34 = vmul.f32 %v15433_v6, %v22961_v39  ;;  %v755_v17 = vmul.f32 %v15434_v43, %v22961_v39  ;;  %v756_v36 = vmul.f32 %v22961_v39, %v22960_v48  ;;  %14416 = vmatmul.mubr.f32.vlgmr.msra.gmra.mrb[0].mxu1 %v17407_v12 }
 0x1a7   :  { %v539_v10 = vsel %vm491_vm0, %v537_v61, %v538_v62  ;;  %v17521_v59 = vadd.f32 %v538_v62, %v365_v49  ;;  %v757_v28 = vmul.f32 %v22961_v39, %v16937_v20  ;;  %v1040_v6 = vmul.f32 %v15435_v45, %v22963_v35  ;;  %14961 = vmatpush3.bf16.msra.mxu1 %v14958_v3  ;;  %v17537_v20 = vld [vmem:[#allocation9 + $0x100] sm:$0xff] }
 0x1a8   :  { %v17528_v19 = vadd.f32 %v539_v10, %v364_v60  ;;  %v872_v54 = vrot.slane %v754_v34, 1  ;;  %v873_v51 = vrot.slane %v755_v17, 1  ;;  %v875_v43 = vrot.slane %v756_v36, 1  ;;  %14422 = vmatprep.mubr.f32.mxu1 %v17402_v40  ;;  %v22967_v3 = vld [vmem:[#allocation60_spill] sm:$0xff] }
 0x1a9   :  { %14647 = vmatmul.mubr.f32.vlgmr.msra.gmra.mrb[0].mxu0 %v17409_v42  ;;  %v876_v49 = vrot.slane %v757_v28, 1  ;;  %v1041_v21 = vmul.f32 %v15436_v41, %v22963_v35  ;;  %v1042_v48 = vmul.f32 %v22963_v35, %v16963_v56  ;;  %v1043_v10 = vmul.f32 %v22963_v35, %v16965_v31  ;;  %14963 = vmatprep.subr.bf16.mxu1 %v22967_v3  ;;  %v17544_v41 = vld [vmem:[#allocation9 + $0x108] sm:$0x3f]  ;;  %v17547_v34 = vld [vmem:[#allocation10 + $0x100] sm:$0xff]  ;;  %v15438_v35 = vld [vmem:[#allocation9 + $0xf8] sm:$0x3f] }
 0x1aa   :  { %15093 = vmatpush3.bf16.msra.mxu0 %v17443_v26  ;;  %v874_v17 = vsel %vm491_vm0, %v872_v54, %v873_v51  ;;  %v989_v60 = vadd.f32 %v873_v51, %v703_v5  ;;  %v1158_v45 = vrot.slane %v1040_v6, 1  ;;  %14653 = vmatprep.mubr.f32.mxu0 %v17397_v44  ;;  %v15437_v54 = vld [vmem:[#allocation9 + $0xf0] sm:$0xff]  ;;  %v22968_v51 = vld [vmem:[#allocation27_spill] sm:$0xff]  ;;  %v17550_v6 = vld [vmem:[#allocation10 + $0x108] sm:$0x3f]  ;;  %v22971_v0 = vand.u32 4294901760, %v17402_v40 }
 0x1ab   :  { %v877_v56 = vsel %vm491_vm0, %v875_v43, %v876_v49  ;;  %v988_v55 = vadd.f32 %v874_v17, %v702_v15  ;;  %v991_v61 = vadd.f32 %v876_v49, %v705_v13  ;;  %v1159_v62 = vrot.slane %v1041_v21, 1  ;;  %v15439_v17 = vld [vmem:[#allocation10 + $0xf0] sm:$0xff] }
 0x1ac   :  { %v990_v36 = vadd.f32 %v877_v56, %v704_v29  ;;  %v1161_v28 = vrot.slane %v1042_v48, 1  ;;  %v1162_v5 = vrot.slane %v1043_v10, 1  ;;  %v1327_v31 = vmul.f32 %v15437_v54, %v22968_v51 }
 0x1ad   :  { %v1160_v44 = vsel %vm491_vm0, %v1158_v45, %v1159_v62  ;;  %v17553_v26 = vadd.f32 %v1159_v62, %v989_v60  ;;  %v1328_v43 = vmul.f32 %v15438_v35, %v22968_v51  ;;  %v1329_v15 = vmul.f32 %v22968_v51, %v17537_v20  ;;  %v22969_v60 = vld [vmem:[#allocation28_spill] sm:$0xff]  ;;  %v15440_v45 = vld [vmem:[#allocation10 + $0xf8] sm:$0x3f] }
 0x1ae   :  { %v1163_v13 = vsel %vm491_vm0, %v1161_v28, %v1162_v5  ;;  %v17559_v29 = vadd.f32 %v1160_v44, %v988_v55  ;;  %v17561_v49 = vadd.f32 %v1162_v5, %v991_v61  ;;  %v1330_v21 = vmul.f32 %v22968_v51, %v17544_v41  ;;  %14423 = vmatmul.mubr.f32.vlgmr.msra.gmra.mrb[0].mxu1 %v17424_v57  ;;  %v22970_v55 = vld [vmem:[#allocation29_spill] sm:$0xff] }
 0x1af   :  { %v17565_v48 = vadd.f32 %v1163_v13, %v990_v36  ;;  %v1380_v10 = vmul.f32 %v15439_v17, %v22969_v60  ;;  %v1381_v56 = vmul.f32 %v15440_v45, %v22969_v60  ;;  %v1382_v62 = vmul.f32 %v22969_v60, %v17547_v34  ;;  %14965 = vmatpush3.bf16.msra.mxu1 %v22967_v3 }
 0x1b0   :  { %v1383_v44 = vmul.f32 %v22969_v60, %v17550_v6  ;;  %v1485_v61 = vmul.f32 %v15437_v54, %v22970_v55  ;;  %v1486_v28 = vmul.f32 %v15438_v35, %v22970_v55  ;;  %v1487_v36 = vmul.f32 %v22970_v55, %v17537_v20  ;;  %14429 = vmatprep.mubr.f32.mxu1 %v22971_v0 }
 0x1b1   :  { %14654 = vmatmul.mubr.f32.vlgmr.msra.gmra.mrb[0].mxu0 %v17409_v42  ;;  %v1432_v5 = vadd.f32 %v1380_v10, %v1327_v31  ;;  %v1433_v13 = vadd.f32 %v1381_v56, %v1328_v43  ;;  %v1434_v12 = vadd.f32 %v1382_v62, %v1329_v15  ;;  %v1488_v39 = vmul.f32 %v22970_v55, %v17544_v41 }
 0x1b2   :  { %v1435_v11 = vadd.f32 %v1383_v44, %v1330_v21  ;;  %v1603_v23 = vrot.slane %v1485_v61, 1  ;;  %v1604_v16 = vrot.slane %v1486_v28, 1  ;;  %v1606_v4 = vrot.slane %v1487_v36, 1 }
 0x1b3   :  { %v1607_v2 = vrot.slane %v1488_v39, 1  ;;  %v1771_v32 = vmul.f32 %v15439_v17, %v22968_v51  ;;  %v1772_v42 = vmul.f32 %v15440_v45, %v22968_v51  ;;  %v1773_v31 = vmul.f32 %v22968_v51, %v17547_v34 }
 0x1b4   :  { %v1605_v43 = vsel %vm491_vm0, %v1603_v23, %v1604_v16  ;;  %v1720_v15 = vadd.f32 %v1604_v16, %v1433_v13  ;;  %v1774_v21 = vmul.f32 %v22968_v51, %v17550_v6  ;;  %v1823_v10 = vmul.f32 %v15437_v54, %v22969_v60 }
 0x1b5   :  { %v1608_v56 = vsel %vm491_vm0, %v1606_v4, %v1607_v2  ;;  %v1719_v40 = vadd.f32 %v1605_v43, %v1432_v5  ;;  %v1722_v0 = vadd.f32 %v1607_v2, %v1435_v11  ;;  %v1824_v39 = vmul.f32 %v15438_v35, %v22969_v60 }
 0x1b6   :  { %v1721_v62 = vadd.f32 %v1608_v56, %v1434_v12  ;;  %v1825_v44 = vmul.f32 %v22969_v60, %v17537_v20  ;;  %v1826_v61 = vmul.f32 %v22969_v60, %v17544_v41  ;;  %v1941_v23 = vrot.slane %v1823_v10, 1 }
 0x1b7   :  { %v1942_v16 = vrot.slane %v1824_v39, 1  ;;  %v2109_v28 = vmul.f32 %v15439_v17, %v22970_v55  ;;  %v2110_v36 = vmul.f32 %v15440_v45, %v22970_v55  ;;  %v2111_v4 = vmul.f32 %v22970_v55, %v17547_v34 }
 0x1b8   :  { %v1944_v54 = vrot.slane %v1825_v44, 1  ;;  %v1945_v2 = vrot.slane %v1826_v61, 1  ;;  %v2112_v12 = vmul.f32 %v22970_v55, %v17550_v6  ;;  %v17605_v35 = vadd.f32 %v1719_v40, %v17514_v7  ;;  %v149_v44 = vld [vmem:[#allocation9 + $0x110] sm:$0xff] }
 0x1b9   :  { %v22972_v11 = vand.u32 4294901760, %v17424_v57  ;;  %v1943_v5 = vsel %vm491_vm0, %v1941_v23, %v1942_v16  ;;  %v2058_v13 = vadd.f32 %v1942_v16, %v1772_v42  ;;  %v2227_v17 = vrot.slane %v2109_v28, 1  ;;  %v150_v57 = vld [vmem:[#allocation9 + $0x118] sm:$0x3f] }
 0x1ba   :  { %v2228_v43 = vrot.slane %v2110_v36, 1  ;;  %v1946_v45 = vsel %vm491_vm0, %v1944_v54, %v1945_v2  ;;  %v2057_v10 = vadd.f32 %v1943_v5, %v1771_v32  ;;  %v2060_v56 = vadd.f32 %v1945_v2, %v1774_v21  ;;  %v205_v32 = vld [vmem:[#allocation10 + $0x110] sm:$0xff]  ;;  %v206_v21 = vld [vmem:[#allocation10 + $0x118] sm:$0x3f] }
 0x1bb   :  { %14430 = vmatmul.mubr.f32.vlgmr.msra.gmra.mrb[0].mxu1 %v22972_v11  ;;  %v2230_v39 = vrot.slane %v2111_v4, 1  ;;  %v2059_v61 = vadd.f32 %v1946_v45, %v1773_v31  ;;  %v2231_v40 = vrot.slane %v2112_v12, 1  ;;  %v17614_v23 = vadd.f32 %v1720_v15, %v17512_v8  ;;  %v22973_v4 = vld [vmem:[#allocation25_spill] sm:$0xff] }
 0x1bc   :  { %14436 = vmatprep.mubr.f32.mxu1 %v17395_v63  ;;  %v2229_v7 = vsel %vm491_vm0, %v2227_v17, %v2228_v43  ;;  %v2344_v55 = vadd.f32 %v2228_v43, %v2058_v13  ;;  %v17617_v42 = vadd.f32 %v1721_v62, %v17528_v19  ;;  %v17620_v16 = vadd.f32 %v1722_v0, %v17521_v59 }
 0x1bd   :  { %v2343_v11 = vadd.f32 %v2229_v7, %v2057_v10  ;;  %v2232_v28 = vsel %vm491_vm0, %v2230_v39, %v2231_v40  ;;  %v2346_v31 = vadd.f32 %v2231_v40, %v2060_v56  ;;  %v2500_v54 = vmul.f32 %v22973_v4, %v17537_v20 }
 0x1be   :  { %v17624_v36 = vadd.f32 %v2344_v55, %v17553_v26  ;;  %v2345_v2 = vadd.f32 %v2232_v28, %v2059_v61  ;;  %v2501_v19 = vmul.f32 %v22973_v4, %v17544_v41  ;;  %v2502_v59 = vmul.f32 %v22973_v4, %v149_v44  ;;  %v22974_v26 = vld [vmem:[#allocation26_spill] sm:$0xff] }
 0x1bf   :  { %v17629_v8 = vadd.f32 %v2343_v11, %v17559_v29  ;;  %v17635_v15 = vadd.f32 %v2346_v31, %v17561_v49  ;;  %v2503_v0 = vmul.f32 %v22973_v4, %v150_v57  ;;  %v2553_v55 = vmul.f32 %v22974_v26, %v17547_v34 }
 0x1c0   :  { %v2554_v62 = vmul.f32 %v22974_v26, %v17550_v6  ;;  %v17643_v12 = vadd.f32 %v2345_v2, %v17565_v48  ;;  %v2555_v29 = vmul.f32 %v22974_v26, %v205_v32  ;;  %v2556_v5 = vmul.f32 %v22974_v26, %v206_v21 }
 0x1c1   :  { %v2658_v13 = vmul.f32 %v22921_v46, %v17537_v20  ;;  %v2605_v49 = vadd.f32 %v2553_v55, %v2500_v54  ;;  %v2659_v43 = vmul.f32 %v22921_v46, %v17544_v41  ;;  %v2660_v45 = vmul.f32 %v22921_v46, %v149_v44 }
 0x1c2   :  { %v2606_v17 = vadd.f32 %v2554_v62, %v2501_v19  ;;  %v2607_v10 = vadd.f32 %v2555_v29, %v2502_v59  ;;  %v2608_v56 = vadd.f32 %v2556_v5, %v2503_v0  ;;  %v2661_v39 = vmul.f32 %v22921_v46, %v150_v57 }
 0x1c3   :  { %v2776_v48 = vrot.slane %v2658_v13, 1  ;;  %v2777_v61 = vrot.slane %v2659_v43, 1  ;;  %v2779_v7 = vrot.slane %v2660_v45, 1  ;;  %v2944_v40 = vmul.f32 %v22973_v4, %v17547_v34 }
 0x1c4   :  { %v2945_v11 = vmul.f32 %v22973_v4, %v17550_v6  ;;  %v2780_v28 = vrot.slane %v2661_v39, 1  ;;  %v2946_v31 = vmul.f32 %v22973_v4, %v205_v32  ;;  %v2947_v54 = vmul.f32 %v22973_v4, %v206_v21 }
 0x1c5   :  { %v2996_v2 = vmul.f32 %v22974_v26, %v17537_v20  ;;  %v2778_v19 = vsel %vm491_vm0, %v2776_v48, %v2777_v61  ;;  %v2893_v59 = vadd.f32 %v2777_v61, %v2606_v17  ;;  %v2997_v0 = vmul.f32 %v22974_v26, %v17544_v41 }
 0x1c6   :  { %v2998_v55 = vmul.f32 %v22974_v26, %v149_v44  ;;  %v2781_v62 = vsel %vm491_vm0, %v2779_v7, %v2780_v28  ;;  %v2892_v29 = vadd.f32 %v2778_v19, %v2605_v49  ;;  %v2895_v5 = vadd.f32 %v2780_v28, %v2608_v56 }
 0x1c7   :  { %v2999_v13 = vmul.f32 %v22974_v26, %v150_v57  ;;  %v2894_v43 = vadd.f32 %v2781_v62, %v2607_v10  ;;  %v3114_v45 = vrot.slane %v2996_v2, 1  ;;  %v3115_v39 = vrot.slane %v2997_v0, 1 }
 0x1c8   :  { %v3117_v4 = vrot.slane %v2998_v55, 1  ;;  %v3282_v20 = vmul.f32 %v22921_v46, %v17547_v34  ;;  %v3283_v17 = vmul.f32 %v22921_v46, %v17550_v6  ;;  %v3284_v41 = vmul.f32 %v22921_v46, %v205_v32 }
 0x1c9   :  { %v3118_v60 = vrot.slane %v2999_v13, 1  ;;  %v3116_v44 = vsel %vm491_vm0, %v3114_v45, %v3115_v39  ;;  %v3231_v48 = vadd.f32 %v3115_v39, %v2945_v11  ;;  %v3285_v49 = vmul.f32 %v22921_v46, %v206_v21 }
 0x1ca   :  { %v3568_v57 = vadd.f32 %v2892_v29, %v17605_v35  ;;  %v3230_v56 = vadd.f32 %v3116_v44, %v2944_v40  ;;  %v3400_v7 = vrot.slane %v3282_v20, 1  ;;  %v3401_v2 = vrot.slane %v3283_v17, 1 }
 0x1cb   :  { %v3119_v10 = vsel %vm491_vm0, %v3117_v4, %v3118_v60  ;;  %v3233_v61 = vadd.f32 %v3118_v60, %v2947_v54  ;;  %v3403_v34 = vrot.slane %v3284_v41, 1  ;;  %v3404_v19 = vrot.slane %v3285_v49, 1 }
 0x1cc   :  { %v3232_v28 = vadd.f32 %v3119_v10, %v2946_v31  ;;  %v3569_v6 = vadd.f32 %v2893_v59, %v17614_v23  ;;  %v3570_v32 = vadd.f32 %v2894_v43, %v17617_v42  ;;  %v3571_v0 = vadd.f32 %v2895_v5, %v17620_v16 }
 0x1cd   :  { %v3673_v11 = vadd.f32 %v22924_v52, %v3568_v57  ;;  %v3402_v21 = vsel %vm491_vm0, %v3400_v7, %v3401_v2  ;;  %v3405_v35 = vsel %vm491_vm0, %v3403_v34, %v3404_v19  ;;  %v3517_v4 = vadd.f32 %v3401_v2, %v3231_v48 }
 0x1ce   :  { %v3519_v40 = vadd.f32 %v3404_v19, %v3233_v61  ;;  %v3516_v60 = vadd.f32 %v3402_v21, %v3230_v56  ;;  %v3518_v54 = vadd.f32 %v3405_v35, %v3232_v28  ;;  %v3674_v31 = vadd.f32 %v22924_v52, %v3569_v6 }
 0x1cf   :  { %v3675_v55 = vadd.f32 %v22924_v52, %v3570_v32  ;;  %v3621_v23 = vadd.f32 %v3517_v4, %v17624_v36  ;;  %v3676_v16 = vadd.f32 %v22924_v52, %v3571_v0  ;;  %v17687_v59 = vmax.f32 %v3673_v11, 0.0 }
 0x1d0   :  { %v3623_v42 = vadd.f32 %v3519_v40, %v17635_v15  ;;  %v3620_v62 = vadd.f32 %v3516_v60, %v17629_v8  ;;  %v3622_v29 = vadd.f32 %v3518_v54, %v17643_v12  ;;  %v17691_v5 = vmax.f32 %v3674_v31, 0.0 }
 0x1d1   :  { %22975 = vst [vmem:[#allocation60_spill] sm:$0xff] %v17687_v59  ;;  %v17693_v13 = vmax.f32 %v3675_v55, 0.0  ;;  %v17695_v43 = vmax.f32 %v3676_v16, 0.0  ;;  %v3778_v45 = vadd.f32 %v22924_v52, %v3621_v23  ;;  %v3879_v15 = vmul.f32 %v22933_v30, %v17131_v9 }
 0x1d2   :  { %22976 = vst [vmem:[#allocation77_spill] sm:$0xff] %v17691_v5  ;;  %v3780_v36 = vadd.f32 %v22924_v52, %v3623_v42  ;;  %v3777_v39 = vadd.f32 %v22924_v52, %v3620_v62  ;;  %v3779_v20 = vadd.f32 %v22924_v52, %v3622_v29  ;;  %v3880_v8 = vmul.f32 %v22933_v30, %v17133_v27 }
 0x1d3   :  { %22977 = vst [vmem:[#allocation78_spill] sm:$0xff] %v17693_v13  ;;  %22978 = vst [vmem:[#allocation79_spill] sm:$0xff] %v17695_v43  ;;  %v3881_v12 = vmul.f32 %v22933_v30, %v17135_v1  ;;  %v17707_v17 = vmax.f32 %v3778_v45, 0.0  ;;  %v3882_v44 = vmul.f32 %v22933_v30, %v17137_v50  ;;  %v3928_v48 = vmul.f32 %v22934_v24, %v17155_v33 }
 0x1d4   :  { %v17709_v41 = vmax.f32 %v3780_v36, 0.0  ;;  %v17715_v49 = vmax.f32 %v3777_v39, 0.0  ;;  %v17717_v57 = vmax.f32 %v3779_v20, 0.0  ;;  %v3929_v10 = vmul.f32 %v22934_v24, %v17157_v25 }
 0x1d5   :  { %22979 = vst [vmem:[#allocation80_spill] sm:$0xff] %v17707_v17  ;;  %v3930_v56 = vmul.f32 %v22934_v24, %v17159_v47  ;;  %v3931_v61 = vmul.f32 %v22934_v24, %v17161_v58  ;;  %v3976_v7 = vadd.f32 %v3928_v48, %v3879_v15  ;;  %v4025_v28 = vmul.f32 %v22935_v37, %v17131_v9 }
 0x1d6   :  { %22980 = vst [vmem:[#allocation81_spill] sm:$0xff] %v17709_v41  ;;  %22981 = vst [vmem:[#allocation82_spill] sm:$0xff] %v17715_v49  ;;  %v4026_v2 = vmul.f32 %v22935_v37, %v17133_v27  ;;  %v3977_v34 = vadd.f32 %v3929_v10, %v3880_v8  ;;  %v4027_v6 = vmul.f32 %v22935_v37, %v17135_v1 }
 0x1d7   :  { %22982 = vst [vmem:[#allocation83_spill] sm:$0xff] %v17717_v57  ;;  %v3978_v19 = vadd.f32 %v3930_v56, %v3881_v12  ;;  %v4028_v32 = vmul.f32 %v22935_v37, %v17137_v50  ;;  %v3979_v0 = vadd.f32 %v3931_v61, %v3882_v44  ;;  %v4133_v11 = vrot.slane %v4025_v28, 1 }
 0x1d8   :  { %v4134_v21 = vrot.slane %v4026_v2, 1  ;;  %v4289_v35 = vmul.f32 %v22933_v30, %v17155_v33  ;;  %v4136_v4 = vrot.slane %v4027_v6, 1  ;;  %v4290_v60 = vmul.f32 %v22933_v30, %v17157_v25 }
 0x1d9   :  { %v4137_v40 = vrot.slane %v4028_v32, 1  ;;  %v4291_v54 = vmul.f32 %v22933_v30, %v17159_v47  ;;  %v4292_v23 = vmul.f32 %v22933_v30, %v17161_v58  ;;  %v4337_v42 = vmul.f32 %v22934_v24, %v17131_v9 }
 0x1da   :  { %v4135_v31 = vsel %vm491_vm0, %v4133_v11, %v4134_v21  ;;  %v17740_v55 = vadd.f32 %v4134_v21, %v3977_v34  ;;  %v4338_v45 = vmul.f32 %v22934_v24, %v17133_v27  ;;  %v4339_v15 = vmul.f32 %v22934_v24, %v17135_v1 }
 0x1db   :  { %v4138_v16 = vsel %vm491_vm0, %v4136_v4, %v4137_v40  ;;  %v17747_v62 = vadd.f32 %v4135_v31, %v3976_v7  ;;  %v17749_v29 = vadd.f32 %v4137_v40, %v3979_v0  ;;  %v4340_v39 = vmul.f32 %v22934_v24, %v17137_v50 }
 0x1dc   :  { %v17753_v36 = vadd.f32 %v4138_v16, %v3978_v19  ;;  %v4445_v20 = vrot.slane %v4337_v42, 1  ;;  %v4446_v8 = vrot.slane %v4338_v45, 1  ;;  %v4601_v9 = vmul.f32 %v22935_v37, %v17155_v33 }
 0x1dd   :  { %v4602_v12 = vmul.f32 %v22935_v37, %v17157_v25  ;;  %v4603_v44 = vmul.f32 %v22935_v37, %v17159_v47  ;;  %v4448_v27 = vrot.slane %v4339_v15, 1  ;;  %v4449_v48 = vrot.slane %v4340_v39, 1 }
 0x1de   :  { %v4604_v10 = vmul.f32 %v22935_v37, %v17161_v58  ;;  %v4866_v56 = vmul.f32 %v22936_v53, %v17135_v1  ;;  %v4447_v61 = vsel %vm491_vm0, %v4445_v20, %v4446_v8  ;;  %v4554_v7 = vadd.f32 %v4446_v8, %v4290_v60 }
 0x1df   :  { %v4709_v28 = vrot.slane %v4601_v9, 1  ;;  %v4710_v2 = vrot.slane %v4602_v12, 1  ;;  %v4450_v33 = vsel %vm491_vm0, %v4448_v27, %v4449_v48  ;;  %v4553_v34 = vadd.f32 %v4447_v61, %v4289_v35 }
 0x1e0   :  { %v4556_v25 = vadd.f32 %v4449_v48, %v4292_v23  ;;  %v4712_v19 = vrot.slane %v4603_v44, 1  ;;  %v4555_v6 = vadd.f32 %v4450_v33, %v4291_v54  ;;  %v4713_v0 = vrot.slane %v4604_v10, 1 }
 0x1e1   :  { %v4711_v32 = vsel %vm491_vm0, %v4709_v28, %v4710_v2  ;;  %v17772_v11 = vadd.f32 %v4710_v2, %v4554_v7  ;;  %v4867_v4 = vmul.f32 %v22936_v53, %v17137_v50  ;;  %v4868_v40 = vmul.f32 %v22936_v53, %v17687_v59 }
 0x1e2   :  { %v17774_v21 = vadd.f32 %v4711_v32, %v4553_v34  ;;  %v4869_v60 = vmul.f32 %v22936_v53, %v17691_v5  ;;  %v4714_v35 = vsel %vm491_vm0, %v4712_v19, %v4713_v0  ;;  %v17783_v31 = vadd.f32 %v4713_v0, %v4556_v25 }
 0x1e3   :  { %v4915_v54 = vmul.f32 %v22937_v14, %v17159_v47  ;;  %v4916_v23 = vmul.f32 %v22937_v14, %v17161_v58  ;;  %v17789_v42 = vadd.f32 %v4714_v35, %v4555_v6  ;;  %v4917_v16 = vmul.f32 %v22937_v14, %v17715_v49 }
 0x1e4   :  { %v4918_v45 = vmul.f32 %v22937_v14, %v17707_v17  ;;  %v5012_v15 = vmul.f32 %v22938_v38, %v17135_v1  ;;  %v5013_v8 = vmul.f32 %v22938_v38, %v17137_v50  ;;  %v5014_v9 = vmul.f32 %v22938_v38, %v17687_v59 }
 0x1e5   :  { %v4963_v39 = vadd.f32 %v4915_v54, %v4866_v56  ;;  %v4964_v20 = vadd.f32 %v4916_v23, %v4867_v4  ;;  %v4965_v12 = vadd.f32 %v4917_v16, %v4868_v40  ;;  %v5015_v27 = vmul.f32 %v22938_v38, %v17691_v5 }
 0x1e6   :  { %v4966_v44 = vadd.f32 %v4918_v45, %v4869_v60  ;;  %v5120_v48 = vrot.slane %v5012_v15, 1  ;;  %v5121_v10 = vrot.slane %v5013_v8, 1  ;;  %v5123_v61 = vrot.slane %v5014_v9, 1 }
 0x1e7   :  { %v5276_v7 = vmul.f32 %v22936_v53, %v17159_v47  ;;  %v5277_v56 = vmul.f32 %v22936_v53, %v17161_v58  ;;  %v5124_v28 = vrot.slane %v5015_v27, 1  ;;  %v5278_v2 = vmul.f32 %v22936_v53, %v17715_v49 }
 0x1e8   :  { %v5279_v33 = vmul.f32 %v22936_v53, %v17707_v17  ;;  %v5324_v34 = vmul.f32 %v22937_v14, %v17135_v1  ;;  %v5122_v25 = vsel %vm491_vm0, %v5120_v48, %v5121_v10  ;;  %v5229_v19 = vadd.f32 %v5121_v10, %v4964_v20 }
 0x1e9   :  { %v5325_v6 = vmul.f32 %v22937_v14, %v17137_v50  ;;  %v5326_v32 = vmul.f32 %v22937_v14, %v17687_v59  ;;  %v5125_v0 = vsel %vm491_vm0, %v5123_v61, %v5124_v28  ;;  %v5228_v4 = vadd.f32 %v5122_v25, %v4963_v39 }
 0x1ea   :  { %v5231_v40 = vadd.f32 %v5124_v28, %v4966_v44  ;;  %v5327_v60 = vmul.f32 %v22937_v14, %v17691_v5  ;;  %v5230_v35 = vadd.f32 %v5125_v0, %v4965_v12  ;;  %v5432_v54 = vrot.slane %v5324_v34, 1 }
 0x1eb   :  { %v5433_v23 = vrot.slane %v5325_v6, 1  ;;  %v5435_v1 = vrot.slane %v5326_v32, 1  ;;  %v5588_v45 = vmul.f32 %v22938_v38, %v17159_v47  ;;  %v5589_v50 = vmul.f32 %v22938_v38, %v17161_v58 }
 0x1ec   :  { %v5436_v16 = vrot.slane %v5327_v60, 1  ;;  %v5590_v15 = vmul.f32 %v22938_v38, %v17715_v49  ;;  %v5591_v8 = vmul.f32 %v22938_v38, %v17707_v17  ;;  %v17831_v9 = vadd.f32 %v5228_v4, %v17747_v62 }
 0x1ed   :  { %v5434_v39 = vsel %vm491_vm0, %v5432_v54, %v5433_v23  ;;  %v5541_v20 = vadd.f32 %v5433_v23, %v5277_v56  ;;  %v5696_v47 = vrot.slane %v5588_v45, 1  ;;  %v5697_v10 = vrot.slane %v5589_v50, 1  ;;  %v22983_v23 = vld [vmem:[#allocation52_spill] sm:$0xff] }
 0x1ee   :  { %v5437_v12 = vsel %vm491_vm0, %v5435_v1, %v5436_v16  ;;  %v5540_v44 = vadd.f32 %v5434_v39, %v5276_v7  ;;  %v5543_v27 = vadd.f32 %v5436_v16, %v5279_v33  ;;  %v5699_v58 = vrot.slane %v5590_v15, 1 }
 0x1ef   :  { %v5542_v48 = vadd.f32 %v5437_v12, %v5278_v2  ;;  %v5700_v61 = vrot.slane %v5591_v8, 1  ;;  %v17835_v28 = vadd.f32 %v5229_v19, %v17740_v55  ;;  %v17838_v56 = vadd.f32 %v5230_v35, %v17753_v36 }
 0x1f0   :  { %v17841_v34 = vadd.f32 %v5231_v40, %v17749_v29  ;;  %v5949_v62 = vmul.f32 %v22939_v18, %v17687_v59  ;;  %v5698_v7 = vsel %vm491_vm0, %v5696_v47, %v5697_v10  ;;  %v5805_v2 = vadd.f32 %v5697_v10, %v5541_v20 }
 0x1f1   :  { %v5701_v33 = vsel %vm491_vm0, %v5699_v58, %v5700_v61  ;;  %v5807_v25 = vadd.f32 %v5700_v61, %v5543_v27  ;;  %v5804_v6 = vadd.f32 %v5698_v7, %v5540_v44  ;;  %v5950_v55 = vmul.f32 %v22939_v18, %v17691_v5 }
 0x1f2   :  { %v5806_v32 = vadd.f32 %v5701_v33, %v5542_v48  ;;  %v5951_v36 = vmul.f32 %v22939_v18, %v17693_v13  ;;  %v5901_v29 = vadd.f32 %v5805_v2, %v17772_v11  ;;  %v5952_v0 = vmul.f32 %v22939_v18, %v17695_v43 }
 0x1f3   :  { %v17853_v19 = vadd.f32 %v5807_v25, %v17783_v31  ;;  %v5998_v4 = vmul.f32 %v22940_v22, %v17715_v49  ;;  %v5900_v40 = vadd.f32 %v5804_v6, %v17774_v21  ;;  %v5999_v35 = vmul.f32 %v22940_v22, %v17707_v17 }
 0x1f4   :  { %v17861_v60 = vadd.f32 %v5806_v32, %v17789_v42  ;;  %v6000_v11 = vmul.f32 %v22940_v22, %v17717_v57  ;;  %v6001_v31 = vmul.f32 %v22940_v22, %v17709_v41  ;;  %v6095_v1 = vmul.f32 %v22983_v23, %v17687_v59 }
 0x1f5   :  { %v6046_v54 = vadd.f32 %v5998_v4, %v5949_v62  ;;  %v6096_v16 = vmul.f32 %v22983_v23, %v17691_v5  ;;  %v6047_v21 = vadd.f32 %v5999_v35, %v5950_v55  ;;  %v6097_v42 = vmul.f32 %v22983_v23, %v17693_v13 }
 0x1f6   :  { %v6048_v45 = vadd.f32 %v6000_v11, %v5951_v36  ;;  %v6098_v50 = vmul.f32 %v22983_v23, %v17695_v43  ;;  %v6049_v15 = vadd.f32 %v6001_v31, %v5952_v0  ;;  %v6203_v39 = vrot.slane %v6095_v1, 1 }
 0x1f7   :  { %v6204_v20 = vrot.slane %v6096_v16, 1  ;;  %v6359_v8 = vmul.f32 %v22939_v18, %v17715_v49  ;;  %v6206_v12 = vrot.slane %v6097_v42, 1  ;;  %v6360_v27 = vmul.f32 %v22939_v18, %v17707_v17 }
 0x1f8   :  { %v6207_v44 = vrot.slane %v6098_v50, 1  ;;  %v6361_v47 = vmul.f32 %v22939_v18, %v17717_v57  ;;  %v6362_v58 = vmul.f32 %v22939_v18, %v17709_v41  ;;  %v6407_v61 = vmul.f32 %v22940_v22, %v17687_v59 }
 0x1f9   :  { %v6205_v48 = vsel %vm491_vm0, %v6203_v39, %v6204_v20  ;;  %v6312_v10 = vadd.f32 %v6204_v20, %v6047_v21  ;;  %v6408_v2 = vmul.f32 %v22940_v22, %v17691_v5  ;;  %v6409_v6 = vmul.f32 %v22940_v22, %v17693_v13 }
 0x1fa   :  { %v6208_v62 = vsel %vm491_vm0, %v6206_v12, %v6207_v44  ;;  %v6311_v7 = vadd.f32 %v6205_v48, %v6046_v54  ;;  %v6314_v33 = vadd.f32 %v6207_v44, %v6049_v15  ;;  %v6410_v32 = vmul.f32 %v22940_v22, %v17695_v43 }
 0x1fb   :  { %v6313_v25 = vadd.f32 %v6208_v62, %v6048_v45  ;;  %v6515_v55 = vrot.slane %v6407_v61, 1  ;;  %v6516_v36 = vrot.slane %v6408_v2, 1  ;;  %v6671_v0 = vmul.f32 %v22983_v23, %v17715_v49 }
 0x1fc   :  { %v6672_v4 = vmul.f32 %v22983_v23, %v17707_v17  ;;  %v6673_v35 = vmul.f32 %v22983_v23, %v17717_v57  ;;  %v6518_v11 = vrot.slane %v6409_v6, 1  ;;  %v6519_v31 = vrot.slane %v6410_v32, 1 }
 0x1fd   :  { %v6674_v54 = vmul.f32 %v22983_v23, %v17709_v41  ;;  %v6935_v1 = vadd.f32 %v6311_v7, %v17831_v9  ;;  %v6517_v16 = vsel %vm491_vm0, %v6515_v55, %v6516_v36  ;;  %v6624_v21 = vadd.f32 %v6516_v36, %v6360_v27  ;;  %v22984_v55 = vld [vmem:[#allocation53_spill] sm:$0xff] }
 0x1fe   :  { %v6779_v45 = vrot.slane %v6671_v0, 1  ;;  %v6780_v42 = vrot.slane %v6672_v4, 1  ;;  %v6520_v50 = vsel %vm491_vm0, %v6518_v11, %v6519_v31  ;;  %v6623_v15 = vadd.f32 %v6517_v16, %v6359_v8  ;;  %v17926_v16 = vld [vmem:[#allocation9 + $0x8] sm:$0x3f] }
 0x1ff   :  { %v6626_v39 = vadd.f32 %v6519_v31, %v6362_v58  ;;  %v6782_v20 = vrot.slane %v6673_v35, 1  ;;  %v6625_v12 = vadd.f32 %v6520_v50, %v6361_v47  ;;  %v6783_v48 = vrot.slane %v6674_v54, 1  ;;  %v17919_v35 = vld [vmem:[#allocation9] sm:$0xff]  ;;  %v22985_v54 = vld [vmem:[#allocation74_spill] sm:$0xff] }
 0x200   :  { %v6781_v44 = vsel %vm491_vm0, %v6779_v45, %v6780_v42  ;;  %v6888_v61 = vadd.f32 %v6780_v42, %v6624_v21  ;;  %v6936_v2 = vadd.f32 %v6312_v10, %v17835_v28  ;;  %v6937_v9 = vadd.f32 %v6313_v25, %v17838_v56  ;;  %v22988_v42 = vld [vmem:[#allocation75_spill] sm:$0xff] }
 0x201   :  { %v6887_v62 = vadd.f32 %v6781_v44, %v6623_v15  ;;  %v6938_v7 = vadd.f32 %v6314_v33, %v17841_v34  ;;  %v6784_v27 = vsel %vm491_vm0, %v6782_v20, %v6783_v48  ;;  %v6890_v6 = vadd.f32 %v6783_v48, %v6626_v39  ;;  %v22989_v15 = vld [vmem:[#allocation58_spill] sm:$0xff]  ;;  %v22991_v20 = vld [vmem:[#allocation59_spill] sm:$0xff] }
 0x202   :  { %v6984_v32 = vadd.f32 %v6888_v61, %v5901_v29  ;;  %v7032_v8 = vadd.f32 %v22984_v55, %v6935_v1  ;;  %v6889_v58 = vadd.f32 %v6784_v27, %v6625_v12  ;;  %v7033_v47 = vadd.f32 %v22984_v55, %v6936_v2  ;;  %v22986_v1 = vld [vmem:[#allocation64_spill] sm:$0xff]  ;;  %v17937_v48 = vld [vmem:[#allocation9 + $0x10] sm:$0xff]  ;;  %v17939_v61 = vld [vmem:[#allocation9 + $0x18] sm:$0x3f] }
 0x203   :  { %v6983_v36 = vadd.f32 %v6887_v62, %v5900_v40  ;;  %v7034_v0 = vadd.f32 %v22984_v55, %v6937_v9  ;;  %v6986_v4 = vadd.f32 %v6890_v6, %v17853_v19  ;;  %v7035_v28 = vadd.f32 %v22984_v55, %v6938_v7  ;;  %v17942_v7 = vld [vmem:[#allocation10] sm:$0xff]  ;;  %v17944_v27 = vld [vmem:[#allocation10 + $0x8] sm:$0x3f]  ;;  %v22993_v6 = vld [vmem:[#allocation18_spill] sm:$0xff] }
 0x204   :  { %v7080_v10 = vmax.f32 %v7032_v8, 0.0  ;;  %v7129_v56 = vadd.f32 %v22984_v55, %v6984_v32  ;;  %v6985_v34 = vadd.f32 %v6889_v58, %v17861_v60  ;;  %v7081_v33 = vmax.f32 %v7033_v47, 0.0  ;;  %v22987_v60 = vld [vmem:[#allocation76_spill] sm:$0xff]  ;;  %v17949_v47 = vld [vmem:[#allocation10 + $0x10] sm:$0xff] }
 0x205   :  { %v7082_v25 = vmax.f32 %v7034_v0, 0.0  ;;  %v7128_v29 = vadd.f32 %v22984_v55, %v6983_v36  ;;  %v7083_v40 = vmax.f32 %v7035_v28, 0.0  ;;  %v7131_v11 = vadd.f32 %v22984_v55, %v6986_v4  ;;  %v17951_v0 = vld [vmem:[#allocation10 + $0x18] sm:$0x3f] }
 0x206   :  { %v7177_v31 = vmax.f32 %v7129_v56, 0.0  ;;  %v17924_v19 = vsub.f32 %v22986_v1, %v22985_v54  ;;  %v7130_v21 = vadd.f32 %v22984_v55, %v6985_v34  ;;  %v17931_v50 = vsub.f32 %v22988_v42, %v22987_v60 }
 0x207   :  { %v7176_v45 = vmax.f32 %v7128_v29, 0.0  ;;  %v22990_v39 = vand.u32 4294901760, %v22989_v15  ;;  %v22992_v12 = vand.u32 4294901760, %v22991_v20  ;;  %v7179_v62 = vmax.f32 %v7131_v11, 0.0 }
 0x208   :  { %v7225_v2 = vmax.f32 %v7081_v33, %v7177_v31  ;;  %v22668_v9 = vand.u32 4294901760, %v17924_v19  ;;  %v229_v32 = vmul.f32 %v22993_v6, %v17919_v35  ;;  %v7178_v8 = vmax.f32 %v7130_v21, 0.0 }
 0x209   :  { %v14966_v44 = vpack.c.bf16 %v22992_v12, %v22990_v39  ;;  %v7224_v58 = vmax.f32 %v7080_v10, %v7176_v45  ;;  %v22667_v36 = vand.u32 4294901760, %v17931_v50  ;;  %v230_v4 = vmul.f32 %v22993_v6, %v17926_v16  ;;  %v22995_v39 = vld [vmem:[#allocation66_spill] sm:$0xff] }
 0x20a   :  { %v7227_v28 = vmax.f32 %v7083_v40, %v7179_v62  ;;  %v10439_v56 = vsub.f32 %v17924_v19, %v22668_v9  ;;  %v231_v34 = vmul.f32 %v22993_v6, %v17937_v48  ;;  %v232_v10 = vmul.f32 %v22993_v6, %v17939_v61  ;;  %v22994_v40 = vld [vmem:[#allocation19_spill] sm:$0xff] }
 0x20b   :  { %14967 = vmatprep.subr.bf16.mxu1 %v14966_v44  ;;  %v7226_v33 = vmax.f32 %v7082_v25, %v7178_v8  ;;  %v10449_v29 = vsub.f32 %v17931_v50, %v22667_v36  ;;  %v282_v11 = vmul.f32 %v22994_v40, %v17942_v7  ;;  %v283_v31 = vmul.f32 %v22994_v40, %v17944_v27  ;;  %v22996_v8 = vld [vmem:[#allocation21_spill] sm:$0xff] }
 0x20c   :  { %14969 = vmatpush3.bf16.msra.mxu1 %v14966_v44  ;;  %v10356_v1 = vmax.f32 %v7225_v2, %v7227_v28  ;;  %v10440_v21 = vand.u32 4294901760, %v10439_v56  ;;  %v284_v45 = vmul.f32 %v22994_v40, %v17949_v47  ;;  %v285_v25 = vmul.f32 %v22994_v40, %v17951_v0 }
 0x20d   :  { %14971 = vmatprep.subr.bf16.mxu1 %v22967_v3  ;;  %v10355_v42 = vmax.f32 %v7224_v58, %v7226_v33  ;;  %v10450_v15 = vand.u32 4294901760, %v10449_v29  ;;  %v334_v20 = vadd.f32 %v282_v11, %v229_v32  ;;  %v335_v12 = vadd.f32 %v283_v31, %v230_v4 }
 0x20e   :  { %v10367_v44 = vsel %vm7266_vm1, %v10356_v1, 0  ;;  %14660 = vmatprep.mubr.f32.mxu0 %v10440_v21  ;;  %v336_v62 = vadd.f32 %v284_v45, %v231_v34  ;;  %v337_v2 = vadd.f32 %v285_v25, %v232_v10  ;;  %v387_v28 = vmul.f32 %v22996_v8, %v17919_v35 }
 0x20f   :  { %14437 = vmatmul.mubr.f32.vlgmr.msra.gmra.mrb[0].mxu1 %v22995_v39  ;;  %v10370_v56 = vand.u32 4294901760, %v10355_v42  ;;  %v10373_v36 = vand.u32 4294901760, %v10367_v44  ;;  %v388_v58 = vmul.f32 %v22996_v8, %v17926_v16  ;;  %v389_v32 = vmul.f32 %v22996_v8, %v17937_v48 }
 0x210   :  { %14973 = vmatpush3.bf16.msra.mxu1 %v22967_v3  ;;  %14443 = vmatprep.mubr.f32.mxu1 %v17395_v63  ;;  %v390_v4 = vmul.f32 %v22996_v8, %v17939_v61  ;;  %v492_v33 = vrot.slane %v387_v28, 1  ;;  %v674_v3 = vmul.f32 %v22993_v6, %v17942_v7  ;;  %v675_v34 = vmul.f32 %v22993_v6, %v17944_v27 }
 0x211   :  { %v17990_v10 = vpack.c.bf16 %v10373_v36, %v10370_v56  ;;  %v17992_v29 = vsub.f32 %v10355_v42, %v10370_v56  ;;  %v17994_v63 = vsub.f32 %v10367_v44, %v10373_v36  ;;  %v493_v11 = vrot.slane %v388_v58, 1 }
 0x212   :  { %v495_v31 = vrot.slane %v389_v32, 1  ;;  %v496_v1 = vrot.slane %v390_v4, 1  ;;  %v676_v21 = vmul.f32 %v22993_v6, %v17949_v47  ;;  %v677_v45 = vmul.f32 %v22993_v6, %v17951_v0 }
 0x213   :  { %15095 = vmatprep.subr.bf16.mxu0 %v17990_v10  ;;  %v22670_v25 = vand.u32 4294901760, %v17992_v29  ;;  %v22669_v28 = vand.u32 4294901760, %v17994_v63  ;;  %v18005_v42 = vpack.c.bf16 %v17994_v63, %v17992_v29  ;;  %v494_v36 = vsel %vm491_vm0, %v492_v33, %v493_v11 }
 0x214   :  { %15097 = vmatpush3.bf16.msra.mxu0 %v17990_v10  ;;  %v497_v44 = vsel %vm491_vm0, %v495_v31, %v496_v1  ;;  %v18010_v56 = vadd.f32 %v494_v36, %v334_v20  ;;  %v18012_v58 = vadd.f32 %v493_v11, %v335_v12  ;;  %v18014_v32 = vadd.f32 %v496_v1, %v337_v2 }
 0x215   :  { %v10460_v4 = vsub.f32 %v17992_v29, %v22670_v25  ;;  %v10467_v9 = vsub.f32 %v17994_v63, %v22669_v28  ;;  %v18023_v33 = vadd.f32 %v497_v44, %v336_v62  ;;  %v726_v20 = vmul.f32 %v22994_v40, %v17919_v35 }
 0x216   :  { %v727_v12 = vmul.f32 %v22994_v40, %v17926_v16  ;;  %v728_v2 = vmul.f32 %v22994_v40, %v17937_v48  ;;  %v729_v11 = vmul.f32 %v22994_v40, %v17939_v61  ;;  %v1012_v31 = vmul.f32 %v22996_v8, %v17942_v7 }
 0x217   :  { %14444 = vmatmul.mubr.f32.vlgmr.msra.gmra.mrb[0].mxu1 %v22995_v39  ;;  %14661 = vmatmul.mubr.f32.vlgmr.msra.gmra.mrb[0].mxu0 %v10450_v15  ;;  %v10461_v1 = vand.u32 4294901760, %v10460_v4  ;;  %v10468_v39 = vand.u32 4294901760, %v10467_v9  ;;  %v830_v62 = vrot.slane %v726_v20, 1  ;;  %v1013_v36 = vmul.f32 %v22996_v8, %v17944_v27 }
 0x218   :  { %14667 = vmatprep.mubr.f32.mxu0 %v22985_v54  ;;  %v831_v35 = vrot.slane %v727_v12, 1  ;;  %v833_v16 = vrot.slane %v728_v2, 1  ;;  %v834_v44 = vrot.slane %v729_v11, 1  ;;  %v1014_v28 = vmul.f32 %v22996_v8, %v17949_v47 }
 0x219   :  { %v15098_v25 = vpack.c.bf16 %v10468_v39, %v10461_v1  ;;  %v1015_v41 = vmul.f32 %v22996_v8, %v17951_v0  ;;  %v1116_v7 = vrot.slane %v1012_v31, 1  ;;  %v1117_v15 = vrot.slane %v1013_v36, 1 }
 0x21a   :  { %v832_v9 = vsel %vm491_vm0, %v830_v62, %v831_v35  ;;  %v835_v4 = vsel %vm491_vm0, %v833_v16, %v834_v44  ;;  %v961_v20 = vadd.f32 %v831_v35, %v675_v34  ;;  %v963_v27 = vadd.f32 %v834_v44, %v677_v45  ;;  %v18054_v45 = vld [vmem:[#allocation9 + $0x20] sm:$0xff] }
 0x21b   :  { %15099 = vmatprep.subr.bf16.mxu0 %v15098_v25  ;;  %v960_v57 = vadd.f32 %v832_v9, %v674_v3  ;;  %v962_v12 = vadd.f32 %v835_v4, %v676_v21  ;;  %v1118_v2 = vsel %vm491_vm0, %v1116_v7, %v1117_v15  ;;  %v1119_v11 = vrot.slane %v1014_v28, 1  ;;  %v18058_v21 = vld [vmem:[#allocation9 + $0x28] sm:$0x3f]  ;;  %v7252_v62 = vld [vmem:[%s22509_s5] sm:$0xff] }
 0x21c   :  { %15101 = vmatpush3.bf16.msra.mxu0 %v15098_v25  ;;  %v1120_v17 = vrot.slane %v1015_v41, 1  ;;  %v18045_v1 = vadd.f32 %v1117_v15, %v961_v20  ;;  %v1299_v31 = vmul.f32 %v22968_v51, %v17937_v48  ;;  %v1300_v39 = vmul.f32 %v22968_v51, %v17939_v61  ;;  %v22997_v25 = vld [vmem:[#allocation28_spill] sm:$0xff]  ;;  %v18079_v15 = vld [vmem:[#allocation10 + $0x28] sm:$0x3f] }
 0x21d   :  { %15103 = vmatprep.subr.bf16.mxu0 %v18005_v42  ;;  %v18052_v34 = vadd.f32 %v1118_v2, %v960_v57  ;;  %v1301_v3 = vmul.f32 %v18054_v45, %v22968_v51  ;;  %v1302_v41 = vmul.f32 %v18058_v21, %v22968_v51  ;;  %v1352_v28 = vmul.f32 %v22997_v25, %v17949_v47  ;;  %v18072_v16 = vld [vmem:[#allocation10 + $0x20] sm:$0xff] }
 0x21e   :  { %v1121_v57 = vsel %vm491_vm0, %v1119_v11, %v1120_v17  ;;  %v18068_v36 = vadd.f32 %v1120_v17, %v963_v27  ;;  %v1353_v35 = vmul.f32 %v22997_v25, %v17951_v0  ;;  %v1354_v44 = vmul.f32 %v18072_v16, %v22997_v25  ;;  %v22998_v17 = vld [vmem:[#allocation29_spill] sm:$0xff] }
 0x21f   :  { %14668 = vmatmul.mubr.f32.vlgmr.msra.gmra.mrb[0].mxu0 %v22987_v60  ;;  %v18077_v7 = vadd.f32 %v1121_v57, %v962_v12  ;;  %v1355_v9 = vmul.f32 %v18079_v15, %v22997_v25  ;;  %v1404_v4 = vadd.f32 %v1352_v28, %v1299_v31  ;;  %v1457_v20 = vmul.f32 %v22998_v17, %v17937_v48 }
 0x220   :  { %15105 = vmatpush3.bf16.msra.mxu0 %v18005_v42  ;;  %14674 = vmatprep.mubr.f32.mxu0 %v17924_v19  ;;  %v1405_v27 = vadd.f32 %v1353_v35, %v1300_v39  ;;  %v1406_v2 = vadd.f32 %v1354_v44, %v1301_v3  ;;  %v1458_v11 = vmul.f32 %v22998_v17, %v17939_v61  ;;  %v18090_v12 = vsel %vm7259_vm2, %v7252_v62, 0 }
 0x221   :  { %v1407_v57 = vadd.f32 %v1355_v9, %v1302_v41  ;;  %v1459_v49 = vmul.f32 %v18054_v45, %v22998_v17  ;;  %v1460_v31 = vmul.f32 %v18058_v21, %v22998_v17  ;;  %v1561_v28 = vrot.slane %v1457_v20, 1  ;;  %15107 = vmatprep.subr.bf16.mxu0 %v17990_v10 }
 0x222   :  { %v1562_v42 = vrot.slane %v1458_v11, 1  ;;  %v1743_v39 = vmul.f32 %v22968_v51, %v17949_v47  ;;  %v1744_v3 = vmul.f32 %v22968_v51, %v17951_v0  ;;  %v1745_v62 = vmul.f32 %v18072_v16, %v22968_v51 }
 0x223   :  { %v1564_v41 = vrot.slane %v1459_v49, 1  ;;  %v1565_v35 = vrot.slane %v1460_v31, 1  ;;  %v1746_v44 = vmul.f32 %v18079_v15, %v22968_v51  ;;  %v1795_v9 = vmul.f32 %v22997_v25, %v17937_v48 }
 0x224   :  { %v1563_v20 = vsel %vm491_vm0, %v1561_v28, %v1562_v42  ;;  %v1692_v11 = vadd.f32 %v1562_v42, %v1405_v27  ;;  %v1796_v43 = vmul.f32 %v22997_v25, %v17939_v61  ;;  %v1797_v13 = vmul.f32 %v18054_v45, %v22997_v25 }
 0x225   :  { %v1566_v5 = vsel %vm491_vm0, %v1564_v41, %v1565_v35  ;;  %v1691_v59 = vadd.f32 %v1563_v20, %v1404_v4  ;;  %v1694_v49 = vadd.f32 %v1565_v35, %v1407_v57  ;;  %v1798_v31 = vmul.f32 %v18058_v21, %v22997_v25  ;;  %v23000_v20 = vld [vmem:[#allocation25_spill] sm:$0xff] }
 0x226   :  { %v1693_v51 = vadd.f32 %v1566_v5, %v1406_v2  ;;  %v1899_v8 = vrot.slane %v1795_v9, 1  ;;  %v1900_v60 = vrot.slane %v1796_v43, 1  ;;  %v1902_v48 = vrot.slane %v1797_v13, 1 }
 0x227   :  { %14675 = vmatmul.mubr.f32.vlgmr.msra.gmra.mrb[0].mxu0 %v17931_v50  ;;  %v1903_v27 = vrot.slane %v1798_v31, 1  ;;  %v2081_v61 = vmul.f32 %v22998_v17, %v17949_v47  ;;  %v2082_v28 = vmul.f32 %v22998_v17, %v17951_v0  ;;  %v2083_v4 = vmul.f32 %v18072_v16, %v22998_v17 }
 0x228   :  { %v1901_v57 = vsel %vm491_vm0, %v1899_v8, %v1900_v60  ;;  %v2030_v42 = vadd.f32 %v1900_v60, %v1744_v3  ;;  %v2084_v5 = vmul.f32 %v18079_v15, %v22998_v17  ;;  %v18126_v13 = vadd.f32 %v1691_v59, %v18010_v56  ;;  %15109 = vmatpush3.bf16.msra.mxu0 %v17990_v10 }
 0x229   :  { %v1904_v43 = vsel %vm491_vm0, %v1902_v48, %v1903_v27  ;;  %v2029_v47 = vadd.f32 %v1901_v57, %v1743_v39  ;;  %v2032_v2 = vadd.f32 %v1903_v27, %v1746_v44  ;;  %v2185_v41 = vrot.slane %v2081_v61, 1 }
 0x22a   :  { %v22999_v0 = vand.u32 4294901760, %v17924_v19  ;;  %v2031_v35 = vadd.f32 %v1904_v43, %v1745_v62  ;;  %v2186_v9 = vrot.slane %v2082_v28, 1  ;;  %v2188_v8 = vrot.slane %v2083_v4, 1  ;;  %v15448_v43 = vld [vmem:[#allocation10 + $0x38] sm:$0x3f] }
 0x22b   :  { %v2189_v60 = vrot.slane %v2084_v5, 1  ;;  %v18133_v3 = vadd.f32 %v1692_v11, %v18012_v58  ;;  %v18136_v59 = vadd.f32 %v1693_v51, %v18023_v33  ;;  %v18139_v56 = vadd.f32 %v1694_v49, %v18014_v32  ;;  %v15445_v11 = vld [vmem:[#allocation9 + $0x30] sm:$0xff]  ;;  %v15446_v49 = vld [vmem:[#allocation9 + $0x38] sm:$0x3f] }
 0x22c   :  { %14681 = vmatprep.mubr.f32.mxu0 %v22999_v0  ;;  %v2472_v39 = vmul.f32 %v18054_v45, %v23000_v20  ;;  %v2187_v44 = vsel %vm491_vm0, %v2185_v41, %v2186_v9  ;;  %v2316_v62 = vadd.f32 %v2186_v9, %v2030_v42  ;;  %v2473_v58 = vmul.f32 %v18058_v21, %v23000_v20 }
 0x22d   :  { %v2190_v19 = vsel %vm491_vm0, %v2188_v8, %v2189_v60  ;;  %v2318_v31 = vadd.f32 %v2189_v60, %v2032_v2  ;;  %v2315_v48 = vadd.f32 %v2187_v44, %v2029_v47  ;;  %v2474_v51 = vmul.f32 %v15445_v11, %v23000_v20 }
 0x22e   :  { %v2317_v27 = vadd.f32 %v2190_v19, %v2031_v35  ;;  %v18149_v32 = vadd.f32 %v2316_v62, %v18045_v1  ;;  %v2475_v61 = vmul.f32 %v15446_v49, %v23000_v20  ;;  %v2525_v28 = vmul.f32 %v18072_v16, %v22974_v26  ;;  %v15447_v1 = vld [vmem:[#allocation10 + $0x30] sm:$0xff] }
 0x22f   :  { %v18152_v33 = vadd.f32 %v2318_v31, %v18068_v36  ;;  %v18158_v4 = vadd.f32 %v2315_v48, %v18052_v34  ;;  %v2526_v42 = vmul.f32 %v18079_v15, %v22974_v26  ;;  %v2527_v5 = vmul.f32 %v15447_v1, %v22974_v26 }
 0x230   :  { %v18161_v57 = vadd.f32 %v2317_v27, %v18077_v7  ;;  %v23001_v36 = vand.u32 4294901760, %v17931_v50  ;;  %v2528_v47 = vmul.f32 %v15448_v43, %v22974_v26  ;;  %v2577_v2 = vadd.f32 %v2525_v28, %v2472_v39 }
 0x231   :  { %v2630_v34 = vmul.f32 %v18054_v45, %v22921_v46  ;;  %v2631_v7 = vmul.f32 %v18058_v21, %v22921_v46  ;;  %v2578_v41 = vadd.f32 %v2526_v42, %v2473_v58  ;;  %v2579_v0 = vadd.f32 %v2527_v5, %v2474_v51 }
 0x232   :  { %14682 = vmatmul.mubr.f32.vlgmr.msra.gmra.mrb[0].mxu0 %v23001_v36  ;;  %v2632_v35 = vmul.f32 %v15445_v11, %v22921_v46  ;;  %v2633_v9 = vmul.f32 %v15446_v49, %v22921_v46  ;;  %v2580_v50 = vadd.f32 %v2528_v47, %v2475_v61  ;;  %v2916_v39 = vmul.f32 %v18072_v16, %v23000_v20 }
 0x233   :  { %14688 = vmatprep.mubr.f32.mxu0 %v22985_v54  ;;  %v2734_v8 = vrot.slane %v2630_v34, 1  ;;  %v2735_v60 = vrot.slane %v2631_v7, 1  ;;  %v2917_v62 = vmul.f32 %v18079_v15, %v23000_v20  ;;  %v2918_v31 = vmul.f32 %v15447_v1, %v23000_v20 }
 0x234   :  { %v2737_v44 = vrot.slane %v2632_v35, 1  ;;  %v2738_v19 = vrot.slane %v2633_v9, 1  ;;  %v2919_v58 = vmul.f32 %v15448_v43, %v23000_v20  ;;  %v2968_v51 = vmul.f32 %v18054_v45, %v22974_v26 }
 0x235   :  { %v2736_v48 = vsel %vm491_vm0, %v2734_v8, %v2735_v60  ;;  %v2865_v27 = vadd.f32 %v2735_v60, %v2578_v41  ;;  %v2969_v5 = vmul.f32 %v18058_v21, %v22974_v26  ;;  %v2970_v47 = vmul.f32 %v15445_v11, %v22974_v26 }
 0x236   :  { %v2739_v61 = vsel %vm491_vm0, %v2737_v44, %v2738_v19  ;;  %v2864_v28 = vadd.f32 %v2736_v48, %v2577_v2  ;;  %v2867_v42 = vadd.f32 %v2738_v19, %v2580_v50  ;;  %v2971_v34 = vmul.f32 %v15446_v49, %v22974_v26 }
 0x237   :  { %v2866_v36 = vadd.f32 %v2739_v61, %v2579_v0  ;;  %v3072_v7 = vrot.slane %v2968_v51, 1  ;;  %v3073_v35 = vrot.slane %v2969_v5, 1  ;;  %v3254_v41 = vmul.f32 %v18072_v16, %v22921_v46 }
 0x238   :  { %v3255_v45 = vmul.f32 %v18079_v15, %v22921_v46  ;;  %v3256_v9 = vmul.f32 %v15447_v1, %v22921_v46  ;;  %v3075_v2 = vrot.slane %v2970_v47, 1  ;;  %v3076_v50 = vrot.slane %v2971_v34, 1 }
 0x239   :  { %v3257_v8 = vmul.f32 %v15448_v43, %v22921_v46  ;;  %v3540_v21 = vadd.f32 %v2864_v28, %v18126_v13  ;;  %v3074_v11 = vsel %vm491_vm0, %v3072_v7, %v3073_v35  ;;  %v3203_v0 = vadd.f32 %v3073_v35, %v2917_v62 }
 0x23a   :  { %v3358_v49 = vrot.slane %v3254_v41, 1  ;;  %v3359_v60 = vrot.slane %v3255_v45, 1  ;;  %v3077_v44 = vsel %vm491_vm0, %v3075_v2, %v3076_v50  ;;  %v3202_v19 = vadd.f32 %v3074_v11, %v2916_v39 }
 0x23b   :  { %v3205_v16 = vadd.f32 %v3076_v50, %v2919_v58  ;;  %v3361_v48 = vrot.slane %v3256_v9, 1  ;;  %v3204_v51 = vadd.f32 %v3077_v44, %v2918_v31  ;;  %v3362_v1 = vrot.slane %v3257_v8, 1 }
 0x23c   :  { %v3360_v15 = vsel %vm491_vm0, %v3358_v49, %v3359_v60  ;;  %v3489_v61 = vadd.f32 %v3359_v60, %v3203_v0  ;;  %v3541_v43 = vadd.f32 %v2865_v27, %v18133_v3  ;;  %v3542_v13 = vadd.f32 %v2866_v36, %v18136_v59 }
 0x23d   :  { %v3488_v5 = vadd.f32 %v3360_v15, %v3202_v19  ;;  %v3543_v28 = vadd.f32 %v2867_v42, %v18139_v56  ;;  %v3363_v62 = vsel %vm491_vm0, %v3361_v48, %v3362_v1  ;;  %v3491_v47 = vadd.f32 %v3362_v1, %v3205_v16 }
 0x23e   :  { %v3593_v34 = vadd.f32 %v3489_v61, %v18149_v32  ;;  %v3645_v39 = vadd.f32 %v22924_v52, %v3540_v21  ;;  %v3490_v58 = vadd.f32 %v3363_v62, %v3204_v51  ;;  %v3646_v7 = vadd.f32 %v22924_v52, %v3541_v43 }
 0x23f   :  { %v3592_v31 = vadd.f32 %v3488_v5, %v18158_v4  ;;  %v3647_v35 = vadd.f32 %v22924_v52, %v3542_v13  ;;  %v3595_v3 = vadd.f32 %v3491_v47, %v18152_v33  ;;  %v3648_v59 = vadd.f32 %v22924_v52, %v3543_v28 }
 0x240   :  { %v3697_v27 = vmax.f32 %v3645_v39, 0.0  ;;  %v3750_v56 = vadd.f32 %v22924_v52, %v3593_v34  ;;  %v3594_v42 = vadd.f32 %v3490_v58, %v18161_v57  ;;  %v3698_v36 = vmax.f32 %v3646_v7, 0.0 }
 0x241   :  { %v18213_v32 = vmax.f32 %v3647_v35, 0.0  ;;  %v3749_v41 = vadd.f32 %v22924_v52, %v3592_v31  ;;  %v18216_v45 = vmax.f32 %v3648_v59, 0.0  ;;  %v3752_v4 = vadd.f32 %v22924_v52, %v3595_v3 }
 0x242   :  { %v3802_v9 = vmax.f32 %v3750_v56, 0.0  ;;  %v3855_v2 = vmul.f32 %v22933_v30, %v3697_v27  ;;  %v3751_v33 = vadd.f32 %v22924_v52, %v3594_v42  ;;  %v3856_v8 = vmul.f32 %v22933_v30, %v3698_v36 }
 0x243   :  { %v3801_v50 = vmax.f32 %v3749_v41, 0.0  ;;  %v3857_v57 = vmul.f32 %v22933_v30, %v18213_v32  ;;  %v18224_v21 = vmax.f32 %v3752_v4, 0.0  ;;  %v3858_v11 = vmul.f32 %v22933_v30, %v18216_v45 }
 0x244   :  { %v3905_v0 = vmul.f32 %v22934_v24, %v3802_v9  ;;  %v4001_v49 = vmul.f32 %v22935_v37, %v3697_v27  ;;  %v18230_v60 = vmax.f32 %v3751_v33, 0.0  ;;  %v4002_v19 = vmul.f32 %v22935_v37, %v3698_v36 }
 0x245   :  { %v3904_v44 = vmul.f32 %v22934_v24, %v3801_v50  ;;  %v4003_v16 = vmul.f32 %v22935_v37, %v18213_v32  ;;  %v3907_v48 = vmul.f32 %v22934_v24, %v18224_v21  ;;  %v4004_v15 = vmul.f32 %v22935_v37, %v18216_v45 }
 0x246   :  { %v3953_v51 = vadd.f32 %v3905_v0, %v3856_v8  ;;  %v4097_v1 = vrot.slane %v4001_v49, 1  ;;  %v3906_v61 = vmul.f32 %v22934_v24, %v18230_v60  ;;  %v4098_v43 = vrot.slane %v4002_v19, 1 }
 0x247   :  { %v3952_v5 = vadd.f32 %v3904_v44, %v3855_v2  ;;  %v4100_v13 = vrot.slane %v4003_v16, 1  ;;  %v3955_v28 = vadd.f32 %v3907_v48, %v3858_v11  ;;  %v4101_v62 = vrot.slane %v4004_v15, 1 }
 0x248   :  { %v4265_v47 = vmul.f32 %v22933_v30, %v3801_v50  ;;  %v4266_v34 = vmul.f32 %v22933_v30, %v3802_v9  ;;  %v3954_v39 = vadd.f32 %v3906_v61, %v3857_v57  ;;  %v4099_v58 = vsel %vm491_vm0, %v4097_v1, %v4098_v43 }
 0x249   :  { %v18245_v31 = vadd.f32 %v4098_v43, %v3953_v51  ;;  %v4267_v7 = vmul.f32 %v22933_v30, %v18230_v60  ;;  %v4102_v35 = vsel %vm491_vm0, %v4100_v13, %v4101_v62  ;;  %v18250_v3 = vadd.f32 %v4099_v58, %v3952_v5 }
 0x24a   :  { %v18252_v59 = vadd.f32 %v4101_v62, %v3955_v28  ;;  %v4268_v56 = vmul.f32 %v22933_v30, %v18224_v21  ;;  %v18256_v42 = vadd.f32 %v4102_v35, %v3954_v39  ;;  %v4313_v41 = vmul.f32 %v22934_v24, %v3697_v27  ;;  %v23002_v35 = vld [vmem:[#allocation31_spill] sm:$0xff] }
 0x24b   :  { %v4314_v4 = vmul.f32 %v22934_v24, %v3698_v36  ;;  %v4315_v2 = vmul.f32 %v22934_v24, %v18213_v32  ;;  %v4316_v33 = vmul.f32 %v22934_v24, %v18216_v45  ;;  %v4577_v8 = vmul.f32 %v22935_v37, %v3801_v50 }
 0x24c   :  { %v4578_v57 = vmul.f32 %v22935_v37, %v3802_v9  ;;  %v4579_v11 = vmul.f32 %v22935_v37, %v18230_v60  ;;  %v4409_v0 = vrot.slane %v4313_v41, 1  ;;  %v4580_v27 = vmul.f32 %v22935_v37, %v18224_v21 }
 0x24d   :  { %v4410_v49 = vrot.slane %v4314_v4, 1  ;;  %v4412_v44 = vrot.slane %v4315_v2, 1  ;;  %v4413_v36 = vrot.slane %v4316_v33, 1  ;;  %v4673_v19 = vrot.slane %v4577_v8, 1  ;;  %v23003_v4 = vld [vmem:[#allocation32_spill] sm:$0xff]  ;;  %v23004_v33 = vld [vmem:[#allocation39_spill] sm:$0xff] }
 0x24e   :  { %v4674_v16 = vrot.slane %v4578_v57, 1  ;;  %v4676_v48 = vrot.slane %v4579_v11, 1  ;;  %v4677_v1 = vrot.slane %v4580_v27, 1  ;;  %v4842_v9 = vmul.f32 %v22936_v53, %v18213_v32  ;;  %v23005_v57 = vld [vmem:[#allocation40_spill] sm:$0xff] }
 0x24f   :  { %v4411_v51 = vsel %vm491_vm0, %v4409_v0, %v4410_v49  ;;  %v4530_v15 = vadd.f32 %v4410_v49, %v4266_v34  ;;  %v4414_v50 = vsel %vm491_vm0, %v4412_v44, %v4413_v36  ;;  %v4532_v5 = vadd.f32 %v4413_v36, %v4268_v56 }
 0x250   :  { %v4529_v61 = vadd.f32 %v4411_v51, %v4265_v47  ;;  %v4675_v43 = vsel %vm491_vm0, %v4673_v19, %v4674_v16  ;;  %v4531_v13 = vadd.f32 %v4414_v50, %v4267_v7  ;;  %v4678_v28 = vsel %vm491_vm0, %v4676_v48, %v4677_v1 }
 0x251   :  { %v18276_v62 = vadd.f32 %v4674_v16, %v4530_v15  ;;  %v4843_v39 = vmul.f32 %v22936_v53, %v18216_v45  ;;  %v18282_v34 = vadd.f32 %v4677_v1, %v4532_v5  ;;  %v4844_v41 = vmul.f32 %v22936_v53, %v23002_v35 }
 0x252   :  { %v18280_v58 = vadd.f32 %v4675_v43, %v4529_v61  ;;  %v4845_v47 = vmul.f32 %v22936_v53, %v23003_v4  ;;  %v18288_v56 = vadd.f32 %v4678_v28, %v4531_v13  ;;  %v4891_v7 = vmul.f32 %v22937_v14, %v18230_v60 }
 0x253   :  { %v4892_v2 = vmul.f32 %v22937_v14, %v18224_v21  ;;  %v4893_v8 = vmul.f32 %v22937_v14, %v23004_v33  ;;  %v4894_v11 = vmul.f32 %v22937_v14, %v23005_v57  ;;  %v4988_v0 = vmul.f32 %v22938_v38, %v18213_v32 }
 0x254   :  { %v4989_v49 = vmul.f32 %v22938_v38, %v18216_v45  ;;  %v4990_v44 = vmul.f32 %v22938_v38, %v23002_v35  ;;  %v4939_v27 = vadd.f32 %v4891_v7, %v4842_v9  ;;  %v4991_v16 = vmul.f32 %v22938_v38, %v23003_v4 }
 0x255   :  { %v4940_v36 = vadd.f32 %v4892_v2, %v4843_v39  ;;  %v4941_v19 = vadd.f32 %v4893_v8, %v4844_v41  ;;  %v4942_v48 = vadd.f32 %v4894_v11, %v4845_v47  ;;  %v5084_v51 = vrot.slane %v4988_v0, 1 }
 0x256   :  { %v5085_v15 = vrot.slane %v4989_v49, 1  ;;  %v5087_v1 = vrot.slane %v4990_v44, 1  ;;  %v5088_v50 = vrot.slane %v4991_v16, 1  ;;  %v5252_v61 = vmul.f32 %v22936_v53, %v18230_v60 }
 0x257   :  { %v5253_v5 = vmul.f32 %v22936_v53, %v18224_v21  ;;  %v5254_v43 = vmul.f32 %v22936_v53, %v23004_v33  ;;  %v5255_v28 = vmul.f32 %v22936_v53, %v23005_v57  ;;  %v5300_v39 = vmul.f32 %v22937_v14, %v18213_v32 }
 0x258   :  { %v5086_v9 = vsel %vm491_vm0, %v5084_v51, %v5085_v15  ;;  %v5205_v13 = vadd.f32 %v5085_v15, %v4940_v36  ;;  %v5089_v41 = vsel %vm491_vm0, %v5087_v1, %v5088_v50  ;;  %v5207_v7 = vadd.f32 %v5088_v50, %v4942_v48 }
 0x259   :  { %v5204_v47 = vadd.f32 %v5086_v9, %v4939_v27  ;;  %v5301_v2 = vmul.f32 %v22937_v14, %v18216_v45  ;;  %v5206_v8 = vadd.f32 %v5089_v41, %v4941_v19  ;;  %v5302_v11 = vmul.f32 %v22937_v14, %v23002_v35 }
 0x25a   :  { %v5303_v0 = vmul.f32 %v22937_v14, %v23003_v4  ;;  %v5396_v49 = vrot.slane %v5300_v39, 1  ;;  %v5564_v36 = vmul.f32 %v22938_v38, %v18230_v60  ;;  %v5565_v32 = vmul.f32 %v22938_v38, %v18224_v21 }
 0x25b   :  { %v5397_v44 = vrot.slane %v5301_v2, 1  ;;  %v5566_v27 = vmul.f32 %v22938_v38, %v23004_v33  ;;  %v5399_v16 = vrot.slane %v5302_v11, 1  ;;  %v5567_v19 = vmul.f32 %v22938_v38, %v23005_v57 }
 0x25c   :  { %v5400_v45 = vrot.slane %v5303_v0, 1  ;;  %v18333_v48 = vadd.f32 %v5204_v47, %v18250_v3  ;;  %v5660_v1 = vrot.slane %v5564_v36, 1  ;;  %v5661_v50 = vrot.slane %v5565_v32, 1 }
 0x25d   :  { %v5398_v51 = vsel %vm491_vm0, %v5396_v49, %v5397_v44  ;;  %v5517_v15 = vadd.f32 %v5397_v44, %v5253_v5  ;;  %v5663_v39 = vrot.slane %v5566_v27, 1  ;;  %v5664_v11 = vrot.slane %v5567_v19, 1  ;;  %v23009_v27 = vld [vmem:[#allocation42_spill] sm:$0xff] }
 0x25e   :  { %v5401_v60 = vsel %vm491_vm0, %v5399_v16, %v5400_v45  ;;  %v5516_v9 = vadd.f32 %v5398_v51, %v5252_v61  ;;  %v5519_v21 = vadd.f32 %v5400_v45, %v5255_v28  ;;  %v5662_v2 = vsel %vm491_vm0, %v5660_v1, %v5661_v50 }
 0x25f   :  { %v5518_v41 = vadd.f32 %v5401_v60, %v5254_v43  ;;  %v5781_v0 = vadd.f32 %v5661_v50, %v5517_v15  ;;  %v18339_v38 = vadd.f32 %v5205_v13, %v18245_v31  ;;  %v18342_v3 = vadd.f32 %v5206_v8, %v18256_v42  ;;  %v23006_v42 = vld [vmem:[#allocation33_spill] sm:$0xff] }
 0x260   :  { %v5780_v14 = vadd.f32 %v5662_v2, %v5516_v9  ;;  %v18345_v5 = vadd.f32 %v5207_v7, %v18252_v59  ;;  %v5665_v47 = vsel %vm491_vm0, %v5663_v39, %v5664_v11  ;;  %v5783_v61 = vadd.f32 %v5664_v11, %v5519_v21  ;;  %v23007_v7 = vld [vmem:[#allocation34_spill] sm:$0xff] }
 0x261   :  { %v18349_v28 = vadd.f32 %v5781_v0, %v18276_v62  ;;  %v5925_v43 = vmul.f32 %v22939_v18, %v23002_v35  ;;  %v5782_v49 = vadd.f32 %v5665_v47, %v5518_v41  ;;  %v5926_v31 = vmul.f32 %v22939_v18, %v23003_v4 }
 0x262   :  { %v18354_v44 = vadd.f32 %v5780_v14, %v18280_v58  ;;  %v5927_v59 = vmul.f32 %v22939_v18, %v23006_v42  ;;  %v18361_v13 = vadd.f32 %v5783_v61, %v18282_v34  ;;  %v5928_v62 = vmul.f32 %v22939_v18, %v23007_v7  ;;  %v23008_v58 = vld [vmem:[#allocation41_spill] sm:$0xff] }
 0x263   :  { %v5974_v8 = vmul.f32 %v22940_v22, %v23004_v33  ;;  %v5975_v36 = vmul.f32 %v22940_v22, %v23005_v57  ;;  %v18370_v14 = vadd.f32 %v5782_v49, %v18288_v56  ;;  %v5976_v32 = vmul.f32 %v22940_v22, %v23008_v58 }
 0x264   :  { %v5977_v16 = vmul.f32 %v22940_v22, %v23009_v27  ;;  %v6071_v34 = vmul.f32 %v22983_v23, %v23002_v35  ;;  %v6072_v51 = vmul.f32 %v22983_v23, %v23003_v4  ;;  %v6073_v15 = vmul.f32 %v22983_v23, %v23006_v42 }
 0x265   :  { %v6022_v45 = vadd.f32 %v5974_v8, %v5925_v43  ;;  %v6023_v19 = vadd.f32 %v5975_v36, %v5926_v31  ;;  %v6024_v1 = vadd.f32 %v5976_v32, %v5927_v59  ;;  %v6074_v50 = vmul.f32 %v22983_v23, %v23007_v7 }
 0x266   :  { %v6025_v56 = vadd.f32 %v5977_v16, %v5928_v62  ;;  %v6167_v60 = vrot.slane %v6071_v34, 1  ;;  %v6168_v9 = vrot.slane %v6072_v51, 1  ;;  %v6170_v21 = vrot.slane %v6073_v15, 1 }
 0x267   :  { %v6335_v39 = vmul.f32 %v22939_v18, %v23004_v33  ;;  %v6336_v41 = vmul.f32 %v22939_v18, %v23005_v57  ;;  %v6171_v2 = vrot.slane %v6074_v50, 1  ;;  %v6337_v11 = vmul.f32 %v22939_v18, %v23008_v58 }
 0x268   :  { %v6338_v0 = vmul.f32 %v22939_v18, %v23009_v27  ;;  %v6383_v47 = vmul.f32 %v22940_v22, %v23002_v35  ;;  %v6169_v61 = vsel %vm491_vm0, %v6167_v60, %v6168_v9  ;;  %v6288_v43 = vadd.f32 %v6168_v9, %v6023_v19 }
 0x269   :  { %v6384_v49 = vmul.f32 %v22940_v22, %v23003_v4  ;;  %v6385_v31 = vmul.f32 %v22940_v22, %v23006_v42  ;;  %v6172_v59 = vsel %vm491_vm0, %v6170_v21, %v6171_v2  ;;  %v6287_v62 = vadd.f32 %v6169_v61, %v6022_v45 }
 0x26a   :  { %v6290_v8 = vadd.f32 %v6171_v2, %v6025_v56  ;;  %v6386_v36 = vmul.f32 %v22940_v22, %v23007_v7  ;;  %v6289_v32 = vadd.f32 %v6172_v59, %v6024_v1  ;;  %v6479_v16 = vrot.slane %v6383_v47, 1 }
 0x26b   :  { %v6480_v34 = vrot.slane %v6384_v49, 1  ;;  %v6482_v35 = vrot.slane %v6385_v31, 1  ;;  %v6647_v19 = vmul.f32 %v22983_v23, %v23004_v33  ;;  %v6648_v4 = vmul.f32 %v22983_v23, %v23005_v57 }
 0x26c   :  { %v6483_v51 = vrot.slane %v6386_v36, 1  ;;  %v6649_v42 = vmul.f32 %v22983_v23, %v23008_v58  ;;  %v6650_v7 = vmul.f32 %v22983_v23, %v23009_v27  ;;  %v6911_v1 = vadd.f32 %v6287_v62, %v18333_v48  ;;  %v7253_v62 = vld [vmem:[%s22509_s5 + $0x8] sm:$0x3] }
 0x26d   :  { %v6481_v45 = vsel %vm491_vm0, %v6479_v16, %v6480_v34  ;;  %v6600_v15 = vadd.f32 %v6480_v34, %v6336_v41  ;;  %v6743_v9 = vrot.slane %v6647_v19, 1  ;;  %v6744_v21 = vrot.slane %v6648_v4, 1 }
 0x26e   :  { %v6484_v56 = vsel %vm491_vm0, %v6482_v35, %v6483_v51  ;;  %v6599_v50 = vadd.f32 %v6481_v45, %v6335_v39  ;;  %v6602_v60 = vadd.f32 %v6483_v51, %v6338_v0  ;;  %v6746_v2 = vrot.slane %v6649_v42, 1 }
 0x26f   :  { %v6601_v33 = vadd.f32 %v6484_v56, %v6337_v11  ;;  %v6747_v57 = vrot.slane %v6650_v7, 1  ;;  %v6912_v47 = vadd.f32 %v6288_v43, %v18339_v38  ;;  %v6913_v58 = vadd.f32 %v6289_v32, %v18342_v3 }
 0x270   :  { %v6914_v41 = vadd.f32 %v6290_v8, %v18345_v5  ;;  %v7008_v61 = vadd.f32 %v22984_v55, %v6911_v1  ;;  %v6745_v27 = vsel %vm491_vm0, %v6743_v9, %v6744_v21  ;;  %v6864_v49 = vadd.f32 %v6744_v21, %v6600_v15 }
 0x271   :  { %v6748_v48 = vsel %vm491_vm0, %v6746_v2, %v6747_v57  ;;  %v6866_v39 = vadd.f32 %v6747_v57, %v6602_v60  ;;  %v6863_v0 = vadd.f32 %v6745_v27, %v6599_v50  ;;  %v7009_v11 = vadd.f32 %v22984_v55, %v6912_v47  ;;  %v18447_v60 = vld [vmem:[#allocation9 + $0x100] sm:$0xff] }
 0x272   :  { %v6865_v31 = vadd.f32 %v6748_v48, %v6601_v33  ;;  %v7010_v59 = vadd.f32 %v22984_v55, %v6913_v58  ;;  %v6960_v38 = vadd.f32 %v6864_v49, %v18349_v28  ;;  %v7011_v5 = vadd.f32 %v22984_v55, %v6914_v41  ;;  %v18460_v58 = vld [vmem:[#allocation9 + $0x110] sm:$0xff] }
 0x273   :  { %v6962_v3 = vadd.f32 %v6866_v39, %v18361_v13  ;;  %v7056_v43 = vmax.f32 %v7008_v61, 0.0  ;;  %v6959_v8 = vadd.f32 %v6863_v0, %v18354_v44  ;;  %v7057_v32 = vmax.f32 %v7009_v11, 0.0  ;;  %v18464_v61 = vld [vmem:[#allocation9 + $0x118] sm:$0x3f]  ;;  %v15453_v0 = vld [vmem:[#allocation10 + $0x100] sm:$0xff] }
 0x274   :  { %v6961_v36 = vadd.f32 %v6865_v31, %v18370_v14  ;;  %v7058_v16 = vmax.f32 %v7010_v59, 0.0  ;;  %v7059_v34 = vmax.f32 %v7011_v5, 0.0  ;;  %v7105_v35 = vadd.f32 %v22984_v55, %v6960_v38  ;;  %v23012_v59 = vld [vmem:[#allocation76_spill] sm:$0xff]  ;;  %v15454_v38 = vld [vmem:[#allocation10 + $0x108] sm:$0x3f]  ;;  %v18475_v5 = vld [vmem:[#allocation10 + $0x110] sm:$0xff] }
 0x275   :  { %v7107_v28 = vadd.f32 %v22984_v55, %v6962_v3  ;;  %v18432_v13 = vand.u32 4294901760, %v18090_v12  ;;  %v7104_v51 = vadd.f32 %v22984_v55, %v6959_v8  ;;  %v7776_v4 = vsel %vm7259_vm2, %v7253_v62, 0  ;;  %v18479_v62 = vld [vmem:[#allocation10 + $0x118] sm:$0x3f] }
 0x276   :  { %v7106_v19 = vadd.f32 %v22984_v55, %v6961_v36  ;;  %v23010_v44 = vand.u32 4294901760, %v17992_v29  ;;  %v23011_v14 = vand.u32 4294901760, %v17994_v63  ;;  %v7153_v45 = vmax.f32 %v7105_v35, 0.0  ;;  %v18451_v29 = vld [vmem:[#allocation9 + $0x108] sm:$0x3f] }
 0x277   :  { %v7155_v15 = vmax.f32 %v7107_v28, 0.0  ;;  %v18443_v7 = vsub.f32 %v18090_v12, %v18432_v13  ;;  %v18445_v1 = vand.u32 4294901760, %v7776_v4  ;;  %v7152_v56 = vmax.f32 %v7104_v51, 0.0 }
 0x278   :  { %v15110_v42 = vpack.c.bf16 %v23011_v14, %v23010_v44  ;;  %v7154_v50 = vmax.f32 %v7106_v19, 0.0  ;;  %v261_v9 = vmul.f32 %v18447_v60, %v22993_v6  ;;  %v262_v63 = vmul.f32 %v18451_v29, %v22993_v6  ;;  %v23013_v14 = vld [vmem:[#allocation21_spill] sm:$0xff] }
 0x279   :  { %v7201_v33 = vmax.f32 %v7057_v32, %v7153_v45  ;;  %v7203_v21 = vmax.f32 %v7059_v34, %v7155_v15  ;;  %v22695_v12 = vand.u32 4294901760, %v18443_v7  ;;  %v18457_v2 = vsub.f32 %v7776_v4, %v18445_v1 }
 0x27a   :  { %15111 = vmatprep.subr.bf16.mxu0 %v15110_v42  ;;  %v7200_v57 = vmax.f32 %v7056_v43, %v7152_v56  ;;  %v7202_v47 = vmax.f32 %v7058_v16, %v7154_v50  ;;  %v263_v41 = vmul.f32 %v18460_v58, %v22993_v6  ;;  %v264_v27 = vmul.f32 %v18464_v61, %v22993_v6 }
 0x27b   :  { %15113 = vmatpush3.bf16.msra.mxu0 %v15110_v42  ;;  %v7251_v48 = vmax.f32 %v7201_v33, %v7203_v21  ;;  %v7851_v49 = vsub.f32 %v18443_v7, %v22695_v12  ;;  %v22694_v39 = vand.u32 4294901760, %v18457_v2  ;;  %v314_v31 = vmul.f32 %v15453_v0, %v22994_v40 }
 0x27c   :  { %15115 = vmatprep.subr.bf16.mxu0 %v17990_v10  ;;  %v7250_v11 = vmax.f32 %v7200_v57, %v7202_v47  ;;  %v315_v3 = vmul.f32 %v15454_v38, %v22994_v40  ;;  %v316_v43 = vmul.f32 %v18475_v5, %v22994_v40  ;;  %v317_v8 = vmul.f32 %v18479_v62, %v22994_v40 }
 0x27d   :  { %v7779_v36 = vsel %vm7266_vm1, %v7251_v48, 0  ;;  %v7852_v32 = vand.u32 4294901760, %v7851_v49  ;;  %v7861_v16 = vsub.f32 %v18457_v2, %v22694_v39  ;;  %v366_v34 = vadd.f32 %v314_v31, %v261_v9 }
 0x27e   :  { %14689 = vmatmul.mubr.f32.vlgmr.msra.gmra.mrb[0].mxu0 %v23012_v59  ;;  %v7782_v35 = vand.u32 4294901760, %v7250_v11  ;;  %v7785_v28 = vand.u32 4294901760, %v7779_v36  ;;  %v367_v51 = vadd.f32 %v315_v3, %v262_v63  ;;  %v368_v19 = vadd.f32 %v316_v43, %v263_v41 }
 0x27f   :  { %15117 = vmatpush3.bf16.msra.mxu0 %v17990_v10  ;;  %14695 = vmatprep.mubr.f32.mxu0 %v22985_v54  ;;  %v7862_v4 = vand.u32 4294901760, %v7861_v16  ;;  %v369_v44 = vadd.f32 %v317_v8, %v264_v27  ;;  %v419_v42 = vmul.f32 %v18447_v60, %v23013_v14  ;;  %v420_v45 = vmul.f32 %v18451_v29, %v23013_v14 }
 0x280   :  { %14450 = vmatprep.mubr.f32.mxu1 %v7852_v32  ;;  %v18493_v15 = vpack.c.bf16 %v7785_v28, %v7782_v35  ;;  %v18495_v56 = vsub.f32 %v7250_v11, %v7782_v35  ;;  %v18497_v10 = vsub.f32 %v7779_v36, %v7785_v28  ;;  %v421_v54 = vmul.f32 %v18460_v58, %v23013_v14 }
 0x281   :  { %v422_v50 = vmul.f32 %v18464_v61, %v23013_v14  ;;  %v540_v9 = vrot.slane %v419_v42, 1  ;;  %v541_v63 = vrot.slane %v420_v45, 1  ;;  %v706_v33 = vmul.f32 %v15453_v0, %v22993_v6 }
 0x282   :  { %14975 = vmatprep.subr.bf16.mxu1 %v18493_v15  ;;  %v22693_v21 = vand.u32 4294901760, %v18495_v56  ;;  %v22692_v57 = vand.u32 4294901760, %v18497_v10  ;;  %v18509_v47 = vpack.c.bf16 %v18497_v10, %v18495_v56  ;;  %v543_v41 = vrot.slane %v421_v54, 1 }
 0x283   :  { %14977 = vmatpush3.bf16.msra.mxu1 %v18493_v15  ;;  %v542_v27 = vsel %vm491_vm0, %v540_v9, %v541_v63  ;;  %v544_v48 = vrot.slane %v422_v50, 1  ;;  %v18513_v49 = vadd.f32 %v541_v63, %v367_v51  ;;  %v707_v31 = vmul.f32 %v15454_v38, %v22993_v6 }
 0x284   :  { %v7872_v11 = vsub.f32 %v18495_v56, %v22693_v21  ;;  %v7879_v3 = vsub.f32 %v18497_v10, %v22692_v57  ;;  %v18523_v43 = vadd.f32 %v542_v27, %v366_v34  ;;  %v708_v8 = vmul.f32 %v18475_v5, %v22993_v6 }
 0x285   :  { %v545_v36 = vsel %vm491_vm0, %v543_v41, %v544_v48  ;;  %v18528_v32 = vadd.f32 %v544_v48, %v369_v44  ;;  %v709_v16 = vmul.f32 %v18479_v62, %v22993_v6  ;;  %v758_v35 = vmul.f32 %v18447_v60, %v22994_v40 }
 0x286   :  { %14696 = vmatmul.mubr.f32.vlgmr.msra.gmra.mrb[0].mxu0 %v23012_v59  ;;  %14451 = vmatmul.mubr.f32.vlgmr.msra.gmra.mrb[0].mxu1 %v7862_v4  ;;  %v7873_v28 = vand.u32 4294901760, %v7872_v11  ;;  %v7880_v51 = vand.u32 4294901760, %v7879_v3  ;;  %v18534_v42 = vadd.f32 %v545_v36, %v368_v19  ;;  %v759_v59 = vmul.f32 %v18451_v29, %v22994_v40  ;;  %v18552_v36 = vld [vmem:[#allocation9 + $0x128] sm:$0x3f] }
 0x287   :  { %14457 = vmatprep.mubr.f32.mxu1 %v18432_v13  ;;  %v760_v34 = vmul.f32 %v18460_v58, %v22994_v40  ;;  %v761_v44 = vmul.f32 %v18464_v61, %v22994_v40  ;;  %v878_v45 = vrot.slane %v758_v35, 1  ;;  %v1044_v54 = vmul.f32 %v15453_v0, %v23013_v14  ;;  %v18550_v0 = vld [vmem:[#allocation9 + $0x120] sm:$0xff] }
 0x288   :  { %v14978_v60 = vpack.c.bf16 %v7880_v51, %v7873_v28  ;;  %v879_v4 = vrot.slane %v759_v59, 1  ;;  %v1045_v50 = vmul.f32 %v15454_v38, %v23013_v14  ;;  %v1046_v19 = vmul.f32 %v18475_v5, %v23013_v14  ;;  %v18556_v59 = vld [vmem:[#allocation10 + $0x120] sm:$0xff] }
 0x289   :  { %v881_v9 = vrot.slane %v760_v34, 1  ;;  %v882_v29 = vrot.slane %v761_v44, 1  ;;  %v1047_v63 = vmul.f32 %v18479_v62, %v23013_v14  ;;  %v1164_v41 = vrot.slane %v1044_v54, 1  ;;  %v18558_v34 = vld [vmem:[#allocation10 + $0x128] sm:$0x3f]  ;;  %v23014_v54 = vld [vmem:[#allocation27_spill] sm:$0xff] }
 0x28a   :  { %14979 = vmatprep.subr.bf16.mxu1 %v14978_v60  ;;  %v880_v27 = vsel %vm491_vm0, %v878_v45, %v879_v4  ;;  %v993_v48 = vadd.f32 %v879_v4, %v707_v31  ;;  %v1165_v11 = vrot.slane %v1045_v50, 1  ;;  %v1167_v3 = vrot.slane %v1046_v19, 1 }
 0x28b   :  { %14981 = vmatpush3.bf16.msra.mxu1 %v14978_v60  ;;  %v883_v38 = vsel %vm491_vm0, %v881_v9, %v882_v29  ;;  %v992_v35 = vadd.f32 %v880_v27, %v706_v33  ;;  %v995_v28 = vadd.f32 %v882_v29, %v709_v16  ;;  %v1168_v51 = vrot.slane %v1047_v63, 1  ;;  %v14082_v33 = vld [vmem:[%s22509_s5 + $0x70] sm:$0xff] }
 0x28c   :  { %14983 = vmatprep.subr.bf16.mxu1 %v18509_v47  ;;  %v994_v44 = vadd.f32 %v883_v38, %v708_v8  ;;  %v1166_v31 = vsel %vm491_vm0, %v1164_v41, %v1165_v11  ;;  %v18561_v45 = vadd.f32 %v1165_v11, %v993_v48  ;;  %v1331_v60 = vmul.f32 %v18460_v58, %v23014_v54 }
 0x28d   :  { %v1169_v16 = vsel %vm491_vm0, %v1167_v3, %v1168_v51  ;;  %v18569_v4 = vadd.f32 %v1166_v31, %v992_v35  ;;  %v18571_v50 = vadd.f32 %v1168_v51, %v995_v28  ;;  %v1332_v8 = vmul.f32 %v18464_v61, %v23014_v54 }
 0x28e   :  { %14458 = vmatmul.mubr.f32.vlgmr.msra.gmra.mrb[0].mxu1 %v18445_v1  ;;  %v18576_v19 = vadd.f32 %v1169_v16, %v994_v44  ;;  %v1333_v9 = vmul.f32 %v23014_v54, %v18550_v0  ;;  %v1334_v29 = vmul.f32 %v23014_v54, %v18552_v36  ;;  %v1384_v63 = vmul.f32 %v18475_v5, %v22997_v25 }
 0x28f   :  { %14985 = vmatpush3.bf16.msra.mxu1 %v18509_v47  ;;  %14464 = vmatprep.mubr.f32.mxu1 %v18443_v7  ;;  %v1385_v41 = vmul.f32 %v18479_v62, %v22997_v25  ;;  %v1386_v27 = vmul.f32 %v22997_v25, %v18556_v59  ;;  %v1387_v48 = vmul.f32 %v22997_v25, %v18558_v34  ;;  %v18593_v11 = vsel %vm7259_vm2, %v14082_v33, 0 }
 0x290   :  { %14987 = vmatprep.subr.bf16.mxu1 %v18493_v15  ;;  %v1436_v3 = vadd.f32 %v1384_v63, %v1331_v60  ;;  %v1489_v47 = vmul.f32 %v18460_v58, %v22998_v17  ;;  %v1490_v38 = vmul.f32 %v18464_v61, %v22998_v17  ;;  %v1491_v35 = vmul.f32 %v22998_v17, %v18550_v0 }
 0x291   :  { %v1437_v28 = vadd.f32 %v1385_v41, %v1332_v8  ;;  %v1438_v51 = vadd.f32 %v1386_v27, %v1333_v9  ;;  %v1439_v44 = vadd.f32 %v1387_v48, %v1334_v29  ;;  %v1492_v31 = vmul.f32 %v22998_v17, %v18552_v36 }
 0x292   :  { %v1609_v33 = vrot.slane %v1489_v47, 1  ;;  %v1610_v16 = vrot.slane %v1490_v38, 1  ;;  %v1612_v57 = vrot.slane %v1491_v35, 1  ;;  %v1775_v60 = vmul.f32 %v18475_v5, %v23014_v54 }
 0x293   :  { %v1613_v63 = vrot.slane %v1492_v31, 1  ;;  %v1776_v21 = vmul.f32 %v18479_v62, %v23014_v54  ;;  %v1777_v39 = vmul.f32 %v23014_v54, %v18556_v59  ;;  %v1778_v8 = vmul.f32 %v23014_v54, %v18558_v34 }
 0x294   :  { %v1611_v9 = vsel %vm491_vm0, %v1609_v33, %v1610_v16  ;;  %v1724_v29 = vadd.f32 %v1610_v16, %v1437_v28  ;;  %v1827_v41 = vmul.f32 %v18460_v58, %v22997_v25  ;;  %v1828_v27 = vmul.f32 %v18464_v61, %v22997_v25 }
 0x295   :  { %v1614_v48 = vsel %vm491_vm0, %v1612_v57, %v1613_v63  ;;  %v1723_v47 = vadd.f32 %v1611_v9, %v1436_v3  ;;  %v1726_v38 = vadd.f32 %v1613_v63, %v1439_v44  ;;  %v1829_v35 = vmul.f32 %v22997_v25, %v18550_v0 }
 0x296   :  { %14465 = vmatmul.mubr.f32.vlgmr.msra.gmra.mrb[0].mxu1 %v18457_v2  ;;  %v1725_v31 = vadd.f32 %v1614_v48, %v1438_v51  ;;  %v1830_v33 = vmul.f32 %v22997_v25, %v18552_v36  ;;  %v1947_v28 = vrot.slane %v1827_v41, 1  ;;  %v1948_v16 = vrot.slane %v1828_v27, 1 }
 0x297   :  { %v1950_v12 = vrot.slane %v1829_v35, 1  ;;  %v2113_v58 = vmul.f32 %v18475_v5, %v22998_v17  ;;  %v2114_v61 = vmul.f32 %v18479_v62, %v22998_v17  ;;  %v2115_v57 = vmul.f32 %v22998_v17, %v18556_v59  ;;  %14989 = vmatpush3.bf16.msra.mxu1 %v18493_v15 }
 0x298   :  { %v23015_v3 = vand.u32 4294901760, %v18443_v7  ;;  %v1949_v51 = vsel %vm491_vm0, %v1947_v28, %v1948_v16  ;;  %v1951_v44 = vrot.slane %v1830_v33, 1  ;;  %v2062_v63 = vadd.f32 %v1948_v16, %v1776_v21  ;;  %v153_v7 = vld [vmem:[#allocation9 + $0x130] sm:$0xff]  ;;  %v154_v16 = vld [vmem:[#allocation9 + $0x138] sm:$0x3f] }
 0x299   :  { %v2116_v9 = vmul.f32 %v22998_v17, %v18558_v34  ;;  %v2061_v41 = vadd.f32 %v1949_v51, %v1775_v60  ;;  %v2233_v5 = vrot.slane %v2113_v58, 1  ;;  %v2234_v27 = vrot.slane %v2114_v61, 1 }
 0x29a   :  { %14471 = vmatprep.mubr.f32.mxu1 %v23015_v3  ;;  %v2236_v48 = vrot.slane %v2115_v57, 1  ;;  %v1952_v62 = vsel %vm491_vm0, %v1950_v12, %v1951_v44  ;;  %v2064_v35 = vadd.f32 %v1951_v44, %v1778_v8  ;;  %v18637_v54 = vadd.f32 %v1723_v47, %v18523_v43  ;;  %v209_v8 = vld [vmem:[#allocation10 + $0x130] sm:$0xff]  ;;  %v210_v57 = vld [vmem:[#allocation10 + $0x138] sm:$0x3f] }
 0x29b   :  { %v2237_v25 = vrot.slane %v2116_v9, 1  ;;  %v2063_v3 = vadd.f32 %v1952_v62, %v1777_v39  ;;  %v2235_v28 = vsel %vm491_vm0, %v2233_v5, %v2234_v27  ;;  %v2348_v33 = vadd.f32 %v2234_v27, %v2062_v63 }
 0x29c   :  { %v18641_v21 = vadd.f32 %v1724_v29, %v18513_v49  ;;  %v2347_v58 = vadd.f32 %v2235_v28, %v2061_v41  ;;  %v18645_v12 = vadd.f32 %v1725_v31, %v18534_v42  ;;  %v18648_v47 = vadd.f32 %v1726_v38, %v18528_v32 }
 0x29d   :  { %v2238_v60 = vsel %vm491_vm0, %v2236_v48, %v2237_v25  ;;  %v2350_v61 = vadd.f32 %v2237_v25, %v2064_v35  ;;  %v18651_v39 = vadd.f32 %v2348_v33, %v18561_v45  ;;  %v2504_v49 = vmul.f32 %v23000_v20, %v18550_v0 }
 0x29e   :  { %v2349_v43 = vadd.f32 %v2238_v60, %v2063_v3  ;;  %v18656_v29 = vadd.f32 %v2347_v58, %v18569_v4  ;;  %v2505_v42 = vmul.f32 %v23000_v20, %v18552_v36  ;;  %v2506_v31 = vmul.f32 %v23000_v20, %v153_v7 }
 0x29f   :  { %v18659_v25 = vadd.f32 %v2350_v61, %v18571_v50  ;;  %v23016_v32 = vand.u32 4294901760, %v18457_v2  ;;  %v2507_v38 = vmul.f32 %v23000_v20, %v154_v16  ;;  %v2557_v4 = vmul.f32 %v22974_v26, %v18556_v59 }
 0x2a0   :  { %v18667_v45 = vadd.f32 %v2349_v43, %v18576_v19  ;;  %v2558_v50 = vmul.f32 %v22974_v26, %v18558_v34  ;;  %v2559_v51 = vmul.f32 %v22974_v26, %v209_v8  ;;  %v2560_v44 = vmul.f32 %v22974_v26, %v210_v57 }
 0x2a1   :  { %14472 = vmatmul.mubr.f32.vlgmr.msra.gmra.mrb[0].mxu1 %v23016_v32  ;;  %v2662_v2 = vmul.f32 %v22921_v46, %v18550_v0  ;;  %v2663_v19 = vmul.f32 %v22921_v46, %v18552_v36  ;;  %v2609_v63 = vadd.f32 %v2557_v4, %v2504_v49  ;;  %v2664_v41 = vmul.f32 %v22921_v46, %v153_v7 }
 0x2a2   :  { %14478 = vmatprep.mubr.f32.mxu1 %v18432_v13  ;;  %v2610_v9 = vadd.f32 %v2558_v50, %v2505_v42  ;;  %v2665_v5 = vmul.f32 %v22921_v46, %v154_v16  ;;  %v2611_v27 = vadd.f32 %v2559_v51, %v2506_v31  ;;  %v2612_v48 = vadd.f32 %v2560_v44, %v2507_v38 }
 0x2a3   :  { %v2782_v62 = vrot.slane %v2662_v2, 1  ;;  %v2783_v35 = vrot.slane %v2663_v19, 1  ;;  %v2785_v3 = vrot.slane %v2664_v41, 1  ;;  %v2948_v33 = vmul.f32 %v23000_v20, %v18556_v59 }
 0x2a4   :  { %v2786_v28 = vrot.slane %v2665_v5, 1  ;;  %v2949_v60 = vmul.f32 %v23000_v20, %v18558_v34  ;;  %v2950_v43 = vmul.f32 %v23000_v20, %v209_v8  ;;  %v2951_v49 = vmul.f32 %v23000_v20, %v210_v57 }
 0x2a5   :  { %v2784_v58 = vsel %vm491_vm0, %v2782_v62, %v2783_v35  ;;  %v2897_v61 = vadd.f32 %v2783_v35, %v2610_v9  ;;  %v3000_v38 = vmul.f32 %v22974_v26, %v18550_v0  ;;  %v3001_v50 = vmul.f32 %v22974_v26, %v18552_v36 }
 0x2a6   :  { %v2787_v42 = vsel %vm491_vm0, %v2785_v3, %v2786_v28  ;;  %v2896_v31 = vadd.f32 %v2784_v58, %v2609_v63  ;;  %v2899_v32 = vadd.f32 %v2786_v28, %v2612_v48  ;;  %v3002_v51 = vmul.f32 %v22974_v26, %v153_v7 }
 0x2a7   :  { %v2898_v4 = vadd.f32 %v2787_v42, %v2611_v27  ;;  %v3003_v44 = vmul.f32 %v22974_v26, %v154_v16  ;;  %v3120_v2 = vrot.slane %v3000_v38, 1  ;;  %v3286_v19 = vmul.f32 %v22921_v46, %v18556_v59 }
 0x2a8   :  { %v3287_v9 = vmul.f32 %v22921_v46, %v18558_v34  ;;  %v3288_v63 = vmul.f32 %v22921_v46, %v209_v8  ;;  %v3121_v41 = vrot.slane %v3001_v50, 1  ;;  %v3123_v5 = vrot.slane %v3002_v51, 1 }
 0x2a9   :  { %v3124_v0 = vrot.slane %v3003_v44, 1  ;;  %v3289_v27 = vmul.f32 %v22921_v46, %v210_v57  ;;  %v3406_v48 = vrot.slane %v3286_v19, 1  ;;  %v3572_v7 = vadd.f32 %v2896_v31, %v18637_v54 }
 0x2aa   :  { %v3407_v36 = vrot.slane %v3287_v9, 1  ;;  %v3409_v62 = vrot.slane %v3288_v63, 1  ;;  %v3122_v16 = vsel %vm491_vm0, %v3120_v2, %v3121_v41  ;;  %v3235_v59 = vadd.f32 %v3121_v41, %v2949_v60  ;;  %v23021_v63 = vld [vmem:[#allocation60_spill] sm:$0xff] }
 0x2ab   :  { %v3125_v35 = vsel %vm491_vm0, %v3123_v5, %v3124_v0  ;;  %v3237_v3 = vadd.f32 %v3124_v0, %v2951_v49  ;;  %v3234_v28 = vadd.f32 %v3122_v16, %v2948_v33  ;;  %v3410_v58 = vrot.slane %v3289_v27, 1  ;;  %v23024_v27 = vld [vmem:[#allocation78_spill] sm:$0xff] }
 0x2ac   :  { %v3236_v34 = vadd.f32 %v3125_v35, %v2950_v43  ;;  %v3408_v8 = vsel %vm491_vm0, %v3406_v48, %v3407_v36  ;;  %v3521_v42 = vadd.f32 %v3407_v36, %v3235_v59  ;;  %v3573_v38 = vadd.f32 %v2897_v61, %v18641_v21  ;;  %v23028_v35 = vld [vmem:[#allocation82_spill] sm:$0xff] }
 0x2ad   :  { %v3574_v57 = vadd.f32 %v2898_v4, %v18645_v12  ;;  %v3575_v50 = vadd.f32 %v2899_v32, %v18648_v47  ;;  %v3411_v54 = vsel %vm491_vm0, %v3409_v62, %v3410_v58  ;;  %v3520_v31 = vadd.f32 %v3408_v8, %v3234_v28  ;;  %v23030_v28 = vld [vmem:[#allocation80_spill] sm:$0xff]  ;;  %v23031_v8 = vld [vmem:[#allocation83_spill] sm:$0xff] }
 0x2ae   :  { %v3523_v51 = vadd.f32 %v3410_v58, %v3237_v3  ;;  %v3677_v44 = vadd.f32 %v22924_v52, %v3572_v7  ;;  %v3522_v60 = vadd.f32 %v3411_v54, %v3236_v34  ;;  %v3625_v33 = vadd.f32 %v3521_v42, %v18651_v39  ;;  %v23027_v7 = vld [vmem:[#allocation79_spill] sm:$0xff]  ;;  %v23032_v42 = vld [vmem:[#allocation81_spill] sm:$0xff] }
 0x2af   :  { %v3678_v43 = vadd.f32 %v22924_v52, %v3573_v38  ;;  %v3679_v49 = vadd.f32 %v22924_v52, %v3574_v57  ;;  %v3624_v2 = vadd.f32 %v3520_v31, %v18656_v29  ;;  %v3680_v12 = vadd.f32 %v22924_v52, %v3575_v50 }
 0x2b0   :  { %v3627_v21 = vadd.f32 %v3523_v51, %v18659_v25  ;;  %v18718_v47 = vmax.f32 %v3677_v44, 0.0  ;;  %v3626_v61 = vadd.f32 %v3522_v60, %v18667_v45  ;;  %v3782_v39 = vadd.f32 %v22924_v52, %v3625_v33  ;;  %v23023_v45 = vld [vmem:[#allocation77_spill] sm:$0xff] }
 0x2b1   :  { %v18721_v32 = vmax.f32 %v3678_v43, 0.0  ;;  %v18723_v4 = vmax.f32 %v3679_v49, 0.0  ;;  %v18726_v19 = vmax.f32 %v3680_v12, 0.0  ;;  %v3781_v9 = vadd.f32 %v22924_v52, %v3624_v2 }
 0x2b2   :  { %23017 = vst [vmem:[#allocation52_spill] sm:$0xff] %v18718_v47  ;;  %v3784_v29 = vadd.f32 %v22924_v52, %v3627_v21  ;;  %v3883_v25 = vmul.f32 %v22933_v30, %v23021_v63  ;;  %v3783_v41 = vadd.f32 %v22924_v52, %v3626_v61  ;;  %v18733_v5 = vmax.f32 %v3782_v39, 0.0 }
 0x2b3   :  { %23018 = vst [vmem:[#allocation53_spill] sm:$0xff] %v18721_v32  ;;  %23019 = vst [vmem:[#allocation74_spill] sm:$0xff] %v18723_v4  ;;  %v3884_v0 = vmul.f32 %v22933_v30, %v23023_v45  ;;  %v3885_v48 = vmul.f32 %v22933_v30, %v23024_v27  ;;  %v18739_v36 = vmax.f32 %v3781_v9, 0.0  ;;  %v3886_v16 = vmul.f32 %v22933_v30, %v23027_v7 }
 0x2b4   :  { %23020 = vst [vmem:[#allocation64_spill] sm:$0xff] %v18726_v19  ;;  %23022 = vst [vmem:[#allocation75_spill] sm:$0xff] %v18733_v5  ;;  %v18741_v62 = vmax.f32 %v3784_v29, 0.0  ;;  %v3932_v59 = vmul.f32 %v22934_v24, %v23028_v35  ;;  %v18747_v3 = vmax.f32 %v3783_v41, 0.0  ;;  %v3933_v34 = vmul.f32 %v22934_v24, %v23030_v28 }
 0x2b5   :  { %23025 = vst [vmem:[#allocation58_spill] sm:$0xff] %v18739_v36  ;;  %v3934_v58 = vmul.f32 %v22934_v24, %v23031_v8  ;;  %v3935_v38 = vmul.f32 %v22934_v24, %v23032_v42  ;;  %v4029_v50 = vmul.f32 %v22935_v37, %v23021_v63  ;;  %v4030_v54 = vmul.f32 %v22935_v37, %v23023_v45 }
 0x2b6   :  { %23026 = vst [vmem:[#allocation59_spill] sm:$0xff] %v18741_v62  ;;  %23029 = vst [vmem:[#allocation66_spill] sm:$0xff] %v18747_v3  ;;  %v3980_v57 = vadd.f32 %v3932_v59, %v3883_v25  ;;  %v4031_v31 = vmul.f32 %v22935_v37, %v23024_v27  ;;  %v3981_v51 = vadd.f32 %v3933_v34, %v3884_v0 }
 0x2b7   :  { %v3982_v44 = vadd.f32 %v3934_v58, %v3885_v48  ;;  %v3983_v60 = vadd.f32 %v3935_v38, %v3886_v16  ;;  %v4032_v33 = vmul.f32 %v22935_v37, %v23027_v7  ;;  %v4139_v43 = vrot.slane %v4029_v50, 1 }
 0x2b8   :  { %v4140_v49 = vrot.slane %v4030_v54, 1  ;;  %v4142_v2 = vrot.slane %v4031_v31, 1  ;;  %v4293_v21 = vmul.f32 %v22933_v30, %v23028_v35  ;;  %v4294_v61 = vmul.f32 %v22933_v30, %v23030_v28 }
 0x2b9   :  { %v4143_v12 = vrot.slane %v4032_v33, 1  ;;  %v4295_v39 = vmul.f32 %v22933_v30, %v23031_v8  ;;  %v4296_v9 = vmul.f32 %v22933_v30, %v23032_v42  ;;  %v4341_v41 = vmul.f32 %v22934_v24, %v23021_v63 }
 0x2ba   :  { %v4141_v29 = vsel %vm491_vm0, %v4139_v43, %v4140_v49  ;;  %v18772_v25 = vadd.f32 %v4140_v49, %v3981_v51  ;;  %v4342_v0 = vmul.f32 %v22934_v24, %v23023_v45  ;;  %v4343_v34 = vmul.f32 %v22934_v24, %v23024_v27 }
 0x2bb   :  { %v4144_v48 = vsel %vm491_vm0, %v4142_v2, %v4143_v12  ;;  %v18779_v16 = vadd.f32 %v4141_v29, %v3980_v57  ;;  %v18781_v59 = vadd.f32 %v4143_v12, %v3983_v60  ;;  %v4344_v38 = vmul.f32 %v22934_v24, %v23027_v7 }
 0x2bc   :  { %v18785_v58 = vadd.f32 %v4144_v48, %v3982_v44  ;;  %v4451_v50 = vrot.slane %v4341_v41, 1  ;;  %v4452_v54 = vrot.slane %v4342_v0, 1  ;;  %v4454_v63 = vrot.slane %v4343_v34, 1 }
 0x2bd   :  { %v4605_v45 = vmul.f32 %v22935_v37, %v23028_v35  ;;  %v4606_v57 = vmul.f32 %v22935_v37, %v23030_v28  ;;  %v4607_v31 = vmul.f32 %v22935_v37, %v23031_v8  ;;  %v4455_v60 = vrot.slane %v4344_v38, 1 }
 0x2be   :  { %v4453_v51 = vsel %vm491_vm0, %v4451_v50, %v4452_v54  ;;  %v4558_v44 = vadd.f32 %v4452_v54, %v4294_v61  ;;  %v4608_v33 = vmul.f32 %v22935_v37, %v23032_v42  ;;  %v4870_v28 = vmul.f32 %v22936_v53, %v23024_v27 }
 0x2bf   :  { %v4557_v43 = vadd.f32 %v4453_v51, %v4293_v21  ;;  %v4715_v49 = vrot.slane %v4605_v45, 1  ;;  %v4716_v2 = vrot.slane %v4606_v57, 1  ;;  %v4718_v12 = vrot.slane %v4607_v31, 1 }
 0x2c0   :  { %v4456_v29 = vsel %vm491_vm0, %v4454_v63, %v4455_v60  ;;  %v4560_v35 = vadd.f32 %v4455_v60, %v4296_v9  ;;  %v4719_v41 = vrot.slane %v4608_v33, 1  ;;  %v4871_v61 = vmul.f32 %v22936_v53, %v23027_v7  ;;  %v23033_v63 = vld [vmem:[#allocation48_spill] sm:$0xff]  ;;  %v23034_v60 = vld [vmem:[#allocation49_spill] sm:$0xff] }
 0x2c1   :  { %v4559_v0 = vadd.f32 %v4456_v29, %v4295_v39  ;;  %v4717_v48 = vsel %vm491_vm0, %v4715_v49, %v4716_v2  ;;  %v18802_v34 = vadd.f32 %v4716_v2, %v4558_v44  ;;  %v4872_v9 = vmul.f32 %v22936_v53, %v18718_v47 }
 0x2c2   :  { %v4720_v21 = vsel %vm491_vm0, %v4718_v12, %v4719_v41  ;;  %v18807_v38 = vadd.f32 %v4717_v48, %v4557_v43  ;;  %v18809_v50 = vadd.f32 %v4719_v41, %v4560_v35  ;;  %v4873_v39 = vmul.f32 %v22936_v53, %v18721_v32 }
 0x2c3   :  { %v18813_v54 = vadd.f32 %v4720_v21, %v4559_v0  ;;  %v4919_v45 = vmul.f32 %v23033_v63, %v23031_v8  ;;  %v4920_v57 = vmul.f32 %v23033_v63, %v23032_v42  ;;  %v4921_v31 = vmul.f32 %v23033_v63, %v18739_v36 }
 0x2c4   :  { %v4922_v51 = vmul.f32 %v23033_v63, %v18733_v5  ;;  %v5016_v44 = vmul.f32 %v23034_v60, %v23024_v27  ;;  %v5017_v33 = vmul.f32 %v23034_v60, %v23027_v7  ;;  %v5018_v2 = vmul.f32 %v23034_v60, %v18718_v47 }
 0x2c5   :  { %v4967_v43 = vadd.f32 %v4919_v45, %v4870_v28  ;;  %v4968_v49 = vadd.f32 %v4920_v57, %v4871_v61  ;;  %v5019_v12 = vmul.f32 %v23034_v60, %v18721_v32  ;;  %v4969_v29 = vadd.f32 %v4921_v31, %v4872_v9 }
 0x2c6   :  { %v4970_v35 = vadd.f32 %v4922_v51, %v4873_v39  ;;  %v5126_v41 = vrot.slane %v5016_v44, 1  ;;  %v5127_v0 = vrot.slane %v5017_v33, 1  ;;  %v5129_v48 = vrot.slane %v5018_v2, 1 }
 0x2c7   :  { %v5130_v21 = vrot.slane %v5019_v12, 1  ;;  %v5280_v37 = vmul.f32 %v22936_v53, %v23031_v8  ;;  %v5281_v24 = vmul.f32 %v22936_v53, %v23032_v42  ;;  %v5282_v45 = vmul.f32 %v22936_v53, %v18739_v36 }
 0x2c8   :  { %v5128_v28 = vsel %vm491_vm0, %v5126_v41, %v5127_v0  ;;  %v5233_v61 = vadd.f32 %v5127_v0, %v4968_v49  ;;  %v5283_v9 = vmul.f32 %v22936_v53, %v18733_v5  ;;  %v5328_v51 = vmul.f32 %v23033_v63, %v23024_v27 }
 0x2c9   :  { %v5131_v39 = vsel %vm491_vm0, %v5129_v48, %v5130_v21  ;;  %v5232_v57 = vadd.f32 %v5128_v28, %v4967_v43  ;;  %v5235_v31 = vadd.f32 %v5130_v21, %v4970_v35  ;;  %v5329_v33 = vmul.f32 %v23033_v63, %v23027_v7 }
 0x2ca   :  { %v5234_v44 = vadd.f32 %v5131_v39, %v4969_v29  ;;  %v5330_v49 = vmul.f32 %v23033_v63, %v18718_v47  ;;  %v5331_v2 = vmul.f32 %v23033_v63, %v18721_v32  ;;  %v5438_v12 = vrot.slane %v5328_v51, 1 }
 0x2cb   :  { %v5592_v41 = vmul.f32 %v23034_v60, %v23031_v8  ;;  %v5593_v43 = vmul.f32 %v23034_v60, %v23032_v42  ;;  %v5594_v27 = vmul.f32 %v23034_v60, %v18739_v36  ;;  %v5439_v29 = vrot.slane %v5329_v33, 1 }
 0x2cc   :  { %v5441_v35 = vrot.slane %v5330_v49, 1  ;;  %v5442_v0 = vrot.slane %v5331_v2, 1  ;;  %v5595_v7 = vmul.f32 %v23034_v60, %v18733_v5  ;;  %v18860_v39 = vadd.f32 %v5232_v57, %v18779_v16 }
 0x2cd   :  { %v5702_v48 = vrot.slane %v5592_v41, 1  ;;  %v5703_v21 = vrot.slane %v5593_v43, 1  ;;  %v5705_v28 = vrot.slane %v5594_v27, 1  ;;  %v5440_v8 = vsel %vm491_vm0, %v5438_v12, %v5439_v29 }
 0x2ce   :  { %v5443_v51 = vsel %vm491_vm0, %v5441_v35, %v5442_v0  ;;  %v5545_v42 = vadd.f32 %v5439_v29, %v5281_v24  ;;  %v5547_v63 = vadd.f32 %v5442_v0, %v5283_v9  ;;  %v5544_v53 = vadd.f32 %v5440_v8, %v5280_v37 }
 0x2cf   :  { %v5546_v30 = vadd.f32 %v5443_v51, %v5282_v45  ;;  %v5704_v33 = vsel %vm491_vm0, %v5702_v48, %v5703_v21  ;;  %v5706_v49 = vrot.slane %v5595_v7, 1  ;;  %v18866_v60 = vadd.f32 %v5233_v61, %v18772_v25 }
 0x2d0   :  { %v5809_v2 = vadd.f32 %v5703_v21, %v5545_v42  ;;  %v18869_v41 = vadd.f32 %v5234_v44, %v18785_v58  ;;  %v18872_v16 = vadd.f32 %v5235_v31, %v18781_v59  ;;  %v5808_v12 = vadd.f32 %v5704_v33, %v5544_v53 }
 0x2d1   :  { %v5707_v57 = vsel %vm491_vm0, %v5705_v28, %v5706_v49  ;;  %v5811_v24 = vadd.f32 %v5706_v49, %v5547_v63  ;;  %v5953_v37 = vmul.f32 %v22939_v18, %v18718_v47  ;;  %v5954_v25 = vmul.f32 %v22939_v18, %v18721_v32 }
 0x2d2   :  { %v5810_v45 = vadd.f32 %v5707_v57, %v5546_v30  ;;  %v18878_v9 = vadd.f32 %v5809_v2, %v18802_v34  ;;  %v5955_v58 = vmul.f32 %v22939_v18, %v18723_v4  ;;  %v18885_v59 = vadd.f32 %v5808_v12, %v18807_v38 }
 0x2d3   :  { %v18888_v61 = vadd.f32 %v5811_v24, %v18809_v50  ;;  %v5956_v53 = vmul.f32 %v22939_v18, %v18726_v19  ;;  %v6002_v30 = vmul.f32 %v22940_v22, %v18739_v36  ;;  %v6003_v63 = vmul.f32 %v22940_v22, %v18733_v5 }
 0x2d4   :  { %v18895_v34 = vadd.f32 %v5810_v45, %v18813_v54  ;;  %v6004_v31 = vmul.f32 %v22940_v22, %v18747_v3  ;;  %v6005_v38 = vmul.f32 %v22940_v22, %v18741_v62  ;;  %v6099_v44 = vmul.f32 %v22983_v23, %v18718_v47 }
 0x2d5   :  { %v6050_v50 = vadd.f32 %v6002_v30, %v5953_v37  ;;  %v6100_v43 = vmul.f32 %v22983_v23, %v18721_v32  ;;  %v6101_v54 = vmul.f32 %v22983_v23, %v18723_v4  ;;  %v6051_v27 = vadd.f32 %v6003_v63, %v5954_v25 }
 0x2d6   :  { %v6052_v29 = vadd.f32 %v6004_v31, %v5955_v58  ;;  %v6053_v35 = vadd.f32 %v6005_v38, %v5956_v53  ;;  %v6102_v0 = vmul.f32 %v22983_v23, %v18726_v19  ;;  %v6209_v7 = vrot.slane %v6099_v44, 1 }
 0x2d7   :  { %v6210_v48 = vrot.slane %v6100_v43, 1  ;;  %v6212_v21 = vrot.slane %v6101_v54, 1  ;;  %v6363_v28 = vmul.f32 %v22939_v18, %v18739_v36  ;;  %v6364_v51 = vmul.f32 %v22939_v18, %v18733_v5 }
 0x2d8   :  { %v6213_v8 = vrot.slane %v6102_v0, 1  ;;  %v6365_v42 = vmul.f32 %v22939_v18, %v18747_v3  ;;  %v6366_v33 = vmul.f32 %v22939_v18, %v18741_v62  ;;  %v6411_v57 = vmul.f32 %v22940_v22, %v18718_v47  ;;  %v134_v47 = vld [vmem:[#allocation9 + $0x98] sm:$0x3f] }
 0x2d9   :  { %v6211_v49 = vsel %vm491_vm0, %v6209_v7, %v6210_v48  ;;  %v6316_v2 = vadd.f32 %v6210_v48, %v6051_v27  ;;  %v6412_v12 = vmul.f32 %v22940_v22, %v18721_v32  ;;  %v6413_v25 = vmul.f32 %v22940_v22, %v18723_v4 }
 0x2da   :  { %v6214_v24 = vsel %vm491_vm0, %v6212_v21, %v6213_v8  ;;  %v6315_v37 = vadd.f32 %v6211_v49, %v6050_v50  ;;  %v6318_v45 = vadd.f32 %v6213_v8, %v6053_v35  ;;  %v6414_v53 = vmul.f32 %v22940_v22, %v18726_v19 }
 0x2db   :  { %v6317_v58 = vadd.f32 %v6214_v24, %v6052_v29  ;;  %v6521_v30 = vrot.slane %v6411_v57, 1  ;;  %v6522_v63 = vrot.slane %v6412_v12, 1  ;;  %v6524_v31 = vrot.slane %v6413_v25, 1 }
 0x2dc   :  { %v6675_v38 = vmul.f32 %v22983_v23, %v18739_v36  ;;  %v6676_v44 = vmul.f32 %v22983_v23, %v18733_v5  ;;  %v6677_v50 = vmul.f32 %v22983_v23, %v18747_v3  ;;  %v6525_v54 = vrot.slane %v6414_v53, 1 }
 0x2dd   :  { %v6523_v43 = vsel %vm491_vm0, %v6521_v30, %v6522_v63  ;;  %v6628_v27 = vadd.f32 %v6522_v63, %v6364_v51  ;;  %v6678_v29 = vmul.f32 %v22983_v23, %v18741_v62  ;;  %v6939_v57 = vadd.f32 %v6315_v37, %v18860_v39 }
 0x2de   :  { %v6627_v35 = vadd.f32 %v6523_v43, %v6363_v28  ;;  %v6785_v0 = vrot.slane %v6675_v38, 1  ;;  %v6786_v7 = vrot.slane %v6676_v44, 1  ;;  %v6788_v48 = vrot.slane %v6677_v50, 1 }
 0x2df   :  { %v6526_v21 = vsel %vm491_vm0, %v6524_v31, %v6525_v54  ;;  %v6630_v8 = vadd.f32 %v6525_v54, %v6366_v33  ;;  %v6789_v49 = vrot.slane %v6678_v29, 1  ;;  %v6940_v53 = vadd.f32 %v6316_v2, %v18866_v60 }
 0x2e0   :  { %v6629_v12 = vadd.f32 %v6526_v21, %v6365_v42  ;;  %v6787_v24 = vsel %vm491_vm0, %v6785_v0, %v6786_v7  ;;  %v6892_v25 = vadd.f32 %v6786_v7, %v6628_v27  ;;  %v6941_v28 = vadd.f32 %v6317_v58, %v18869_v41 }
 0x2e1   :  { %v6790_v51 = vsel %vm491_vm0, %v6788_v48, %v6789_v49  ;;  %v6891_v30 = vadd.f32 %v6787_v24, %v6627_v35  ;;  %v6894_v63 = vadd.f32 %v6789_v49, %v6630_v8  ;;  %v6942_v44 = vadd.f32 %v6318_v45, %v18872_v16  ;;  %v14083_v16 = vld [vmem:[%s22509_s5 + $0x78] sm:$0x3] }
 0x2e2   :  { %v6893_v38 = vadd.f32 %v6790_v51, %v6629_v12  ;;  %v6988_v33 = vadd.f32 %v6892_v25, %v18878_v9  ;;  %v7036_v31 = vadd.f32 %v22984_v55, %v6939_v57  ;;  %v7037_v37 = vadd.f32 %v22984_v55, %v6940_v53  ;;  %v18974_v53 = vld [vmem:[#allocation9 + $0x60] sm:$0xff] }
 0x2e3   :  { %v6987_v39 = vadd.f32 %v6891_v30, %v18885_v59  ;;  %v6990_v42 = vadd.f32 %v6894_v63, %v18888_v61  ;;  %v7038_v60 = vadd.f32 %v22984_v55, %v6941_v28  ;;  %v7039_v50 = vadd.f32 %v22984_v55, %v6942_v44  ;;  %v18986_v28 = vld [vmem:[#allocation9 + $0x70] sm:$0xff] }
 0x2e4   :  { %v6989_v2 = vadd.f32 %v6893_v38, %v18895_v34  ;;  %v7084_v41 = vmax.f32 %v7036_v31, 0.0  ;;  %v7133_v58 = vadd.f32 %v22984_v55, %v6988_v33  ;;  %v7085_v9 = vmax.f32 %v7037_v37, 0.0  ;;  %v18991_v33 = vld [vmem:[#allocation9 + $0x78] sm:$0x3f]  ;;  %v18996_v37 = vld [vmem:[#allocation10 + $0x68] sm:$0x3f] }
 0x2e5   :  { %v7086_v45 = vmax.f32 %v7038_v60, 0.0  ;;  %v7132_v59 = vadd.f32 %v22984_v55, %v6987_v39  ;;  %v7135_v61 = vadd.f32 %v22984_v55, %v6990_v42  ;;  %v7087_v43 = vmax.f32 %v7039_v50, 0.0  ;;  %v15461_v39 = vld [vmem:[#allocation10 + $0x60] sm:$0xff] }
 0x2e6   :  { %v7134_v54 = vadd.f32 %v22984_v55, %v6989_v2  ;;  %v7181_v27 = vmax.f32 %v7133_v58, 0.0  ;;  %v18961_v34 = vand.u32 4294901760, %v18593_v11  ;;  %v10882_v0 = vsel %vm7259_vm2, %v14083_v16, 0  ;;  %v19004_v58 = vld [vmem:[#allocation10 + $0x70] sm:$0xff] }
 0x2e7   :  { %v7180_v29 = vmax.f32 %v7132_v59, 0.0  ;;  %v7183_v35 = vmax.f32 %v7135_v61, 0.0  ;;  %v23035_v7 = vand.u32 4294901760, %v18495_v56  ;;  %v23036_v48 = vand.u32 4294901760, %v18497_v10  ;;  %v18978_v56 = vld [vmem:[#allocation9 + $0x68] sm:$0x3f] }
 0x2e8   :  { %v7182_v8 = vmax.f32 %v7134_v54, 0.0  ;;  %v7229_v49 = vmax.f32 %v7085_v9, %v7181_v27  ;;  %v18970_v57 = vsub.f32 %v18593_v11, %v18961_v34  ;;  %v18972_v12 = vand.u32 4294901760, %v10882_v0 }
 0x2e9   :  { %v14990_v21 = vpack.c.bf16 %v23036_v48, %v23035_v7  ;;  %v7228_v24 = vmax.f32 %v7084_v41, %v7180_v29  ;;  %v7231_v25 = vmax.f32 %v7087_v43, %v7183_v35  ;;  %v241_v51 = vmul.f32 %v18974_v53, %v22993_v6 }
 0x2ea   :  { %v242_v10 = vmul.f32 %v18978_v56, %v22993_v6  ;;  %v7230_v30 = vmax.f32 %v7086_v45, %v7182_v8  ;;  %v22707_v63 = vand.u32 4294901760, %v18970_v57  ;;  %v18984_v11 = vsub.f32 %v10882_v0, %v18972_v12  ;;  %v19010_v45 = vld [vmem:[#allocation10 + $0x78] sm:$0x3f] }
 0x2eb   :  { %14991 = vmatprep.subr.bf16.mxu1 %v14990_v21  ;;  %v243_v38 = vmul.f32 %v18986_v28, %v22993_v6  ;;  %v10874_v44 = vmax.f32 %v7229_v49, %v7231_v25  ;;  %v244_v31 = vmul.f32 %v18991_v33, %v22993_v6  ;;  %v294_v42 = vmul.f32 %v15461_v39, %v22994_v40 }
 0x2ec   :  { %14993 = vmatpush3.bf16.msra.mxu1 %v14990_v21  ;;  %v295_v60 = vmul.f32 %v18996_v37, %v22994_v40  ;;  %v10873_v2 = vmax.f32 %v7228_v24, %v7230_v30  ;;  %v10957_v50 = vsub.f32 %v18970_v57, %v22707_v63  ;;  %v22706_v41 = vand.u32 4294901760, %v18984_v11 }
 0x2ed   :  { %14995 = vmatprep.subr.bf16.mxu1 %v18493_v15  ;;  %v296_v16 = vmul.f32 %v19004_v58, %v22994_v40  ;;  %v10885_v9 = vsel %vm7266_vm1, %v10874_v44, 0  ;;  %v297_v59 = vmul.f32 %v19010_v45, %v22994_v40  ;;  %v346_v61 = vadd.f32 %v294_v42, %v241_v51 }
 0x2ee   :  { %v347_v43 = vadd.f32 %v295_v60, %v242_v10  ;;  %v10888_v54 = vand.u32 4294901760, %v10873_v2  ;;  %v10891_v27 = vand.u32 4294901760, %v10885_v9  ;;  %v10958_v29 = vand.u32 4294901760, %v10957_v50 }
 0x2ef   :  { %14479 = vmatmul.mubr.f32.vlgmr.msra.gmra.mrb[0].mxu1 %v18445_v1  ;;  %v10967_v35 = vsub.f32 %v18984_v11, %v22706_v41  ;;  %v348_v0 = vadd.f32 %v296_v16, %v243_v38  ;;  %v349_v7 = vadd.f32 %v297_v59, %v244_v31  ;;  %v399_v48 = vmul.f32 %v18974_v53, %v23013_v14 }
 0x2f0   :  { %14997 = vmatpush3.bf16.msra.mxu1 %v18493_v15  ;;  %14485 = vmatprep.mubr.f32.mxu1 %v18432_v13  ;;  %v400_v21 = vmul.f32 %v18978_v56, %v23013_v14  ;;  %v19023_v8 = vpack.c.bf16 %v10891_v27, %v10888_v54  ;;  %v19025_v24 = vsub.f32 %v10873_v2, %v10888_v54 }
 0x2f1   :  { %14702 = vmatprep.mubr.f32.mxu0 %v10958_v29  ;;  %v10968_v49 = vand.u32 4294901760, %v10967_v35  ;;  %v19027_v25 = vsub.f32 %v10885_v9, %v10891_v27  ;;  %v401_v15 = vmul.f32 %v18986_v28, %v23013_v14  ;;  %v402_v13 = vmul.f32 %v18991_v33, %v23013_v14 }
 0x2f2   :  { %v510_v51 = vrot.slane %v399_v48, 1  ;;  %v511_v10 = vrot.slane %v400_v21, 1  ;;  %15119 = vmatprep.subr.bf16.mxu0 %v19023_v8  ;;  %v22705_v30 = vand.u32 4294901760, %v19025_v24  ;;  %v686_v31 = vmul.f32 %v15461_v39, %v22993_v6 }
 0x2f3   :  { %v22704_v38 = vand.u32 4294901760, %v19027_v25  ;;  %v19038_v44 = vpack.c.bf16 %v19027_v25, %v19025_v24  ;;  %15121 = vmatpush3.bf16.msra.mxu0 %v19023_v8  ;;  %v513_v60 = vrot.slane %v401_v15, 1  ;;  %v514_v2 = vrot.slane %v402_v13, 1 }
 0x2f4   :  { %v512_v42 = vsel %vm491_vm0, %v510_v51, %v511_v10  ;;  %v19043_v50 = vadd.f32 %v511_v10, %v347_v43  ;;  %v10978_v16 = vsub.f32 %v19025_v24, %v22705_v30  ;;  %v687_v54 = vmul.f32 %v18996_v37, %v22993_v6 }
 0x2f5   :  { %v10985_v9 = vsub.f32 %v19027_v25, %v22704_v38  ;;  %v19051_v59 = vadd.f32 %v512_v42, %v346_v61  ;;  %v515_v27 = vsel %vm491_vm0, %v513_v60, %v514_v2  ;;  %v19057_v29 = vadd.f32 %v514_v2, %v349_v7  ;;  %v19090_v38 = vld [vmem:[#allocation10 + $0x80] sm:$0xff] }
 0x2f6   :  { %v688_v43 = vmul.f32 %v19004_v58, %v22993_v6  ;;  %v689_v35 = vmul.f32 %v19010_v45, %v22993_v6  ;;  %14703 = vmatmul.mubr.f32.vlgmr.msra.gmra.mrb[0].mxu0 %v10968_v49  ;;  %v10979_v48 = vand.u32 4294901760, %v10978_v16  ;;  %v19063_v61 = vadd.f32 %v515_v27, %v348_v0  ;;  %v19081_v16 = vld [vmem:[#allocation9 + $0x80] sm:$0xff] }
 0x2f7   :  { %14486 = vmatmul.mubr.f32.vlgmr.msra.gmra.mrb[0].mxu1 %v18445_v1  ;;  %v10986_v21 = vand.u32 4294901760, %v10985_v9  ;;  %v738_v15 = vmul.f32 %v18974_v53, %v22994_v40  ;;  %14709 = vmatprep.mubr.f32.mxu0 %v18961_v34  ;;  %v739_v1 = vmul.f32 %v18978_v56, %v22994_v40  ;;  %v740_v7 = vmul.f32 %v18986_v28, %v22994_v40  ;;  %v19083_v9 = vld [vmem:[#allocation9 + $0x88] sm:$0x3f] }
 0x2f8   :  { %v741_v13 = vmul.f32 %v18991_v33, %v22994_v40  ;;  %v1024_v49 = vmul.f32 %v15461_v39, %v23013_v14  ;;  %v1025_v0 = vmul.f32 %v18996_v37, %v23013_v14  ;;  %v1026_v53 = vmul.f32 %v19004_v58, %v23013_v14 }
 0x2f9   :  { %v15122_v51 = vpack.c.bf16 %v10986_v21, %v10979_v48  ;;  %v848_v10 = vrot.slane %v738_v15, 1  ;;  %v849_v42 = vrot.slane %v739_v1, 1  ;;  %v851_v60 = vrot.slane %v740_v7, 1  ;;  %v23037_v21 = vld [vmem:[#allocation27_spill] sm:$0xff] }
 0x2fa   :  { %v852_v2 = vrot.slane %v741_v13, 1  ;;  %v1027_v56 = vmul.f32 %v19010_v45, %v23013_v14  ;;  %v1134_v39 = vrot.slane %v1024_v49, 1  ;;  %v1135_v27 = vrot.slane %v1025_v0, 1 }
 0x2fb   :  { %15123 = vmatprep.subr.bf16.mxu0 %v15122_v51  ;;  %v1137_v48 = vrot.slane %v1026_v53, 1  ;;  %v1311_v37 = vmul.f32 %v18986_v28, %v23037_v21  ;;  %v850_v15 = vsel %vm491_vm0, %v848_v10, %v849_v42  ;;  %v973_v7 = vadd.f32 %v849_v42, %v687_v54  ;;  %v14072_v53 = vld [vmem:[%s22509_s5 + $0x20] sm:$0xff] }
 0x2fc   :  { %15125 = vmatpush3.bf16.msra.mxu0 %v15122_v51  ;;  %v853_v1 = vsel %vm491_vm0, %v851_v60, %v852_v2  ;;  %v975_v13 = vadd.f32 %v852_v2, %v689_v35  ;;  %v972_v30 = vadd.f32 %v850_v15, %v686_v31  ;;  %v1136_v49 = vsel %vm491_vm0, %v1134_v39, %v1135_v27  ;;  %v19096_v51 = vld [vmem:[#allocation10 + $0x88] sm:$0x3f]  ;;  %v23038_v2 = vld [vmem:[#allocation28_spill] sm:$0xff] }
 0x2fd   :  { %15127 = vmatprep.subr.bf16.mxu0 %v19038_v44  ;;  %v974_v41 = vadd.f32 %v853_v1, %v688_v43  ;;  %v1138_v0 = vrot.slane %v1027_v56, 1  ;;  %v19098_v10 = vadd.f32 %v1135_v27, %v973_v7  ;;  %v1312_v54 = vmul.f32 %v18991_v33, %v23037_v21 }
 0x2fe   :  { %v1313_v35 = vmul.f32 %v23037_v21, %v19081_v16  ;;  %v1314_v31 = vmul.f32 %v23037_v21, %v19083_v9  ;;  %v19108_v42 = vadd.f32 %v1136_v49, %v972_v30  ;;  %v1364_v56 = vmul.f32 %v19004_v58, %v23038_v2 }
 0x2ff   :  { %14710 = vmatmul.mubr.f32.vlgmr.msra.gmra.mrb[0].mxu0 %v18972_v12  ;;  %v1139_v43 = vsel %vm491_vm0, %v1137_v48, %v1138_v0  ;;  %v19110_v60 = vadd.f32 %v1138_v0, %v975_v13  ;;  %v1365_v27 = vmul.f32 %v19010_v45, %v23038_v2  ;;  %v1366_v15 = vmul.f32 %v23038_v2, %v19090_v38 }
 0x300   :  { %15129 = vmatpush3.bf16.msra.mxu0 %v19038_v44  ;;  %14716 = vmatprep.mubr.f32.mxu0 %v18970_v57  ;;  %v19116_v39 = vadd.f32 %v1139_v43, %v974_v41  ;;  %v19123_v30 = vsel %vm7259_vm2, %v14072_v53, 0  ;;  %v1367_v48 = vmul.f32 %v23038_v2, %v19096_v51  ;;  %v1416_v1 = vadd.f32 %v1364_v56, %v1311_v37 }
 0x301   :  { %v1469_v44 = vmul.f32 %v18986_v28, %v22998_v17  ;;  %v1470_v41 = vmul.f32 %v18991_v33, %v22998_v17  ;;  %15131 = vmatprep.subr.bf16.mxu0 %v19023_v8  ;;  %v1417_v7 = vadd.f32 %v1365_v27, %v1312_v54  ;;  %v1418_v13 = vadd.f32 %v1366_v15, %v1313_v35 }
 0x302   :  { %v1471_v49 = vmul.f32 %v22998_v17, %v19081_v16  ;;  %v1472_v0 = vmul.f32 %v22998_v17, %v19083_v9  ;;  %v1419_v53 = vadd.f32 %v1367_v48, %v1314_v31  ;;  %v1755_v37 = vmul.f32 %v19004_v58, %v23037_v21 }
 0x303   :  { %v1579_v43 = vrot.slane %v1469_v44, 1  ;;  %v1580_v63 = vrot.slane %v1470_v41, 1  ;;  %v1756_v3 = vmul.f32 %v19010_v45, %v23037_v21  ;;  %v1757_v54 = vmul.f32 %v23037_v21, %v19090_v38 }
 0x304   :  { %v1582_v56 = vrot.slane %v1471_v49, 1  ;;  %v1583_v62 = vrot.slane %v1472_v0, 1  ;;  %v1758_v15 = vmul.f32 %v23037_v21, %v19096_v51  ;;  %v1807_v31 = vmul.f32 %v18986_v28, %v23038_v2 }
 0x305   :  { %v1581_v35 = vsel %vm491_vm0, %v1579_v43, %v1580_v63  ;;  %v1704_v27 = vadd.f32 %v1580_v63, %v1417_v7  ;;  %v1808_v49 = vmul.f32 %v18991_v33, %v23038_v2  ;;  %v1809_v43 = vmul.f32 %v23038_v2, %v19081_v16 }
 0x306   :  { %v1584_v48 = vsel %vm491_vm0, %v1582_v56, %v1583_v62  ;;  %v1703_v44 = vadd.f32 %v1581_v35, %v1416_v1  ;;  %v1706_v41 = vadd.f32 %v1583_v62, %v1419_v53  ;;  %v1810_v63 = vmul.f32 %v23038_v2, %v19083_v9 }
 0x307   :  { %14717 = vmatmul.mubr.f32.vlgmr.msra.gmra.mrb[0].mxu0 %v18984_v11  ;;  %v1705_v0 = vadd.f32 %v1584_v48, %v1418_v13  ;;  %v1917_v7 = vrot.slane %v1807_v31, 1  ;;  %v1918_v5 = vrot.slane %v1808_v49, 1  ;;  %v2093_v28 = vmul.f32 %v19004_v58, %v22998_v17 }
 0x308   :  { %v2094_v62 = vmul.f32 %v19010_v45, %v22998_v17  ;;  %v2095_v33 = vmul.f32 %v22998_v17, %v19090_v38  ;;  %15133 = vmatpush3.bf16.msra.mxu0 %v19023_v8  ;;  %v23039_v1 = vand.u32 4294901760, %v18970_v57  ;;  %v1920_v13 = vrot.slane %v1809_v43, 1  ;;  %v133_v57 = vld [vmem:[#allocation9 + $0x90] sm:$0xff] }
 0x309   :  { %v1921_v53 = vrot.slane %v1810_v63, 1  ;;  %v2096_v56 = vmul.f32 %v22998_v17, %v19096_v51  ;;  %v19167_v35 = vadd.f32 %v1703_v44, %v19051_v59  ;;  %v1919_v58 = vsel %vm491_vm0, %v1917_v7, %v1918_v5 }
 0x30a   :  { %14723 = vmatprep.mubr.f32.mxu0 %v23039_v1  ;;  %v2042_v31 = vadd.f32 %v1918_v5, %v1756_v3  ;;  %v2203_v45 = vrot.slane %v2093_v28, 1  ;;  %v2204_v48 = vrot.slane %v2094_v62, 1  ;;  %v2041_v36 = vadd.f32 %v1919_v58, %v1755_v37  ;;  %v189_v37 = vld [vmem:[#allocation10 + $0x90] sm:$0xff] }
 0x30b   :  { %v1922_v49 = vsel %vm491_vm0, %v1920_v13, %v1921_v53  ;;  %v2044_v19 = vadd.f32 %v1921_v53, %v1758_v15  ;;  %v2206_v4 = vrot.slane %v2095_v33, 1  ;;  %v2207_v63 = vrot.slane %v2096_v56, 1  ;;  %v190_v15 = vld [vmem:[#allocation10 + $0x98] sm:$0x3f] }
 0x30c   :  { %v2043_v1 = vadd.f32 %v1922_v49, %v1757_v54  ;;  %v2205_v43 = vsel %vm491_vm0, %v2203_v45, %v2204_v48  ;;  %v2328_v32 = vadd.f32 %v2204_v48, %v2042_v31  ;;  %v19173_v59 = vadd.f32 %v1704_v27, %v19043_v50 }
 0x30d   :  { %v2327_v17 = vadd.f32 %v2205_v43, %v2041_v36  ;;  %v19176_v5 = vadd.f32 %v1705_v0, %v19063_v61  ;;  %v19179_v3 = vadd.f32 %v1706_v41, %v19057_v29  ;;  %v2208_v44 = vsel %vm491_vm0, %v2206_v4, %v2207_v63 }
 0x30e   :  { %v2330_v54 = vadd.f32 %v2207_v63, %v2044_v19  ;;  %v19183_v7 = vadd.f32 %v2328_v32, %v19098_v10  ;;  %v2484_v36 = vmul.f32 %v23000_v20, %v19081_v16  ;;  %v2329_v28 = vadd.f32 %v2208_v44, %v2043_v1 }
 0x30f   :  { %v19188_v50 = vadd.f32 %v2327_v17, %v19108_v42  ;;  %v2485_v61 = vmul.f32 %v23000_v20, %v19083_v9  ;;  %v2486_v29 = vmul.f32 %v23000_v20, %v133_v57  ;;  %v23040_v27 = vand.u32 4294901760, %v18984_v11 }
 0x310   :  { %v19196_v4 = vadd.f32 %v2330_v54, %v19110_v60  ;;  %v2487_v32 = vmul.f32 %v23000_v20, %v134_v47  ;;  %v2537_v19 = vmul.f32 %v22974_v26, %v19090_v38  ;;  %v2538_v17 = vmul.f32 %v22974_v26, %v19096_v51 }
 0x311   :  { %14724 = vmatmul.mubr.f32.vlgmr.msra.gmra.mrb[0].mxu0 %v23040_v27  ;;  %v19205_v10 = vadd.f32 %v2329_v28, %v19116_v39  ;;  %v2539_v42 = vmul.f32 %v22974_v26, %v189_v37  ;;  %v2540_v11 = vmul.f32 %v22974_v26, %v190_v15  ;;  %v2642_v60 = vmul.f32 %v22921_v46, %v19081_v16 }
 0x312   :  { %14730 = vmatprep.mubr.f32.mxu0 %v18961_v34  ;;  %v2589_v41 = vadd.f32 %v2537_v19, %v2484_v36  ;;  %v2590_v0 = vadd.f32 %v2538_v17, %v2485_v61  ;;  %v2643_v62 = vmul.f32 %v22921_v46, %v19083_v9  ;;  %v2644_v33 = vmul.f32 %v22921_v46, %v133_v57 }
 0x313   :  { %v2591_v13 = vadd.f32 %v2539_v42, %v2486_v29  ;;  %v2592_v53 = vadd.f32 %v2540_v11, %v2487_v32  ;;  %v2645_v56 = vmul.f32 %v22921_v46, %v134_v47  ;;  %v2752_v39 = vrot.slane %v2642_v60, 1 }
 0x314   :  { %v2753_v58 = vrot.slane %v2643_v62, 1  ;;  %v2755_v31 = vrot.slane %v2644_v33, 1  ;;  %v2928_v45 = vmul.f32 %v23000_v20, %v19090_v38  ;;  %v2929_v48 = vmul.f32 %v23000_v20, %v19096_v51 }
 0x315   :  { %v2756_v49 = vrot.slane %v2645_v56, 1  ;;  %v2930_v1 = vmul.f32 %v23000_v20, %v189_v37  ;;  %v2931_v43 = vmul.f32 %v23000_v20, %v190_v15  ;;  %v2980_v63 = vmul.f32 %v22974_v26, %v19081_v16 }
 0x316   :  { %v2754_v44 = vsel %vm491_vm0, %v2752_v39, %v2753_v58  ;;  %v2877_v54 = vadd.f32 %v2753_v58, %v2590_v0  ;;  %v2981_v36 = vmul.f32 %v22974_v26, %v19083_v9  ;;  %v2982_v28 = vmul.f32 %v22974_v26, %v133_v57 }
 0x317   :  { %v2757_v61 = vsel %vm491_vm0, %v2755_v31, %v2756_v49  ;;  %v2876_v29 = vadd.f32 %v2754_v44, %v2589_v41  ;;  %v2879_v27 = vadd.f32 %v2756_v49, %v2592_v53  ;;  %v2983_v32 = vmul.f32 %v22974_v26, %v134_v47 }
 0x318   :  { %v2878_v19 = vadd.f32 %v2757_v61, %v2591_v13  ;;  %v3090_v17 = vrot.slane %v2980_v63, 1  ;;  %v3091_v42 = vrot.slane %v2981_v36, 1  ;;  %v3093_v11 = vrot.slane %v2982_v28, 1 }
 0x319   :  { %v3094_v60 = vrot.slane %v2983_v32, 1  ;;  %v3266_v16 = vmul.f32 %v22921_v46, %v19090_v38  ;;  %v3267_v0 = vmul.f32 %v22921_v46, %v19096_v51  ;;  %v3268_v9 = vmul.f32 %v22921_v46, %v189_v37 }
 0x31a   :  { %v3092_v57 = vsel %vm491_vm0, %v3090_v17, %v3091_v42  ;;  %v3215_v62 = vadd.f32 %v3091_v42, %v2929_v48  ;;  %v3269_v41 = vmul.f32 %v22921_v46, %v190_v15  ;;  %v3552_v47 = vadd.f32 %v2876_v29, %v19167_v35  ;;  %v23045_v17 = vld [vmem:[#allocation35_spill] sm:$0xff] }
 0x31b   :  { %v3095_v33 = vsel %vm491_vm0, %v3093_v11, %v3094_v60  ;;  %v3214_v13 = vadd.f32 %v3092_v57, %v2928_v45  ;;  %v3217_v53 = vadd.f32 %v3094_v60, %v2931_v43  ;;  %v3376_v56 = vrot.slane %v3266_v16, 1  ;;  %v23048_v16 = vld [vmem:[#allocation37_spill] sm:$0xff] }
 0x31c   :  { %v3216_v39 = vadd.f32 %v3095_v33, %v2930_v1  ;;  %v3377_v58 = vrot.slane %v3267_v0, 1  ;;  %v3379_v38 = vrot.slane %v3268_v9, 1  ;;  %v3380_v31 = vrot.slane %v3269_v41, 1  ;;  %v23053_v33 = vld [vmem:[#allocation23_spill] sm:$0xff] }
 0x31d   :  { %v3553_v51 = vadd.f32 %v2877_v54, %v19173_v59  ;;  %v3554_v37 = vadd.f32 %v2878_v19, %v19176_v5  ;;  %v3555_v49 = vadd.f32 %v2879_v27, %v19179_v3  ;;  %v3657_v48 = vadd.f32 %v22924_v52, %v3552_v47  ;;  %v23052_v47 = vld [vmem:[#allocation43_spill] sm:$0xff] }
 0x31e   :  { %v3378_v15 = vsel %vm491_vm0, %v3376_v56, %v3377_v58  ;;  %v3381_v35 = vsel %vm491_vm0, %v3379_v38, %v3380_v31  ;;  %v3501_v63 = vadd.f32 %v3377_v58, %v3215_v62  ;;  %v3503_v45 = vadd.f32 %v3380_v31, %v3217_v53  ;;  %v23051_v62 = vld [vmem:[#allocation38_spill] sm:$0xff]  ;;  %v23057_v38 = vld [vmem:[#allocation45_spill] sm:$0xff] }
 0x31f   :  { %v3500_v43 = vadd.f32 %v3378_v15, %v3214_v13  ;;  %v3502_v44 = vadd.f32 %v3381_v35, %v3216_v39  ;;  %v3658_v1 = vadd.f32 %v22924_v52, %v3553_v51  ;;  %v3659_v36 = vadd.f32 %v22924_v52, %v3554_v37  ;;  %v23056_v39 = vld [vmem:[#allocation44_spill] sm:$0xff]  ;;  %v23058_v51 = vld [vmem:[#allocation46_spill] sm:$0xff] }
 0x320   :  { %v3605_v59 = vadd.f32 %v3501_v63, %v19183_v7  ;;  %v3607_v5 = vadd.f32 %v3503_v45, %v19196_v4  ;;  %v3660_v3 = vadd.f32 %v22924_v52, %v3555_v49  ;;  %v19249_v54 = vmax.f32 %v3657_v48, 0.0  ;;  %v23046_v4 = vld [vmem:[#allocation22_spill] sm:$0xff]  ;;  %v23059_v48 = vld [vmem:[#allocation24_spill] sm:$0xff] }
 0x321   :  { %v3604_v28 = vadd.f32 %v3500_v43, %v19188_v50  ;;  %v3606_v61 = vadd.f32 %v3502_v44, %v19205_v10  ;;  %v19253_v29 = vmax.f32 %v3658_v1, 0.0  ;;  %v19255_v27 = vmax.f32 %v3659_v36, 0.0  ;;  %v23047_v50 = vld [vmem:[#allocation36_spill] sm:$0xff] }
 0x322   :  { %23041 = vst [vmem:[#allocation31_spill] sm:$0xff] %v19249_v54  ;;  %v19257_v32 = vmax.f32 %v3660_v3, 0.0  ;;  %v3762_v19 = vadd.f32 %v22924_v52, %v3605_v59  ;;  %v3764_v7 = vadd.f32 %v22924_v52, %v3607_v5  ;;  %v3863_v42 = vmul.f32 %v23046_v4, %v23045_v17 }
 0x323   :  { %23042 = vst [vmem:[#allocation32_spill] sm:$0xff] %v19253_v29  ;;  %23043 = vst [vmem:[#allocation39_spill] sm:$0xff] %v19255_v27  ;;  %v3761_v11 = vadd.f32 %v22924_v52, %v3604_v28  ;;  %v3763_v60 = vadd.f32 %v22924_v52, %v3606_v61  ;;  %v3864_v10 = vmul.f32 %v23046_v4, %v23047_v50 }
 0x324   :  { %23044 = vst [vmem:[#allocation40_spill] sm:$0xff] %v19257_v32  ;;  %v3865_v0 = vmul.f32 %v23046_v4, %v23048_v16  ;;  %v19269_v9 = vmax.f32 %v3762_v19, 0.0  ;;  %v19271_v57 = vmax.f32 %v3764_v7, 0.0  ;;  %v3866_v41 = vmul.f32 %v23046_v4, %v23051_v62 }
 0x325   :  { %v3912_v13 = vmul.f32 %v23053_v33, %v23052_v47  ;;  %v19277_v53 = vmax.f32 %v3761_v11, 0.0  ;;  %v19279_v56 = vmax.f32 %v3763_v60, 0.0  ;;  %v3913_v58 = vmul.f32 %v23053_v33, %v23056_v39 }
 0x326   :  { %23049 = vst [vmem:[#allocation33_spill] sm:$0xff] %v19269_v9  ;;  %23050 = vst [vmem:[#allocation34_spill] sm:$0xff] %v19271_v57  ;;  %v3914_v31 = vmul.f32 %v23053_v33, %v23057_v38  ;;  %v3915_v37 = vmul.f32 %v23053_v33, %v23058_v51  ;;  %v4009_v15 = vmul.f32 %v23059_v48, %v23045_v17 }
 0x327   :  { %23054 = vst [vmem:[#allocation41_spill] sm:$0xff] %v19277_v53  ;;  %23055 = vst [vmem:[#allocation42_spill] sm:$0xff] %v19279_v56  ;;  %v3960_v49 = vadd.f32 %v3912_v13, %v3863_v42  ;;  %v4010_v35 = vmul.f32 %v23059_v48, %v23047_v50  ;;  %v3961_v63 = vadd.f32 %v3913_v58, %v3864_v10 }
 0x328   :  { %v3962_v45 = vadd.f32 %v3914_v31, %v3865_v0  ;;  %v4011_v43 = vmul.f32 %v23059_v48, %v23048_v16  ;;  %v4012_v44 = vmul.f32 %v23059_v48, %v23051_v62  ;;  %v3963_v1 = vadd.f32 %v3915_v37, %v3866_v41 }
 0x329   :  { %v4109_v36 = vrot.slane %v4009_v15, 1  ;;  %v4110_v59 = vrot.slane %v4010_v35, 1  ;;  %v4273_v5 = vmul.f32 %v23046_v4, %v23052_v47  ;;  %v4274_v61 = vmul.f32 %v23046_v4, %v23056_v39 }
 0x32a   :  { %v4112_v3 = vrot.slane %v4011_v43, 1  ;;  %v4113_v28 = vrot.slane %v4012_v44, 1  ;;  %v4275_v19 = vmul.f32 %v23046_v4, %v23057_v38  ;;  %v4276_v11 = vmul.f32 %v23046_v4, %v23058_v51  ;;  %v23060_v44 = vld [vmem:[#allocation47_spill] sm:$0xff] }
 0x32b   :  { %v4111_v7 = vsel %vm491_vm0, %v4109_v36, %v4110_v59  ;;  %v19302_v42 = vadd.f32 %v4110_v59, %v3961_v63  ;;  %v4321_v60 = vmul.f32 %v23053_v33, %v23045_v17  ;;  %v4322_v13 = vmul.f32 %v23053_v33, %v23047_v50 }
 0x32c   :  { %v4114_v10 = vsel %vm491_vm0, %v4112_v3, %v4113_v28  ;;  %v19309_v0 = vadd.f32 %v4111_v7, %v3960_v49  ;;  %v19311_v41 = vadd.f32 %v4113_v28, %v3963_v1  ;;  %v4323_v31 = vmul.f32 %v23053_v33, %v23048_v16 }
 0x32d   :  { %v19315_v58 = vadd.f32 %v4114_v10, %v3962_v45  ;;  %v4324_v37 = vmul.f32 %v23053_v33, %v23051_v62  ;;  %v4421_v15 = vrot.slane %v4321_v60, 1  ;;  %v4422_v35 = vrot.slane %v4322_v13, 1 }
 0x32e   :  { %v4585_v17 = vmul.f32 %v23059_v48, %v23052_v47  ;;  %v4586_v49 = vmul.f32 %v23059_v48, %v23056_v39  ;;  %v4587_v63 = vmul.f32 %v23059_v48, %v23057_v38  ;;  %v4424_v50 = vrot.slane %v4323_v31, 1 }
 0x32f   :  { %v4425_v45 = vrot.slane %v4324_v37, 1  ;;  %v4588_v43 = vmul.f32 %v23059_v48, %v23058_v51  ;;  %v4850_v1 = vmul.f32 %v23060_v44, %v23048_v16  ;;  %v4423_v36 = vsel %vm491_vm0, %v4421_v15, %v4422_v35 }
 0x330   :  { %v4538_v59 = vadd.f32 %v4422_v35, %v4274_v61  ;;  %v4685_v3 = vrot.slane %v4585_v17, 1  ;;  %v4686_v28 = vrot.slane %v4586_v49, 1  ;;  %v4537_v7 = vadd.f32 %v4423_v36, %v4273_v5 }
 0x331   :  { %v4426_v47 = vsel %vm491_vm0, %v4424_v50, %v4425_v45  ;;  %v4540_v39 = vadd.f32 %v4425_v45, %v4276_v11  ;;  %v4688_v60 = vrot.slane %v4587_v63, 1  ;;  %v4689_v31 = vrot.slane %v4588_v43, 1  ;;  %v23062_v45 = vld [vmem:[#allocation49_spill] sm:$0xff] }
 0x332   :  { %v4539_v10 = vadd.f32 %v4426_v47, %v4275_v19  ;;  %v4687_v13 = vsel %vm491_vm0, %v4685_v3, %v4686_v28  ;;  %v19334_v37 = vadd.f32 %v4686_v28, %v4538_v59  ;;  %v4851_v33 = vmul.f32 %v23060_v44, %v23051_v62  ;;  %v23061_v19 = vld [vmem:[#allocation48_spill] sm:$0xff] }
 0x333   :  { %v19336_v48 = vadd.f32 %v4687_v13, %v4537_v7  ;;  %v4852_v61 = vmul.f32 %v23060_v44, %v19249_v54  ;;  %v4853_v15 = vmul.f32 %v23060_v44, %v19253_v29  ;;  %v4690_v5 = vsel %vm491_vm0, %v4688_v60, %v4689_v31 }
 0x334   :  { %v19345_v11 = vadd.f32 %v4689_v31, %v4540_v39  ;;  %v4899_v35 = vmul.f32 %v23061_v19, %v23057_v38  ;;  %v4900_v17 = vmul.f32 %v23061_v19, %v23058_v51  ;;  %v19351_v49 = vadd.f32 %v4690_v5, %v4539_v10 }
 0x335   :  { %v4901_v63 = vmul.f32 %v23061_v19, %v19277_v53  ;;  %v4902_v50 = vmul.f32 %v23061_v19, %v19269_v9  ;;  %v4996_v43 = vmul.f32 %v23062_v45, %v23048_v16  ;;  %v4997_v3 = vmul.f32 %v23062_v45, %v23051_v62 }
 0x336   :  { %v4947_v36 = vadd.f32 %v4899_v35, %v4850_v1  ;;  %v4948_v59 = vadd.f32 %v4900_v17, %v4851_v33  ;;  %v4998_v28 = vmul.f32 %v23062_v45, %v19249_v54  ;;  %v4999_v39 = vmul.f32 %v23062_v45, %v19253_v29 }
 0x337   :  { %v4949_v47 = vadd.f32 %v4901_v63, %v4852_v61  ;;  %v4950_v7 = vadd.f32 %v4902_v50, %v4853_v15  ;;  %v5096_v60 = vrot.slane %v4996_v43, 1  ;;  %v5097_v10 = vrot.slane %v4997_v3, 1 }
 0x338   :  { %v5099_v13 = vrot.slane %v4998_v28, 1  ;;  %v5260_v31 = vmul.f32 %v23060_v44, %v23057_v38  ;;  %v5261_v33 = vmul.f32 %v23060_v44, %v23058_v51  ;;  %v5100_v1 = vrot.slane %v4999_v39, 1 }
 0x339   :  { %v5262_v5 = vmul.f32 %v23060_v44, %v19277_v53  ;;  %v5263_v61 = vmul.f32 %v23060_v44, %v19269_v9  ;;  %v5308_v15 = vmul.f32 %v23061_v19, %v23048_v16  ;;  %v5098_v35 = vsel %vm491_vm0, %v5096_v60, %v5097_v10 }
 0x33a   :  { %v5213_v17 = vadd.f32 %v5097_v10, %v4948_v59  ;;  %v5309_v63 = vmul.f32 %v23061_v19, %v23051_v62  ;;  %v5310_v50 = vmul.f32 %v23061_v19, %v19249_v54  ;;  %v5101_v43 = vsel %vm491_vm0, %v5099_v13, %v5100_v1 }
 0x33b   :  { %v5212_v3 = vadd.f32 %v5098_v35, %v4947_v36  ;;  %v5215_v28 = vadd.f32 %v5100_v1, %v4950_v7  ;;  %v5311_v39 = vmul.f32 %v23061_v19, %v19253_v29  ;;  %v5214_v44 = vadd.f32 %v5101_v43, %v4949_v47 }
 0x33c   :  { %v5408_v4 = vrot.slane %v5308_v15, 1  ;;  %v5409_v52 = vrot.slane %v5309_v63, 1  ;;  %v5411_v16 = vrot.slane %v5310_v50, 1  ;;  %v5572_v59 = vmul.f32 %v23062_v45, %v23057_v38 }
 0x33d   :  { %v5412_v46 = vrot.slane %v5311_v39, 1  ;;  %v5573_v62 = vmul.f32 %v23062_v45, %v23058_v51  ;;  %v5574_v60 = vmul.f32 %v23062_v45, %v19277_v53  ;;  %v5575_v10 = vmul.f32 %v23062_v45, %v19269_v9 }
 0x33e   :  { %v5410_v36 = vsel %vm491_vm0, %v5408_v4, %v5409_v52  ;;  %v5525_v7 = vadd.f32 %v5409_v52, %v5261_v33  ;;  %v19393_v47 = vadd.f32 %v5212_v3, %v19309_v0  ;;  %v5672_v38 = vrot.slane %v5572_v59, 1 }
 0x33f   :  { %v5413_v13 = vsel %vm491_vm0, %v5411_v16, %v5412_v46  ;;  %v5524_v1 = vadd.f32 %v5410_v36, %v5260_v31  ;;  %v5527_v15 = vadd.f32 %v5412_v46, %v5263_v61  ;;  %v5673_v63 = vrot.slane %v5573_v62, 1 }
 0x340   :  { %v5526_v35 = vadd.f32 %v5413_v13, %v5262_v5  ;;  %v5675_v51 = vrot.slane %v5574_v60, 1  ;;  %v5676_v50 = vrot.slane %v5575_v10, 1  ;;  %v19397_v43 = vadd.f32 %v5213_v17, %v19302_v42 }
 0x341   :  { %v19400_v52 = vadd.f32 %v5214_v44, %v19315_v58  ;;  %v19403_v4 = vadd.f32 %v5215_v28, %v19311_v41  ;;  %v5933_v0 = vmul.f32 %v22939_v18, %v19249_v54  ;;  %v5674_v31 = vsel %vm491_vm0, %v5672_v38, %v5673_v63 }
 0x342   :  { %v5677_v46 = vsel %vm491_vm0, %v5675_v51, %v5676_v50  ;;  %v5789_v33 = vadd.f32 %v5673_v63, %v5525_v7  ;;  %v5791_v5 = vadd.f32 %v5676_v50, %v5527_v15  ;;  %v5788_v61 = vadd.f32 %v5674_v31, %v5524_v1 }
 0x343   :  { %v5790_v3 = vadd.f32 %v5677_v46, %v5526_v35  ;;  %v5934_v42 = vmul.f32 %v22939_v18, %v19253_v29  ;;  %v5935_v58 = vmul.f32 %v22939_v18, %v19255_v27  ;;  %v5936_v17 = vmul.f32 %v22939_v18, %v19257_v32 }
 0x344   :  { %v5885_v41 = vadd.f32 %v5789_v33, %v19334_v37  ;;  %v19415_v44 = vadd.f32 %v5791_v5, %v19345_v11  ;;  %v5982_v28 = vmul.f32 %v22940_v22, %v19277_v53  ;;  %v5884_v39 = vadd.f32 %v5788_v61, %v19336_v48 }
 0x345   :  { %v19423_v16 = vadd.f32 %v5790_v3, %v19351_v49  ;;  %v5983_v59 = vmul.f32 %v22940_v22, %v19269_v9  ;;  %v5984_v37 = vmul.f32 %v22940_v22, %v19279_v56  ;;  %v5985_v11 = vmul.f32 %v22940_v22, %v19271_v57 }
 0x346   :  { %v6030_v62 = vadd.f32 %v5982_v28, %v5933_v0  ;;  %v6079_v60 = vmul.f32 %v22983_v23, %v19249_v54  ;;  %v6080_v36 = vmul.f32 %v22983_v23, %v19253_v29  ;;  %v6081_v49 = vmul.f32 %v22983_v23, %v19255_v27 }
 0x347   :  { %v6031_v48 = vadd.f32 %v5983_v59, %v5934_v42  ;;  %v6032_v7 = vadd.f32 %v5984_v37, %v5935_v58  ;;  %v6082_v10 = vmul.f32 %v22983_v23, %v19257_v32  ;;  %v6033_v13 = vadd.f32 %v5985_v11, %v5936_v17 }
 0x348   :  { %v6179_v1 = vrot.slane %v6079_v60, 1  ;;  %v6180_v15 = vrot.slane %v6080_v36, 1  ;;  %v6343_v38 = vmul.f32 %v22939_v18, %v19277_v53  ;;  %v6182_v35 = vrot.slane %v6081_v49, 1 }
 0x349   :  { %v6183_v63 = vrot.slane %v6082_v10, 1  ;;  %v6344_v51 = vmul.f32 %v22939_v18, %v19269_v9  ;;  %v6345_v50 = vmul.f32 %v22939_v18, %v19279_v56  ;;  %v6346_v46 = vmul.f32 %v22939_v18, %v19271_v57 }
 0x34a   :  { %v6181_v0 = vsel %vm491_vm0, %v6179_v1, %v6180_v15  ;;  %v6296_v31 = vadd.f32 %v6180_v15, %v6031_v48  ;;  %v6391_v33 = vmul.f32 %v22940_v22, %v19249_v54  ;;  %v6392_v42 = vmul.f32 %v22940_v22, %v19253_v29 }
 0x34b   :  { %v6184_v5 = vsel %vm491_vm0, %v6182_v35, %v6183_v63  ;;  %v6295_v61 = vadd.f32 %v6181_v0, %v6030_v62  ;;  %v6298_v3 = vadd.f32 %v6183_v63, %v6033_v13  ;;  %v6393_v17 = vmul.f32 %v22940_v22, %v19255_v27 }
 0x34c   :  { %v6297_v58 = vadd.f32 %v6184_v5, %v6032_v7  ;;  %v6394_v28 = vmul.f32 %v22940_v22, %v19257_v32  ;;  %v6491_v59 = vrot.slane %v6391_v33, 1  ;;  %v6492_v37 = vrot.slane %v6392_v42, 1 }
 0x34d   :  { %v6655_v11 = vmul.f32 %v22983_v23, %v19277_v53  ;;  %v6656_v60 = vmul.f32 %v22983_v23, %v19269_v9  ;;  %v6657_v62 = vmul.f32 %v22983_v23, %v19279_v56  ;;  %v6494_v36 = vrot.slane %v6393_v17, 1  ;;  %v157_v53 = vld [vmem:[#allocation9 + $0x150] sm:$0xff] }
 0x34e   :  { %v6495_v48 = vrot.slane %v6394_v28, 1  ;;  %v6658_v7 = vmul.f32 %v22983_v23, %v19271_v57  ;;  %v6919_v49 = vadd.f32 %v6295_v61, %v19393_v47  ;;  %v6493_v10 = vsel %vm491_vm0, %v6491_v59, %v6492_v37 }
 0x34f   :  { %v6608_v13 = vadd.f32 %v6492_v37, %v6344_v51  ;;  %v6755_v1 = vrot.slane %v6655_v11, 1  ;;  %v6756_v15 = vrot.slane %v6656_v60, 1  ;;  %v6607_v63 = vadd.f32 %v6493_v10, %v6343_v38 }
 0x350   :  { %v6496_v35 = vsel %vm491_vm0, %v6494_v36, %v6495_v48  ;;  %v6610_v0 = vadd.f32 %v6495_v48, %v6346_v46  ;;  %v6758_v33 = vrot.slane %v6657_v62, 1  ;;  %v6759_v17 = vrot.slane %v6658_v7, 1 }
 0x351   :  { %v6609_v5 = vadd.f32 %v6496_v35, %v6345_v50  ;;  %v6757_v42 = vsel %vm491_vm0, %v6755_v1, %v6756_v15  ;;  %v6872_v28 = vadd.f32 %v6756_v15, %v6608_v13  ;;  %v6920_v57 = vadd.f32 %v6296_v31, %v19397_v43 }
 0x352   :  { %v6871_v56 = vadd.f32 %v6757_v42, %v6607_v63  ;;  %v6921_v47 = vadd.f32 %v6297_v58, %v19400_v52  ;;  %v6922_v61 = vadd.f32 %v6298_v3, %v19403_v4  ;;  %v6760_v51 = vsel %vm491_vm0, %v6758_v33, %v6759_v17  ;;  %v14073_v4 = vld [vmem:[%s22509_s5 + $0x28] sm:$0x3] }
 0x353   :  { %v6874_v59 = vadd.f32 %v6759_v17, %v6610_v0  ;;  %v6968_v37 = vadd.f32 %v6872_v28, %v5885_v41  ;;  %v7016_v38 = vadd.f32 %v22984_v55, %v6919_v49  ;;  %v6873_v46 = vadd.f32 %v6760_v51, %v6609_v5  ;;  %v19500_v5 = vld [vmem:[#allocation9 + $0x120] sm:$0xff] }
 0x354   :  { %v6967_v11 = vadd.f32 %v6871_v56, %v5884_v39  ;;  %v7017_v50 = vadd.f32 %v22984_v55, %v6920_v57  ;;  %v7018_v60 = vadd.f32 %v22984_v55, %v6921_v47  ;;  %v7019_v43 = vadd.f32 %v22984_v55, %v6922_v61  ;;  %v19512_v47 = vld [vmem:[#allocation9 + $0x130] sm:$0xff] }
 0x355   :  { %v6970_v62 = vadd.f32 %v6874_v59, %v19415_v44  ;;  %v7064_v31 = vmax.f32 %v7016_v38, 0.0  ;;  %v7113_v52 = vadd.f32 %v22984_v55, %v6968_v37  ;;  %v6969_v41 = vadd.f32 %v6873_v46, %v19423_v16  ;;  %v19517_v59 = vld [vmem:[#allocation9 + $0x138] sm:$0x3f]  ;;  %v19521_v38 = vld [vmem:[#allocation10 + $0x120] sm:$0xff] }
 0x356   :  { %v7065_v3 = vmax.f32 %v7017_v50, 0.0  ;;  %v7066_v58 = vmax.f32 %v7018_v60, 0.0  ;;  %v7112_v56 = vadd.f32 %v22984_v55, %v6967_v11  ;;  %v7067_v57 = vmax.f32 %v7019_v43, 0.0  ;;  %v19525_v11 = vld [vmem:[#allocation10 + $0x128] sm:$0x3f] }
 0x357   :  { %v7115_v39 = vadd.f32 %v22984_v55, %v6970_v62  ;;  %v7161_v36 = vmax.f32 %v7113_v52, 0.0  ;;  %v19486_v44 = vand.u32 4294901760, %v19123_v30  ;;  %v7114_v48 = vadd.f32 %v22984_v55, %v6969_v41  ;;  %v19538_v41 = vld [vmem:[#allocation10 + $0x138] sm:$0x3f] }
 0x358   :  { %v7160_v7 = vmax.f32 %v7112_v56, 0.0  ;;  %v8292_v49 = vsel %vm7259_vm2, %v14073_v4, 0  ;;  %v23063_v10 = vand.u32 4294901760, %v19025_v24  ;;  %v23064_v16 = vand.u32 4294901760, %v19027_v25  ;;  %v19504_v24 = vld [vmem:[#allocation9 + $0x128] sm:$0x3f] }
 0x359   :  { %v7163_v1 = vmax.f32 %v7115_v39, 0.0  ;;  %v7209_v15 = vmax.f32 %v7065_v3, %v7161_v36  ;;  %v19496_v35 = vsub.f32 %v19123_v30, %v19486_v44  ;;  %v19498_v63 = vand.u32 4294901760, %v8292_v49 }
 0x35a   :  { %v15134_v13 = vpack.c.bf16 %v23064_v16, %v23063_v10  ;;  %v7162_v0 = vmax.f32 %v7114_v48, 0.0  ;;  %v7208_v33 = vmax.f32 %v7064_v31, %v7160_v7  ;;  %v265_v42 = vmul.f32 %v19500_v5, %v22993_v6  ;;  %v19533_v31 = vld [vmem:[#allocation10 + $0x130] sm:$0xff] }
 0x35b   :  { %v266_v25 = vmul.f32 %v19504_v24, %v22993_v6  ;;  %v7211_v17 = vmax.f32 %v7067_v57, %v7163_v1  ;;  %v22738_v28 = vand.u32 4294901760, %v19496_v35  ;;  %v19510_v30 = vsub.f32 %v8292_v49, %v19498_v63 }
 0x35c   :  { %15135 = vmatprep.subr.bf16.mxu0 %v15134_v13  ;;  %v267_v61 = vmul.f32 %v19512_v47, %v22993_v6  ;;  %v7210_v51 = vmax.f32 %v7066_v58, %v7162_v0  ;;  %v268_v37 = vmul.f32 %v19517_v59, %v22993_v6  ;;  %v318_v46 = vmul.f32 %v19521_v38, %v22994_v40 }
 0x35d   :  { %15137 = vmatpush3.bf16.msra.mxu0 %v15134_v13  ;;  %v319_v50 = vmul.f32 %v19525_v11, %v22994_v40  ;;  %v8284_v60 = vmax.f32 %v7209_v15, %v7211_v17  ;;  %v8367_v62 = vsub.f32 %v19496_v35, %v22738_v28  ;;  %v22737_v43 = vand.u32 4294901760, %v19510_v30 }
 0x35e   :  { %15139 = vmatprep.subr.bf16.mxu0 %v19023_v8  ;;  %v320_v52 = vmul.f32 %v19533_v31, %v22994_v40  ;;  %v8283_v4 = vmax.f32 %v7208_v33, %v7210_v51  ;;  %v321_v3 = vmul.f32 %v19538_v41, %v22994_v40  ;;  %v370_v58 = vadd.f32 %v318_v46, %v265_v42 }
 0x35f   :  { %v371_v56 = vadd.f32 %v319_v50, %v266_v25  ;;  %v8295_v57 = vsel %vm7266_vm1, %v8284_v60, 0  ;;  %v8368_v39 = vand.u32 4294901760, %v8367_v62  ;;  %v8377_v36 = vsub.f32 %v19510_v30, %v22737_v43 }
 0x360   :  { %14731 = vmatmul.mubr.f32.vlgmr.msra.gmra.mrb[0].mxu0 %v18972_v12  ;;  %v372_v48 = vadd.f32 %v320_v52, %v267_v61  ;;  %v8298_v7 = vand.u32 4294901760, %v8283_v4  ;;  %v8301_v49 = vand.u32 4294901760, %v8295_v57  ;;  %v373_v10 = vadd.f32 %v321_v3, %v268_v37 }
 0x361   :  { %15141 = vmatpush3.bf16.msra.mxu0 %v19023_v8  ;;  %14737 = vmatprep.mubr.f32.mxu0 %v18961_v34  ;;  %v423_v16 = vmul.f32 %v19500_v5, %v23013_v14  ;;  %v8378_v13 = vand.u32 4294901760, %v8377_v36  ;;  %v424_v1 = vmul.f32 %v19504_v24, %v23013_v14  ;;  %v425_v15 = vmul.f32 %v19512_v47, %v23013_v14 }
 0x362   :  { %14492 = vmatprep.mubr.f32.mxu1 %v8368_v39  ;;  %v426_v8 = vmul.f32 %v19517_v59, %v23013_v14  ;;  %v19556_v0 = vpack.c.bf16 %v8301_v49, %v8298_v7  ;;  %v19558_v34 = vsub.f32 %v8283_v4, %v8298_v7  ;;  %v19560_v33 = vsub.f32 %v8295_v57, %v8301_v49 }
 0x363   :  { %v546_v42 = vrot.slane %v423_v16, 1  ;;  %v547_v25 = vrot.slane %v424_v1, 1  ;;  %v549_v17 = vrot.slane %v425_v15, 1  ;;  %v710_v51 = vmul.f32 %v19521_v38, %v22993_v6 }
 0x364   :  { %v550_v61 = vrot.slane %v426_v8, 1  ;;  %14999 = vmatprep.subr.bf16.mxu1 %v19556_v0  ;;  %v22736_v37 = vand.u32 4294901760, %v19558_v34  ;;  %v22735_v46 = vand.u32 4294901760, %v19560_v33  ;;  %v19569_v50 = vpack.c.bf16 %v19560_v33, %v19558_v34 }
 0x365   :  { %v711_v60 = vmul.f32 %v19525_v11, %v22993_v6  ;;  %15001 = vmatpush3.bf16.msra.mxu1 %v19556_v0  ;;  %v548_v62 = vsel %vm491_vm0, %v546_v42, %v547_v25  ;;  %v19576_v4 = vadd.f32 %v547_v25, %v371_v56  ;;  %v712_v56 = vmul.f32 %v19533_v31, %v22993_v6 }
 0x366   :  { %v551_v52 = vsel %vm491_vm0, %v549_v17, %v550_v61  ;;  %v19578_v3 = vadd.f32 %v550_v61, %v373_v10  ;;  %v8388_v57 = vsub.f32 %v19558_v34, %v22736_v37  ;;  %v8395_v39 = vsub.f32 %v19560_v33, %v22735_v46  ;;  %v19610_v61 = vld [vmem:[#allocation9 + $0x140] sm:$0xff] }
 0x367   :  { %v19587_v36 = vadd.f32 %v548_v62, %v370_v58  ;;  %v19589_v7 = vadd.f32 %v551_v52, %v372_v48  ;;  %v713_v49 = vmul.f32 %v19538_v41, %v22993_v6  ;;  %v762_v10 = vmul.f32 %v19500_v5, %v22994_v40 }
 0x368   :  { %14738 = vmatmul.mubr.f32.vlgmr.msra.gmra.mrb[0].mxu0 %v18972_v12  ;;  %v763_v16 = vmul.f32 %v19504_v24, %v22994_v40  ;;  %14493 = vmatmul.mubr.f32.vlgmr.msra.gmra.mrb[0].mxu1 %v8378_v13  ;;  %v8389_v1 = vand.u32 4294901760, %v8388_v57  ;;  %v8396_v15 = vand.u32 4294901760, %v8395_v39  ;;  %v764_v12 = vmul.f32 %v19512_v47, %v22994_v40 }
 0x369   :  { %v765_v58 = vmul.f32 %v19517_v59, %v22994_v40  ;;  %14499 = vmatprep.mubr.f32.mxu1 %v19486_v44  ;;  %v884_v48 = vrot.slane %v762_v10, 1  ;;  %v1048_v42 = vmul.f32 %v19521_v38, %v23013_v14  ;;  %v1049_v5 = vmul.f32 %v19525_v11, %v23013_v14  ;;  %v19615_v38 = vld [vmem:[#allocation9 + $0x148] sm:$0x3f] }
 0x36a   :  { %v885_v8 = vrot.slane %v763_v16, 1  ;;  %v15002_v24 = vpack.c.bf16 %v8396_v15, %v8389_v1  ;;  %v887_v13 = vrot.slane %v764_v12, 1  ;;  %v1050_v17 = vmul.f32 %v19533_v31, %v23013_v14  ;;  %v19618_v15 = vld [vmem:[#allocation10 + $0x140] sm:$0xff] }
 0x36b   :  { %v888_v25 = vrot.slane %v765_v58, 1  ;;  %v1051_v57 = vmul.f32 %v19538_v41, %v23013_v14  ;;  %v1170_v39 = vrot.slane %v1048_v42, 1  ;;  %v1171_v1 = vrot.slane %v1049_v5, 1 }
 0x36c   :  { %v886_v62 = vsel %vm491_vm0, %v884_v48, %v885_v8  ;;  %v997_v52 = vadd.f32 %v885_v8, %v711_v60  ;;  %15003 = vmatprep.subr.bf16.mxu1 %v15002_v24  ;;  %v1173_v58 = vrot.slane %v1050_v17, 1  ;;  %v1335_v60 = vmul.f32 %v19512_v47, %v23037_v21  ;;  %v19623_v48 = vld [vmem:[#allocation10 + $0x148] sm:$0x3f] }
 0x36d   :  { %v889_v11 = vsel %vm491_vm0, %v887_v13, %v888_v25  ;;  %v996_v10 = vadd.f32 %v886_v62, %v710_v51  ;;  %v999_v16 = vadd.f32 %v888_v25, %v713_v49  ;;  %15005 = vmatpush3.bf16.msra.mxu1 %v15002_v24  ;;  %v1174_v46 = vrot.slane %v1051_v57, 1 }
 0x36e   :  { %v998_v12 = vadd.f32 %v889_v11, %v712_v56  ;;  %15007 = vmatprep.subr.bf16.mxu1 %v19569_v50  ;;  %v1172_v8 = vsel %vm491_vm0, %v1170_v39, %v1171_v1  ;;  %v19626_v42 = vadd.f32 %v1171_v1, %v997_v52  ;;  %v1336_v51 = vmul.f32 %v19517_v59, %v23037_v21  ;;  %v14084_v56 = vld [vmem:[%s22509_s5 + $0x80] sm:$0xff]  ;;  %v23065_v39 = vld [vmem:[#allocation29_spill] sm:$0xff] }
 0x36f   :  { %v1337_v49 = vmul.f32 %v23037_v21, %v19610_v61  ;;  %v1175_v5 = vsel %vm491_vm0, %v1173_v58, %v1174_v46  ;;  %v19636_v24 = vadd.f32 %v1172_v8, %v996_v10  ;;  %v19638_v13 = vadd.f32 %v1174_v46, %v999_v16 }
 0x370   :  { %v1338_v25 = vmul.f32 %v23037_v21, %v19615_v38  ;;  %14500 = vmatmul.mubr.f32.vlgmr.msra.gmra.mrb[0].mxu1 %v19498_v63  ;;  %v19643_v17 = vadd.f32 %v1175_v5, %v998_v12  ;;  %v1388_v62 = vmul.f32 %v19533_v31, %v23038_v2  ;;  %v1389_v52 = vmul.f32 %v19538_v41, %v23038_v2 }
 0x371   :  { %v1390_v57 = vmul.f32 %v23038_v2, %v19618_v15  ;;  %15009 = vmatpush3.bf16.msra.mxu1 %v19569_v50  ;;  %14506 = vmatprep.mubr.f32.mxu1 %v19496_v35  ;;  %v1391_v46 = vmul.f32 %v23038_v2, %v19623_v48  ;;  %v1493_v11 = vmul.f32 %v19512_v47, %v23065_v39  ;;  %v19660_v16 = vsel %vm7259_vm2, %v14084_v56, 0 }
 0x372   :  { %v1494_v10 = vmul.f32 %v19517_v59, %v23065_v39  ;;  %15011 = vmatprep.subr.bf16.mxu1 %v19556_v0  ;;  %v1440_v1 = vadd.f32 %v1388_v62, %v1335_v60  ;;  %v1441_v12 = vadd.f32 %v1389_v52, %v1336_v51  ;;  %v1495_v50 = vmul.f32 %v23065_v39, %v19610_v61 }
 0x373   :  { %v1442_v58 = vadd.f32 %v1390_v57, %v1337_v49  ;;  %v1443_v8 = vadd.f32 %v1391_v46, %v1338_v25  ;;  %v1496_v5 = vmul.f32 %v23065_v39, %v19615_v38  ;;  %v1615_v37 = vrot.slane %v1493_v11, 1 }
 0x374   :  { %v1616_v43 = vrot.slane %v1494_v10, 1  ;;  %v1618_v28 = vrot.slane %v1495_v50, 1  ;;  %v1779_v9 = vmul.f32 %v19533_v31, %v23037_v21  ;;  %v1780_v56 = vmul.f32 %v19538_v41, %v23037_v21 }
 0x375   :  { %v1781_v60 = vmul.f32 %v23037_v21, %v19618_v15  ;;  %v1619_v49 = vrot.slane %v1496_v5, 1  ;;  %v1782_v25 = vmul.f32 %v23037_v21, %v19623_v48  ;;  %v1831_v57 = vmul.f32 %v19512_v47, %v23038_v2 }
 0x376   :  { %v1617_v51 = vsel %vm491_vm0, %v1615_v37, %v1616_v43  ;;  %v1728_v62 = vadd.f32 %v1616_v43, %v1441_v12  ;;  %v1832_v46 = vmul.f32 %v19517_v59, %v23038_v2  ;;  %v1833_v11 = vmul.f32 %v23038_v2, %v19610_v61 }
 0x377   :  { %v1727_v52 = vadd.f32 %v1617_v51, %v1440_v1  ;;  %v1620_v10 = vsel %vm491_vm0, %v1618_v28, %v1619_v49  ;;  %v1730_v50 = vadd.f32 %v1619_v49, %v1443_v8  ;;  %v1834_v37 = vmul.f32 %v23038_v2, %v19615_v38 }
 0x378   :  { %v2117_v43 = vmul.f32 %v19533_v31, %v23065_v39  ;;  %14507 = vmatmul.mubr.f32.vlgmr.msra.gmra.mrb[0].mxu1 %v19510_v30  ;;  %v1729_v1 = vadd.f32 %v1620_v10, %v1442_v58  ;;  %v1953_v12 = vrot.slane %v1831_v57, 1  ;;  %v1954_v47 = vrot.slane %v1832_v46, 1 }
 0x379   :  { %v1956_v5 = vrot.slane %v1833_v11, 1  ;;  %v1957_v51 = vrot.slane %v1834_v37, 1  ;;  %v2118_v59 = vmul.f32 %v19538_v41, %v23065_v39  ;;  %v2119_v28 = vmul.f32 %v23065_v39, %v19618_v15  ;;  %15013 = vmatpush3.bf16.msra.mxu1 %v19556_v0 }
 0x37a   :  { %v2120_v8 = vmul.f32 %v23065_v39, %v19623_v48  ;;  %v23066_v31 = vand.u32 4294901760, %v19496_v35  ;;  %v1955_v58 = vsel %vm491_vm0, %v1953_v12, %v1954_v47  ;;  %v2066_v49 = vadd.f32 %v1954_v47, %v1780_v56  ;;  %v158_v35 = vld [vmem:[#allocation9 + $0x158] sm:$0x3f] }
 0x37b   :  { %v2239_v57 = vrot.slane %v2117_v43, 1  ;;  %v19699_v46 = vadd.f32 %v1727_v52, %v19587_v36  ;;  %v1958_v41 = vsel %vm491_vm0, %v1956_v5, %v1957_v51  ;;  %v2065_v11 = vadd.f32 %v1955_v58, %v1779_v9  ;;  %v213_v9 = vld [vmem:[#allocation10 + $0x150] sm:$0xff] }
 0x37c   :  { %14513 = vmatprep.mubr.f32.mxu1 %v23066_v31  ;;  %v2068_v10 = vadd.f32 %v1957_v51, %v1782_v25  ;;  %v2240_v37 = vrot.slane %v2118_v59, 1  ;;  %v2067_v32 = vadd.f32 %v1958_v41, %v1781_v60  ;;  %v2242_v27 = vrot.slane %v2119_v28, 1  ;;  %v214_v25 = vld [vmem:[#allocation10 + $0x158] sm:$0x3f]  ;;  %v23068_v28 = vld [vmem:[#allocation30_spill] sm:$0xff] }
 0x37d   :  { %v2243_v29 = vrot.slane %v2120_v8, 1  ;;  %v19703_v54 = vadd.f32 %v1728_v62, %v19576_v4  ;;  %v19707_v43 = vadd.f32 %v1729_v1, %v19589_v7  ;;  %v19710_v36 = vadd.f32 %v1730_v50, %v19578_v3 }
 0x37e   :  { %v2241_v12 = vsel %vm491_vm0, %v2239_v57, %v2240_v37  ;;  %v2352_v56 = vadd.f32 %v2240_v37, %v2066_v49  ;;  %v2508_v4 = vmul.f32 %v23000_v20, %v19610_v61  ;;  %v2509_v7 = vmul.f32 %v23000_v20, %v19615_v38 }
 0x37f   :  { %v2244_v52 = vsel %vm491_vm0, %v2242_v27, %v2243_v29  ;;  %v2351_v60 = vadd.f32 %v2241_v12, %v2065_v11  ;;  %v2354_v47 = vadd.f32 %v2243_v29, %v2068_v10  ;;  %v2510_v1 = vmul.f32 %v23000_v20, %v157_v53 }
 0x380   :  { %v2353_v62 = vadd.f32 %v2244_v52, %v2067_v32  ;;  %v19716_v5 = vadd.f32 %v2352_v56, %v19626_v42  ;;  %v2511_v29 = vmul.f32 %v23000_v20, %v158_v35  ;;  %v2561_v27 = vmul.f32 %v22974_v26, %v19618_v15 }
 0x381   :  { %v19722_v3 = vadd.f32 %v2351_v60, %v19636_v24  ;;  %v19725_v50 = vadd.f32 %v2354_v47, %v19638_v13  ;;  %v23067_v32 = vand.u32 4294901760, %v19510_v30  ;;  %v2562_v51 = vmul.f32 %v22974_v26, %v19623_v48 }
 0x382   :  { %v19733_v42 = vadd.f32 %v2353_v62, %v19643_v17  ;;  %v2563_v24 = vmul.f32 %v22974_v26, %v213_v9  ;;  %v2564_v59 = vmul.f32 %v22974_v26, %v214_v25  ;;  %v2613_v13 = vadd.f32 %v2561_v27, %v2508_v4 }
 0x383   :  { %14514 = vmatmul.mubr.f32.vlgmr.msra.gmra.mrb[0].mxu1 %v23067_v32  ;;  %v2666_v8 = vmul.f32 %v23068_v28, %v19610_v61  ;;  %v2667_v30 = vmul.f32 %v23068_v28, %v19615_v38  ;;  %v2668_v31 = vmul.f32 %v23068_v28, %v157_v53  ;;  %v2614_v17 = vadd.f32 %v2562_v51, %v2509_v7 }
 0x384   :  { %14520 = vmatprep.mubr.f32.mxu1 %v19486_v44  ;;  %v2615_v58 = vadd.f32 %v2563_v24, %v2510_v1  ;;  %v2616_v49 = vadd.f32 %v2564_v59, %v2511_v29  ;;  %v2669_v57 = vmul.f32 %v23068_v28, %v158_v35  ;;  %v2952_v37 = vmul.f32 %v23000_v20, %v19618_v15 }
 0x385   :  { %v2788_v41 = vrot.slane %v2666_v8, 1  ;;  %v2789_v11 = vrot.slane %v2667_v30, 1  ;;  %v2791_v10 = vrot.slane %v2668_v31, 1  ;;  %v2953_v56 = vmul.f32 %v23000_v20, %v19623_v48 }
 0x386   :  { %v2792_v12 = vrot.slane %v2669_v57, 1  ;;  %v2954_v52 = vmul.f32 %v23000_v20, %v213_v9  ;;  %v2955_v60 = vmul.f32 %v23000_v20, %v214_v25  ;;  %v3004_v62 = vmul.f32 %v22974_v26, %v19610_v61 }
 0x387   :  { %v2790_v47 = vsel %vm491_vm0, %v2788_v41, %v2789_v11  ;;  %v2901_v4 = vadd.f32 %v2789_v11, %v2614_v17  ;;  %v3005_v7 = vmul.f32 %v22974_v26, %v19615_v38  ;;  %v3006_v32 = vmul.f32 %v22974_v26, %v157_v53 }
 0x388   :  { %v2793_v1 = vsel %vm491_vm0, %v2791_v10, %v2792_v12  ;;  %v2900_v29 = vadd.f32 %v2790_v47, %v2613_v13  ;;  %v2903_v27 = vadd.f32 %v2792_v12, %v2616_v49  ;;  %v3007_v24 = vmul.f32 %v22974_v26, %v158_v35 }
 0x389   :  { %v2902_v51 = vadd.f32 %v2793_v1, %v2615_v58  ;;  %v3126_v59 = vrot.slane %v3004_v62, 1  ;;  %v3127_v8 = vrot.slane %v3005_v7, 1  ;;  %v3129_v30 = vrot.slane %v3006_v32, 1 }
 0x38a   :  { %v3290_v31 = vmul.f32 %v23068_v28, %v19618_v15  ;;  %v3291_v61 = vmul.f32 %v23068_v28, %v19623_v48  ;;  %v3292_v38 = vmul.f32 %v23068_v28, %v213_v9  ;;  %v3130_v13 = vrot.slane %v3007_v24, 1  ;;  %v23069_v24 = vld [vmem:[#allocation20_spill] sm:$0xff] }
 0x38b   :  { %v3128_v17 = vsel %vm491_vm0, %v3126_v59, %v3127_v8  ;;  %v3239_v49 = vadd.f32 %v3127_v8, %v2953_v56  ;;  %v3293_v53 = vmul.f32 %v23068_v28, %v214_v25  ;;  %v3576_v15 = vadd.f32 %v2900_v29, %v19699_v46 }
 0x38c   :  { %v3238_v58 = vadd.f32 %v3128_v17, %v2952_v37  ;;  %v3412_v57 = vrot.slane %v3290_v31, 1  ;;  %v3413_v35 = vrot.slane %v3291_v61, 1  ;;  %v3415_v41 = vrot.slane %v3292_v38, 1  ;;  %v23076_v61 = vld [vmem:[#allocation22_spill] sm:$0xff] }
 0x38d   :  { %v3131_v11 = vsel %vm491_vm0, %v3129_v30, %v3130_v13  ;;  %v3241_v10 = vadd.f32 %v3130_v13, %v2955_v60  ;;  %v3416_v12 = vrot.slane %v3293_v53, 1  ;;  %v3577_v62 = vadd.f32 %v2901_v4, %v19703_v54 }
 0x38e   :  { %v3240_v47 = vadd.f32 %v3131_v11, %v2954_v52  ;;  %v3414_v48 = vsel %vm491_vm0, %v3412_v57, %v3413_v35  ;;  %v3525_v9 = vadd.f32 %v3413_v35, %v3239_v49  ;;  %v3578_v37 = vadd.f32 %v2902_v51, %v19707_v43  ;;  %v23079_v49 = vld [vmem:[#allocation53_spill] sm:$0xff] }
 0x38f   :  { %v3417_v56 = vsel %vm491_vm0, %v3415_v41, %v3416_v12  ;;  %v3524_v7 = vadd.f32 %v3414_v48, %v3238_v58  ;;  %v3527_v25 = vadd.f32 %v3416_v12, %v3241_v10  ;;  %v3579_v32 = vadd.f32 %v2903_v27, %v19710_v36  ;;  %v23080_v58 = vld [vmem:[#allocation74_spill] sm:$0xff]  ;;  %v23082_v41 = vld [vmem:[#allocation64_spill] sm:$0xff]  ;;  %v23084_v12 = vld [vmem:[#allocation23_spill] sm:$0xff] }
 0x390   :  { %v3526_v1 = vadd.f32 %v3417_v56, %v3240_v47  ;;  %v3629_v60 = vadd.f32 %v3525_v9, %v19716_v5  ;;  %v3681_v59 = vadd.f32 %v23069_v24, %v3576_v15  ;;  %v3682_v29 = vadd.f32 %v23069_v24, %v3577_v62  ;;  %v23083_v10 = vld [vmem:[#allocation58_spill] sm:$0xff]  ;;  %v23085_v47 = vld [vmem:[#allocation75_spill] sm:$0xff] }
 0x391   :  { %v3628_v46 = vadd.f32 %v3524_v7, %v19722_v3  ;;  %v3631_v52 = vadd.f32 %v3527_v25, %v19725_v50  ;;  %v3683_v54 = vadd.f32 %v23069_v24, %v3578_v37  ;;  %v3684_v8 = vadd.f32 %v23069_v24, %v3579_v32  ;;  %v23086_v9 = vld [vmem:[#allocation66_spill] sm:$0xff]  ;;  %v23087_v56 = vld [vmem:[#allocation59_spill] sm:$0xff]  ;;  %v23088_v25 = vld [vmem:[#allocation24_spill] sm:$0xff] }
 0x392   :  { %v3630_v4 = vadd.f32 %v3526_v1, %v19733_v42  ;;  %v19782_v43 = vmax.f32 %v3681_v59, 0.0  ;;  %v3786_v36 = vadd.f32 %v23069_v24, %v3629_v60  ;;  %v19785_v27 = vmax.f32 %v3682_v29, 0.0  ;;  %v23075_v42 = vld [vmem:[#allocation52_spill] sm:$0xff] }
 0x393   :  { %v19787_v5 = vmax.f32 %v3683_v54, 0.0  ;;  %v3785_v3 = vadd.f32 %v23069_v24, %v3628_v46  ;;  %v3788_v50 = vadd.f32 %v23069_v24, %v3631_v52  ;;  %v19791_v51 = vmax.f32 %v3684_v8, 0.0 }
 0x394   :  { %23070 = vst [vmem:[#allocation76_spill] sm:$0xff] %v19782_v43  ;;  %23071 = vst [vmem:[#allocation60_spill] sm:$0xff] %v19785_v27  ;;  %v3787_v30 = vadd.f32 %v23069_v24, %v3630_v4  ;;  %v19794_v31 = vmax.f32 %v3786_v36, 0.0  ;;  %v3887_v38 = vmul.f32 %v23076_v61, %v23075_v42  ;;  %v3888_v53 = vmul.f32 %v23076_v61, %v23079_v49 }
 0x395   :  { %23072 = vst [vmem:[#allocation77_spill] sm:$0xff] %v19787_v5  ;;  %23073 = vst [vmem:[#allocation78_spill] sm:$0xff] %v19791_v51  ;;  %v19798_v17 = vmax.f32 %v3785_v3, 0.0  ;;  %v19800_v13 = vmax.f32 %v3788_v50, 0.0  ;;  %v3889_v57 = vmul.f32 %v23076_v61, %v23080_v58  ;;  %v3890_v11 = vmul.f32 %v23076_v61, %v23082_v41 }
 0x396   :  { %23074 = vst [vmem:[#allocation79_spill] sm:$0xff] %v19794_v31  ;;  %v19806_v35 = vmax.f32 %v3787_v30, 0.0  ;;  %v3936_v15 = vmul.f32 %v23084_v12, %v23083_v10  ;;  %v3937_v48 = vmul.f32 %v23084_v12, %v23085_v47  ;;  %v3938_v62 = vmul.f32 %v23084_v12, %v23086_v9 }
 0x397   :  { %23077 = vst [vmem:[#allocation82_spill] sm:$0xff] %v19798_v17  ;;  %23078 = vst [vmem:[#allocation80_spill] sm:$0xff] %v19800_v13  ;;  %v3939_v7 = vmul.f32 %v23084_v12, %v23087_v56  ;;  %v4033_v37 = vmul.f32 %v23088_v25, %v23075_v42  ;;  %v4034_v1 = vmul.f32 %v23088_v25, %v23079_v49 }
 0x398   :  { %23081 = vst [vmem:[#allocation83_spill] sm:$0xff] %v19806_v35  ;;  %v3984_v32 = vadd.f32 %v3936_v15, %v3887_v38  ;;  %v3985_v60 = vadd.f32 %v3937_v48, %v3888_v53  ;;  %v4035_v59 = vmul.f32 %v23088_v25, %v23080_v58  ;;  %v4036_v46 = vmul.f32 %v23088_v25, %v23082_v41 }
 0x399   :  { %v3986_v52 = vadd.f32 %v3938_v62, %v3889_v57  ;;  %v3987_v29 = vadd.f32 %v3939_v7, %v3890_v11  ;;  %v4145_v54 = vrot.slane %v4033_v37, 1  ;;  %v4146_v4 = vrot.slane %v4034_v1, 1 }
 0x39a   :  { %v4148_v8 = vrot.slane %v4035_v59, 1  ;;  %v4149_v36 = vrot.slane %v4036_v46, 1  ;;  %v4297_v3 = vmul.f32 %v23076_v61, %v23083_v10  ;;  %v4298_v50 = vmul.f32 %v23076_v61, %v23085_v47 }
 0x39b   :  { %v4147_v30 = vsel %vm491_vm0, %v4145_v54, %v4146_v4  ;;  %v19831_v38 = vadd.f32 %v4146_v4, %v3985_v60  ;;  %v4299_v53 = vmul.f32 %v23076_v61, %v23086_v9  ;;  %v4300_v57 = vmul.f32 %v23076_v61, %v23087_v56 }
 0x39c   :  { %v4150_v11 = vsel %vm491_vm0, %v4148_v8, %v4149_v36  ;;  %v19838_v15 = vadd.f32 %v4147_v30, %v3984_v32  ;;  %v19840_v48 = vadd.f32 %v4149_v36, %v3987_v29  ;;  %v4345_v62 = vmul.f32 %v23084_v12, %v23075_v42  ;;  %v23089_v30 = vld [vmem:[#allocation47_spill] sm:$0xff] }
 0x39d   :  { %v19844_v7 = vadd.f32 %v4150_v11, %v3986_v52  ;;  %v4346_v37 = vmul.f32 %v23084_v12, %v23079_v49  ;;  %v4347_v1 = vmul.f32 %v23084_v12, %v23080_v58  ;;  %v4348_v60 = vmul.f32 %v23084_v12, %v23082_v41 }
 0x39e   :  { %v4457_v59 = vrot.slane %v4345_v62, 1  ;;  %v4609_v32 = vmul.f32 %v23088_v25, %v23083_v10  ;;  %v4610_v46 = vmul.f32 %v23088_v25, %v23085_v47  ;;  %v4611_v42 = vmul.f32 %v23088_v25, %v23086_v9 }
 0x39f   :  { %v4458_v52 = vrot.slane %v4346_v37, 1  ;;  %v4460_v29 = vrot.slane %v4347_v1, 1  ;;  %v4461_v54 = vrot.slane %v4348_v60, 1  ;;  %v4612_v49 = vmul.f32 %v23088_v25, %v23087_v56 }
 0x3a0   :  { %v4721_v4 = vrot.slane %v4609_v32, 1  ;;  %v4722_v8 = vrot.slane %v4610_v46, 1  ;;  %v4724_v36 = vrot.slane %v4611_v42, 1  ;;  %v4874_v11 = vmul.f32 %v23089_v30, %v23080_v58 }
 0x3a1   :  { %v4459_v10 = vsel %vm491_vm0, %v4457_v59, %v4458_v52  ;;  %v4462_v62 = vsel %vm491_vm0, %v4460_v29, %v4461_v54  ;;  %v4562_v47 = vadd.f32 %v4458_v52, %v4298_v50  ;;  %v4564_v12 = vadd.f32 %v4461_v54, %v4300_v57 }
 0x3a2   :  { %v4561_v61 = vadd.f32 %v4459_v10, %v4297_v3  ;;  %v4563_v24 = vadd.f32 %v4462_v62, %v4299_v53  ;;  %v4723_v37 = vsel %vm491_vm0, %v4721_v4, %v4722_v8  ;;  %v4725_v1 = vrot.slane %v4612_v49, 1 }
 0x3a3   :  { %v19865_v60 = vadd.f32 %v4722_v8, %v4562_v47  ;;  %v4875_v32 = vmul.f32 %v23089_v30, %v23082_v41  ;;  %v4876_v46 = vmul.f32 %v23089_v30, %v19782_v43  ;;  %v4877_v59 = vmul.f32 %v23089_v30, %v19785_v27 }
 0x3a4   :  { %v4726_v42 = vsel %vm491_vm0, %v4724_v36, %v4725_v1  ;;  %v19874_v50 = vadd.f32 %v4723_v37, %v4561_v61  ;;  %v19876_v3 = vadd.f32 %v4725_v1, %v4564_v12  ;;  %v4923_v53 = vmul.f32 %v23061_v19, %v23086_v9 }
 0x3a5   :  { %v19880_v57 = vadd.f32 %v4726_v42, %v4563_v24  ;;  %v4924_v52 = vmul.f32 %v23061_v19, %v23087_v56  ;;  %v4925_v29 = vmul.f32 %v23061_v19, %v19798_v17  ;;  %v4926_v54 = vmul.f32 %v23061_v19, %v19794_v31 }
 0x3a6   :  { %v4971_v49 = vadd.f32 %v4923_v53, %v4874_v11  ;;  %v5020_v61 = vmul.f32 %v23062_v45, %v23080_v58  ;;  %v5021_v12 = vmul.f32 %v23062_v45, %v23082_v41  ;;  %v5022_v24 = vmul.f32 %v23062_v45, %v19782_v43 }
 0x3a7   :  { %v4972_v4 = vadd.f32 %v4924_v52, %v4875_v32  ;;  %v4973_v8 = vadd.f32 %v4925_v29, %v4876_v46  ;;  %v4974_v36 = vadd.f32 %v4926_v54, %v4877_v59  ;;  %v5023_v10 = vmul.f32 %v23062_v45, %v19785_v27 }
 0x3a8   :  { %v5132_v62 = vrot.slane %v5020_v61, 1  ;;  %v5133_v47 = vrot.slane %v5021_v12, 1  ;;  %v5135_v37 = vrot.slane %v5022_v24, 1  ;;  %v5284_v11 = vmul.f32 %v23089_v30, %v23086_v9 }
 0x3a9   :  { %v5136_v1 = vrot.slane %v5023_v10, 1  ;;  %v5285_v42 = vmul.f32 %v23089_v30, %v23087_v56  ;;  %v5286_v53 = vmul.f32 %v23089_v30, %v19798_v17  ;;  %v5287_v32 = vmul.f32 %v23089_v30, %v19794_v31 }
 0x3aa   :  { %v5134_v46 = vsel %vm491_vm0, %v5132_v62, %v5133_v47  ;;  %v5237_v59 = vadd.f32 %v5133_v47, %v4972_v4  ;;  %v5332_v52 = vmul.f32 %v23061_v19, %v23080_v58  ;;  %v5333_v29 = vmul.f32 %v23061_v19, %v23082_v41 }
 0x3ab   :  { %v5137_v54 = vsel %vm491_vm0, %v5135_v37, %v5136_v1  ;;  %v5236_v61 = vadd.f32 %v5134_v46, %v4971_v49  ;;  %v5239_v12 = vadd.f32 %v5136_v1, %v4974_v36  ;;  %v5334_v24 = vmul.f32 %v23061_v19, %v19782_v43 }
 0x3ac   :  { %v5238_v10 = vadd.f32 %v5137_v54, %v4973_v8  ;;  %v5335_v30 = vmul.f32 %v23061_v19, %v19785_v27  ;;  %v5444_v25 = vrot.slane %v5332_v52, 1  ;;  %v5445_v62 = vrot.slane %v5333_v29, 1 }
 0x3ad   :  { %v5447_v4 = vrot.slane %v5334_v24, 1  ;;  %v5596_v58 = vmul.f32 %v23062_v45, %v23086_v9  ;;  %v5597_v41 = vmul.f32 %v23062_v45, %v23087_v56  ;;  %v5598_v49 = vmul.f32 %v23062_v45, %v19798_v17 }
 0x3ae   :  { %v5446_v36 = vsel %vm491_vm0, %v5444_v25, %v5445_v62  ;;  %v5448_v47 = vrot.slane %v5335_v30, 1  ;;  %v5549_v37 = vadd.f32 %v5445_v62, %v5285_v42  ;;  %v5599_v8 = vmul.f32 %v23062_v45, %v19794_v31 }
 0x3af   :  { %v5548_v1 = vadd.f32 %v5446_v36, %v5284_v11  ;;  %v5708_v46 = vrot.slane %v5596_v58, 1  ;;  %v5709_v52 = vrot.slane %v5597_v41, 1  ;;  %v5711_v29 = vrot.slane %v5598_v49, 1 }
 0x3b0   :  { %v5449_v54 = vsel %vm491_vm0, %v5447_v4, %v5448_v47  ;;  %v5551_v9 = vadd.f32 %v5448_v47, %v5287_v32  ;;  %v5712_v24 = vrot.slane %v5599_v8, 1  ;;  %v5860_v56 = vadd.f32 %v5236_v61, %v19838_v15 }
 0x3b1   :  { %v5550_v19 = vadd.f32 %v5449_v54, %v5286_v53  ;;  %v5710_v28 = vsel %vm491_vm0, %v5708_v46, %v5709_v52  ;;  %v5813_v26 = vadd.f32 %v5709_v52, %v5549_v37  ;;  %v19927_v25 = vadd.f32 %v5237_v59, %v19831_v38 }
 0x3b2   :  { %v5713_v30 = vsel %vm491_vm0, %v5711_v29, %v5712_v24  ;;  %v5812_v42 = vadd.f32 %v5710_v28, %v5548_v1  ;;  %v5815_v11 = vadd.f32 %v5712_v24, %v5551_v9  ;;  %v19931_v62 = vadd.f32 %v5238_v10, %v19844_v7 }
 0x3b3   :  { %v5814_v58 = vadd.f32 %v5713_v30, %v5550_v19  ;;  %v5863_v32 = vadd.f32 %v5239_v12, %v19840_v48  ;;  %v19935_v4 = vadd.f32 %v5813_v26, %v19865_v60  ;;  %v5957_v15 = vmul.f32 %v22939_v18, %v19782_v43 }
 0x3b4   :  { %v19940_v53 = vadd.f32 %v5812_v42, %v19874_v50  ;;  %v19943_v38 = vadd.f32 %v5815_v11, %v19876_v3  ;;  %v5958_v28 = vmul.f32 %v22939_v18, %v19785_v27  ;;  %v5959_v19 = vmul.f32 %v22939_v18, %v19787_v5 }
 0x3b5   :  { %v19950_v48 = vadd.f32 %v5814_v58, %v19880_v57  ;;  %v5960_v26 = vmul.f32 %v22939_v18, %v19791_v51  ;;  %v6006_v7 = vmul.f32 %v22940_v22, %v19798_v17  ;;  %v6007_v60 = vmul.f32 %v22940_v22, %v19794_v31 }
 0x3b6   :  { %v6008_v50 = vmul.f32 %v22940_v22, %v19806_v35  ;;  %v6009_v3 = vmul.f32 %v22940_v22, %v19800_v13  ;;  %v6103_v59 = vmul.f32 %v22983_v23, %v19782_v43  ;;  %v6104_v57 = vmul.f32 %v22983_v23, %v19785_v27 }
 0x3b7   :  { %v6054_v61 = vadd.f32 %v6006_v7, %v5957_v15  ;;  %v6055_v12 = vadd.f32 %v6007_v60, %v5958_v28  ;;  %v6105_v10 = vmul.f32 %v22983_v23, %v19787_v5  ;;  %v6106_v41 = vmul.f32 %v22983_v23, %v19791_v51 }
 0x3b8   :  { %v6056_v49 = vadd.f32 %v6008_v50, %v5959_v19  ;;  %v6057_v36 = vadd.f32 %v6009_v3, %v5960_v26  ;;  %v6215_v47 = vrot.slane %v6103_v59, 1  ;;  %v6216_v37 = vrot.slane %v6104_v57, 1 }
 0x3b9   :  { %v6218_v8 = vrot.slane %v6105_v10, 1  ;;  %v6219_v1 = vrot.slane %v6106_v41, 1  ;;  %v6367_v46 = vmul.f32 %v22939_v18, %v19798_v17  ;;  %v6368_v52 = vmul.f32 %v22939_v18, %v19794_v31 }
 0x3ba   :  { %v6217_v29 = vsel %vm491_vm0, %v6215_v47, %v6216_v37  ;;  %v6320_v54 = vadd.f32 %v6216_v37, %v6055_v12  ;;  %v6369_v9 = vmul.f32 %v22939_v18, %v19806_v35  ;;  %v6370_v24 = vmul.f32 %v22939_v18, %v19800_v13 }
 0x3bb   :  { %v6220_v30 = vsel %vm491_vm0, %v6218_v8, %v6219_v1  ;;  %v6319_v42 = vadd.f32 %v6217_v29, %v6054_v61  ;;  %v6322_v11 = vadd.f32 %v6219_v1, %v6057_v36  ;;  %v6415_v58 = vmul.f32 %v22940_v22, %v19782_v43 }
 0x3bc   :  { %v6321_v15 = vadd.f32 %v6220_v30, %v6056_v49  ;;  %v6416_v28 = vmul.f32 %v22940_v22, %v19785_v27  ;;  %v6417_v19 = vmul.f32 %v22940_v22, %v19787_v5  ;;  %v6418_v26 = vmul.f32 %v22940_v22, %v19791_v51 }
 0x3bd   :  { %v6527_v7 = vrot.slane %v6415_v58, 1  ;;  %v6679_v60 = vmul.f32 %v22983_v23, %v19798_v17  ;;  %v6680_v50 = vmul.f32 %v22983_v23, %v19794_v31  ;;  %v6681_v3 = vmul.f32 %v22983_v23, %v19806_v35 }
 0x3be   :  { %v6528_v59 = vrot.slane %v6416_v28, 1  ;;  %v6530_v57 = vrot.slane %v6417_v19, 1  ;;  %v6531_v61 = vrot.slane %v6418_v26, 1  ;;  %v6682_v12 = vmul.f32 %v22983_v23, %v19800_v13 }
 0x3bf   :  { %v6791_v10 = vrot.slane %v6679_v60, 1  ;;  %v6792_v41 = vrot.slane %v6680_v50, 1  ;;  %v6794_v49 = vrot.slane %v6681_v3, 1  ;;  %v6943_v36 = vadd.f32 %v6319_v42, %v5860_v56 }
 0x3c0   :  { %v6529_v47 = vsel %vm491_vm0, %v6527_v7, %v6528_v59  ;;  %v6532_v37 = vsel %vm491_vm0, %v6530_v57, %v6531_v61  ;;  %v6632_v8 = vadd.f32 %v6528_v59, %v6368_v52  ;;  %v6634_v1 = vadd.f32 %v6531_v61, %v6370_v24 }
 0x3c1   :  { %v6631_v29 = vadd.f32 %v6529_v47, %v6367_v46  ;;  %v6633_v30 = vadd.f32 %v6532_v37, %v6369_v9  ;;  %v6793_v58 = vsel %vm491_vm0, %v6791_v10, %v6792_v41  ;;  %v6795_v28 = vrot.slane %v6682_v12, 1 }
 0x3c2   :  { %v6896_v19 = vadd.f32 %v6792_v41, %v6632_v8  ;;  %v6944_v26 = vadd.f32 %v6320_v54, %v19927_v25  ;;  %v6945_v13 = vadd.f32 %v6321_v15, %v19931_v62  ;;  %v6946_v60 = vadd.f32 %v6322_v11, %v5863_v32  ;;  %v14085_v54 = vld [vmem:[%s22509_s5 + $0x88] sm:$0x3] }
 0x3c3   :  { %v6796_v50 = vsel %vm491_vm0, %v6794_v49, %v6795_v28  ;;  %v6895_v56 = vadd.f32 %v6793_v58, %v6631_v29  ;;  %v6898_v42 = vadd.f32 %v6795_v28, %v6634_v1  ;;  %v7040_v7 = vadd.f32 %v22984_v55, %v6943_v36 }
 0x3c4   :  { %v6897_v3 = vadd.f32 %v6796_v50, %v6633_v30  ;;  %v6992_v52 = vadd.f32 %v6896_v19, %v19935_v4  ;;  %v7041_v46 = vadd.f32 %v22984_v55, %v6944_v26  ;;  %v7042_v9 = vadd.f32 %v22984_v55, %v6945_v13  ;;  %v20031_v30 = vld [vmem:[#allocation9 + $0x80] sm:$0xff]  ;;  %v20044_v50 = vld [vmem:[#allocation9 + $0x90] sm:$0xff] }
 0x3c5   :  { %v6991_v24 = vadd.f32 %v6895_v56, %v19940_v53  ;;  %v6994_v25 = vadd.f32 %v6898_v42, %v19943_v38  ;;  %v7043_v62 = vadd.f32 %v22984_v55, %v6946_v60  ;;  %v7088_v32 = vmax.f32 %v7040_v7, 0.0  ;;  %v20048_v42 = vld [vmem:[#allocation9 + $0x98] sm:$0x3f] }
 0x3c6   :  { %v6993_v11 = vadd.f32 %v6897_v3, %v19950_v48  ;;  %v7089_v15 = vmax.f32 %v7041_v46, 0.0  ;;  %v7090_v59 = vmax.f32 %v7042_v9, 0.0  ;;  %v7137_v4 = vadd.f32 %v22984_v55, %v6992_v52  ;;  %v20052_v3 = vld [vmem:[#allocation10 + $0x80] sm:$0xff] }
 0x3c7   :  { %v7091_v57 = vmax.f32 %v7043_v62, 0.0  ;;  %v7136_v13 = vadd.f32 %v22984_v55, %v6991_v24  ;;  %v7139_v53 = vadd.f32 %v22984_v55, %v6994_v25  ;;  %v20017_v38 = vand.u32 4294901760, %v19660_v16  ;;  %v15478_v25 = vld [vmem:[#allocation10 + $0x88] sm:$0x3f] }
 0x3c8   :  { %v7138_v61 = vadd.f32 %v22984_v55, %v6993_v11  ;;  %v7185_v12 = vmax.f32 %v7137_v4, 0.0  ;;  %v11400_v10 = vsel %vm7259_vm2, %v14085_v54, 0  ;;  %v23090_v41 = vand.u32 4294901760, %v19558_v34  ;;  %v20035_v34 = vld [vmem:[#allocation9 + $0x88] sm:$0x3f]  ;;  %v20062_v54 = vld [vmem:[#allocation10 + $0x90] sm:$0xff] }
 0x3c9   :  { %v23091_v48 = vand.u32 4294901760, %v19560_v33  ;;  %v7184_v36 = vmax.f32 %v7136_v13, 0.0  ;;  %v7187_v47 = vmax.f32 %v7139_v53, 0.0  ;;  %v20027_v37 = vsub.f32 %v19660_v16, %v20017_v38 }
 0x3ca   :  { %v20029_v8 = vand.u32 4294901760, %v11400_v10  ;;  %v7186_v1 = vmax.f32 %v7138_v61, 0.0  ;;  %v7233_v29 = vmax.f32 %v7089_v15, %v7185_v12  ;;  %v245_v58 = vmul.f32 %v20031_v30, %v22993_v6  ;;  %v20066_v15 = vld [vmem:[#allocation10 + $0x98] sm:$0x3f] }
 0x3cb   :  { %v15014_v49 = vpack.c.bf16 %v23091_v48, %v23090_v41  ;;  %v246_v33 = vmul.f32 %v20035_v34, %v22993_v6  ;;  %v7232_v28 = vmax.f32 %v7088_v32, %v7184_v36  ;;  %v7235_v19 = vmax.f32 %v7091_v57, %v7187_v47 }
 0x3cc   :  { %v22764_v16 = vand.u32 4294901760, %v20027_v37  ;;  %v20041_v26 = vsub.f32 %v11400_v10, %v20029_v8  ;;  %v7234_v60 = vmax.f32 %v7090_v59, %v7186_v1  ;;  %v247_v56 = vmul.f32 %v20044_v50, %v22993_v6 }
 0x3cd   :  { %15015 = vmatprep.subr.bf16.mxu1 %v15014_v49  ;;  %v248_v7 = vmul.f32 %v20048_v42, %v22993_v6  ;;  %v298_v52 = vmul.f32 %v20052_v3, %v22994_v40  ;;  %v11392_v46 = vmax.f32 %v7233_v29, %v7235_v19  ;;  %v299_v62 = vmul.f32 %v15478_v25, %v22994_v40 }
 0x3ce   :  { %15017 = vmatpush3.bf16.msra.mxu1 %v15014_v49  ;;  %v11475_v9 = vsub.f32 %v20027_v37, %v22764_v16  ;;  %v22763_v24 = vand.u32 4294901760, %v20041_v26  ;;  %v11391_v32 = vmax.f32 %v7232_v28, %v7234_v60  ;;  %v300_v11 = vmul.f32 %v20062_v54, %v22994_v40 }
 0x3cf   :  { %15019 = vmatprep.subr.bf16.mxu1 %v19556_v0  ;;  %v301_v59 = vmul.f32 %v20066_v15, %v22994_v40  ;;  %v350_v4 = vadd.f32 %v298_v52, %v245_v58  ;;  %v11403_v57 = vsel %vm7266_vm1, %v11392_v46, 0  ;;  %v351_v61 = vadd.f32 %v299_v62, %v246_v33 }
 0x3d0   :  { %v11476_v13 = vand.u32 4294901760, %v11475_v9  ;;  %v11485_v53 = vsub.f32 %v20041_v26, %v22763_v24  ;;  %v11406_v12 = vand.u32 4294901760, %v11391_v32  ;;  %v11409_v10 = vand.u32 4294901760, %v11403_v57 }
 0x3d1   :  { %14521 = vmatmul.mubr.f32.vlgmr.msra.gmra.mrb[0].mxu1 %v19498_v63  ;;  %v352_v41 = vadd.f32 %v300_v11, %v247_v56  ;;  %v353_v48 = vadd.f32 %v301_v59, %v248_v7  ;;  %v403_v36 = vmul.f32 %v20031_v30, %v23013_v14  ;;  %v404_v47 = vmul.f32 %v20035_v34, %v23013_v14 }
 0x3d2   :  { %15021 = vmatpush3.bf16.msra.mxu1 %v19556_v0  ;;  %14527 = vmatprep.mubr.f32.mxu1 %v19486_v44  ;;  %v11486_v49 = vand.u32 4294901760, %v11485_v53  ;;  %v405_v1 = vmul.f32 %v20044_v50, %v23013_v14  ;;  %v20082_v29 = vpack.c.bf16 %v11409_v10, %v11406_v12  ;;  %v20084_v0 = vsub.f32 %v11391_v32, %v11406_v12 }
 0x3d3   :  { %14744 = vmatprep.mubr.f32.mxu0 %v11476_v13  ;;  %v20086_v44 = vsub.f32 %v11403_v57, %v11409_v10  ;;  %v406_v58 = vmul.f32 %v20048_v42, %v23013_v14  ;;  %v516_v33 = vrot.slane %v403_v36, 1  ;;  %v517_v28 = vrot.slane %v404_v47, 1 }
 0x3d4   :  { %v519_v19 = vrot.slane %v405_v1, 1  ;;  %v690_v60 = vmul.f32 %v20052_v3, %v22993_v6  ;;  %15143 = vmatprep.subr.bf16.mxu0 %v20082_v29  ;;  %v22762_v56 = vand.u32 4294901760, %v20084_v0  ;;  %v691_v32 = vmul.f32 %v15478_v25, %v22993_v6 }
 0x3d5   :  { %v22761_v7 = vand.u32 4294901760, %v20086_v44  ;;  %v15150_v52 = vpack.c.bf16 %v20086_v44, %v20084_v0  ;;  %v520_v46 = vrot.slane %v406_v58, 1  ;;  %15145 = vmatpush3.bf16.msra.mxu0 %v20082_v29  ;;  %v518_v9 = vsel %vm491_vm0, %v516_v33, %v517_v28 }
 0x3d6   :  { %v20099_v62 = vadd.f32 %v517_v28, %v351_v61  ;;  %v692_v11 = vmul.f32 %v20062_v54, %v22993_v6  ;;  %v11496_v59 = vsub.f32 %v20084_v0, %v22762_v56  ;;  %v20112_v53 = vadd.f32 %v518_v9, %v350_v4 }
 0x3d7   :  { %v11503_v57 = vsub.f32 %v20086_v44, %v22761_v7  ;;  %v521_v13 = vsel %vm491_vm0, %v519_v19, %v520_v46  ;;  %v20116_v12 = vadd.f32 %v520_v46, %v353_v48  ;;  %v693_v10 = vmul.f32 %v20066_v15, %v22993_v6 }
 0x3d8   :  { %v20114_v61 = vadd.f32 %v521_v13, %v352_v41  ;;  %v742_v36 = vmul.f32 %v20031_v30, %v22994_v40  ;;  %14745 = vmatmul.mubr.f32.vlgmr.msra.gmra.mrb[0].mxu0 %v11486_v49  ;;  %v11497_v47 = vand.u32 4294901760, %v11496_v59  ;;  %v744_v4 = vmul.f32 %v20044_v50, %v22994_v40 }
 0x3d9   :  { %14528 = vmatmul.mubr.f32.vlgmr.msra.gmra.mrb[0].mxu1 %v19498_v63  ;;  %v11504_v1 = vand.u32 4294901760, %v11503_v57  ;;  %v743_v63 = vmul.f32 %v20035_v34, %v22994_v40  ;;  %14751 = vmatprep.mubr.f32.mxu0 %v20017_v38  ;;  %v745_v41 = vmul.f32 %v20048_v42, %v22994_v40  ;;  %v1028_v58 = vmul.f32 %v20052_v3, %v23013_v14 }
 0x3da   :  { %v854_v48 = vrot.slane %v742_v36, 1  ;;  %v1029_v30 = vmul.f32 %v15478_v25, %v23013_v14  ;;  %v857_v28 = vrot.slane %v744_v4, 1  ;;  %v1030_v34 = vmul.f32 %v20062_v54, %v23013_v14 }
 0x3db   :  { %v15146_v49 = vpack.c.bf16 %v11504_v1, %v11497_v47  ;;  %v855_v33 = vrot.slane %v743_v63, 1  ;;  %v858_v19 = vrot.slane %v745_v41, 1  ;;  %v1031_v46 = vmul.f32 %v20066_v15, %v23013_v14 }
 0x3dc   :  { %v1140_v9 = vrot.slane %v1028_v58, 1  ;;  %v1141_v59 = vrot.slane %v1029_v30, 1  ;;  %v1143_v36 = vrot.slane %v1030_v34, 1  ;;  %v1315_v3 = vmul.f32 %v20044_v50, %v23037_v21 }
 0x3dd   :  { %15147 = vmatprep.subr.bf16.mxu0 %v15146_v49  ;;  %v856_v57 = vsel %vm491_vm0, %v854_v48, %v855_v33  ;;  %v977_v13 = vadd.f32 %v855_v33, %v691_v32  ;;  %v859_v25 = vsel %vm491_vm0, %v857_v28, %v858_v19  ;;  %v979_v1 = vadd.f32 %v858_v19, %v693_v10  ;;  %v14074_v32 = vld [vmem:[%s22509_s5 + $0x30] sm:$0xff]  ;;  %v20154_v10 = vld [vmem:[#allocation9 + $0xa8] sm:$0x3f] }
 0x3de   :  { %15149 = vmatpush3.bf16.msra.mxu0 %v15146_v49  ;;  %v976_v47 = vadd.f32 %v856_v57, %v690_v60  ;;  %v1142_v63 = vsel %vm491_vm0, %v1140_v9, %v1141_v59  ;;  %v978_v4 = vadd.f32 %v859_v25, %v692_v11  ;;  %v1144_v41 = vrot.slane %v1031_v46, 1  ;;  %v20150_v49 = vld [vmem:[#allocation9 + $0xa0] sm:$0xff]  ;;  %v20173_v57 = vld [vmem:[#allocation10 + $0xa8] sm:$0x3f] }
 0x3df   :  { %15151 = vmatprep.subr.bf16.mxu0 %v15150_v52  ;;  %v20141_v58 = vadd.f32 %v1141_v59, %v977_v13  ;;  %v1316_v48 = vmul.f32 %v20048_v42, %v23037_v21  ;;  %v1317_v60 = vmul.f32 %v20150_v49, %v23037_v21  ;;  %v1318_v11 = vmul.f32 %v20154_v10, %v23037_v21  ;;  %v20166_v46 = vld [vmem:[#allocation10 + $0xa0] sm:$0xff] }
 0x3e0   :  { %v20148_v30 = vadd.f32 %v1142_v63, %v976_v47  ;;  %v1368_v33 = vmul.f32 %v20062_v54, %v23038_v2  ;;  %v1145_v28 = vsel %vm491_vm0, %v1143_v36, %v1144_v41  ;;  %v20162_v34 = vadd.f32 %v1144_v41, %v979_v1 }
 0x3e1   :  { %14752 = vmatmul.mubr.f32.vlgmr.msra.gmra.mrb[0].mxu0 %v20029_v8  ;;  %v1369_v19 = vmul.f32 %v20066_v15, %v23038_v2  ;;  %v1370_v9 = vmul.f32 %v20166_v46, %v23038_v2  ;;  %v20171_v59 = vadd.f32 %v1145_v28, %v978_v4  ;;  %v1371_v13 = vmul.f32 %v20173_v57, %v23038_v2 }
 0x3e2   :  { %15153 = vmatpush3.bf16.msra.mxu0 %v15150_v52  ;;  %14758 = vmatprep.mubr.f32.mxu0 %v20027_v37  ;;  %v1420_v36 = vadd.f32 %v1368_v33, %v1315_v3  ;;  %v20178_v25 = vsel %vm7259_vm2, %v14074_v32, 0  ;;  %v1473_v63 = vmul.f32 %v20044_v50, %v23065_v39  ;;  %v1474_v52 = vmul.f32 %v20048_v42, %v23065_v39 }
 0x3e3   :  { %v1421_v47 = vadd.f32 %v1369_v19, %v1316_v48  ;;  %v1422_v1 = vadd.f32 %v1370_v9, %v1317_v60  ;;  %15155 = vmatprep.subr.bf16.mxu0 %v20082_v29  ;;  %v1423_v4 = vadd.f32 %v1371_v13, %v1318_v11  ;;  %v1475_v41 = vmul.f32 %v20150_v49, %v23065_v39 }
 0x3e4   :  { %v1476_v3 = vmul.f32 %v20154_v10, %v23065_v39  ;;  %v1759_v32 = vmul.f32 %v20062_v54, %v23037_v21  ;;  %v1585_v48 = vrot.slane %v1473_v63, 1  ;;  %v1586_v60 = vrot.slane %v1474_v52, 1 }
 0x3e5   :  { %v1760_v33 = vmul.f32 %v20066_v15, %v23037_v21  ;;  %v1761_v28 = vmul.f32 %v20166_v46, %v23037_v21  ;;  %v1588_v19 = vrot.slane %v1475_v41, 1  ;;  %v1762_v11 = vmul.f32 %v20173_v57, %v23037_v21 }
 0x3e6   :  { %v1589_v9 = vrot.slane %v1476_v3, 1  ;;  %v1811_v13 = vmul.f32 %v20044_v50, %v23038_v2  ;;  %v1587_v7 = vsel %vm491_vm0, %v1585_v48, %v1586_v60  ;;  %v1708_v56 = vadd.f32 %v1586_v60, %v1421_v47 }
 0x3e7   :  { %v1812_v63 = vmul.f32 %v20048_v42, %v23038_v2  ;;  %v1813_v52 = vmul.f32 %v20150_v49, %v23038_v2  ;;  %v1707_v16 = vadd.f32 %v1587_v7, %v1420_v36  ;;  %v1814_v3 = vmul.f32 %v20154_v10, %v23038_v2 }
 0x3e8   :  { %v1590_v24 = vsel %vm491_vm0, %v1588_v19, %v1589_v9  ;;  %v1710_v41 = vadd.f32 %v1589_v9, %v1423_v4  ;;  %v1923_v50 = vrot.slane %v1811_v13, 1  ;;  %v2097_v42 = vmul.f32 %v20062_v54, %v23065_v39 }
 0x3e9   :  { %14759 = vmatmul.mubr.f32.vlgmr.msra.gmra.mrb[0].mxu0 %v20041_v26  ;;  %v1709_v35 = vadd.f32 %v1590_v24, %v1422_v1  ;;  %v1924_v31 = vrot.slane %v1812_v63, 1  ;;  %v1926_v48 = vrot.slane %v1813_v52, 1  ;;  %v1927_v47 = vrot.slane %v1814_v3, 1 }
 0x3ea   :  { %v2098_v60 = vmul.f32 %v20066_v15, %v23065_v39  ;;  %v2099_v7 = vmul.f32 %v20166_v46, %v23065_v39  ;;  %15157 = vmatpush3.bf16.msra.mxu0 %v20082_v29  ;;  %v23092_v36 = vand.u32 4294901760, %v20027_v37  ;;  %v2100_v4 = vmul.f32 %v20173_v57, %v23065_v39 }
 0x3eb   :  { %v1925_v24 = vsel %vm491_vm0, %v1923_v50, %v1924_v31  ;;  %v2046_v1 = vadd.f32 %v1924_v31, %v1760_v33  ;;  %v20221_v19 = vadd.f32 %v1707_v16, %v20112_v53  ;;  %v1928_v54 = vsel %vm491_vm0, %v1926_v48, %v1927_v47 }
 0x3ec   :  { %14765 = vmatprep.mubr.f32.mxu0 %v23092_v36  ;;  %v2045_v15 = vadd.f32 %v1925_v24, %v1759_v32  ;;  %v2048_v9 = vadd.f32 %v1927_v47, %v1762_v11  ;;  %v2209_v13 = vrot.slane %v2097_v42, 1  ;;  %v2047_v63 = vadd.f32 %v1928_v54, %v1761_v28  ;;  %v23093_v42 = vld [vmem:[#allocation26_spill] sm:$0xff] }
 0x3ed   :  { %v2210_v52 = vrot.slane %v2098_v60, 1  ;;  %v2212_v3 = vrot.slane %v2099_v7, 1  ;;  %v2213_v17 = vrot.slane %v2100_v4, 1  ;;  %v20225_v37 = vadd.f32 %v1708_v56, %v20099_v62  ;;  %v15485_v62 = vld [vmem:[#allocation9 + $0xb0] sm:$0xff] }
 0x3ee   :  { %v20228_v31 = vadd.f32 %v1709_v35, %v20114_v61  ;;  %v20231_v33 = vadd.f32 %v1710_v41, %v20116_v12  ;;  %v2488_v16 = vmul.f32 %v20150_v49, %v23000_v20  ;;  %v2489_v56 = vmul.f32 %v20154_v10, %v23000_v20  ;;  %v15486_v41 = vld [vmem:[#allocation9 + $0xb8] sm:$0x3f] }
 0x3ef   :  { %v2211_v53 = vsel %vm491_vm0, %v2209_v13, %v2210_v52  ;;  %v2214_v32 = vsel %vm491_vm0, %v2212_v3, %v2213_v17  ;;  %v2332_v28 = vadd.f32 %v2210_v52, %v2046_v1  ;;  %v2334_v11 = vadd.f32 %v2213_v17, %v2048_v9  ;;  %v15488_v1 = vld [vmem:[#allocation10 + $0xb8] sm:$0x3f] }
 0x3f0   :  { %v2331_v50 = vadd.f32 %v2211_v53, %v2045_v15  ;;  %v2333_v48 = vadd.f32 %v2214_v32, %v2047_v63  ;;  %v2490_v35 = vmul.f32 %v15485_v62, %v23000_v20  ;;  %v2491_v47 = vmul.f32 %v15486_v41, %v23000_v20 }
 0x3f1   :  { %v20241_v61 = vadd.f32 %v2332_v28, %v20141_v58  ;;  %v20244_v12 = vadd.f32 %v2334_v11, %v20162_v34  ;;  %v2541_v17 = vmul.f32 %v20166_v46, %v23093_v42  ;;  %v23094_v60 = vand.u32 4294901760, %v20041_v26  ;;  %v15487_v34 = vld [vmem:[#allocation10 + $0xb0] sm:$0xff] }
 0x3f2   :  { %v20252_v7 = vadd.f32 %v2331_v50, %v20148_v30  ;;  %v20255_v36 = vadd.f32 %v2333_v48, %v20171_v59  ;;  %v2542_v58 = vmul.f32 %v20173_v57, %v23093_v42  ;;  %v2543_v24 = vmul.f32 %v15487_v34, %v23093_v42  ;;  %v23095_v26 = vld [vmem:[#allocation30_spill] sm:$0xff] }
 0x3f3   :  { %14766 = vmatmul.mubr.f32.vlgmr.msra.gmra.mrb[0].mxu0 %v23094_v60  ;;  %v2544_v4 = vmul.f32 %v15488_v1, %v23093_v42  ;;  %v2593_v54 = vadd.f32 %v2541_v17, %v2488_v16  ;;  %v2646_v15 = vmul.f32 %v20150_v49, %v23095_v26  ;;  %v2647_v30 = vmul.f32 %v20154_v10, %v23095_v26 }
 0x3f4   :  { %14772 = vmatprep.mubr.f32.mxu0 %v20017_v38  ;;  %v2594_v59 = vadd.f32 %v2542_v58, %v2489_v56  ;;  %v2595_v9 = vadd.f32 %v2543_v24, %v2490_v35  ;;  %v2648_v13 = vmul.f32 %v15485_v62, %v23095_v26  ;;  %v2649_v63 = vmul.f32 %v15486_v41, %v23095_v26 }
 0x3f5   :  { %v2596_v52 = vadd.f32 %v2544_v4, %v2491_v47  ;;  %v2758_v3 = vrot.slane %v2646_v15, 1  ;;  %v2759_v53 = vrot.slane %v2647_v30, 1  ;;  %v2932_v32 = vmul.f32 %v20166_v46, %v23000_v20 }
 0x3f6   :  { %v2761_v28 = vrot.slane %v2648_v13, 1  ;;  %v2762_v16 = vrot.slane %v2649_v63, 1  ;;  %v2933_v11 = vmul.f32 %v20173_v57, %v23000_v20  ;;  %v2934_v50 = vmul.f32 %v15487_v34, %v23000_v20 }
 0x3f7   :  { %v2760_v48 = vsel %vm491_vm0, %v2758_v3, %v2759_v53  ;;  %v2881_v56 = vadd.f32 %v2759_v53, %v2594_v59  ;;  %v2935_v35 = vmul.f32 %v15488_v1, %v23000_v20  ;;  %v2984_v47 = vmul.f32 %v20150_v49, %v23093_v42 }
 0x3f8   :  { %v2763_v17 = vsel %vm491_vm0, %v2761_v28, %v2762_v16  ;;  %v2880_v60 = vadd.f32 %v2760_v48, %v2593_v54  ;;  %v2883_v58 = vadd.f32 %v2762_v16, %v2596_v52  ;;  %v2985_v24 = vmul.f32 %v20154_v10, %v23093_v42 }
 0x3f9   :  { %v2882_v4 = vadd.f32 %v2763_v17, %v2595_v9  ;;  %v2986_v15 = vmul.f32 %v15485_v62, %v23093_v42  ;;  %v2987_v30 = vmul.f32 %v15486_v41, %v23093_v42  ;;  %v3096_v13 = vrot.slane %v2984_v47, 1 }
 0x3fa   :  { %v3097_v63 = vrot.slane %v2985_v24, 1  ;;  %v3270_v59 = vmul.f32 %v20166_v46, %v23095_v26  ;;  %v3271_v49 = vmul.f32 %v20173_v57, %v23095_v26  ;;  %v3272_v3 = vmul.f32 %v15487_v34, %v23095_v26 }
 0x3fb   :  { %v3099_v54 = vrot.slane %v2986_v15, 1  ;;  %v3100_v52 = vrot.slane %v2987_v30, 1  ;;  %v3273_v53 = vmul.f32 %v15488_v1, %v23095_v26  ;;  %v3556_v10 = vadd.f32 %v2880_v60, %v20221_v19 }
 0x3fc   :  { %v3098_v62 = vsel %vm491_vm0, %v3096_v13, %v3097_v63  ;;  %v3219_v9 = vadd.f32 %v3097_v63, %v2933_v11  ;;  %v3382_v41 = vrot.slane %v3270_v59, 1  ;;  %v3383_v28 = vrot.slane %v3271_v49, 1 }
 0x3fd   :  { %v3101_v16 = vsel %vm491_vm0, %v3099_v54, %v3100_v52  ;;  %v3218_v48 = vadd.f32 %v3098_v62, %v2932_v32  ;;  %v3221_v46 = vadd.f32 %v3100_v52, %v2935_v35  ;;  %v3385_v47 = vrot.slane %v3272_v3, 1  ;;  %v23096_v32 = vld [vmem:[#allocation20_spill] sm:$0xff] }
 0x3fe   :  { %v3220_v17 = vadd.f32 %v3101_v16, %v2934_v50  ;;  %v3384_v57 = vsel %vm491_vm0, %v3382_v41, %v3383_v28  ;;  %v3386_v34 = vrot.slane %v3273_v53, 1  ;;  %v3505_v24 = vadd.f32 %v3383_v28, %v3219_v9  ;;  %v23098_v53 = vld [vmem:[#allocation22_spill] sm:$0xff]  ;;  %v23100_v28 = vld [vmem:[#allocation39_spill] sm:$0xff] }
 0x3ff   :  { %v3504_v15 = vadd.f32 %v3384_v57, %v3218_v48  ;;  %v3557_v1 = vadd.f32 %v2881_v56, %v20225_v37  ;;  %v3558_v19 = vadd.f32 %v2882_v4, %v20228_v31  ;;  %v3559_v60 = vadd.f32 %v2883_v58, %v20231_v33  ;;  %v23104_v57 = vld [vmem:[#allocation23_spill] sm:$0xff] }
 0x400   :  { %v3387_v11 = vsel %vm491_vm0, %v3385_v47, %v3386_v34  ;;  %v3507_v30 = vadd.f32 %v3386_v34, %v3221_v46  ;;  %v3609_v13 = vadd.f32 %v3505_v24, %v20241_v61  ;;  %v3661_v35 = vadd.f32 %v23096_v32, %v3556_v10  ;;  %v23102_v46 = vld [vmem:[#allocation40_spill] sm:$0xff]  ;;  %v23105_v24 = vld [vmem:[#allocation33_spill] sm:$0xff] }
 0x401   :  { %v3506_v63 = vadd.f32 %v3387_v11, %v3220_v17  ;;  %v3608_v50 = vadd.f32 %v3504_v15, %v20252_v7  ;;  %v3662_v59 = vadd.f32 %v23096_v32, %v3557_v1  ;;  %v3663_v49 = vadd.f32 %v23096_v32, %v3558_v19  ;;  %v23103_v17 = vld [vmem:[#allocation41_spill] sm:$0xff]  ;;  %v23106_v19 = vld [vmem:[#allocation42_spill] sm:$0xff] }
 0x402   :  { %v3611_v37 = vadd.f32 %v3507_v30, %v20244_v12  ;;  %v3664_v31 = vadd.f32 %v23096_v32, %v3559_v60  ;;  %v20303_v56 = vmax.f32 %v3661_v35, 0.0  ;;  %v3766_v33 = vadd.f32 %v23096_v32, %v3609_v13  ;;  %v23097_v12 = vld [vmem:[#allocation31_spill] sm:$0xff]  ;;  %v23107_v11 = vld [vmem:[#allocation34_spill] sm:$0xff]  ;;  %v23108_v13 = vld [vmem:[#allocation24_spill] sm:$0xff] }
 0x403   :  { %v3610_v58 = vadd.f32 %v3506_v63, %v20255_v36  ;;  %v20307_v61 = vmax.f32 %v3662_v59, 0.0  ;;  %v20309_v4 = vmax.f32 %v3663_v49, 0.0  ;;  %v3765_v7 = vadd.f32 %v23096_v32, %v3608_v50  ;;  %v23099_v36 = vld [vmem:[#allocation32_spill] sm:$0xff] }
 0x404   :  { %v20312_v3 = vmax.f32 %v3664_v31, 0.0  ;;  %v3768_v54 = vadd.f32 %v23096_v32, %v3611_v37  ;;  %v20315_v52 = vmax.f32 %v3766_v33, 0.0  ;;  %v3867_v10 = vmul.f32 %v23098_v53, %v23097_v12 }
 0x405   :  { %v3767_v62 = vadd.f32 %v23096_v32, %v3610_v58  ;;  %v20320_v9 = vmax.f32 %v3765_v7, 0.0  ;;  %v3868_v41 = vmul.f32 %v23098_v53, %v23099_v36  ;;  %v3869_v16 = vmul.f32 %v23098_v53, %v23100_v28 }
 0x406   :  { %v20326_v48 = vmax.f32 %v3768_v54, 0.0  ;;  %v3870_v47 = vmul.f32 %v23098_v53, %v23102_v46  ;;  %v3916_v34 = vmul.f32 %v23104_v57, %v23103_v17  ;;  %v3917_v15 = vmul.f32 %v23104_v57, %v23105_v24 }
 0x407   :  { %v20334_v1 = vmax.f32 %v3767_v62, 0.0  ;;  %v3918_v60 = vmul.f32 %v23104_v57, %v23106_v19  ;;  %v3919_v30 = vmul.f32 %v23104_v57, %v23107_v11  ;;  %v4013_v35 = vmul.f32 %v23108_v13, %v23097_v12 }
 0x408   :  { %23101 = vst [vmem:[#allocation81_spill] sm:$0xff] %v20326_v48  ;;  %v3964_v63 = vadd.f32 %v3916_v34, %v3867_v10  ;;  %v3965_v50 = vadd.f32 %v3917_v15, %v3868_v41  ;;  %v4014_v59 = vmul.f32 %v23108_v13, %v23099_v36  ;;  %v4015_v49 = vmul.f32 %v23108_v13, %v23100_v28 }
 0x409   :  { %v3966_v37 = vadd.f32 %v3918_v60, %v3869_v16  ;;  %v3967_v31 = vadd.f32 %v3919_v30, %v3870_v47  ;;  %v4016_v33 = vmul.f32 %v23108_v13, %v23102_v46  ;;  %v4115_v58 = vrot.slane %v4013_v35, 1 }
 0x40a   :  { %v4116_v7 = vrot.slane %v4014_v59, 1  ;;  %v4118_v54 = vrot.slane %v4015_v49, 1  ;;  %v4277_v62 = vmul.f32 %v23098_v53, %v23103_v17  ;;  %v4278_v10 = vmul.f32 %v23098_v53, %v23105_v24 }
 0x40b   :  { %v4119_v41 = vrot.slane %v4016_v33, 1  ;;  %v4279_v34 = vmul.f32 %v23098_v53, %v23106_v19  ;;  %v4280_v16 = vmul.f32 %v23098_v53, %v23107_v11  ;;  %v4325_v47 = vmul.f32 %v23104_v57, %v23097_v12 }
 0x40c   :  { %v4117_v15 = vsel %vm491_vm0, %v4115_v58, %v4116_v7  ;;  %v20359_v60 = vadd.f32 %v4116_v7, %v3965_v50  ;;  %v4326_v30 = vmul.f32 %v23104_v57, %v23099_v36  ;;  %v4327_v35 = vmul.f32 %v23104_v57, %v23100_v28 }
 0x40d   :  { %v4120_v59 = vsel %vm491_vm0, %v4118_v54, %v4119_v41  ;;  %v20366_v49 = vadd.f32 %v4117_v15, %v3964_v63  ;;  %v20368_v33 = vadd.f32 %v4119_v41, %v3967_v31  ;;  %v4328_v51 = vmul.f32 %v23104_v57, %v23102_v46  ;;  %v23109_v41 = vld [vmem:[#allocation47_spill] sm:$0xff] }
 0x40e   :  { %v20372_v12 = vadd.f32 %v4120_v59, %v3966_v37  ;;  %v4427_v58 = vrot.slane %v4325_v47, 1  ;;  %v4428_v50 = vrot.slane %v4326_v30, 1  ;;  %v4430_v7 = vrot.slane %v4327_v35, 1 }
 0x40f   :  { %v4431_v5 = vrot.slane %v4328_v51, 1  ;;  %v4589_v36 = vmul.f32 %v23108_v13, %v23103_v17  ;;  %v4590_v27 = vmul.f32 %v23108_v13, %v23105_v24  ;;  %v4591_v63 = vmul.f32 %v23108_v13, %v23106_v19 }
 0x410   :  { %v4429_v31 = vsel %vm491_vm0, %v4427_v58, %v4428_v50  ;;  %v4542_v54 = vadd.f32 %v4428_v50, %v4278_v10  ;;  %v4592_v37 = vmul.f32 %v23108_v13, %v23107_v11  ;;  %v4854_v47 = vmul.f32 %v23109_v41, %v23100_v28  ;;  %v23110_v50 = vld [vmem:[#allocation48_spill] sm:$0xff] }
 0x411   :  { %v4432_v51 = vsel %vm491_vm0, %v4430_v7, %v4431_v5  ;;  %v4541_v15 = vadd.f32 %v4429_v31, %v4277_v62  ;;  %v4544_v30 = vadd.f32 %v4431_v5, %v4280_v16  ;;  %v4691_v17 = vrot.slane %v4589_v36, 1 }
 0x412   :  { %v4543_v35 = vadd.f32 %v4432_v51, %v4279_v34  ;;  %v4692_v59 = vrot.slane %v4590_v27, 1  ;;  %v4694_v24 = vrot.slane %v4591_v63, 1  ;;  %v4695_v57 = vrot.slane %v4592_v37, 1 }
 0x413   :  { %v4855_v53 = vmul.f32 %v23109_v41, %v23102_v46  ;;  %v4856_v10 = vmul.f32 %v23109_v41, %v20303_v56  ;;  %v4857_v58 = vmul.f32 %v23109_v41, %v20307_v61  ;;  %v4903_v13 = vmul.f32 %v23110_v50, %v23106_v19 }
 0x414   :  { %v4693_v62 = vsel %vm491_vm0, %v4691_v17, %v4692_v59  ;;  %v4696_v5 = vsel %vm491_vm0, %v4694_v24, %v4695_v57  ;;  %v4806_v34 = vadd.f32 %v4692_v59, %v4542_v54  ;;  %v20396_v27 = vadd.f32 %v4695_v57, %v4544_v30 }
 0x415   :  { %v4805_v16 = vadd.f32 %v4693_v62, %v4541_v15  ;;  %v20398_v7 = vadd.f32 %v4696_v5, %v4543_v35  ;;  %v4904_v36 = vmul.f32 %v23110_v50, %v23107_v11  ;;  %v4905_v63 = vmul.f32 %v23110_v50, %v20320_v9 }
 0x416   :  { %v4906_v31 = vmul.f32 %v23110_v50, %v20315_v52  ;;  %v4951_v37 = vadd.f32 %v4903_v13, %v4854_v47  ;;  %v5000_v51 = vmul.f32 %v23062_v45, %v23100_v28  ;;  %v5001_v57 = vmul.f32 %v23062_v45, %v23102_v46 }
 0x417   :  { %v4952_v54 = vadd.f32 %v4904_v36, %v4855_v53  ;;  %v4953_v15 = vadd.f32 %v4905_v63, %v4856_v10  ;;  %v5002_v30 = vmul.f32 %v23062_v45, %v20303_v56  ;;  %v5003_v17 = vmul.f32 %v23062_v45, %v20307_v61 }
 0x418   :  { %v4954_v35 = vadd.f32 %v4906_v31, %v4857_v58  ;;  %v5102_v59 = vrot.slane %v5000_v51, 1  ;;  %v5103_v24 = vrot.slane %v5001_v57, 1  ;;  %v5264_v13 = vmul.f32 %v23109_v41, %v23106_v19 }
 0x419   :  { %v5105_v47 = vrot.slane %v5002_v30, 1  ;;  %v5106_v62 = vrot.slane %v5003_v17, 1  ;;  %v5265_v5 = vmul.f32 %v23109_v41, %v23107_v11  ;;  %v5266_v53 = vmul.f32 %v23109_v41, %v20320_v9 }
 0x41a   :  { %v5104_v10 = vsel %vm491_vm0, %v5102_v59, %v5103_v24  ;;  %v5217_v36 = vadd.f32 %v5103_v24, %v4952_v54  ;;  %v5267_v63 = vmul.f32 %v23109_v41, %v20315_v52  ;;  %v5312_v58 = vmul.f32 %v23110_v50, %v23100_v28 }
 0x41b   :  { %v5107_v31 = vsel %vm491_vm0, %v5105_v47, %v5106_v62  ;;  %v5216_v51 = vadd.f32 %v5104_v10, %v4951_v37  ;;  %v5219_v57 = vadd.f32 %v5106_v62, %v4954_v35  ;;  %v5313_v30 = vmul.f32 %v23110_v50, %v23102_v46 }
 0x41c   :  { %v5218_v17 = vadd.f32 %v5107_v31, %v4953_v15  ;;  %v5314_v43 = vmul.f32 %v23110_v50, %v20303_v56  ;;  %v5315_v54 = vmul.f32 %v23110_v50, %v20307_v61  ;;  %v5414_v59 = vrot.slane %v5312_v58, 1 }
 0x41d   :  { %v5415_v24 = vrot.slane %v5313_v30, 1  ;;  %v5576_v41 = vmul.f32 %v23062_v45, %v23106_v19  ;;  %v5577_v28 = vmul.f32 %v23062_v45, %v23107_v11  ;;  %v5578_v37 = vmul.f32 %v23062_v45, %v20320_v9 }
 0x41e   :  { %v5417_v35 = vrot.slane %v5314_v43, 1  ;;  %v5418_v46 = vrot.slane %v5315_v54, 1  ;;  %v5579_v15 = vmul.f32 %v23062_v45, %v20315_v52  ;;  %v20441_v47 = vadd.f32 %v5216_v51, %v20366_v49 }
 0x41f   :  { %v5416_v62 = vsel %vm491_vm0, %v5414_v59, %v5415_v24  ;;  %v5529_v10 = vadd.f32 %v5415_v24, %v5265_v5  ;;  %v5678_v58 = vrot.slane %v5576_v41, 1  ;;  %v5679_v31 = vrot.slane %v5577_v28, 1 }
 0x420   :  { %v5419_v19 = vsel %vm491_vm0, %v5417_v35, %v5418_v46  ;;  %v5528_v30 = vadd.f32 %v5416_v62, %v5264_v13  ;;  %v5531_v11 = vadd.f32 %v5418_v46, %v5267_v63  ;;  %v5681_v50 = vrot.slane %v5578_v37, 1 }
 0x421   :  { %v5530_v32 = vadd.f32 %v5419_v19, %v5266_v53  ;;  %v5680_v43 = vsel %vm491_vm0, %v5678_v58, %v5679_v31  ;;  %v5682_v54 = vrot.slane %v5579_v15, 1  ;;  %v5793_v26 = vadd.f32 %v5679_v31, %v5529_v10 }
 0x422   :  { %v5792_v42 = vadd.f32 %v5680_v43, %v5528_v30  ;;  %v20447_v45 = vadd.f32 %v5217_v36, %v20359_v60  ;;  %v20450_v49 = vadd.f32 %v5218_v17, %v20372_v12  ;;  %v20453_v41 = vadd.f32 %v5219_v57, %v20368_v33 }
 0x423   :  { %v5683_v5 = vsel %vm491_vm0, %v5681_v50, %v5682_v54  ;;  %v5795_v13 = vadd.f32 %v5682_v54, %v5531_v11  ;;  %v20456_v63 = vadd.f32 %v5793_v26, %v4806_v34  ;;  %v5937_v53 = vmul.f32 %v22939_v18, %v20303_v56 }
 0x424   :  { %v5794_v51 = vadd.f32 %v5683_v5, %v5530_v32  ;;  %v20460_v59 = vadd.f32 %v5792_v42, %v4805_v16  ;;  %v5938_v60 = vmul.f32 %v22939_v18, %v20307_v61  ;;  %v5939_v12 = vmul.f32 %v22939_v18, %v20309_v4 }
 0x425   :  { %v20467_v33 = vadd.f32 %v5795_v13, %v20396_v27  ;;  %v5940_v50 = vmul.f32 %v22939_v18, %v20312_v3  ;;  %v5986_v26 = vmul.f32 %v22940_v22, %v20320_v9  ;;  %v5987_v32 = vmul.f32 %v22940_v22, %v20315_v52 }
 0x426   :  { %v20476_v42 = vadd.f32 %v5794_v51, %v20398_v7  ;;  %v5988_v34 = vmul.f32 %v22940_v22, %v20334_v1  ;;  %v5989_v16 = vmul.f32 %v22940_v22, %v20326_v48  ;;  %v6083_v27 = vmul.f32 %v22983_v23, %v20303_v56 }
 0x427   :  { %v6034_v36 = vadd.f32 %v5986_v26, %v5937_v53  ;;  %v6035_v57 = vadd.f32 %v5987_v32, %v5938_v60  ;;  %v6084_v17 = vmul.f32 %v22983_v23, %v20307_v61  ;;  %v6085_v24 = vmul.f32 %v22983_v23, %v20309_v4 }
 0x428   :  { %v6036_v28 = vadd.f32 %v5988_v34, %v5939_v12  ;;  %v6037_v7 = vadd.f32 %v5989_v16, %v5940_v50  ;;  %v6086_v37 = vmul.f32 %v22983_v23, %v20312_v3  ;;  %v6185_v35 = vrot.slane %v6083_v27, 1 }
 0x429   :  { %v6186_v46 = vrot.slane %v6084_v17, 1  ;;  %v6188_v15 = vrot.slane %v6085_v24, 1  ;;  %v6347_v62 = vmul.f32 %v22939_v18, %v20320_v9  ;;  %v6348_v10 = vmul.f32 %v22939_v18, %v20315_v52 }
 0x42a   :  { %v6189_v58 = vrot.slane %v6086_v37, 1  ;;  %v6349_v31 = vmul.f32 %v22939_v18, %v20334_v1  ;;  %v6350_v19 = vmul.f32 %v22939_v18, %v20326_v48  ;;  %v6395_v30 = vmul.f32 %v22940_v22, %v20303_v56 }
 0x42b   :  { %v6187_v11 = vsel %vm491_vm0, %v6185_v35, %v6186_v46  ;;  %v6300_v43 = vadd.f32 %v6186_v46, %v6035_v57  ;;  %v6396_v54 = vmul.f32 %v22940_v22, %v20307_v61  ;;  %v6397_v5 = vmul.f32 %v22940_v22, %v20309_v4 }
 0x42c   :  { %v6190_v13 = vsel %vm491_vm0, %v6188_v15, %v6189_v58  ;;  %v6299_v53 = vadd.f32 %v6187_v11, %v6034_v36  ;;  %v6302_v51 = vadd.f32 %v6189_v58, %v6037_v7  ;;  %v6398_v60 = vmul.f32 %v22940_v22, %v20312_v3 }
 0x42d   :  { %v6301_v12 = vadd.f32 %v6190_v13, %v6036_v28  ;;  %v6497_v50 = vrot.slane %v6395_v30, 1  ;;  %v6498_v26 = vrot.slane %v6396_v54, 1  ;;  %v6500_v32 = vrot.slane %v6397_v5, 1 }
 0x42e   :  { %v6501_v34 = vrot.slane %v6398_v60, 1  ;;  %v6659_v16 = vmul.f32 %v22983_v23, %v20320_v9  ;;  %v6660_v27 = vmul.f32 %v22983_v23, %v20315_v52  ;;  %v6661_v57 = vmul.f32 %v22983_v23, %v20334_v1 }
 0x42f   :  { %v6499_v36 = vsel %vm491_vm0, %v6497_v50, %v6498_v26  ;;  %v6612_v17 = vadd.f32 %v6498_v26, %v6348_v10  ;;  %v6662_v24 = vmul.f32 %v22983_v23, %v20326_v48  ;;  %v6923_v28 = vadd.f32 %v6299_v53, %v20441_v47 }
 0x430   :  { %v6502_v7 = vsel %vm491_vm0, %v6500_v32, %v6501_v34  ;;  %v6611_v37 = vadd.f32 %v6499_v36, %v6347_v62  ;;  %v6614_v35 = vadd.f32 %v6501_v34, %v6350_v19  ;;  %v6761_v46 = vrot.slane %v6659_v16, 1 }
 0x431   :  { %v6613_v15 = vadd.f32 %v6502_v7, %v6349_v31  ;;  %v6762_v58 = vrot.slane %v6660_v27, 1  ;;  %v6764_v30 = vrot.slane %v6661_v57, 1  ;;  %v6765_v11 = vrot.slane %v6662_v24, 1 }
 0x432   :  { %v6924_v54 = vadd.f32 %v6300_v43, %v20447_v45  ;;  %v6925_v5 = vadd.f32 %v6301_v12, %v20450_v49  ;;  %v6926_v10 = vadd.f32 %v6302_v51, %v20453_v41  ;;  %v7020_v13 = vadd.f32 %v22984_v55, %v6923_v28  ;;  %v14075_v51 = vld [vmem:[%s22509_s5 + $0x38] sm:$0x3] }
 0x433   :  { %v6763_v60 = vsel %vm491_vm0, %v6761_v46, %v6762_v58  ;;  %v6766_v47 = vsel %vm491_vm0, %v6764_v30, %v6765_v11  ;;  %v6876_v53 = vadd.f32 %v6762_v58, %v6612_v17  ;;  %v6878_v62 = vadd.f32 %v6765_v11, %v6614_v35  ;;  %v20553_v30 = vld [vmem:[#allocation9 + $0x140] sm:$0xff] }
 0x434   :  { %v6875_v19 = vadd.f32 %v6763_v60, %v6611_v37  ;;  %v6877_v50 = vadd.f32 %v6766_v47, %v6613_v15  ;;  %v7021_v31 = vadd.f32 %v22984_v55, %v6924_v54  ;;  %v7022_v26 = vadd.f32 %v22984_v55, %v6925_v5  ;;  %v20566_v47 = vld [vmem:[#allocation9 + $0x150] sm:$0xff] }
 0x435   :  { %v6972_v45 = vadd.f32 %v6876_v53, %v20456_v63  ;;  %v6974_v49 = vadd.f32 %v6878_v62, %v20467_v33  ;;  %v7023_v41 = vadd.f32 %v22984_v55, %v6926_v10  ;;  %v7068_v43 = vmax.f32 %v7020_v13, 0.0  ;;  %v20570_v62 = vld [vmem:[#allocation9 + $0x158] sm:$0x3f] }
 0x436   :  { %v6971_v12 = vadd.f32 %v6875_v19, %v20460_v59  ;;  %v6973_v32 = vadd.f32 %v6877_v50, %v20476_v42  ;;  %v7069_v34 = vmax.f32 %v7021_v31, 0.0  ;;  %v7070_v16 = vmax.f32 %v7022_v26, 0.0 }
 0x437   :  { %v7071_v27 = vmax.f32 %v7023_v41, 0.0  ;;  %v7117_v57 = vadd.f32 %v22984_v55, %v6972_v45  ;;  %v7119_v63 = vadd.f32 %v22984_v55, %v6974_v49  ;;  %v20538_v33 = vand.u32 4294901760, %v20178_v25  ;;  %v15493_v45 = vld [vmem:[#allocation10 + $0x140] sm:$0xff] }
 0x438   :  { %v7116_v36 = vadd.f32 %v22984_v55, %v6971_v12  ;;  %v7118_v17 = vadd.f32 %v22984_v55, %v6973_v32  ;;  %v8810_v24 = vsel %vm7259_vm2, %v14075_v51, 0  ;;  %v23112_v59 = vand.u32 4294901760, %v20084_v0  ;;  %v20557_v0 = vld [vmem:[#allocation9 + $0x148] sm:$0x3f]  ;;  %v20581_v12 = vld [vmem:[#allocation10 + $0x150] sm:$0xff] }
 0x439   :  { %23111 = vst [vmem:[#allocation35_spill] sm:$0xff] %v20538_v33  ;;  %v23113_v42 = vand.u32 4294901760, %v20086_v44  ;;  %v7165_v7 = vmax.f32 %v7117_v57, 0.0  ;;  %v7167_v37 = vmax.f32 %v7119_v63, 0.0  ;;  %v20549_v35 = vsub.f32 %v20178_v25, %v20538_v33 }
 0x43a   :  { %v20551_v46 = vand.u32 4294901760, %v8810_v24  ;;  %v7164_v15 = vmax.f32 %v7116_v36, 0.0  ;;  %v7166_v58 = vmax.f32 %v7118_v17, 0.0  ;;  %v269_v11 = vmul.f32 %v20553_v30, %v22993_v6 }
 0x43b   :  { %v15158_v28 = vpack.c.bf16 %v23113_v42, %v23112_v59  ;;  %v270_v44 = vmul.f32 %v20557_v0, %v22993_v6  ;;  %v7213_v54 = vmax.f32 %v7069_v34, %v7165_v7  ;;  %v7215_v5 = vmax.f32 %v7071_v27, %v7167_v37  ;;  %v20585_v34 = vld [vmem:[#allocation10 + $0x158] sm:$0x3f] }
 0x43c   :  { %v22791_v25 = vand.u32 4294901760, %v20549_v35  ;;  %v20563_v10 = vsub.f32 %v8810_v24, %v20551_v46  ;;  %v7212_v13 = vmax.f32 %v7068_v43, %v7164_v15  ;;  %v7214_v60 = vmax.f32 %v7070_v16, %v7166_v58  ;;  %v15494_v43 = vld [vmem:[#allocation10 + $0x148] sm:$0x3f] }
 0x43d   :  { %15159 = vmatprep.subr.bf16.mxu0 %v15158_v28  ;;  %v271_v53 = vmul.f32 %v20566_v47, %v22993_v6  ;;  %v272_v19 = vmul.f32 %v20570_v62, %v22993_v6  ;;  %v8802_v50 = vmax.f32 %v7213_v54, %v7215_v5  ;;  %v322_v49 = vmul.f32 %v15493_v45, %v22994_v40 }
 0x43e   :  { %15161 = vmatpush3.bf16.msra.mxu0 %v15158_v28  ;;  %v8885_v31 = vsub.f32 %v20549_v35, %v22791_v25  ;;  %v22790_v26 = vand.u32 4294901760, %v20563_v10  ;;  %v8801_v41 = vmax.f32 %v7212_v13, %v7214_v60  ;;  %v323_v51 = vmul.f32 %v15494_v43, %v22994_v40 }
 0x43f   :  { %15163 = vmatprep.subr.bf16.mxu0 %v20082_v29  ;;  %v324_v32 = vmul.f32 %v20581_v12, %v22994_v40  ;;  %v325_v16 = vmul.f32 %v20585_v34, %v22994_v40  ;;  %v8813_v27 = vsel %vm7266_vm1, %v8802_v50, 0  ;;  %v374_v36 = vadd.f32 %v322_v49, %v269_v11 }
 0x440   :  { %v8886_v57 = vand.u32 4294901760, %v8885_v31  ;;  %v8895_v63 = vsub.f32 %v20563_v10, %v22790_v26  ;;  %v8816_v17 = vand.u32 4294901760, %v8801_v41  ;;  %v8819_v24 = vand.u32 4294901760, %v8813_v27 }
 0x441   :  { %14773 = vmatmul.mubr.f32.vlgmr.msra.gmra.mrb[0].mxu0 %v20029_v8  ;;  %v375_v59 = vadd.f32 %v323_v51, %v270_v44  ;;  %v376_v42 = vadd.f32 %v324_v32, %v271_v53  ;;  %v377_v7 = vadd.f32 %v325_v16, %v272_v19  ;;  %v427_v37 = vmul.f32 %v20553_v30, %v23013_v14 }
 0x442   :  { %15165 = vmatpush3.bf16.msra.mxu0 %v20082_v29  ;;  %14779 = vmatprep.mubr.f32.mxu0 %v20017_v38  ;;  %v8896_v28 = vand.u32 4294901760, %v8895_v63  ;;  %v428_v15 = vmul.f32 %v20557_v0, %v23013_v14  ;;  %v20599_v58 = vpack.c.bf16 %v8819_v24, %v8816_v17  ;;  %v20601_v54 = vsub.f32 %v8801_v41, %v8816_v17 }
 0x443   :  { %14534 = vmatprep.mubr.f32.mxu1 %v8886_v57  ;;  %v20603_v29 = vsub.f32 %v8813_v27, %v8819_v24  ;;  %v429_v38 = vmul.f32 %v20566_v47, %v23013_v14  ;;  %v430_v11 = vmul.f32 %v20570_v62, %v23013_v14  ;;  %v552_v44 = vrot.slane %v427_v37, 1 }
 0x444   :  { %v553_v5 = vrot.slane %v428_v15, 1  ;;  %v714_v13 = vmul.f32 %v15493_v45, %v22993_v6  ;;  %15023 = vmatprep.subr.bf16.mxu1 %v20599_v58  ;;  %v22789_v60 = vand.u32 4294901760, %v20601_v54  ;;  %v715_v51 = vmul.f32 %v15494_v43, %v22993_v6 }
 0x445   :  { %v22788_v53 = vand.u32 4294901760, %v20603_v29  ;;  %v20615_v19 = vpack.c.bf16 %v20603_v29, %v20601_v54  ;;  %v555_v50 = vrot.slane %v429_v38, 1  ;;  %15025 = vmatpush3.bf16.msra.mxu1 %v20599_v58  ;;  %v556_v49 = vrot.slane %v430_v11, 1 }
 0x446   :  { %v554_v31 = vsel %vm491_vm0, %v552_v44, %v553_v5  ;;  %v20619_v41 = vadd.f32 %v553_v5, %v375_v59  ;;  %v8906_v32 = vsub.f32 %v20601_v54, %v22789_v60  ;;  %v716_v57 = vmul.f32 %v20581_v12, %v22993_v6 }
 0x447   :  { %v8913_v16 = vsub.f32 %v20603_v29, %v22788_v53  ;;  %v20629_v27 = vadd.f32 %v554_v31, %v374_v36  ;;  %v557_v63 = vsel %vm491_vm0, %v555_v50, %v556_v49  ;;  %v20634_v17 = vadd.f32 %v556_v49, %v377_v7 }
 0x448   :  { %v717_v24 = vmul.f32 %v20585_v34, %v22993_v6  ;;  %v766_v59 = vmul.f32 %v20553_v30, %v22994_v40  ;;  %14535 = vmatmul.mubr.f32.vlgmr.msra.gmra.mrb[0].mxu1 %v8896_v28  ;;  %v8907_v37 = vand.u32 4294901760, %v8906_v32  ;;  %v20640_v38 = vadd.f32 %v557_v63, %v376_v42 }
 0x449   :  { %14780 = vmatmul.mubr.f32.vlgmr.msra.gmra.mrb[0].mxu0 %v20029_v8  ;;  %v8914_v15 = vand.u32 4294901760, %v8913_v16  ;;  %v767_v8 = vmul.f32 %v20557_v0, %v22994_v40  ;;  %14541 = vmatprep.mubr.f32.mxu1 %v20538_v33  ;;  %v768_v36 = vmul.f32 %v20566_v47, %v22994_v40  ;;  %v769_v7 = vmul.f32 %v20570_v62, %v22994_v40 }
 0x44a   :  { %v890_v11 = vrot.slane %v766_v59, 1  ;;  %v1052_v44 = vmul.f32 %v15493_v45, %v23013_v14  ;;  %v1053_v5 = vmul.f32 %v15494_v43, %v23013_v14  ;;  %v1054_v42 = vmul.f32 %v20581_v12, %v23013_v14  ;;  %v20656_v45 = vld [vmem:[#allocation9 + $0x160] sm:$0xff] }
 0x44b   :  { %v15026_v30 = vpack.c.bf16 %v8914_v15, %v8907_v37  ;;  %v891_v28 = vrot.slane %v767_v8, 1  ;;  %v893_v50 = vrot.slane %v768_v36, 1  ;;  %v894_v0 = vrot.slane %v769_v7, 1  ;;  %v20658_v37 = vld [vmem:[#allocation9 + $0x168] sm:$0x3f]  ;;  %v20662_v7 = vld [vmem:[#allocation10 + $0x160] sm:$0xff] }
 0x44c   :  { %v1055_v31 = vmul.f32 %v20585_v34, %v23013_v14  ;;  %v1176_v49 = vrot.slane %v1052_v44, 1  ;;  %v1177_v63 = vrot.slane %v1053_v5, 1  ;;  %v1179_v59 = vrot.slane %v1054_v42, 1  ;;  %v20664_v44 = vld [vmem:[#allocation10 + $0x168] sm:$0x3f] }
 0x44d   :  { %15027 = vmatprep.subr.bf16.mxu1 %v15026_v30  ;;  %v892_v32 = vsel %vm491_vm0, %v890_v11, %v891_v28  ;;  %v1001_v16 = vadd.f32 %v891_v28, %v715_v51  ;;  %v895_v43 = vsel %vm491_vm0, %v893_v50, %v894_v0  ;;  %v1003_v8 = vadd.f32 %v894_v0, %v717_v24 }
 0x44e   :  { %15029 = vmatpush3.bf16.msra.mxu1 %v15026_v30  ;;  %v1000_v15 = vadd.f32 %v892_v32, %v714_v13  ;;  %v1180_v36 = vrot.slane %v1055_v31, 1  ;;  %v1002_v11 = vadd.f32 %v895_v43, %v716_v57  ;;  %v1178_v51 = vsel %vm491_vm0, %v1176_v49, %v1177_v63  ;;  %v14086_v13 = vld [vmem:[%s22509_s5 + $0x90] sm:$0xff] }
 0x44f   :  { %15031 = vmatprep.subr.bf16.mxu1 %v20615_v19  ;;  %v20667_v28 = vadd.f32 %v1177_v63, %v1001_v16  ;;  %v1339_v30 = vmul.f32 %v20566_v47, %v23037_v21  ;;  %v1340_v57 = vmul.f32 %v20570_v62, %v23037_v21  ;;  %v1341_v0 = vmul.f32 %v23037_v21, %v20656_v45 }
 0x450   :  { %v1181_v24 = vsel %vm491_vm0, %v1179_v59, %v1180_v36  ;;  %v20675_v5 = vadd.f32 %v1178_v51, %v1000_v15  ;;  %v20677_v42 = vadd.f32 %v1180_v36, %v1003_v8  ;;  %v1342_v31 = vmul.f32 %v23037_v21, %v20658_v37 }
 0x451   :  { %14542 = vmatmul.mubr.f32.vlgmr.msra.gmra.mrb[0].mxu1 %v20551_v46  ;;  %v20682_v50 = vadd.f32 %v1181_v24, %v1002_v11  ;;  %v1392_v49 = vmul.f32 %v20581_v12, %v23038_v2  ;;  %v1393_v32 = vmul.f32 %v20585_v34, %v23038_v2  ;;  %v1394_v16 = vmul.f32 %v23038_v2, %v20662_v7 }
 0x452   :  { %15033 = vmatpush3.bf16.msra.mxu1 %v20615_v19  ;;  %14548 = vmatprep.mubr.f32.mxu1 %v20549_v35  ;;  %v1395_v63 = vmul.f32 %v23038_v2, %v20664_v44  ;;  %v20699_v59 = vsel %vm7259_vm2, %v14086_v13, 0  ;;  %v1497_v19 = vmul.f32 %v20566_v47, %v23065_v39  ;;  %v1498_v15 = vmul.f32 %v20570_v62, %v23065_v39 }
 0x453   :  { %15035 = vmatprep.subr.bf16.mxu1 %v20599_v58  ;;  %v1444_v43 = vadd.f32 %v1392_v49, %v1339_v30  ;;  %v1499_v8 = vmul.f32 %v23065_v39, %v20656_v45  ;;  %v1445_v36 = vadd.f32 %v1393_v32, %v1340_v57  ;;  %v1446_v11 = vadd.f32 %v1394_v16, %v1341_v0 }
 0x454   :  { %v1447_v51 = vadd.f32 %v1395_v63, %v1342_v31  ;;  %v1500_v24 = vmul.f32 %v23065_v39, %v20658_v37  ;;  %v1621_v13 = vrot.slane %v1497_v19, 1  ;;  %v1622_v53 = vrot.slane %v1498_v15, 1 }
 0x455   :  { %v1624_v60 = vrot.slane %v1499_v8, 1  ;;  %v1783_v30 = vmul.f32 %v20581_v12, %v23037_v21  ;;  %v1784_v26 = vmul.f32 %v20585_v34, %v23037_v21  ;;  %v1785_v25 = vmul.f32 %v23037_v21, %v20662_v7 }
 0x456   :  { %v1625_v49 = vrot.slane %v1500_v24, 1  ;;  %v1786_v57 = vmul.f32 %v23037_v21, %v20664_v44  ;;  %v1623_v0 = vsel %vm491_vm0, %v1621_v13, %v1622_v53  ;;  %v1732_v31 = vadd.f32 %v1622_v53, %v1445_v36 }
 0x457   :  { %v1835_v32 = vmul.f32 %v20566_v47, %v23038_v2  ;;  %v1836_v16 = vmul.f32 %v20570_v62, %v23038_v2  ;;  %v1731_v19 = vadd.f32 %v1623_v0, %v1444_v43  ;;  %v1837_v8 = vmul.f32 %v23038_v2, %v20656_v45 }
 0x458   :  { %v1626_v63 = vsel %vm491_vm0, %v1624_v60, %v1625_v49  ;;  %v1734_v15 = vadd.f32 %v1625_v49, %v1447_v51  ;;  %v1838_v13 = vmul.f32 %v23038_v2, %v20658_v37  ;;  %v2121_v47 = vmul.f32 %v20581_v12, %v23065_v39 }
 0x459   :  { %14549 = vmatmul.mubr.f32.vlgmr.msra.gmra.mrb[0].mxu1 %v20563_v10  ;;  %v1733_v24 = vadd.f32 %v1626_v63, %v1446_v11  ;;  %v1959_v53 = vrot.slane %v1835_v32, 1  ;;  %v1960_v36 = vrot.slane %v1836_v16, 1  ;;  %v1962_v21 = vrot.slane %v1837_v8, 1 }
 0x45a   :  { %v2122_v62 = vmul.f32 %v20585_v34, %v23065_v39  ;;  %v2123_v60 = vmul.f32 %v23065_v39, %v20662_v7  ;;  %15037 = vmatpush3.bf16.msra.mxu1 %v20599_v58  ;;  %v23114_v43 = vand.u32 4294901760, %v20549_v35  ;;  %v1963_v51 = vrot.slane %v1838_v13, 1  ;;  %v161_v35 = vld [vmem:[#allocation9 + $0x170] sm:$0xff] }
 0x45b   :  { %v1961_v11 = vsel %vm491_vm0, %v1959_v53, %v1960_v36  ;;  %v2070_v49 = vadd.f32 %v1960_v36, %v1784_v26  ;;  %v2124_v0 = vmul.f32 %v23065_v39, %v20664_v44  ;;  %v2245_v12 = vrot.slane %v2121_v47, 1  ;;  %v162_v36 = vld [vmem:[#allocation9 + $0x178] sm:$0x3f] }
 0x45c   :  { %14555 = vmatprep.mubr.f32.mxu1 %v23114_v43  ;;  %v2069_v32 = vadd.f32 %v1961_v11, %v1783_v30  ;;  %v2246_v16 = vrot.slane %v2122_v62, 1  ;;  %v2248_v63 = vrot.slane %v2123_v60, 1  ;;  %v1964_v34 = vsel %vm491_vm0, %v1962_v21, %v1963_v51  ;;  %v218_v60 = vld [vmem:[#allocation10 + $0x178] sm:$0x3f]  ;;  %v23116_v11 = vld [vmem:[#allocation26_spill] sm:$0xff] }
 0x45d   :  { %v2072_v8 = vadd.f32 %v1963_v51, %v1786_v57  ;;  %v2249_v2 = vrot.slane %v2124_v0, 1  ;;  %v20743_v14 = vadd.f32 %v1731_v19, %v20629_v27  ;;  %v2071_v43 = vadd.f32 %v1964_v34, %v1785_v25  ;;  %v217_v57 = vld [vmem:[#allocation10 + $0x170] sm:$0xff] }
 0x45e   :  { %v2247_v53 = vsel %vm491_vm0, %v2245_v12, %v2246_v16  ;;  %v2356_v13 = vadd.f32 %v2246_v16, %v2070_v49  ;;  %v20747_v26 = vadd.f32 %v1732_v31, %v20619_v41  ;;  %v20751_v21 = vadd.f32 %v1733_v24, %v20640_v38 }
 0x45f   :  { %v2250_v30 = vsel %vm491_vm0, %v2248_v63, %v2249_v2  ;;  %v2355_v47 = vadd.f32 %v2247_v53, %v2069_v32  ;;  %v2358_v62 = vadd.f32 %v2249_v2, %v2072_v8  ;;  %v20754_v19 = vadd.f32 %v1734_v15, %v20634_v17 }
 0x460   :  { %v2357_v27 = vadd.f32 %v2250_v30, %v2071_v43  ;;  %v20757_v25 = vadd.f32 %v2356_v13, %v20667_v28  ;;  %v2512_v41 = vmul.f32 %v23000_v20, %v20656_v45  ;;  %v2513_v38 = vmul.f32 %v23000_v20, %v20658_v37 }
 0x461   :  { %v20762_v31 = vadd.f32 %v2355_v47, %v20675_v5  ;;  %v20765_v2 = vadd.f32 %v2358_v62, %v20677_v42  ;;  %v2514_v24 = vmul.f32 %v23000_v20, %v161_v35  ;;  %v23115_v17 = vand.u32 4294901760, %v20563_v10  ;;  %v23117_v10 = vld [vmem:[#allocation30_spill] sm:$0xff] }
 0x462   :  { %v20773_v28 = vadd.f32 %v2357_v27, %v20682_v50  ;;  %v2515_v15 = vmul.f32 %v23000_v20, %v162_v36  ;;  %v2565_v5 = vmul.f32 %v23116_v11, %v20662_v7  ;;  %v2566_v42 = vmul.f32 %v23116_v11, %v20664_v44 }
 0x463   :  { %14556 = vmatmul.mubr.f32.vlgmr.msra.gmra.mrb[0].mxu1 %v23115_v17  ;;  %v2567_v51 = vmul.f32 %v23116_v11, %v217_v57  ;;  %v2568_v49 = vmul.f32 %v23116_v11, %v218_v60  ;;  %v2670_v0 = vmul.f32 %v23117_v10, %v20656_v45  ;;  %v2671_v50 = vmul.f32 %v23117_v10, %v20658_v37 }
 0x464   :  { %14562 = vmatprep.mubr.f32.mxu1 %v20538_v33  ;;  %v2617_v32 = vadd.f32 %v2565_v5, %v2512_v41  ;;  %v2618_v12 = vadd.f32 %v2566_v42, %v2513_v38  ;;  %v2672_v16 = vmul.f32 %v23117_v10, %v161_v35  ;;  %v2673_v63 = vmul.f32 %v23117_v10, %v162_v36 }
 0x465   :  { %v2619_v34 = vadd.f32 %v2567_v51, %v2514_v24  ;;  %v2620_v8 = vadd.f32 %v2568_v49, %v2515_v15  ;;  %v2794_v43 = vrot.slane %v2670_v0, 1  ;;  %v2795_v53 = vrot.slane %v2671_v50, 1 }
 0x466   :  { %v2797_v13 = vrot.slane %v2672_v16, 1  ;;  %v2798_v30 = vrot.slane %v2673_v63, 1  ;;  %v2956_v47 = vmul.f32 %v23000_v20, %v20662_v7  ;;  %v2957_v62 = vmul.f32 %v23000_v20, %v20664_v44 }
 0x467   :  { %v2796_v27 = vsel %vm491_vm0, %v2794_v43, %v2795_v53  ;;  %v2905_v41 = vadd.f32 %v2795_v53, %v2618_v12  ;;  %v2958_v38 = vmul.f32 %v23000_v20, %v217_v57  ;;  %v2959_v17 = vmul.f32 %v23000_v20, %v218_v60 }
 0x468   :  { %v2799_v24 = vsel %vm491_vm0, %v2797_v13, %v2798_v30  ;;  %v2904_v15 = vadd.f32 %v2796_v27, %v2617_v32  ;;  %v2907_v5 = vadd.f32 %v2798_v30, %v2620_v8  ;;  %v3008_v42 = vmul.f32 %v23116_v11, %v20656_v45 }
 0x469   :  { %v2906_v51 = vadd.f32 %v2799_v24, %v2619_v34  ;;  %v3009_v49 = vmul.f32 %v23116_v11, %v20658_v37  ;;  %v3010_v0 = vmul.f32 %v23116_v11, %v161_v35  ;;  %v3011_v50 = vmul.f32 %v23116_v11, %v162_v36 }
 0x46a   :  { %v3132_v12 = vrot.slane %v3008_v42, 1  ;;  %v3294_v16 = vmul.f32 %v23117_v10, %v20662_v7  ;;  %v3295_v63 = vmul.f32 %v23117_v10, %v20664_v44  ;;  %v3296_v32 = vmul.f32 %v23117_v10, %v217_v57 }
 0x46b   :  { %v3133_v8 = vrot.slane %v3009_v49, 1  ;;  %v3135_v43 = vrot.slane %v3010_v0, 1  ;;  %v3136_v45 = vrot.slane %v3011_v50, 1  ;;  %v3297_v34 = vmul.f32 %v23117_v10, %v218_v60 }
 0x46c   :  { %v3418_v53 = vrot.slane %v3294_v16, 1  ;;  %v3419_v37 = vrot.slane %v3295_v63, 1  ;;  %v3421_v13 = vrot.slane %v3296_v32, 1  ;;  %v3580_v35 = vadd.f32 %v2904_v15, %v20743_v14  ;;  %v23118_v16 = vld [vmem:[#allocation20_spill] sm:$0xff] }
 0x46d   :  { %v3134_v36 = vsel %vm491_vm0, %v3132_v12, %v3133_v8  ;;  %v3137_v30 = vsel %vm491_vm0, %v3135_v43, %v3136_v45  ;;  %v3243_v7 = vadd.f32 %v3133_v8, %v2957_v62  ;;  %v3245_v27 = vadd.f32 %v3136_v45, %v2959_v17  ;;  %v23119_v45 = vld [vmem:[#allocation76_spill] sm:$0xff] }
 0x46e   :  { %v3242_v24 = vadd.f32 %v3134_v36, %v2956_v47  ;;  %v3244_v44 = vadd.f32 %v3137_v30, %v2958_v38  ;;  %v3420_v57 = vsel %vm491_vm0, %v3418_v53, %v3419_v37  ;;  %v3422_v42 = vrot.slane %v3297_v34, 1 }
 0x46f   :  { %v3529_v49 = vadd.f32 %v3419_v37, %v3243_v7  ;;  %v3581_v0 = vadd.f32 %v2905_v41, %v20747_v26  ;;  %v3582_v60 = vadd.f32 %v2906_v51, %v20751_v21  ;;  %v3583_v50 = vadd.f32 %v2907_v5, %v20754_v19 }
 0x470   :  { %v3423_v14 = vsel %vm491_vm0, %v3421_v13, %v3422_v42  ;;  %v3528_v15 = vadd.f32 %v3420_v57, %v3242_v24  ;;  %v3531_v12 = vadd.f32 %v3422_v42, %v3245_v27  ;;  %v3685_v63 = vadd.f32 %v23118_v16, %v3580_v35  ;;  %v23122_v35 = vld [vmem:[#allocation77_spill] sm:$0xff]  ;;  %v23123_v27 = vld [vmem:[#allocation78_spill] sm:$0xff]  ;;  %v23125_v57 = vld [vmem:[#allocation23_spill] sm:$0xff] }
 0x471   :  { %v3530_v62 = vadd.f32 %v3423_v14, %v3244_v44  ;;  %v3633_v47 = vadd.f32 %v3529_v49, %v20757_v25  ;;  %v3686_v38 = vadd.f32 %v23118_v16, %v3581_v0  ;;  %v3687_v17 = vadd.f32 %v23118_v16, %v3582_v60  ;;  %v23124_v44 = vld [vmem:[#allocation82_spill] sm:$0xff]  ;;  %v23126_v0 = vld [vmem:[#allocation79_spill] sm:$0xff] }
 0x472   :  { %v3632_v32 = vadd.f32 %v3528_v15, %v20762_v31  ;;  %v3635_v26 = vadd.f32 %v3531_v12, %v20765_v2  ;;  %v3688_v21 = vadd.f32 %v23118_v16, %v3583_v50  ;;  %v20824_v19 = vmax.f32 %v3685_v63, 0.0  ;;  %v23120_v2 = vld [vmem:[#allocation22_spill] sm:$0xff]  ;;  %v23127_v50 = vld [vmem:[#allocation83_spill] sm:$0xff]  ;;  %v23128_v15 = vld [vmem:[#allocation80_spill] sm:$0xff] }
 0x473   :  { %v3634_v41 = vadd.f32 %v3530_v62, %v20773_v28  ;;  %v20827_v5 = vmax.f32 %v3686_v38, 0.0  ;;  %v20829_v51 = vmax.f32 %v3687_v17, 0.0  ;;  %v3790_v25 = vadd.f32 %v23118_v16, %v3633_v47  ;;  %v23121_v28 = vld [vmem:[#allocation60_spill] sm:$0xff] }
 0x474   :  { %v20832_v8 = vmax.f32 %v3688_v21, 0.0  ;;  %v3789_v43 = vadd.f32 %v23118_v16, %v3632_v32  ;;  %v3792_v31 = vadd.f32 %v23118_v16, %v3635_v26  ;;  %v3891_v34 = vmul.f32 %v23120_v2, %v23119_v45  ;;  %v23129_v62 = vld [vmem:[#allocation24_spill] sm:$0xff] }
 0x475   :  { %v3791_v53 = vadd.f32 %v23118_v16, %v3634_v41  ;;  %v20839_v37 = vmax.f32 %v3790_v25, 0.0  ;;  %v3892_v13 = vmul.f32 %v23120_v2, %v23121_v28  ;;  %v3893_v36 = vmul.f32 %v23120_v2, %v23122_v35 }
 0x476   :  { %v20845_v30 = vmax.f32 %v3789_v43, 0.0  ;;  %v20847_v7 = vmax.f32 %v3792_v31, 0.0  ;;  %v3894_v24 = vmul.f32 %v23120_v2, %v23123_v27  ;;  %v3940_v42 = vmul.f32 %v23125_v57, %v23124_v44 }
 0x477   :  { %v20853_v49 = vmax.f32 %v3791_v53, 0.0  ;;  %v3941_v60 = vmul.f32 %v23125_v57, %v23126_v0  ;;  %v3942_v14 = vmul.f32 %v23125_v57, %v23127_v50  ;;  %v3943_v12 = vmul.f32 %v23125_v57, %v23128_v15 }
 0x478   :  { %v3988_v63 = vadd.f32 %v3940_v42, %v3891_v34  ;;  %v4037_v47 = vmul.f32 %v23129_v62, %v23119_v45  ;;  %v4038_v38 = vmul.f32 %v23129_v62, %v23121_v28  ;;  %v4039_v17 = vmul.f32 %v23129_v62, %v23122_v35 }
 0x479   :  { %v3989_v32 = vadd.f32 %v3941_v60, %v3892_v13  ;;  %v3990_v26 = vadd.f32 %v3942_v14, %v3893_v36  ;;  %v3991_v21 = vadd.f32 %v3943_v12, %v3894_v24  ;;  %v4040_v41 = vmul.f32 %v23129_v62, %v23123_v27 }
 0x47a   :  { %v4151_v25 = vrot.slane %v4037_v47, 1  ;;  %v4152_v43 = vrot.slane %v4038_v38, 1  ;;  %v4154_v31 = vrot.slane %v4039_v17, 1  ;;  %v4301_v34 = vmul.f32 %v23120_v2, %v23124_v44 }
 0x47b   :  { %v4155_v53 = vrot.slane %v4040_v41, 1  ;;  %v4302_v42 = vmul.f32 %v23120_v2, %v23126_v0  ;;  %v4303_v16 = vmul.f32 %v23120_v2, %v23127_v50  ;;  %v4304_v13 = vmul.f32 %v23120_v2, %v23128_v15 }
 0x47c   :  { %v4153_v36 = vsel %vm491_vm0, %v4151_v25, %v4152_v43  ;;  %v20878_v24 = vadd.f32 %v4152_v43, %v3989_v32  ;;  %v4349_v60 = vmul.f32 %v23125_v57, %v23119_v45  ;;  %v4350_v14 = vmul.f32 %v23125_v57, %v23121_v28 }
 0x47d   :  { %v4156_v12 = vsel %vm491_vm0, %v4154_v31, %v4155_v53  ;;  %v20885_v47 = vadd.f32 %v4153_v36, %v3988_v63  ;;  %v20887_v38 = vadd.f32 %v4155_v53, %v3991_v21  ;;  %v4351_v17 = vmul.f32 %v23125_v57, %v23122_v35 }
 0x47e   :  { %v20891_v41 = vadd.f32 %v4156_v12, %v3990_v26  ;;  %v4352_v32 = vmul.f32 %v23125_v57, %v23123_v27  ;;  %v4463_v25 = vrot.slane %v4349_v60, 1  ;;  %v4464_v43 = vrot.slane %v4350_v14, 1 }
 0x47f   :  { %v4466_v45 = vrot.slane %v4351_v17, 1  ;;  %v4613_v28 = vmul.f32 %v23129_v62, %v23124_v44  ;;  %v4614_v63 = vmul.f32 %v23129_v62, %v23126_v0  ;;  %v4615_v21 = vmul.f32 %v23129_v62, %v23127_v50  ;;  %v23130_v0 = vld [vmem:[#allocation47_spill] sm:$0xff] }
 0x480   :  { %v4465_v31 = vsel %vm491_vm0, %v4463_v25, %v4464_v43  ;;  %v4467_v53 = vrot.slane %v4352_v32, 1  ;;  %v4566_v26 = vadd.f32 %v4464_v43, %v4302_v42  ;;  %v4616_v36 = vmul.f32 %v23129_v62, %v23128_v15 }
 0x481   :  { %v4565_v12 = vadd.f32 %v4465_v31, %v4301_v34  ;;  %v4727_v60 = vrot.slane %v4613_v28, 1  ;;  %v4728_v14 = vrot.slane %v4614_v63, 1  ;;  %v4730_v17 = vrot.slane %v4615_v21, 1  ;;  %v23132_v21 = vld [vmem:[#allocation49_spill] sm:$0xff] }
 0x482   :  { %v4468_v10 = vsel %vm491_vm0, %v4466_v45, %v4467_v53  ;;  %v4568_v44 = vadd.f32 %v4467_v53, %v4304_v13  ;;  %v4731_v11 = vrot.slane %v4616_v36, 1  ;;  %v4878_v20 = vmul.f32 %v23130_v0, %v23122_v35 }
 0x483   :  { %v4567_v39 = vadd.f32 %v4468_v10, %v4303_v16  ;;  %v4729_v40 = vsel %vm491_vm0, %v4727_v60, %v4728_v14  ;;  %v20908_v25 = vadd.f32 %v4728_v14, %v4566_v26  ;;  %v4879_v42 = vmul.f32 %v23130_v0, %v23123_v27  ;;  %v23131_v16 = vld [vmem:[#allocation48_spill] sm:$0xff] }
 0x484   :  { %v4732_v34 = vsel %vm491_vm0, %v4730_v17, %v4731_v11  ;;  %v20913_v32 = vadd.f32 %v4729_v40, %v4565_v12  ;;  %v20915_v43 = vadd.f32 %v4731_v11, %v4568_v44  ;;  %v4880_v13 = vmul.f32 %v23130_v0, %v20824_v19 }
 0x485   :  { %v20919_v45 = vadd.f32 %v4732_v34, %v4567_v39  ;;  %v4881_v10 = vmul.f32 %v23130_v0, %v20827_v5  ;;  %v4927_v28 = vmul.f32 %v23131_v16, %v23127_v50  ;;  %v4928_v63 = vmul.f32 %v23131_v16, %v23128_v15 }
 0x486   :  { %v4929_v40 = vmul.f32 %v23131_v16, %v20845_v30  ;;  %v4930_v11 = vmul.f32 %v23131_v16, %v20839_v37  ;;  %v5024_v31 = vmul.f32 %v23132_v21, %v23122_v35  ;;  %v5025_v39 = vmul.f32 %v23132_v21, %v23123_v27 }
 0x487   :  { %v4975_v53 = vadd.f32 %v4927_v28, %v4878_v20  ;;  %v4976_v26 = vadd.f32 %v4928_v63, %v4879_v42  ;;  %v5026_v36 = vmul.f32 %v23132_v21, %v20824_v19  ;;  %v5027_v12 = vmul.f32 %v23132_v21, %v20827_v5 }
 0x488   :  { %v4977_v60 = vadd.f32 %v4929_v40, %v4880_v13  ;;  %v4978_v14 = vadd.f32 %v4930_v11, %v4881_v10  ;;  %v5138_v17 = vrot.slane %v5024_v31, 1  ;;  %v5139_v44 = vrot.slane %v5025_v39, 1 }
 0x489   :  { %v5141_v34 = vrot.slane %v5026_v36, 1  ;;  %v5142_v6 = vrot.slane %v5027_v12, 1  ;;  %v5288_v62 = vmul.f32 %v23130_v0, %v23127_v50  ;;  %v5289_v33 = vmul.f32 %v23130_v0, %v23128_v15 }
 0x48a   :  { %v5140_v20 = vsel %vm491_vm0, %v5138_v17, %v5139_v44  ;;  %v5241_v42 = vadd.f32 %v5139_v44, %v4976_v26  ;;  %v5290_v28 = vmul.f32 %v23130_v0, %v20845_v30  ;;  %v5291_v13 = vmul.f32 %v23130_v0, %v20839_v37 }
 0x48b   :  { %v5143_v10 = vsel %vm491_vm0, %v5141_v34, %v5142_v6  ;;  %v5240_v63 = vadd.f32 %v5140_v20, %v4975_v53  ;;  %v5243_v40 = vadd.f32 %v5142_v6, %v4978_v14  ;;  %v5336_v11 = vmul.f32 %v23131_v16, %v23122_v35 }
 0x48c   :  { %v5242_v31 = vadd.f32 %v5143_v10, %v4977_v60  ;;  %v5337_v39 = vmul.f32 %v23131_v16, %v23123_v27  ;;  %v5338_v26 = vmul.f32 %v23131_v16, %v20824_v19  ;;  %v5339_v36 = vmul.f32 %v23131_v16, %v20827_v5 }
 0x48d   :  { %v5450_v12 = vrot.slane %v5336_v11, 1  ;;  %v5600_v17 = vmul.f32 %v23132_v21, %v23127_v50  ;;  %v5601_v6 = vmul.f32 %v23132_v21, %v23128_v15  ;;  %v5602_v35 = vmul.f32 %v23132_v21, %v20845_v30 }
 0x48e   :  { %v5451_v53 = vrot.slane %v5337_v39, 1  ;;  %v5453_v60 = vrot.slane %v5338_v26, 1  ;;  %v5454_v14 = vrot.slane %v5339_v36, 1  ;;  %v5603_v27 = vmul.f32 %v23132_v21, %v20839_v37 }
 0x48f   :  { %v5714_v44 = vrot.slane %v5600_v17, 1  ;;  %v5715_v34 = vrot.slane %v5601_v6, 1  ;;  %v5717_v20 = vrot.slane %v5602_v35, 1  ;;  %v20966_v10 = vadd.f32 %v5240_v63, %v20885_v47 }
 0x490   :  { %v5452_v50 = vsel %vm491_vm0, %v5450_v12, %v5451_v53  ;;  %v5455_v11 = vsel %vm491_vm0, %v5453_v60, %v5454_v14  ;;  %v5553_v15 = vadd.f32 %v5451_v53, %v5289_v33  ;;  %v5555_v16 = vadd.f32 %v5454_v14, %v5291_v13 }
 0x491   :  { %v5552_v0 = vadd.f32 %v5452_v50, %v5288_v62  ;;  %v5554_v48 = vadd.f32 %v5455_v11, %v5290_v28  ;;  %v5716_v39 = vsel %vm491_vm0, %v5714_v44, %v5715_v34  ;;  %v5718_v26 = vrot.slane %v5603_v27, 1 }
 0x492   :  { %v5817_v36 = vadd.f32 %v5715_v34, %v5553_v15  ;;  %v20972_v21 = vadd.f32 %v5241_v42, %v20878_v24  ;;  %v20975_v17 = vadd.f32 %v5242_v31, %v20891_v41  ;;  %v20978_v47 = vadd.f32 %v5243_v40, %v20887_v38 }
 0x493   :  { %v5719_v63 = vsel %vm491_vm0, %v5717_v20, %v5718_v26  ;;  %v5816_v12 = vadd.f32 %v5716_v39, %v5552_v0  ;;  %v5819_v33 = vadd.f32 %v5718_v26, %v5555_v16  ;;  %v5961_v62 = vmul.f32 %v22939_v18, %v20824_v19 }
 0x494   :  { %v5818_v28 = vadd.f32 %v5719_v63, %v5554_v48  ;;  %v20984_v13 = vadd.f32 %v5817_v36, %v20908_v25  ;;  %v5962_v24 = vmul.f32 %v22939_v18, %v20827_v5  ;;  %v5963_v41 = vmul.f32 %v22939_v18, %v20829_v51 }
 0x495   :  { %v20991_v38 = vadd.f32 %v5816_v12, %v20913_v32  ;;  %v20994_v42 = vadd.f32 %v5819_v33, %v20915_v43  ;;  %v5964_v0 = vmul.f32 %v22939_v18, %v20832_v8  ;;  %v6010_v48 = vmul.f32 %v22940_v22, %v20845_v30 }
 0x496   :  { %v21001_v25 = vadd.f32 %v5818_v28, %v20919_v45  ;;  %v6011_v16 = vmul.f32 %v22940_v22, %v20839_v37  ;;  %v6012_v40 = vmul.f32 %v22940_v22, %v20853_v49  ;;  %v6013_v32 = vmul.f32 %v22940_v22, %v20847_v7 }
 0x497   :  { %v6058_v43 = vadd.f32 %v6010_v48, %v5961_v62  ;;  %v6107_v31 = vmul.f32 %v22983_v23, %v20824_v19  ;;  %v6108_v6 = vmul.f32 %v22983_v23, %v20827_v5  ;;  %v6109_v45 = vmul.f32 %v22983_v23, %v20829_v51 }
 0x498   :  { %v6059_v35 = vadd.f32 %v6011_v16, %v5962_v24  ;;  %v6060_v53 = vadd.f32 %v6012_v40, %v5963_v41  ;;  %v6061_v60 = vadd.f32 %v6013_v32, %v5964_v0  ;;  %v6110_v14 = vmul.f32 %v22983_v23, %v20832_v8 }
 0x499   :  { %v6221_v27 = vrot.slane %v6107_v31, 1  ;;  %v6222_v44 = vrot.slane %v6108_v6, 1  ;;  %v6224_v34 = vrot.slane %v6109_v45, 1  ;;  %v6371_v20 = vmul.f32 %v22939_v18, %v20845_v30 }
 0x49a   :  { %v6225_v50 = vrot.slane %v6110_v14, 1  ;;  %v6372_v11 = vmul.f32 %v22939_v18, %v20839_v37  ;;  %v6373_v15 = vmul.f32 %v22939_v18, %v20853_v49  ;;  %v6374_v39 = vmul.f32 %v22939_v18, %v20847_v7 }
 0x49b   :  { %v6223_v26 = vsel %vm491_vm0, %v6221_v27, %v6222_v44  ;;  %v6324_v36 = vadd.f32 %v6222_v44, %v6059_v35  ;;  %v6419_v63 = vmul.f32 %v22940_v22, %v20824_v19  ;;  %v6420_v12 = vmul.f32 %v22940_v22, %v20827_v5 }
 0x49c   :  { %v6226_v33 = vsel %vm491_vm0, %v6224_v34, %v6225_v50  ;;  %v6323_v62 = vadd.f32 %v6223_v26, %v6058_v43  ;;  %v6326_v28 = vadd.f32 %v6225_v50, %v6061_v60  ;;  %v6421_v24 = vmul.f32 %v22940_v22, %v20829_v51 }
 0x49d   :  { %v6325_v41 = vadd.f32 %v6226_v33, %v6060_v53  ;;  %v6422_v0 = vmul.f32 %v22940_v22, %v20832_v8  ;;  %v6533_v48 = vrot.slane %v6419_v63, 1  ;;  %v6534_v16 = vrot.slane %v6420_v12, 1 }
 0x49e   :  { %v6536_v40 = vrot.slane %v6421_v24, 1  ;;  %v6683_v32 = vmul.f32 %v22983_v23, %v20845_v30  ;;  %v6684_v31 = vmul.f32 %v22983_v23, %v20839_v37  ;;  %v6685_v43 = vmul.f32 %v22983_v23, %v20853_v49 }
 0x49f   :  { %v6535_v6 = vsel %vm491_vm0, %v6533_v48, %v6534_v16  ;;  %v6537_v45 = vrot.slane %v6422_v0, 1  ;;  %v6636_v35 = vadd.f32 %v6534_v16, %v6372_v11  ;;  %v6686_v53 = vmul.f32 %v22983_v23, %v20847_v7 }
 0x4a0   :  { %v6635_v60 = vadd.f32 %v6535_v6, %v6371_v20  ;;  %v6797_v14 = vrot.slane %v6683_v32, 1  ;;  %v6798_v27 = vrot.slane %v6684_v31, 1  ;;  %v6800_v44 = vrot.slane %v6685_v43, 1 }
 0x4a1   :  { %v6538_v34 = vsel %vm491_vm0, %v6536_v40, %v6537_v45  ;;  %v6638_v50 = vadd.f32 %v6537_v45, %v6374_v39  ;;  %v6801_v26 = vrot.slane %v6686_v53, 1  ;;  %v6947_v63 = vadd.f32 %v6323_v62, %v20966_v10 }
 0x4a2   :  { %v6637_v12 = vadd.f32 %v6538_v34, %v6373_v15  ;;  %v6799_v33 = vsel %vm491_vm0, %v6797_v14, %v6798_v27  ;;  %v6900_v24 = vadd.f32 %v6798_v27, %v6636_v35  ;;  %v6948_v0 = vadd.f32 %v6324_v36, %v20972_v21 }
 0x4a3   :  { %v6802_v11 = vsel %vm491_vm0, %v6800_v44, %v6801_v26  ;;  %v6899_v48 = vadd.f32 %v6799_v33, %v6635_v60  ;;  %v6902_v16 = vadd.f32 %v6801_v26, %v6638_v50  ;;  %v6949_v20 = vadd.f32 %v6325_v41, %v20975_v17 }
 0x4a4   :  { %v6901_v32 = vadd.f32 %v6802_v11, %v6637_v12  ;;  %v6950_v31 = vadd.f32 %v6326_v28, %v20978_v47  ;;  %v6996_v39 = vadd.f32 %v6900_v24, %v20984_v13  ;;  %v7044_v40 = vadd.f32 %v22984_v55, %v6947_v63  ;;  %v14087_v47 = vld [vmem:[%s22509_s5 + $0x98] sm:$0x3] }
 0x4a5   :  { %v6995_v10 = vadd.f32 %v6899_v48, %v20991_v38  ;;  %v6998_v15 = vadd.f32 %v6902_v16, %v20994_v42  ;;  %v7045_v62 = vadd.f32 %v22984_v55, %v6948_v0  ;;  %v7046_v21 = vadd.f32 %v22984_v55, %v6949_v20 }
 0x4a6   :  { %v6997_v36 = vadd.f32 %v6901_v32, %v21001_v25  ;;  %v7047_v43 = vadd.f32 %v22984_v55, %v6950_v31  ;;  %v7092_v17 = vmax.f32 %v7044_v40, 0.0  ;;  %v7141_v41 = vadd.f32 %v22984_v55, %v6996_v39 }
 0x4a7   :  { %v7093_v13 = vmax.f32 %v7045_v62, 0.0  ;;  %v7094_v28 = vmax.f32 %v7046_v21, 0.0  ;;  %v7140_v38 = vadd.f32 %v22984_v55, %v6995_v10  ;;  %v7143_v42 = vadd.f32 %v22984_v55, %v6998_v15  ;;  %v23135_v21 = vld [vmem:[#allocation81_spill] sm:$0xff] }
 0x4a8   :  { %v7095_v6 = vmax.f32 %v7047_v43, 0.0  ;;  %v7142_v45 = vadd.f32 %v22984_v55, %v6997_v36  ;;  %v7189_v35 = vmax.f32 %v7141_v41, 0.0  ;;  %v21067_v25 = vand.u32 4294901760, %v20699_v59 }
 0x4a9   :  { %v7188_v53 = vmax.f32 %v7140_v38, 0.0  ;;  %v7191_v60 = vmax.f32 %v7143_v42, 0.0  ;;  %v11918_v14 = vsel %vm7259_vm2, %v14087_v47, 0  ;;  %v23133_v27 = vand.u32 4294901760, %v20601_v54  ;;  %v23136_v38 = vld [vmem:[#allocation35_spill] sm:$0xff] }
 0x4aa   :  { %v23134_v44 = vand.u32 4294901760, %v20603_v29  ;;  %v7190_v50 = vmax.f32 %v7142_v45, 0.0  ;;  %v7237_v26 = vmax.f32 %v7093_v13, %v7189_v35  ;;  %v21076_v63 = vsub.f32 %v20699_v59, %v21067_v25  ;;  %v23137_v45 = vld [vmem:[#allocation24_spill] sm:$0xff] }
 0x4ab   :  { %v21078_v12 = vand.u32 4294901760, %v11918_v14  ;;  %v7236_v33 = vmax.f32 %v7092_v17, %v7188_v53  ;;  %v7239_v24 = vmax.f32 %v7095_v6, %v7191_v60  ;;  %v3871_v0 = vmul.f32 %v23120_v2, %v20303_v56 }
 0x4ac   :  { %v15038_v34 = vpack.c.bf16 %v23134_v44, %v23133_v27  ;;  %v3872_v54 = vmul.f32 %v23120_v2, %v20307_v61  ;;  %v7238_v11 = vmax.f32 %v7094_v28, %v7190_v50  ;;  %v11992_v29 = vand.u32 4294901760, %v21076_v63 }
 0x4ad   :  { %v21086_v48 = vsub.f32 %v11918_v14, %v21078_v12  ;;  %v3873_v59 = vmul.f32 %v23120_v2, %v20309_v4  ;;  %v11910_v16 = vmax.f32 %v7237_v26, %v7239_v24  ;;  %v3874_v20 = vmul.f32 %v23120_v2, %v20312_v3 }
 0x4ae   :  { %15039 = vmatprep.subr.bf16.mxu1 %v15038_v34  ;;  %v3920_v32 = vmul.f32 %v23125_v57, %v20320_v9  ;;  %v3921_v31 = vmul.f32 %v23125_v57, %v20315_v52  ;;  %v11909_v39 = vmax.f32 %v7236_v33, %v7238_v11  ;;  %v11993_v40 = vsub.f32 %v21076_v63, %v11992_v29 }
 0x4af   :  { %15041 = vmatpush3.bf16.msra.mxu1 %v15038_v34  ;;  %v22811_v10 = vand.u32 4294901760, %v21086_v48  ;;  %v3922_v15 = vmul.f32 %v23125_v57, %v20334_v1  ;;  %v11921_v62 = vsel %vm7266_vm1, %v11910_v16, 0  ;;  %v3923_v36 = vmul.f32 %v23125_v57, %v23135_v21 }
 0x4b0   :  { %15043 = vmatprep.subr.bf16.mxu1 %v20599_v58  ;;  %v3968_v43 = vadd.f32 %v3920_v32, %v3871_v0  ;;  %v3969_v17 = vadd.f32 %v3921_v31, %v3872_v54  ;;  %v11924_v41 = vand.u32 4294901760, %v11909_v39  ;;  %v11927_v47 = vand.u32 4294901760, %v11921_v62 }
 0x4b1   :  { %v11994_v13 = vand.u32 4294901760, %v11993_v40  ;;  %v12003_v28 = vsub.f32 %v21086_v48, %v22811_v10  ;;  %v3970_v42 = vadd.f32 %v3922_v15, %v3873_v59  ;;  %v3971_v6 = vadd.f32 %v3923_v36, %v3874_v20 }
 0x4b2   :  { %14563 = vmatmul.mubr.f32.vlgmr.msra.gmra.mrb[0].mxu1 %v20551_v46  ;;  %v4017_v35 = vmul.f32 %v23137_v45, %v20303_v56  ;;  %v4018_v53 = vmul.f32 %v23137_v45, %v20307_v61  ;;  %v21116_v60 = vpack.c.bf16 %v11927_v47, %v11924_v41  ;;  %v21118_v27 = vsub.f32 %v11909_v39, %v11924_v41 }
 0x4b3   :  { %15045 = vmatpush3.bf16.msra.mxu1 %v20599_v58  ;;  %14569 = vmatprep.mubr.f32.mxu1 %v23136_v38  ;;  %v12004_v14 = vand.u32 4294901760, %v12003_v28  ;;  %v21120_v44 = vsub.f32 %v11921_v62, %v11927_v47  ;;  %v4019_v58 = vmul.f32 %v23137_v45, %v20309_v4  ;;  %v4020_v34 = vmul.f32 %v23137_v45, %v20312_v3 }
 0x4b4   :  { %14786 = vmatprep.mubr.f32.mxu0 %v11994_v13  ;;  %v4121_v50 = vrot.slane %v4017_v35, 1  ;;  %v4122_v26 = vrot.slane %v4018_v53, 1  ;;  %15167 = vmatprep.subr.bf16.mxu0 %v21116_v60  ;;  %v22810_v33 = vand.u32 4294901760, %v21118_v27  ;;  %v4281_v54 = vmul.f32 %v23120_v2, %v20320_v9 }
 0x4b5   :  { %v22809_v24 = vand.u32 4294901760, %v21120_v44  ;;  %v15174_v0 = vpack.c.bf16 %v21120_v44, %v21118_v27  ;;  %15169 = vmatpush3.bf16.msra.mxu0 %v21116_v60  ;;  %v4124_v59 = vrot.slane %v4019_v58, 1  ;;  %v4125_v16 = vrot.slane %v4020_v34, 1 }
 0x4b6   :  { %v4123_v11 = vsel %vm491_vm0, %v4121_v50, %v4122_v26  ;;  %v21135_v20 = vadd.f32 %v4122_v26, %v3969_v17  ;;  %v12014_v32 = vsub.f32 %v21118_v27, %v22810_v33  ;;  %v4282_v40 = vmul.f32 %v23120_v2, %v20315_v52 }
 0x4b7   :  { %v12021_v31 = vsub.f32 %v21120_v44, %v22809_v24  ;;  %v21143_v39 = vadd.f32 %v4123_v11, %v3968_v43  ;;  %v4126_v15 = vsel %vm491_vm0, %v4124_v59, %v4125_v16  ;;  %v21149_v62 = vadd.f32 %v4125_v16, %v3971_v6 }
 0x4b8   :  { %v4283_v36 = vmul.f32 %v23120_v2, %v20334_v1  ;;  %v4284_v17 = vmul.f32 %v23120_v2, %v23135_v21  ;;  %14787 = vmatmul.mubr.f32.vlgmr.msra.gmra.mrb[0].mxu0 %v12004_v14  ;;  %v12015_v41 = vand.u32 4294901760, %v12014_v32  ;;  %v21155_v43 = vadd.f32 %v4126_v15, %v3970_v42 }
 0x4b9   :  { %v12022_v47 = vand.u32 4294901760, %v12021_v31  ;;  %v4329_v13 = vmul.f32 %v23125_v57, %v20303_v56  ;;  %14793 = vmatprep.mubr.f32.mxu0 %v21067_v25  ;;  %v4331_v28 = vmul.f32 %v23125_v57, %v20309_v4  ;;  %v4332_v38 = vmul.f32 %v23125_v57, %v20312_v3 }
 0x4ba   :  { %14570 = vmatmul.mubr.f32.vlgmr.msra.gmra.mrb[0].mxu1 %v20551_v46  ;;  %v4330_v46 = vmul.f32 %v23125_v57, %v20307_v61  ;;  %v4593_v6 = vmul.f32 %v23137_v45, %v20320_v9  ;;  %v4594_v53 = vmul.f32 %v23137_v45, %v20315_v52  ;;  %v4595_v56 = vmul.f32 %v23137_v45, %v20334_v1  ;;  %v23138_v9 = vld [vmem:[#allocation47_spill] sm:$0xff] }
 0x4bb   :  { %v15170_v35 = vpack.c.bf16 %v12022_v47, %v12015_v41  ;;  %v4433_v42 = vrot.slane %v4329_v13, 1  ;;  %v4436_v58 = vrot.slane %v4331_v28, 1  ;;  %v4437_v61 = vrot.slane %v4332_v38, 1 }
 0x4bc   :  { %v4434_v14 = vrot.slane %v4330_v46, 1  ;;  %v4596_v34 = vmul.f32 %v23137_v45, %v23135_v21  ;;  %v4697_v50 = vrot.slane %v4593_v6, 1  ;;  %v4698_v26 = vrot.slane %v4594_v53, 1  ;;  %v14076_v46 = vld [vmem:[%s22509_s5 + $0x40] sm:$0xff]  ;;  %v23139_v6 = vld [vmem:[#allocation54_spill] sm:$0xff] }
 0x4bd   :  { %15171 = vmatprep.subr.bf16.mxu0 %v15170_v35  ;;  %v4700_v11 = vrot.slane %v4595_v56, 1  ;;  %v4858_v59 = vmul.f32 %v23138_v9, %v20309_v4  ;;  %v4438_v52 = vsel %vm491_vm0, %v4436_v58, %v4437_v61  ;;  %v4548_v31 = vadd.f32 %v4437_v61, %v4284_v17  ;;  %v23141_v53 = vld [vmem:[#allocation48_spill] sm:$0xff]  ;;  %v23142_v61 = vld [vmem:[#allocation61_spill] sm:$0xff] }
 0x4be   :  { %15173 = vmatpush3.bf16.msra.mxu0 %v15170_v35  ;;  %v4435_v16 = vsel %vm491_vm0, %v4433_v42, %v4434_v14  ;;  %v4546_v32 = vadd.f32 %v4434_v14, %v4282_v40  ;;  %v4547_v41 = vadd.f32 %v4438_v52, %v4283_v36  ;;  %v4699_v47 = vsel %vm491_vm0, %v4697_v50, %v4698_v26  ;;  %v23140_v40 = vld [vmem:[#allocation55_spill] sm:$0xff]  ;;  %v23144_v52 = vld [vmem:[#allocation49_spill] sm:$0xff] }
 0x4bf   :  { %15175 = vmatprep.subr.bf16.mxu0 %v15174_v0  ;;  %v4545_v15 = vadd.f32 %v4435_v16, %v4281_v54  ;;  %v4701_v13 = vrot.slane %v4596_v34, 1  ;;  %v4859_v38 = vmul.f32 %v23138_v9, %v20312_v3  ;;  %v4860_v35 = vmul.f32 %v23138_v9, %v23139_v6 }
 0x4c0   :  { %v21182_v28 = vadd.f32 %v4698_v26, %v4546_v32  ;;  %v4861_v17 = vmul.f32 %v23138_v9, %v23140_v40  ;;  %v4907_v56 = vmul.f32 %v23141_v53, %v20334_v1  ;;  %v4908_v58 = vmul.f32 %v23141_v53, %v23135_v21  ;;  %v23143_v26 = vld [vmem:[#allocation62_spill] sm:$0xff] }
 0x4c1   :  { %14794 = vmatmul.mubr.f32.vlgmr.msra.gmra.mrb[0].mxu0 %v21078_v12  ;;  %v4702_v54 = vsel %vm491_vm0, %v4700_v11, %v4701_v13  ;;  %v21192_v36 = vadd.f32 %v4699_v47, %v4545_v15  ;;  %v21194_v42 = vadd.f32 %v4701_v13, %v4548_v31  ;;  %v4909_v34 = vmul.f32 %v23141_v53, %v23142_v61 }
 0x4c2   :  { %15177 = vmatpush3.bf16.msra.mxu0 %v15174_v0  ;;  %14800 = vmatprep.mubr.f32.mxu0 %v21076_v63  ;;  %v21199_v14 = vadd.f32 %v4702_v54, %v4547_v41  ;;  %v21206_v50 = vsel %vm7259_vm2, %v14076_v46, 0  ;;  %v4910_v11 = vmul.f32 %v23141_v53, %v23143_v26  ;;  %v4955_v16 = vadd.f32 %v4907_v56, %v4858_v59 }
 0x4c3   :  { %v5004_v0 = vmul.f32 %v23144_v52, %v20309_v4  ;;  %v5005_v32 = vmul.f32 %v23144_v52, %v20312_v3  ;;  %15179 = vmatprep.subr.bf16.mxu0 %v21116_v60  ;;  %v4956_v31 = vadd.f32 %v4908_v58, %v4859_v38  ;;  %v4957_v15 = vadd.f32 %v4909_v34, %v4860_v35 }
 0x4c4   :  { %v5006_v41 = vmul.f32 %v23144_v52, %v23139_v6  ;;  %v5007_v47 = vmul.f32 %v23144_v52, %v23140_v40  ;;  %v4958_v13 = vadd.f32 %v4910_v11, %v4861_v17  ;;  %v5268_v59 = vmul.f32 %v23138_v9, %v20334_v1 }
 0x4c5   :  { %v5108_v46 = vrot.slane %v5004_v0, 1  ;;  %v5109_v54 = vrot.slane %v5005_v32, 1  ;;  %v5269_v33 = vmul.f32 %v23138_v9, %v23135_v21  ;;  %v5270_v38 = vmul.f32 %v23138_v9, %v23142_v61 }
 0x4c6   :  { %v5111_v56 = vrot.slane %v5006_v41, 1  ;;  %v5112_v24 = vrot.slane %v5007_v47, 1  ;;  %v5271_v34 = vmul.f32 %v23138_v9, %v23143_v26  ;;  %v5316_v17 = vmul.f32 %v23141_v53, %v20309_v4 }
 0x4c7   :  { %v5110_v35 = vsel %vm491_vm0, %v5108_v46, %v5109_v54  ;;  %v5221_v58 = vadd.f32 %v5109_v54, %v4956_v31  ;;  %v5317_v41 = vmul.f32 %v23141_v53, %v20312_v3  ;;  %v5318_v46 = vmul.f32 %v23141_v53, %v23139_v6 }
 0x4c8   :  { %v5113_v11 = vsel %vm491_vm0, %v5111_v56, %v5112_v24  ;;  %v5220_v0 = vadd.f32 %v5110_v35, %v4955_v16  ;;  %v5223_v32 = vadd.f32 %v5112_v24, %v4958_v13  ;;  %v5319_v31 = vmul.f32 %v23141_v53, %v23140_v40 }
 0x4c9   :  { %14801 = vmatmul.mubr.f32.vlgmr.msra.gmra.mrb[0].mxu0 %v21086_v48  ;;  %v5222_v47 = vadd.f32 %v5113_v11, %v4957_v15  ;;  %v5420_v54 = vrot.slane %v5316_v17, 1  ;;  %v5421_v10 = vrot.slane %v5317_v41, 1  ;;  %v5580_v4 = vmul.f32 %v23144_v52, %v20334_v1 }
 0x4ca   :  { %v5581_v24 = vmul.f32 %v23144_v52, %v23135_v21  ;;  %v5582_v3 = vmul.f32 %v23144_v52, %v23142_v61  ;;  %15181 = vmatpush3.bf16.msra.mxu0 %v21116_v60  ;;  %14807 = vmatprep.mubr.f32.mxu0 %v11992_v29  ;;  %v5423_v16 = vrot.slane %v5318_v46, 1  ;;  %v5424_v15 = vrot.slane %v5319_v31, 1 }
 0x4cb   :  { %v5583_v13 = vmul.f32 %v23144_v52, %v23143_v26  ;;  %v21250_v56 = vadd.f32 %v5220_v0, %v21143_v39  ;;  %v5422_v1 = vsel %vm491_vm0, %v5420_v54, %v5421_v10  ;;  %v5533_v35 = vadd.f32 %v5421_v10, %v5269_v33 }
 0x4cc   :  { %v5684_v21 = vrot.slane %v5580_v4, 1  ;;  %v5685_v17 = vrot.slane %v5581_v24, 1  ;;  %v5425_v11 = vsel %vm491_vm0, %v5423_v16, %v5424_v15  ;;  %v5532_v41 = vadd.f32 %v5422_v1, %v5268_v59  ;;  %v23149_v4 = vld [vmem:[#allocation65_spill] sm:$0xff] }
 0x4cd   :  { %v5535_v53 = vadd.f32 %v5424_v15, %v5271_v34  ;;  %v5687_v9 = vrot.slane %v5582_v3, 1  ;;  %v5534_v63 = vadd.f32 %v5425_v11, %v5270_v38  ;;  %v5688_v46 = vrot.slane %v5583_v13, 1 }
 0x4ce   :  { %v5686_v29 = vsel %vm491_vm0, %v5684_v21, %v5685_v17  ;;  %v5797_v31 = vadd.f32 %v5685_v17, %v5533_v35  ;;  %v21256_v52 = vadd.f32 %v5221_v58, %v21135_v20  ;;  %v21259_v39 = vadd.f32 %v5222_v47, %v21155_v43  ;;  %v23145_v43 = vld [vmem:[#allocation56_spill] sm:$0xff]  ;;  %v23148_v47 = vld [vmem:[#allocation63_spill] sm:$0xff] }
 0x4cf   :  { %v5796_v45 = vadd.f32 %v5686_v29, %v5532_v41  ;;  %v21262_v10 = vadd.f32 %v5223_v32, %v21149_v62  ;;  %v5689_v33 = vsel %vm491_vm0, %v5687_v9, %v5688_v46  ;;  %v5799_v59 = vadd.f32 %v5688_v46, %v5535_v53 }
 0x4d0   :  { %v21266_v34 = vadd.f32 %v5797_v31, %v21182_v28  ;;  %v5941_v38 = vmul.f32 %v22939_v18, %v23139_v6  ;;  %v5798_v0 = vadd.f32 %v5689_v33, %v5534_v63  ;;  %v5942_v20 = vmul.f32 %v22939_v18, %v23140_v40  ;;  %v23147_v28 = vld [vmem:[#allocation57_spill] sm:$0xff] }
 0x4d1   :  { %v21271_v54 = vadd.f32 %v5796_v45, %v21192_v36  ;;  %v5943_v62 = vmul.f32 %v22939_v18, %v23145_v43  ;;  %v23146_v58 = vand.u32 4294901760, %v21086_v48  ;;  %v21280_v9 = vadd.f32 %v5799_v59, %v21194_v42 }
 0x4d2   :  { %v5944_v53 = vmul.f32 %v22939_v18, %v23147_v28  ;;  %v5990_v32 = vmul.f32 %v22940_v22, %v23142_v61  ;;  %v5991_v45 = vmul.f32 %v22940_v22, %v23143_v26  ;;  %v21290_v36 = vadd.f32 %v5798_v0, %v21199_v14 }
 0x4d3   :  { %14808 = vmatmul.mubr.f32.vlgmr.msra.gmra.mrb[0].mxu0 %v23146_v58  ;;  %v5992_v48 = vmul.f32 %v22940_v22, %v23148_v47  ;;  %v5993_v42 = vmul.f32 %v22940_v22, %v23149_v4  ;;  %v6087_v24 = vmul.f32 %v22983_v23, %v23139_v6  ;;  %v6088_v15 = vmul.f32 %v22983_v23, %v23140_v40 }
 0x4d4   :  { %14814 = vmatprep.mubr.f32.mxu0 %v21067_v25  ;;  %v6038_v3 = vadd.f32 %v5990_v32, %v5941_v38  ;;  %v6039_v16 = vadd.f32 %v5991_v45, %v5942_v20  ;;  %v6089_v13 = vmul.f32 %v22983_v23, %v23145_v43  ;;  %v6090_v35 = vmul.f32 %v22983_v23, %v23147_v28 }
 0x4d5   :  { %v6040_v1 = vadd.f32 %v5992_v48, %v5943_v62  ;;  %v6041_v14 = vadd.f32 %v5993_v42, %v5944_v53  ;;  %v6191_v21 = vrot.slane %v6087_v24, 1  ;;  %v6192_v17 = vrot.slane %v6088_v15, 1 }
 0x4d6   :  { %v6194_v11 = vrot.slane %v6089_v13, 1  ;;  %v6351_v41 = vmul.f32 %v22939_v18, %v23142_v61  ;;  %v6352_v63 = vmul.f32 %v22939_v18, %v23143_v26  ;;  %v6195_v29 = vrot.slane %v6090_v35, 1 }
 0x4d7   :  { %v6353_v46 = vmul.f32 %v22939_v18, %v23148_v47  ;;  %v6354_v31 = vmul.f32 %v22939_v18, %v23149_v4  ;;  %v6399_v33 = vmul.f32 %v22940_v22, %v23139_v6  ;;  %v6193_v59 = vsel %vm491_vm0, %v6191_v21, %v6192_v17 }
 0x4d8   :  { %v6304_v38 = vadd.f32 %v6192_v17, %v6039_v16  ;;  %v6400_v0 = vmul.f32 %v22940_v22, %v23140_v40  ;;  %v6401_v20 = vmul.f32 %v22940_v22, %v23145_v43  ;;  %v6196_v62 = vsel %vm491_vm0, %v6194_v11, %v6195_v29 }
 0x4d9   :  { %v6303_v58 = vadd.f32 %v6193_v59, %v6038_v3  ;;  %v6306_v53 = vadd.f32 %v6195_v29, %v6041_v14  ;;  %v6402_v32 = vmul.f32 %v22940_v22, %v23147_v28  ;;  %v6305_v45 = vadd.f32 %v6196_v62, %v6040_v1  ;;  %v14077_v62 = vld [vmem:[%s22509_s5 + $0x48] sm:$0x3] }
 0x4da   :  { %v6503_v48 = vrot.slane %v6399_v33, 1  ;;  %v6504_v42 = vrot.slane %v6400_v0, 1  ;;  %v6506_v6 = vrot.slane %v6401_v20, 1  ;;  %v6663_v16 = vmul.f32 %v22983_v23, %v23142_v61 }
 0x4db   :  { %v6507_v24 = vrot.slane %v6402_v32, 1  ;;  %v6664_v40 = vmul.f32 %v22983_v23, %v23143_v26  ;;  %v6665_v43 = vmul.f32 %v22983_v23, %v23148_v47  ;;  %v6666_v28 = vmul.f32 %v22983_v23, %v23149_v4 }
 0x4dc   :  { %v6505_v3 = vsel %vm491_vm0, %v6503_v48, %v6504_v42  ;;  %v6616_v15 = vadd.f32 %v6504_v42, %v6352_v63  ;;  %v6927_v13 = vadd.f32 %v6303_v58, %v21250_v56  ;;  %v6767_v21 = vrot.slane %v6663_v16, 1 }
 0x4dd   :  { %v6508_v1 = vsel %vm491_vm0, %v6506_v6, %v6507_v24  ;;  %v6615_v14 = vadd.f32 %v6505_v3, %v6351_v41  ;;  %v6618_v35 = vadd.f32 %v6507_v24, %v6354_v31  ;;  %v6768_v17 = vrot.slane %v6664_v40, 1 }
 0x4de   :  { %v6617_v61 = vadd.f32 %v6508_v1, %v6353_v46  ;;  %v6770_v11 = vrot.slane %v6665_v43, 1  ;;  %v6771_v26 = vrot.slane %v6666_v28, 1  ;;  %v6928_v29 = vadd.f32 %v6304_v38, %v21256_v52 }
 0x4df   :  { %v6929_v47 = vadd.f32 %v6305_v45, %v21259_v39  ;;  %v6930_v63 = vadd.f32 %v6306_v53, %v21262_v10  ;;  %v7024_v33 = vadd.f32 %v22984_v55, %v6927_v13  ;;  %v6769_v4 = vsel %vm491_vm0, %v6767_v21, %v6768_v17 }
 0x4e0   :  { %v6772_v56 = vsel %vm491_vm0, %v6770_v11, %v6771_v26  ;;  %v6880_v59 = vadd.f32 %v6768_v17, %v6616_v15  ;;  %v6882_v41 = vadd.f32 %v6771_v26, %v6618_v35  ;;  %v6879_v31 = vadd.f32 %v6769_v4, %v6615_v14  ;;  %v21367_v14 = vld [vmem:[#allocation9 + $0x160] sm:$0xff]  ;;  %v23153_v35 = vld [vmem:[#allocation18_spill] sm:$0xff] }
 0x4e1   :  { %v6881_v0 = vadd.f32 %v6772_v56, %v6617_v61  ;;  %v7025_v46 = vadd.f32 %v22984_v55, %v6928_v29  ;;  %v7026_v20 = vadd.f32 %v22984_v55, %v6929_v47  ;;  %v7027_v10 = vadd.f32 %v22984_v55, %v6930_v63  ;;  %v21380_v47 = vld [vmem:[#allocation9 + $0x170] sm:$0xff] }
 0x4e2   :  { %v6976_v52 = vadd.f32 %v6880_v59, %v21266_v34  ;;  %v6978_v39 = vadd.f32 %v6882_v41, %v21280_v9  ;;  %v7072_v38 = vmax.f32 %v7024_v33, 0.0  ;;  %v6975_v58 = vadd.f32 %v6879_v31, %v21271_v54  ;;  %v21384_v33 = vld [vmem:[#allocation9 + $0x178] sm:$0x3f]  ;;  %v15501_v31 = vld [vmem:[#allocation10 + $0x160] sm:$0xff] }
 0x4e3   :  { %v6977_v53 = vadd.f32 %v6881_v0, %v21290_v36  ;;  %v7073_v32 = vmax.f32 %v7025_v46, 0.0  ;;  %v7074_v45 = vmax.f32 %v7026_v20, 0.0  ;;  %v7075_v48 = vmax.f32 %v7027_v10, 0.0  ;;  %v23154_v0 = vld [vmem:[#allocation19_spill] sm:$0xff]  ;;  %v21395_v10 = vld [vmem:[#allocation10 + $0x170] sm:$0xff] }
 0x4e4   :  { %v7121_v42 = vadd.f32 %v22984_v55, %v6976_v52  ;;  %v7123_v34 = vadd.f32 %v22984_v55, %v6978_v39  ;;  %v21352_v9 = vand.u32 4294901760, %v21206_v50  ;;  %v7120_v6 = vadd.f32 %v22984_v55, %v6975_v58  ;;  %v15502_v52 = vld [vmem:[#allocation10 + $0x168] sm:$0x3f] }
 0x4e5   :  { %v7122_v24 = vadd.f32 %v22984_v55, %v6977_v53  ;;  %v9328_v16 = vsel %vm7259_vm2, %v14077_v62, 0  ;;  %v23151_v54 = vand.u32 4294901760, %v21118_v27  ;;  %v23152_v36 = vand.u32 4294901760, %v21120_v44  ;;  %v21371_v27 = vld [vmem:[#allocation9 + $0x168] sm:$0x3f] }
 0x4e6   :  { %23150 = vst [vmem:[#allocation36_spill] sm:$0xff] %v21352_v9  ;;  %v7169_v43 = vmax.f32 %v7121_v42, 0.0  ;;  %v7171_v3 = vmax.f32 %v7123_v34, 0.0  ;;  %v21363_v15 = vsub.f32 %v21206_v50, %v21352_v9  ;;  %v21365_v28 = vand.u32 4294901760, %v9328_v16  ;;  %v21399_v62 = vld [vmem:[#allocation10 + $0x178] sm:$0x3f] }
 0x4e7   :  { %v15182_v40 = vpack.c.bf16 %v23152_v36, %v23151_v54  ;;  %v7168_v13 = vmax.f32 %v7120_v6, 0.0  ;;  %v7170_v1 = vmax.f32 %v7122_v24, 0.0  ;;  %v273_v21 = vmul.f32 %v21367_v14, %v23153_v35  ;;  %v23155_v36 = vld [vmem:[#allocation21_spill] sm:$0xff] }
 0x4e8   :  { %v274_v44 = vmul.f32 %v21371_v27, %v23153_v35  ;;  %v7217_v61 = vmax.f32 %v7073_v32, %v7169_v43  ;;  %v7219_v17 = vmax.f32 %v7075_v48, %v7171_v3  ;;  %v22819_v50 = vand.u32 4294901760, %v21363_v15 }
 0x4e9   :  { %15183 = vmatprep.subr.bf16.mxu0 %v15182_v40  ;;  %v21377_v11 = vsub.f32 %v9328_v16, %v21365_v28  ;;  %v7216_v26 = vmax.f32 %v7072_v38, %v7168_v13  ;;  %v7218_v29 = vmax.f32 %v7074_v45, %v7170_v1  ;;  %v275_v63 = vmul.f32 %v21380_v47, %v23153_v35 }
 0x4ea   :  { %15185 = vmatpush3.bf16.msra.mxu0 %v15182_v40  ;;  %v276_v4 = vmul.f32 %v21384_v33, %v23153_v35  ;;  %v9320_v56 = vmax.f32 %v7217_v61, %v7219_v17  ;;  %v9403_v59 = vsub.f32 %v21363_v15, %v22819_v50  ;;  %v326_v46 = vmul.f32 %v15501_v31, %v23154_v0 }
 0x4eb   :  { %15187 = vmatprep.subr.bf16.mxu0 %v21116_v60  ;;  %v22818_v41 = vand.u32 4294901760, %v21377_v11  ;;  %v9319_v20 = vmax.f32 %v7216_v26, %v7218_v29  ;;  %v327_v39 = vmul.f32 %v15502_v52, %v23154_v0  ;;  %v328_v38 = vmul.f32 %v21395_v10, %v23154_v0 }
 0x4ec   :  { %v329_v58 = vmul.f32 %v21399_v62, %v23154_v0  ;;  %v9331_v53 = vsel %vm7266_vm1, %v9320_v56, 0  ;;  %v9404_v32 = vand.u32 4294901760, %v9403_v59  ;;  %v378_v48 = vadd.f32 %v326_v46, %v273_v21 }
 0x4ed   :  { %14815 = vmatmul.mubr.f32.vlgmr.msra.gmra.mrb[0].mxu0 %v21078_v12  ;;  %v9413_v45 = vsub.f32 %v21377_v11, %v22818_v41  ;;  %v9334_v42 = vand.u32 4294901760, %v9319_v20  ;;  %v9337_v34 = vand.u32 4294901760, %v9331_v53  ;;  %v379_v6 = vadd.f32 %v327_v39, %v274_v44 }
 0x4ee   :  { %15189 = vmatpush3.bf16.msra.mxu0 %v21116_v60  ;;  %14821 = vmatprep.mubr.f32.mxu0 %v21067_v25  ;;  %v380_v24 = vadd.f32 %v328_v38, %v275_v63  ;;  %v381_v54 = vadd.f32 %v329_v58, %v276_v4  ;;  %v431_v40 = vmul.f32 %v21367_v14, %v23155_v36 }
 0x4ef   :  { %14576 = vmatprep.mubr.f32.mxu1 %v9404_v32  ;;  %v9414_v16 = vand.u32 4294901760, %v9413_v45  ;;  %v432_v43 = vmul.f32 %v21371_v27, %v23155_v36  ;;  %v21413_v3 = vpack.c.bf16 %v9337_v34, %v9334_v42  ;;  %v21415_v13 = vsub.f32 %v9319_v20, %v9334_v42 }
 0x4f0   :  { %v21417_v60 = vsub.f32 %v9331_v53, %v9337_v34  ;;  %v433_v25 = vmul.f32 %v21380_v47, %v23155_v36  ;;  %v434_v1 = vmul.f32 %v21384_v33, %v23155_v36  ;;  %v558_v21 = vrot.slane %v431_v40, 1 }
 0x4f1   :  { %v559_v44 = vrot.slane %v432_v43, 1  ;;  %v718_v61 = vmul.f32 %v15501_v31, %v23153_v35  ;;  %15047 = vmatprep.subr.bf16.mxu1 %v21413_v3  ;;  %v22817_v17 = vand.u32 4294901760, %v21415_v13  ;;  %v719_v46 = vmul.f32 %v15502_v52, %v23153_v35 }
 0x4f2   :  { %v22816_v26 = vand.u32 4294901760, %v21417_v60  ;;  %v21429_v29 = vpack.c.bf16 %v21417_v60, %v21415_v13  ;;  %v561_v63 = vrot.slane %v433_v25, 1  ;;  %15049 = vmatpush3.bf16.msra.mxu1 %v21413_v3  ;;  %v562_v56 = vrot.slane %v434_v1, 1 }
 0x4f3   :  { %v560_v4 = vsel %vm491_vm0, %v558_v21, %v559_v44  ;;  %v21433_v59 = vadd.f32 %v559_v44, %v379_v6  ;;  %v9424_v20 = vsub.f32 %v21415_v13, %v22817_v17  ;;  %v720_v58 = vmul.f32 %v21395_v10, %v23153_v35 }
 0x4f4   :  { %v9431_v39 = vsub.f32 %v21417_v60, %v22816_v26  ;;  %v21443_v38 = vadd.f32 %v560_v4, %v378_v48  ;;  %v563_v53 = vsel %vm491_vm0, %v561_v63, %v562_v56  ;;  %v21448_v32 = vadd.f32 %v562_v56, %v381_v54 }
 0x4f5   :  { %14822 = vmatmul.mubr.f32.vlgmr.msra.gmra.mrb[0].mxu0 %v21078_v12  ;;  %v721_v45 = vmul.f32 %v21399_v62, %v23153_v35  ;;  %v770_v42 = vmul.f32 %v21367_v14, %v23154_v0  ;;  %14577 = vmatmul.mubr.f32.vlgmr.msra.gmra.mrb[0].mxu1 %v9414_v16  ;;  %v9425_v34 = vand.u32 4294901760, %v9424_v20  ;;  %v21454_v40 = vadd.f32 %v563_v53, %v380_v24  ;;  %v21472_v53 = vld [vmem:[#allocation9 + $0x188] sm:$0x3f] }
 0x4f6   :  { %v9432_v6 = vand.u32 4294901760, %v9431_v39  ;;  %v771_v12 = vmul.f32 %v21371_v27, %v23154_v0  ;;  %14583 = vmatprep.mubr.f32.mxu1 %v21352_v9  ;;  %v772_v48 = vmul.f32 %v21380_v47, %v23154_v0  ;;  %v773_v54 = vmul.f32 %v21384_v33, %v23154_v0 }
 0x4f7   :  { %v896_v43 = vrot.slane %v770_v42, 1  ;;  %v1056_v25 = vmul.f32 %v15501_v31, %v23155_v36  ;;  %v1057_v1 = vmul.f32 %v15502_v52, %v23155_v36  ;;  %v1058_v24 = vmul.f32 %v21395_v10, %v23155_v36  ;;  %v21470_v31 = vld [vmem:[#allocation9 + $0x180] sm:$0xff] }
 0x4f8   :  { %v15050_v14 = vpack.c.bf16 %v9432_v6, %v9425_v34  ;;  %v897_v16 = vrot.slane %v771_v12, 1  ;;  %v899_v21 = vrot.slane %v772_v48, 1  ;;  %v900_v27 = vrot.slane %v773_v54, 1  ;;  %v21476_v12 = vld [vmem:[#allocation10 + $0x180] sm:$0xff]  ;;  %v21478_v48 = vld [vmem:[#allocation10 + $0x188] sm:$0x3f] }
 0x4f9   :  { %v1059_v44 = vmul.f32 %v21399_v62, %v23155_v36  ;;  %v1182_v63 = vrot.slane %v1056_v25, 1  ;;  %v1183_v20 = vrot.slane %v1057_v1, 1  ;;  %v1185_v39 = vrot.slane %v1058_v24, 1  ;;  %23156 = vst [vmem:[#allocation37_spill] sm:$0xff] %v21476_v12  ;;  %23157 = vst [vmem:[#allocation38_spill] sm:$0xff] %v21478_v48  ;;  %v23158_v25 = vld [vmem:[#allocation27_spill] sm:$0xff] }
 0x4fa   :  { %15051 = vmatprep.subr.bf16.mxu1 %v15050_v14  ;;  %v898_v4 = vsel %vm491_vm0, %v896_v43, %v897_v16  ;;  %v1005_v56 = vadd.f32 %v897_v16, %v719_v46  ;;  %v901_v52 = vsel %vm491_vm0, %v899_v21, %v900_v27  ;;  %v1007_v34 = vadd.f32 %v900_v27, %v721_v45 }
 0x4fb   :  { %15053 = vmatpush3.bf16.msra.mxu1 %v15050_v14  ;;  %v1004_v42 = vadd.f32 %v898_v4, %v718_v61  ;;  %v1186_v6 = vrot.slane %v1059_v44, 1  ;;  %v1006_v54 = vadd.f32 %v901_v52, %v720_v58  ;;  %v1184_v46 = vsel %vm491_vm0, %v1182_v63, %v1183_v20  ;;  %v14088_v61 = vld [vmem:[%s22509_s5 + $0xa0] sm:$0xff] }
 0x4fc   :  { %15055 = vmatprep.subr.bf16.mxu1 %v21429_v29  ;;  %v21481_v43 = vadd.f32 %v1183_v20, %v1005_v56  ;;  %v1343_v14 = vmul.f32 %v21380_v47, %v23158_v25  ;;  %v1344_v58 = vmul.f32 %v21384_v33, %v23158_v25  ;;  %v1345_v21 = vmul.f32 %v23158_v25, %v21470_v31  ;;  %v23159_v44 = vld [vmem:[#allocation28_spill] sm:$0xff] }
 0x4fd   :  { %v1187_v45 = vsel %vm491_vm0, %v1185_v39, %v1186_v6  ;;  %v21489_v16 = vadd.f32 %v1184_v46, %v1004_v42  ;;  %v21491_v1 = vadd.f32 %v1186_v6, %v1007_v34  ;;  %v1346_v27 = vmul.f32 %v23158_v25, %v21472_v53  ;;  %v23160_v42 = vld [vmem:[#allocation29_spill] sm:$0xff] }
 0x4fe   :  { %14584 = vmatmul.mubr.f32.vlgmr.msra.gmra.mrb[0].mxu1 %v21365_v28  ;;  %v21496_v24 = vadd.f32 %v1187_v45, %v1006_v54  ;;  %v1396_v63 = vmul.f32 %v21395_v10, %v23159_v44  ;;  %v1397_v4 = vmul.f32 %v21399_v62, %v23159_v44  ;;  %v1398_v56 = vmul.f32 %v23159_v44, %v21476_v12 }
 0x4ff   :  { %15057 = vmatpush3.bf16.msra.mxu1 %v21429_v29  ;;  %14590 = vmatprep.mubr.f32.mxu1 %v21363_v15  ;;  %v1399_v20 = vmul.f32 %v23159_v44, %v21478_v48  ;;  %v21513_v39 = vsel %vm7259_vm2, %v14088_v61, 0  ;;  %v1501_v29 = vmul.f32 %v21380_v47, %v23160_v42  ;;  %v1502_v34 = vmul.f32 %v21384_v33, %v23160_v42 }
 0x500   :  { %15059 = vmatprep.subr.bf16.mxu1 %v21413_v3  ;;  %v1448_v52 = vadd.f32 %v1396_v63, %v1343_v14  ;;  %v1503_v6 = vmul.f32 %v23160_v42, %v21470_v31  ;;  %v1449_v54 = vadd.f32 %v1397_v4, %v1344_v58  ;;  %v1450_v46 = vadd.f32 %v1398_v56, %v1345_v21 }
 0x501   :  { %v1451_v45 = vadd.f32 %v1399_v20, %v1346_v27  ;;  %v1504_v26 = vmul.f32 %v23160_v42, %v21472_v53  ;;  %v1627_v61 = vrot.slane %v1501_v29, 1  ;;  %v1628_v17 = vrot.slane %v1502_v34, 1 }
 0x502   :  { %v1630_v41 = vrot.slane %v1503_v6, 1  ;;  %v1787_v14 = vmul.f32 %v21395_v10, %v23158_v25  ;;  %v1788_v50 = vmul.f32 %v21399_v62, %v23158_v25  ;;  %v1789_v36 = vmul.f32 %v23158_v25, %v21476_v12 }
 0x503   :  { %v1631_v63 = vrot.slane %v1504_v26, 1  ;;  %v1790_v58 = vmul.f32 %v23158_v25, %v21478_v48  ;;  %v1629_v21 = vsel %vm491_vm0, %v1627_v61, %v1628_v17  ;;  %v1736_v27 = vadd.f32 %v1628_v17, %v1449_v54 }
 0x504   :  { %v1839_v4 = vmul.f32 %v21380_v47, %v23159_v44  ;;  %v1840_v56 = vmul.f32 %v21384_v33, %v23159_v44  ;;  %v1735_v20 = vadd.f32 %v1629_v21, %v1448_v52  ;;  %v1841_v34 = vmul.f32 %v23159_v44, %v21470_v31 }
 0x505   :  { %v1632_v26 = vsel %vm491_vm0, %v1630_v41, %v1631_v63  ;;  %v1738_v29 = vadd.f32 %v1631_v63, %v1451_v45  ;;  %v1842_v61 = vmul.f32 %v23159_v44, %v21472_v53  ;;  %v2125_v47 = vmul.f32 %v21395_v10, %v23160_v42 }
 0x506   :  { %14591 = vmatmul.mubr.f32.vlgmr.msra.gmra.mrb[0].mxu1 %v21377_v11  ;;  %v1737_v6 = vadd.f32 %v1632_v26, %v1450_v46  ;;  %v1965_v17 = vrot.slane %v1839_v4, 1  ;;  %v1966_v54 = vrot.slane %v1840_v56, 1  ;;  %v1968_v25 = vrot.slane %v1841_v34, 1 }
 0x507   :  { %v2126_v33 = vmul.f32 %v21399_v62, %v23160_v42  ;;  %v2127_v41 = vmul.f32 %v23160_v42, %v21476_v12  ;;  %15061 = vmatpush3.bf16.msra.mxu1 %v21413_v3  ;;  %v23161_v52 = vand.u32 4294901760, %v21363_v15  ;;  %v1969_v45 = vrot.slane %v1842_v61, 1  ;;  %v21559_v15 = vld [vmem:[#allocation9 + $0x190] sm:$0xff] }
 0x508   :  { %v1967_v46 = vsel %vm491_vm0, %v1965_v17, %v1966_v54  ;;  %v2074_v63 = vadd.f32 %v1966_v54, %v1788_v50  ;;  %v2128_v21 = vmul.f32 %v23160_v42, %v21478_v48  ;;  %v2251_v10 = vrot.slane %v2125_v47, 1 }
 0x509   :  { %14597 = vmatprep.mubr.f32.mxu1 %v23161_v52  ;;  %v2073_v4 = vadd.f32 %v1967_v46, %v1787_v14  ;;  %v2252_v56 = vrot.slane %v2126_v33, 1  ;;  %v2254_v26 = vrot.slane %v2127_v41, 1  ;;  %v1970_v62 = vsel %vm491_vm0, %v1968_v25, %v1969_v45  ;;  %v21565_v14 = vld [vmem:[#allocation9 + $0x198] sm:$0x3f] }
 0x50a   :  { %v2076_v34 = vadd.f32 %v1969_v45, %v1790_v58  ;;  %v2255_v44 = vrot.slane %v2128_v21, 1  ;;  %v21557_v0 = vadd.f32 %v1735_v20, %v21443_v38  ;;  %v2075_v52 = vadd.f32 %v1970_v62, %v1789_v36  ;;  %v21571_v38 = vld [vmem:[#allocation10 + $0x190] sm:$0xff]  ;;  %v21573_v20 = vld [vmem:[#allocation10 + $0x198] sm:$0x3f] }
 0x50b   :  { %v2253_v61 = vsel %vm491_vm0, %v2251_v10, %v2252_v56  ;;  %v2360_v50 = vadd.f32 %v2252_v56, %v2074_v63  ;;  %v21563_v17 = vadd.f32 %v1736_v27, %v21433_v59  ;;  %v21569_v58 = vadd.f32 %v1737_v6, %v21454_v40  ;;  %23162 = vst [vmem:[#allocation43_spill] sm:$0xff] %v21571_v38  ;;  %v23163_v27 = vld [vmem:[#allocation25_spill] sm:$0xff] }
 0x50c   :  { %v2256_v54 = vsel %vm491_vm0, %v2254_v26, %v2255_v44  ;;  %v2359_v47 = vadd.f32 %v2253_v61, %v2073_v4  ;;  %v2362_v25 = vadd.f32 %v2255_v44, %v2076_v34  ;;  %v21576_v33 = vadd.f32 %v1738_v29, %v21448_v32 }
 0x50d   :  { %v2361_v36 = vadd.f32 %v2256_v54, %v2075_v52  ;;  %v21579_v59 = vadd.f32 %v2360_v50, %v21481_v43  ;;  %v2516_v41 = vmul.f32 %v23163_v27, %v21470_v31  ;;  %v2517_v44 = vmul.f32 %v23163_v27, %v21472_v53 }
 0x50e   :  { %v21584_v46 = vadd.f32 %v2359_v47, %v21489_v16  ;;  %v21587_v40 = vadd.f32 %v2362_v25, %v21491_v1  ;;  %v2518_v6 = vmul.f32 %v23163_v27, %v21559_v15  ;;  %v23164_v32 = vand.u32 4294901760, %v21377_v11  ;;  %v23165_v16 = vld [vmem:[#allocation26_spill] sm:$0xff] }
 0x50f   :  { %v21596_v43 = vadd.f32 %v2361_v36, %v21496_v24  ;;  %v2519_v29 = vmul.f32 %v23163_v27, %v21565_v14  ;;  %v2569_v45 = vmul.f32 %v23165_v16, %v21476_v12  ;;  %v2570_v1 = vmul.f32 %v23165_v16, %v21478_v48  ;;  %v23166_v24 = vld [vmem:[#allocation30_spill] sm:$0xff] }
 0x510   :  { %14598 = vmatmul.mubr.f32.vlgmr.msra.gmra.mrb[0].mxu1 %v23164_v32  ;;  %v2571_v63 = vmul.f32 %v23165_v16, %v21571_v38  ;;  %v2572_v11 = vmul.f32 %v23165_v16, %v21573_v20  ;;  %v2674_v21 = vmul.f32 %v23166_v24, %v21470_v31  ;;  %v2675_v4 = vmul.f32 %v23166_v24, %v21472_v53 }
 0x511   :  { %14604 = vmatprep.mubr.f32.mxu1 %v21352_v9  ;;  %v2621_v10 = vadd.f32 %v2569_v45, %v2516_v41  ;;  %v2622_v56 = vadd.f32 %v2570_v1, %v2517_v44  ;;  %v2676_v26 = vmul.f32 %v23166_v24, %v21559_v15  ;;  %v2677_v62 = vmul.f32 %v23166_v24, %v21565_v14 }
 0x512   :  { %v2623_v34 = vadd.f32 %v2571_v63, %v2518_v6  ;;  %v2624_v52 = vadd.f32 %v2572_v11, %v2519_v29  ;;  %v2800_v61 = vrot.slane %v2674_v21, 1  ;;  %v2801_v50 = vrot.slane %v2675_v4, 1 }
 0x513   :  { %v2803_v54 = vrot.slane %v2676_v26, 1  ;;  %v2804_v47 = vrot.slane %v2677_v62, 1  ;;  %v2960_v25 = vmul.f32 %v23163_v27, %v21476_v12  ;;  %v2961_v36 = vmul.f32 %v23163_v27, %v21478_v48 }
 0x514   :  { %v2802_v41 = vsel %vm491_vm0, %v2800_v61, %v2801_v50  ;;  %v2909_v44 = vadd.f32 %v2801_v50, %v2622_v56  ;;  %v2962_v32 = vmul.f32 %v23163_v27, %v21571_v38  ;;  %v2963_v6 = vmul.f32 %v23163_v27, %v21573_v20 }
 0x515   :  { %v2805_v29 = vsel %vm491_vm0, %v2803_v54, %v2804_v47  ;;  %v2908_v45 = vadd.f32 %v2802_v41, %v2621_v10  ;;  %v2911_v1 = vadd.f32 %v2804_v47, %v2624_v52  ;;  %v3012_v63 = vmul.f32 %v23165_v16, %v21470_v31 }
 0x516   :  { %v2910_v11 = vadd.f32 %v2805_v29, %v2623_v34  ;;  %v3013_v21 = vmul.f32 %v23165_v16, %v21472_v53  ;;  %v3014_v4 = vmul.f32 %v23165_v16, %v21559_v15  ;;  %v3015_v56 = vmul.f32 %v23165_v16, %v21565_v14 }
 0x517   :  { %v3138_v26 = vrot.slane %v3012_v63, 1  ;;  %v3298_v62 = vmul.f32 %v23166_v24, %v21476_v12  ;;  %v3299_v10 = vmul.f32 %v23166_v24, %v21478_v48  ;;  %v3300_v52 = vmul.f32 %v23166_v24, %v21571_v38 }
 0x518   :  { %v3139_v34 = vrot.slane %v3013_v21, 1  ;;  %v3141_v61 = vrot.slane %v3014_v4, 1  ;;  %v3142_v50 = vrot.slane %v3015_v56, 1  ;;  %v3301_v54 = vmul.f32 %v23166_v24, %v21573_v20 }
 0x519   :  { %v3424_v47 = vrot.slane %v3298_v62, 1  ;;  %v3425_v41 = vrot.slane %v3299_v10, 1  ;;  %v3427_v29 = vrot.slane %v3300_v52, 1  ;;  %v3584_v63 = vadd.f32 %v2908_v45, %v21557_v0  ;;  %v23167_v52 = vld [vmem:[#allocation20_spill] sm:$0xff] }
 0x51a   :  { %v3140_v16 = vsel %vm491_vm0, %v3138_v26, %v3139_v34  ;;  %v3143_v27 = vsel %vm491_vm0, %v3141_v61, %v3142_v50  ;;  %v3247_v42 = vadd.f32 %v3139_v34, %v2961_v36  ;;  %v3249_v48 = vadd.f32 %v3142_v50, %v2963_v6 }
 0x51b   :  { %v3246_v12 = vadd.f32 %v3140_v16, %v2960_v25  ;;  %v3248_v9 = vadd.f32 %v3143_v27, %v2962_v32  ;;  %v3426_v21 = vsel %vm491_vm0, %v3424_v47, %v3425_v41  ;;  %v3428_v4 = vrot.slane %v3301_v54, 1 }
 0x51c   :  { %v3533_v56 = vadd.f32 %v3425_v41, %v3247_v42  ;;  %v3585_v38 = vadd.f32 %v2909_v44, %v21563_v17  ;;  %v3586_v62 = vadd.f32 %v2910_v11, %v21569_v58  ;;  %v3587_v10 = vadd.f32 %v2911_v1, %v21576_v33 }
 0x51d   :  { %v3429_v0 = vsel %vm491_vm0, %v3427_v29, %v3428_v4  ;;  %v3532_v45 = vadd.f32 %v3426_v21, %v3246_v12  ;;  %v3535_v26 = vadd.f32 %v3428_v4, %v3249_v48  ;;  %v3689_v61 = vadd.f32 %v23167_v52, %v3584_v63  ;;  %v23168_v4 = vld [vmem:[#allocation24_spill] sm:$0xff] }
 0x51e   :  { %v3534_v36 = vadd.f32 %v3429_v0, %v3248_v9  ;;  %v3637_v16 = vadd.f32 %v3533_v56, %v21579_v59  ;;  %v3690_v27 = vadd.f32 %v23167_v52, %v3585_v38  ;;  %v3691_v25 = vadd.f32 %v23167_v52, %v3586_v62 }
 0x51f   :  { %v3636_v42 = vadd.f32 %v3532_v45, %v21584_v46  ;;  %v3639_v17 = vadd.f32 %v3535_v26, %v21587_v40  ;;  %v3692_v58 = vadd.f32 %v23167_v52, %v3587_v10  ;;  %v21658_v33 = vmax.f32 %v3689_v61, 0.0 }
 0x520   :  { %v3638_v12 = vadd.f32 %v3534_v36, %v21596_v43  ;;  %v21661_v48 = vmax.f32 %v3690_v27, 0.0  ;;  %v21663_v44 = vmax.f32 %v3691_v25, 0.0  ;;  %v3794_v9 = vadd.f32 %v23167_v52, %v3637_v16 }
 0x521   :  { %v21666_v59 = vmax.f32 %v3692_v58, 0.0  ;;  %v3793_v38 = vadd.f32 %v23167_v52, %v3636_v42  ;;  %v3796_v46 = vadd.f32 %v23167_v52, %v3639_v17  ;;  %v3895_v40 = vmul.f32 %v23120_v2, %v20824_v19 }
 0x522   :  { %v3795_v32 = vadd.f32 %v23167_v52, %v3638_v12  ;;  %v21673_v6 = vmax.f32 %v3794_v9, 0.0  ;;  %v3896_v43 = vmul.f32 %v23120_v2, %v20827_v5  ;;  %v3897_v1 = vmul.f32 %v23120_v2, %v20829_v51 }
 0x523   :  { %v21679_v11 = vmax.f32 %v3793_v38, 0.0  ;;  %v21681_v34 = vmax.f32 %v3796_v46, 0.0  ;;  %v3898_v50 = vmul.f32 %v23120_v2, %v20832_v8  ;;  %v3944_v54 = vmul.f32 %v23125_v57, %v20845_v30 }
 0x524   :  { %v21687_v47 = vmax.f32 %v3795_v32, 0.0  ;;  %v3945_v41 = vmul.f32 %v23125_v57, %v20839_v37  ;;  %v3946_v29 = vmul.f32 %v23125_v57, %v20853_v49  ;;  %v3947_v63 = vmul.f32 %v23125_v57, %v20847_v7 }
 0x525   :  { %v3992_v21 = vadd.f32 %v3944_v54, %v3895_v40  ;;  %v4041_v56 = vmul.f32 %v23168_v4, %v20824_v19  ;;  %v4042_v62 = vmul.f32 %v23168_v4, %v20827_v5  ;;  %v4043_v10 = vmul.f32 %v23168_v4, %v20829_v51 }
 0x526   :  { %v3993_v0 = vadd.f32 %v3945_v41, %v3896_v43  ;;  %v3994_v45 = vadd.f32 %v3946_v29, %v3897_v1  ;;  %v3995_v26 = vadd.f32 %v3947_v63, %v3898_v50  ;;  %v4044_v61 = vmul.f32 %v23168_v4, %v20832_v8 }
 0x527   :  { %v4157_v36 = vrot.slane %v4041_v56, 1  ;;  %v4158_v16 = vrot.slane %v4042_v62, 1  ;;  %v4160_v27 = vrot.slane %v4043_v10, 1  ;;  %v4305_v25 = vmul.f32 %v23120_v2, %v20845_v30 }
 0x528   :  { %v4161_v42 = vrot.slane %v4044_v61, 1  ;;  %v4306_v17 = vmul.f32 %v23120_v2, %v20839_v37  ;;  %v4307_v58 = vmul.f32 %v23120_v2, %v20853_v49  ;;  %v4308_v12 = vmul.f32 %v23120_v2, %v20847_v7 }
 0x529   :  { %v4159_v9 = vsel %vm491_vm0, %v4157_v36, %v4158_v16  ;;  %v21712_v38 = vadd.f32 %v4158_v16, %v3993_v0  ;;  %v4353_v46 = vmul.f32 %v23125_v57, %v20824_v19  ;;  %v4354_v40 = vmul.f32 %v23125_v57, %v20827_v5 }
 0x52a   :  { %v4162_v32 = vsel %vm491_vm0, %v4160_v27, %v4161_v42  ;;  %v21719_v43 = vadd.f32 %v4159_v9, %v3992_v21  ;;  %v21721_v1 = vadd.f32 %v4161_v42, %v3995_v26  ;;  %v4355_v50 = vmul.f32 %v23125_v57, %v20829_v51 }
 0x52b   :  { %v21725_v54 = vadd.f32 %v4162_v32, %v3994_v45  ;;  %v4356_v41 = vmul.f32 %v23125_v57, %v20832_v8  ;;  %v4469_v29 = vrot.slane %v4353_v46, 1  ;;  %v4470_v63 = vrot.slane %v4354_v40, 1 }
 0x52c   :  { %v4472_v19 = vrot.slane %v4355_v50, 1  ;;  %v4617_v5 = vmul.f32 %v23168_v4, %v20845_v30  ;;  %v4618_v21 = vmul.f32 %v23168_v4, %v20839_v37  ;;  %v4619_v56 = vmul.f32 %v23168_v4, %v20853_v49  ;;  %v23169_v37 = vld [vmem:[#allocation47_spill] sm:$0xff] }
 0x52d   :  { %v4471_v62 = vsel %vm491_vm0, %v4469_v29, %v4470_v63  ;;  %v4473_v10 = vrot.slane %v4356_v41, 1  ;;  %v4570_v0 = vadd.f32 %v4470_v63, %v4306_v17  ;;  %v4620_v45 = vmul.f32 %v23168_v4, %v20847_v7  ;;  %v23170_v63 = vld [vmem:[#allocation48_spill] sm:$0xff] }
 0x52e   :  { %v4569_v26 = vadd.f32 %v4471_v62, %v4305_v25  ;;  %v4733_v61 = vrot.slane %v4617_v5, 1  ;;  %v4734_v36 = vrot.slane %v4618_v21, 1  ;;  %v4736_v16 = vrot.slane %v4619_v56, 1  ;;  %v23171_v62 = vld [vmem:[#allocation49_spill] sm:$0xff] }
 0x52f   :  { %v4474_v27 = vsel %vm491_vm0, %v4472_v19, %v4473_v10  ;;  %v4572_v30 = vadd.f32 %v4473_v10, %v4308_v12  ;;  %v4737_v42 = vrot.slane %v4620_v45, 1  ;;  %v4882_v9 = vmul.f32 %v23169_v37, %v20829_v51 }
 0x530   :  { %v4571_v46 = vadd.f32 %v4474_v27, %v4307_v58  ;;  %v4735_v40 = vsel %vm491_vm0, %v4733_v61, %v4734_v36  ;;  %v21742_v32 = vadd.f32 %v4734_v36, %v4570_v0  ;;  %v4883_v17 = vmul.f32 %v23169_v37, %v20832_v8 }
 0x531   :  { %v4738_v25 = vsel %vm491_vm0, %v4736_v16, %v4737_v42  ;;  %v21747_v50 = vadd.f32 %v4735_v40, %v4569_v26  ;;  %v21749_v41 = vadd.f32 %v4737_v42, %v4572_v30  ;;  %v4884_v12 = vmul.f32 %v23169_v37, %v21658_v33 }
 0x532   :  { %v21753_v29 = vadd.f32 %v4738_v25, %v4571_v46  ;;  %v4885_v58 = vmul.f32 %v23169_v37, %v21661_v48  ;;  %v4931_v19 = vmul.f32 %v23170_v63, %v20853_v49  ;;  %v4932_v5 = vmul.f32 %v23170_v63, %v20847_v7 }
 0x533   :  { %v4933_v21 = vmul.f32 %v23170_v63, %v21679_v11  ;;  %v4934_v56 = vmul.f32 %v23170_v63, %v21673_v6  ;;  %v5028_v10 = vmul.f32 %v23171_v62, %v20829_v51  ;;  %v5029_v0 = vmul.f32 %v23171_v62, %v20832_v8 }
 0x534   :  { %v4979_v45 = vadd.f32 %v4931_v19, %v4882_v9  ;;  %v4980_v26 = vadd.f32 %v4932_v5, %v4883_v17  ;;  %v5030_v61 = vmul.f32 %v23171_v62, %v21658_v33  ;;  %v5031_v36 = vmul.f32 %v23171_v62, %v21661_v48 }
 0x535   :  { %v4981_v16 = vadd.f32 %v4933_v21, %v4884_v12  ;;  %v4982_v27 = vadd.f32 %v4934_v56, %v4885_v58  ;;  %v5144_v30 = vrot.slane %v5028_v10, 1  ;;  %v5145_v42 = vrot.slane %v5029_v0, 1 }
 0x536   :  { %v5147_v46 = vrot.slane %v5030_v61, 1  ;;  %v5148_v40 = vrot.slane %v5031_v36, 1  ;;  %v5292_v25 = vmul.f32 %v23169_v37, %v20853_v49  ;;  %v5293_v4 = vmul.f32 %v23169_v37, %v20847_v7 }
 0x537   :  { %v5146_v9 = vsel %vm491_vm0, %v5144_v30, %v5145_v42  ;;  %v5245_v17 = vadd.f32 %v5145_v42, %v4980_v26  ;;  %v5294_v19 = vmul.f32 %v23169_v37, %v21679_v11  ;;  %v5295_v12 = vmul.f32 %v23169_v37, %v21673_v6 }
 0x538   :  { %v5149_v58 = vsel %vm491_vm0, %v5147_v46, %v5148_v40  ;;  %v5244_v5 = vadd.f32 %v5146_v9, %v4979_v45  ;;  %v5247_v21 = vadd.f32 %v5148_v40, %v4982_v27  ;;  %v5340_v56 = vmul.f32 %v23170_v63, %v20829_v51 }
 0x539   :  { %v5246_v10 = vadd.f32 %v5149_v58, %v4981_v16  ;;  %v5341_v0 = vmul.f32 %v23170_v63, %v20832_v8  ;;  %v5342_v26 = vmul.f32 %v23170_v63, %v21658_v33  ;;  %v5343_v61 = vmul.f32 %v23170_v63, %v21661_v48 }
 0x53a   :  { %v5456_v36 = vrot.slane %v5340_v56, 1  ;;  %v5604_v30 = vmul.f32 %v23171_v62, %v20853_v49  ;;  %v5605_v45 = vmul.f32 %v23171_v62, %v20847_v7  ;;  %v5606_v51 = vmul.f32 %v23171_v62, %v21679_v11 }
 0x53b   :  { %v5457_v16 = vrot.slane %v5341_v0, 1  ;;  %v5459_v27 = vrot.slane %v5342_v26, 1  ;;  %v5460_v42 = vrot.slane %v5343_v61, 1  ;;  %v5607_v8 = vmul.f32 %v23171_v62, %v21673_v6 }
 0x53c   :  { %v5720_v46 = vrot.slane %v5604_v30, 1  ;;  %v5721_v40 = vrot.slane %v5605_v45, 1  ;;  %v5723_v9 = vrot.slane %v5606_v51, 1  ;;  %v21800_v58 = vadd.f32 %v5244_v5, %v21719_v43 }
 0x53d   :  { %v5458_v49 = vsel %vm491_vm0, %v5456_v36, %v5457_v16  ;;  %v5461_v56 = vsel %vm491_vm0, %v5459_v27, %v5460_v42  ;;  %v5557_v7 = vadd.f32 %v5457_v16, %v5293_v4  ;;  %v5559_v63 = vadd.f32 %v5460_v42, %v5295_v12 }
 0x53e   :  { %v5556_v37 = vadd.f32 %v5458_v49, %v5292_v25  ;;  %v5558_v57 = vadd.f32 %v5461_v56, %v5294_v19  ;;  %v5722_v0 = vsel %vm491_vm0, %v5720_v46, %v5721_v40  ;;  %v5724_v26 = vrot.slane %v5607_v8, 1 }
 0x53f   :  { %v5821_v61 = vadd.f32 %v5721_v40, %v5557_v7  ;;  %v21806_v62 = vadd.f32 %v5245_v17, %v21712_v38  ;;  %v21809_v30 = vadd.f32 %v5246_v10, %v21725_v54  ;;  %v21812_v43 = vadd.f32 %v5247_v21, %v21721_v1 }
 0x540   :  { %v5725_v5 = vsel %vm491_vm0, %v5723_v9, %v5724_v26  ;;  %v5820_v36 = vadd.f32 %v5722_v0, %v5556_v37  ;;  %v5823_v4 = vadd.f32 %v5724_v26, %v5559_v63  ;;  %v5965_v25 = vmul.f32 %v22939_v18, %v21658_v33 }
 0x541   :  { %v5822_v19 = vadd.f32 %v5725_v5, %v5558_v57  ;;  %v21818_v12 = vadd.f32 %v5821_v61, %v21742_v32  ;;  %v5966_v38 = vmul.f32 %v22939_v18, %v21661_v48  ;;  %v5967_v54 = vmul.f32 %v22939_v18, %v21663_v44 }
 0x542   :  { %v21825_v1 = vadd.f32 %v5820_v36, %v21747_v50  ;;  %v21828_v17 = vadd.f32 %v5823_v4, %v21749_v41  ;;  %v5968_v37 = vmul.f32 %v22939_v18, %v21666_v59  ;;  %v6014_v57 = vmul.f32 %v22940_v22, %v21679_v11 }
 0x543   :  { %v21835_v32 = vadd.f32 %v5822_v19, %v21753_v29  ;;  %v6015_v63 = vmul.f32 %v22940_v22, %v21673_v6  ;;  %v6016_v21 = vmul.f32 %v22940_v22, %v21687_v47  ;;  %v6017_v50 = vmul.f32 %v22940_v22, %v21681_v34 }
 0x544   :  { %v6062_v41 = vadd.f32 %v6014_v57, %v5965_v25  ;;  %v6111_v10 = vmul.f32 %v22983_v23, %v21658_v33  ;;  %v6112_v45 = vmul.f32 %v22983_v23, %v21661_v48  ;;  %v6113_v29 = vmul.f32 %v22983_v23, %v21663_v44 }
 0x545   :  { %v6063_v51 = vadd.f32 %v6015_v63, %v5966_v38  ;;  %v6064_v16 = vadd.f32 %v6016_v21, %v5967_v54  ;;  %v6065_v27 = vadd.f32 %v6017_v50, %v5968_v37  ;;  %v6114_v42 = vmul.f32 %v22983_v23, %v21666_v59 }
 0x546   :  { %v6227_v8 = vrot.slane %v6111_v10, 1  ;;  %v6228_v46 = vrot.slane %v6112_v45, 1  ;;  %v6230_v40 = vrot.slane %v6113_v29, 1  ;;  %v6375_v9 = vmul.f32 %v22939_v18, %v21679_v11 }
 0x547   :  { %v6231_v49 = vrot.slane %v6114_v42, 1  ;;  %v6376_v56 = vmul.f32 %v22939_v18, %v21673_v6  ;;  %v6377_v7 = vmul.f32 %v22939_v18, %v21687_v47  ;;  %v6378_v0 = vmul.f32 %v22939_v18, %v21681_v34 }
 0x548   :  { %v6229_v26 = vsel %vm491_vm0, %v6227_v8, %v6228_v46  ;;  %v6328_v61 = vadd.f32 %v6228_v46, %v6063_v51  ;;  %v6423_v5 = vmul.f32 %v22940_v22, %v21658_v33  ;;  %v6424_v36 = vmul.f32 %v22940_v22, %v21661_v48 }
 0x549   :  { %v6232_v4 = vsel %vm491_vm0, %v6230_v40, %v6231_v49  ;;  %v6327_v25 = vadd.f32 %v6229_v26, %v6062_v41  ;;  %v6330_v19 = vadd.f32 %v6231_v49, %v6065_v27  ;;  %v6425_v38 = vmul.f32 %v22940_v22, %v21663_v44 }
 0x54a   :  { %v6329_v54 = vadd.f32 %v6232_v4, %v6064_v16  ;;  %v6426_v37 = vmul.f32 %v22940_v22, %v21666_v59  ;;  %v6539_v57 = vrot.slane %v6423_v5, 1  ;;  %v6540_v63 = vrot.slane %v6424_v36, 1 }
 0x54b   :  { %v6542_v21 = vrot.slane %v6425_v38, 1  ;;  %v6687_v50 = vmul.f32 %v22983_v23, %v21679_v11  ;;  %v6688_v10 = vmul.f32 %v22983_v23, %v21673_v6  ;;  %v6689_v41 = vmul.f32 %v22983_v23, %v21687_v47 }
 0x54c   :  { %v6541_v45 = vsel %vm491_vm0, %v6539_v57, %v6540_v63  ;;  %v6543_v29 = vrot.slane %v6426_v37, 1  ;;  %v6640_v51 = vadd.f32 %v6540_v63, %v6376_v56  ;;  %v6690_v16 = vmul.f32 %v22983_v23, %v21681_v34 }
 0x54d   :  { %v6639_v27 = vadd.f32 %v6541_v45, %v6375_v9  ;;  %v6803_v42 = vrot.slane %v6687_v50, 1  ;;  %v6804_v8 = vrot.slane %v6688_v10, 1  ;;  %v6806_v46 = vrot.slane %v6689_v41, 1 }
 0x54e   :  { %v6544_v40 = vsel %vm491_vm0, %v6542_v21, %v6543_v29  ;;  %v6642_v49 = vadd.f32 %v6543_v29, %v6378_v0  ;;  %v6807_v26 = vrot.slane %v6690_v16, 1  ;;  %v6951_v5 = vadd.f32 %v6327_v25, %v21800_v58 }
 0x54f   :  { %v6641_v36 = vadd.f32 %v6544_v40, %v6377_v7  ;;  %v6805_v4 = vsel %vm491_vm0, %v6803_v42, %v6804_v8  ;;  %v6904_v38 = vadd.f32 %v6804_v8, %v6640_v51  ;;  %v6952_v37 = vadd.f32 %v6328_v61, %v21806_v62 }
 0x550   :  { %v6808_v56 = vsel %vm491_vm0, %v6806_v46, %v6807_v26  ;;  %v6903_v57 = vadd.f32 %v6805_v4, %v6639_v27  ;;  %v6906_v63 = vadd.f32 %v6807_v26, %v6642_v49  ;;  %v6953_v9 = vadd.f32 %v6329_v54, %v21809_v30 }
 0x551   :  { %v6905_v50 = vadd.f32 %v6808_v56, %v6641_v36  ;;  %v6954_v10 = vadd.f32 %v6330_v19, %v21812_v43  ;;  %v7000_v0 = vadd.f32 %v6904_v38, %v21818_v12  ;;  %v7048_v21 = vadd.f32 %v22984_v55, %v6951_v5  ;;  %v14089_v43 = vld [vmem:[%s22509_s5 + $0xa8] sm:$0x3] }
 0x552   :  { %v6999_v58 = vadd.f32 %v6903_v57, %v21825_v1  ;;  %v7002_v7 = vadd.f32 %v6906_v63, %v21828_v17  ;;  %v7049_v25 = vadd.f32 %v22984_v55, %v6952_v37  ;;  %v7050_v62 = vadd.f32 %v22984_v55, %v6953_v9  ;;  %v23174_v37 = vld [vmem:[#allocation72_spill] sm:$0xff]  ;;  %v23175_v57 = vld [vmem:[#allocation70_spill] sm:$0xff] }
 0x553   :  { %v7001_v61 = vadd.f32 %v6905_v50, %v21835_v32  ;;  %v7051_v41 = vadd.f32 %v22984_v55, %v6954_v10  ;;  %v7096_v30 = vmax.f32 %v7048_v21, 0.0  ;;  %v7145_v54 = vadd.f32 %v22984_v55, %v7000_v0 }
 0x554   :  { %v7097_v12 = vmax.f32 %v7049_v25, 0.0  ;;  %v7098_v19 = vmax.f32 %v7050_v62, 0.0  ;;  %v7144_v1 = vadd.f32 %v22984_v55, %v6999_v58  ;;  %v7147_v17 = vadd.f32 %v22984_v55, %v7002_v7 }
 0x555   :  { %v7099_v45 = vmax.f32 %v7051_v41, 0.0  ;;  %v7146_v29 = vadd.f32 %v22984_v55, %v7001_v61  ;;  %v7193_v51 = vmax.f32 %v7145_v54, 0.0  ;;  %v21901_v32 = vand.u32 4294901760, %v21513_v39 }
 0x556   :  { %v7192_v16 = vmax.f32 %v7144_v1, 0.0  ;;  %v7195_v27 = vmax.f32 %v7147_v17, 0.0  ;;  %v12436_v42 = vsel %vm7259_vm2, %v14089_v43, 0  ;;  %v23172_v8 = vand.u32 4294901760, %v21415_v13 }
 0x557   :  { %v23173_v46 = vand.u32 4294901760, %v21417_v60  ;;  %v7194_v49 = vmax.f32 %v7146_v29, 0.0  ;;  %v7241_v26 = vmax.f32 %v7097_v12, %v7193_v51  ;;  %v21910_v5 = vsub.f32 %v21513_v39, %v21901_v32  ;;  %v23177_v39 = vld [vmem:[#allocation71_spill] sm:$0xff]  ;;  %v23179_v51 = vld [vmem:[#allocation36_spill] sm:$0xff] }
 0x558   :  { %v21912_v36 = vand.u32 4294901760, %v12436_v42  ;;  %v7240_v4 = vmax.f32 %v7096_v30, %v7192_v16  ;;  %v7243_v38 = vmax.f32 %v7099_v45, %v7195_v27  ;;  %v9922_v56 = vand.u32 4294901760, %v23174_v37  ;;  %v23180_v16 = vld [vmem:[#allocation69_spill] sm:$0xff] }
 0x559   :  { %v15062_v40 = vpack.c.bf16 %v23173_v46, %v23172_v8  ;;  %v23176_v63 = vand.u32 4294901760, %v23175_v57  ;;  %v7242_v9 = vmax.f32 %v7098_v19, %v7194_v49  ;;  %v22840_v60 = vand.u32 4294901760, %v21910_v5  ;;  %v23182_v8 = vld [vmem:[#allocation19_spill] sm:$0xff] }
 0x55a   :  { %v21920_v50 = vsub.f32 %v12436_v42, %v21912_v36  ;;  %v23178_v10 = vand.u32 4294901760, %v23177_v39  ;;  %v12428_v21 = vmax.f32 %v7241_v26, %v7243_v38  ;;  %v21928_v7 = vpack.c.bf16 %v23177_v39, %v23175_v57  ;;  %v23181_v42 = vld [vmem:[#allocation37_spill] sm:$0xff]  ;;  %v23184_v26 = vld [vmem:[#allocation43_spill] sm:$0xff] }
 0x55b   :  { %15063 = vmatprep.subr.bf16.mxu1 %v15062_v40  ;;  %v9942_v13 = vsub.f32 %v23175_v57, %v23176_v63  ;;  %v277_v25 = vmul.f32 %v23153_v35, %v21470_v31  ;;  %v12427_v62 = vmax.f32 %v7240_v4, %v7242_v9  ;;  %v12511_v61 = vsub.f32 %v21910_v5, %v22840_v60  ;;  %v14091_v60 = vld [vmem:[%s22509_s5 + $0xb8] sm:$0x3] }
 0x55c   :  { %15065 = vmatpush3.bf16.msra.mxu1 %v15062_v40  ;;  %v9949_v0 = vsub.f32 %v23177_v39, %v23178_v10  ;;  %v22839_v41 = vand.u32 4294901760, %v21920_v50  ;;  %v12439_v54 = vsel %vm7266_vm1, %v12428_v21, 0  ;;  %v278_v43 = vmul.f32 %v23153_v35, %v21472_v53  ;;  %v23183_v40 = vld [vmem:[#allocation38_spill] sm:$0xff] }
 0x55d   :  { %15067 = vmatprep.subr.bf16.mxu1 %v21413_v3  ;;  %v9943_v58 = vand.u32 4294901760, %v9942_v13  ;;  %v279_v12 = vmul.f32 %v23153_v35, %v21559_v15  ;;  %v280_v19 = vmul.f32 %v23153_v35, %v21565_v14  ;;  %v12442_v1 = vand.u32 4294901760, %v12427_v62 }
 0x55e   :  { %v9950_v30 = vand.u32 4294901760, %v9949_v0  ;;  %v12445_v17 = vand.u32 4294901760, %v12439_v54  ;;  %v12512_v45 = vand.u32 4294901760, %v12511_v61  ;;  %v12521_v29 = vsub.f32 %v21920_v50, %v22839_v41  ;;  %v23185_v61 = vld [vmem:[#allocation21_spill] sm:$0xff] }
 0x55f   :  { %14605 = vmatmul.mubr.f32.vlgmr.msra.gmra.mrb[0].mxu1 %v21365_v28  ;;  %v330_v46 = vmul.f32 %v23182_v8, %v23181_v42  ;;  %v331_v49 = vmul.f32 %v23182_v8, %v23183_v40  ;;  %v332_v4 = vmul.f32 %v23182_v8, %v23184_v26  ;;  %v333_v13 = vmul.f32 %v23182_v8, %v21573_v20 }
 0x560   :  { %15069 = vmatpush3.bf16.msra.mxu1 %v21413_v3  ;;  %14611 = vmatprep.mubr.f32.mxu1 %v23179_v51  ;;  %v21950_v27 = vpack.c.bf16 %v9950_v30, %v9943_v58  ;;  %v21958_v38 = vpack.c.bf16 %v12445_v17, %v12442_v1  ;;  %v12522_v57 = vand.u32 4294901760, %v12521_v29  ;;  %v12530_v3 = vsub.f32 %v12427_v62, %v12442_v1 }
 0x561   :  { %15071 = vmatprep.subr.bf16.mxu1 %v23180_v16  ;;  %14828 = vmatprep.mubr.f32.mxu0 %v12512_v45  ;;  %v12537_v63 = vsub.f32 %v12439_v54, %v12445_v17  ;;  %v382_v9 = vadd.f32 %v330_v46, %v277_v25  ;;  %v383_v39 = vadd.f32 %v331_v49, %v278_v43 }
 0x562   :  { %v384_v10 = vadd.f32 %v332_v4, %v279_v12  ;;  %15191 = vmatprep.subr.bf16.mxu0 %v21958_v38  ;;  %v12531_v0 = vand.u32 4294901760, %v12530_v3  ;;  %v435_v30 = vmul.f32 %v23185_v61, %v21470_v31  ;;  %v385_v45 = vadd.f32 %v333_v13, %v280_v19  ;;  %v23186_v13 = vld [vmem:[#allocation73_spill] sm:$0xff] }
 0x563   :  { %v12538_v21 = vand.u32 4294901760, %v12537_v63  ;;  %v21963_v58 = vpack.c.bf16 %v12537_v63, %v12530_v3  ;;  %15193 = vmatpush3.bf16.msra.mxu0 %v21958_v38  ;;  %v436_v62 = vmul.f32 %v23185_v61, %v21472_v53  ;;  %v437_v25 = vmul.f32 %v23185_v61, %v21559_v15 }
 0x564   :  { %v438_v54 = vmul.f32 %v23185_v61, %v21565_v14  ;;  %v12532_v43 = vsub.f32 %v12530_v3, %v12531_v0  ;;  %v564_v17 = vrot.slane %v435_v30, 1  ;;  %v722_v19 = vmul.f32 %v23153_v35, %v23181_v42 }
 0x565   :  { %v12539_v12 = vsub.f32 %v12537_v63, %v12538_v21  ;;  %v21974_v1 = vpack.c.bf16 %v12538_v21, %v12531_v0  ;;  %v565_v29 = vrot.slane %v436_v62, 1  ;;  %v567_v51 = vrot.slane %v437_v25, 1 }
 0x566   :  { %v568_v46 = vrot.slane %v438_v54, 1  ;;  %14829 = vmatmul.mubr.f32.vlgmr.msra.gmra.mrb[0].mxu0 %v12522_v57  ;;  %v12533_v49 = vand.u32 4294901760, %v12532_v43  ;;  %v723_v3 = vmul.f32 %v23153_v35, %v23183_v40  ;;  %v724_v63 = vmul.f32 %v23153_v35, %v23184_v26 }
 0x567   :  { %14612 = vmatmul.mubr.f32.vlgmr.msra.gmra.mrb[0].mxu1 %v21365_v28  ;;  %v12540_v4 = vand.u32 4294901760, %v12539_v12  ;;  %v9932_v0 = vand.u32 4294901760, %v23186_v13  ;;  %14835 = vmatprep.mubr.f32.mxu0 %v21901_v32  ;;  %v566_v28 = vsel %vm491_vm0, %v564_v17, %v565_v29  ;;  %v21990_v21 = vadd.f32 %v565_v29, %v383_v39  ;;  %v14090_v13 = vld [vmem:[%s22509_s5 + $0xb0] sm:$0xff] }
 0x568   :  { %15073 = vmatpush3.bf16.msra.mxu1 %v23180_v16  ;;  %14618 = vmatprep.mubr.f32.mxu1 %v9922_v56  ;;  %v569_v57 = vsel %vm491_vm0, %v567_v51, %v568_v46  ;;  %v21993_v30 = vadd.f32 %v566_v28, %v382_v9  ;;  %v21997_v25 = vadd.f32 %v568_v46, %v385_v45  ;;  %v22028_v28 = vld [vmem:[#allocation9 + $0x1a8] sm:$0x3f] }
 0x569   :  { %v15194_v16 = vpack.c.bf16 %v12540_v4, %v12533_v49  ;;  %15075 = vmatprep.subr.bf16.mxu1 %v21950_v27  ;;  %v21995_v62 = vadd.f32 %v569_v57, %v384_v10  ;;  %v725_v54 = vmul.f32 %v23153_v35, %v21573_v20  ;;  %v774_v37 = vmul.f32 %v23182_v8, %v21470_v31  ;;  %v23187_v49 = vld [vmem:[#allocation27_spill] sm:$0xff] }
 0x56a   :  { %v775_v56 = vmul.f32 %v23182_v8, %v21472_v53  ;;  %v776_v39 = vmul.f32 %v23182_v8, %v21559_v15  ;;  %v777_v9 = vmul.f32 %v23182_v8, %v21565_v14  ;;  %v1060_v10 = vmul.f32 %v23185_v61, %v23181_v42 }
 0x56b   :  { %15195 = vmatprep.subr.bf16.mxu0 %v15194_v16  ;;  %v1061_v45 = vmul.f32 %v23185_v61, %v23183_v40  ;;  %v1062_v35 = vmul.f32 %v23185_v61, %v23184_v26  ;;  %v902_v31 = vrot.slane %v774_v37, 1  ;;  %v1063_v12 = vmul.f32 %v23185_v61, %v21573_v20  ;;  %v22026_v61 = vld [vmem:[#allocation9 + $0x1a0] sm:$0xff]  ;;  %v22035_v37 = vld [vmem:[#allocation10 + $0x1a8] sm:$0x3f] }
 0x56c   :  { %15197 = vmatpush3.bf16.msra.mxu0 %v15194_v16  ;;  %v903_v43 = vrot.slane %v775_v56, 1  ;;  %v905_v53 = vrot.slane %v776_v39, 1  ;;  %v906_v17 = vrot.slane %v777_v9, 1  ;;  %v1188_v8 = vrot.slane %v1060_v10, 1  ;;  %v22033_v16 = vld [vmem:[#allocation10 + $0x1a0] sm:$0xff]  ;;  %v23188_v9 = vld [vmem:[#allocation50_spill] sm:$0xff] }
 0x56d   :  { %15199 = vmatprep.subr.bf16.mxu0 %v21963_v58  ;;  %v1189_v29 = vrot.slane %v1061_v45, 1  ;;  %v1191_v51 = vrot.slane %v1062_v35, 1  ;;  %v1192_v46 = vrot.slane %v1063_v12, 1  ;;  %v1347_v4 = vmul.f32 %v23187_v49, %v21559_v15 }
 0x56e   :  { %v904_v42 = vsel %vm491_vm0, %v902_v31, %v903_v43  ;;  %v1009_v40 = vadd.f32 %v903_v43, %v723_v3  ;;  %v1011_v3 = vadd.f32 %v906_v17, %v725_v54  ;;  %v22048_v54 = vsel %vm7259_vm2, %v14090_v13, 0  ;;  %v23189_v43 = vld [vmem:[#allocation28_spill] sm:$0xff] }
 0x56f   :  { %14619 = vmatmul.mubr.f32.vlgmr.msra.gmra.mrb[0].mxu1 %v9932_v0  ;;  %14836 = vmatmul.mubr.f32.vlgmr.msra.gmra.mrb[0].mxu0 %v21912_v36  ;;  %v907_v0 = vsel %vm491_vm0, %v905_v53, %v906_v17  ;;  %v1008_v57 = vadd.f32 %v904_v42, %v722_v19  ;;  %v1190_v39 = vsel %vm491_vm0, %v1188_v8, %v1189_v29 }
 0x570   :  { %15077 = vmatpush3.bf16.msra.mxu1 %v21950_v27  ;;  %15201 = vmatpush3.bf16.msra.mxu0 %v21963_v58  ;;  %v1010_v56 = vadd.f32 %v907_v0, %v724_v63  ;;  %v1193_v27 = vsel %vm491_vm0, %v1191_v51, %v1192_v46  ;;  %v22043_v19 = vadd.f32 %v1189_v29, %v1009_v40  ;;  %v23190_v29 = vld [vmem:[#allocation29_spill] sm:$0xff] }
 0x571   :  { %14842 = vmatprep.mubr.f32.mxu0 %v21910_v5  ;;  %15203 = vmatprep.subr.bf16.mxu0 %v21958_v38  ;;  %v22041_v10 = vadd.f32 %v1190_v39, %v1008_v57  ;;  %v22045_v58 = vadd.f32 %v1192_v46, %v1011_v3  ;;  %v1348_v45 = vmul.f32 %v23187_v49, %v21565_v14 }
 0x572   :  { %14625 = vmatprep.mubr.f32.mxu1 %v23188_v9  ;;  %15079 = vmatprep.subr.bf16.mxu1 %v21928_v7  ;;  %v22051_v63 = vadd.f32 %v1193_v27, %v1010_v56  ;;  %v1349_v35 = vmul.f32 %v23187_v49, %v22026_v61  ;;  %v1350_v31 = vmul.f32 %v23187_v49, %v22028_v28  ;;  %v23191_v56 = vld [vmem:[#allocation67_spill] sm:$0xff] }
 0x573   :  { %v1400_v53 = vmul.f32 %v23189_v43, %v23184_v26  ;;  %v1401_v12 = vmul.f32 %v23189_v43, %v21573_v20  ;;  %v1402_v17 = vmul.f32 %v23189_v43, %v22033_v16  ;;  %v1403_v8 = vmul.f32 %v23189_v43, %v22035_v37 }
 0x574   :  { %v1505_v51 = vmul.f32 %v23190_v29, %v21559_v15  ;;  %v1506_v42 = vmul.f32 %v23190_v29, %v21565_v14  ;;  %v1507_v40 = vmul.f32 %v23190_v29, %v22026_v61  ;;  %v1508_v46 = vmul.f32 %v23190_v29, %v22028_v28 }
 0x575   :  { %v1452_v13 = vadd.f32 %v1400_v53, %v1347_v4  ;;  %v1453_v0 = vadd.f32 %v1401_v12, %v1348_v45  ;;  %v1454_v57 = vadd.f32 %v1402_v17, %v1349_v35  ;;  %v1455_v3 = vadd.f32 %v1403_v8, %v1350_v31  ;;  %v23193_v8 = vld [vmem:[#allocation51_spill] sm:$0xff] }
 0x576   :  { %v1633_v39 = vrot.slane %v1505_v51, 1  ;;  %v1634_v27 = vrot.slane %v1506_v42, 1  ;;  %v1636_v9 = vrot.slane %v1507_v40, 1  ;;  %v1637_v41 = vrot.slane %v1508_v46, 1 }
 0x577   :  { %14626 = vmatmul.mubr.f32.vlgmr.msra.gmra.mrb[0].mxu1 %v23191_v56  ;;  %14843 = vmatmul.mubr.f32.vlgmr.msra.gmra.mrb[0].mxu0 %v21920_v50  ;;  %v1791_v4 = vmul.f32 %v23187_v49, %v23184_v26  ;;  %v1792_v45 = vmul.f32 %v23187_v49, %v21573_v20  ;;  %v1793_v35 = vmul.f32 %v23187_v49, %v22033_v16  ;;  %v23192_v31 = vand.u32 4294901760, %v21910_v5 }
 0x578   :  { %15081 = vmatpush3.bf16.msra.mxu1 %v21928_v7  ;;  %15205 = vmatpush3.bf16.msra.mxu0 %v21958_v38  ;;  %v1635_v53 = vsel %vm491_vm0, %v1633_v39, %v1634_v27  ;;  %v1638_v12 = vsel %vm491_vm0, %v1636_v9, %v1637_v41  ;;  %v1740_v17 = vadd.f32 %v1634_v27, %v1453_v0  ;;  %v22093_v7 = vand.u32 4294901760, %v22048_v54 }
 0x579   :  { %14849 = vmatprep.mubr.f32.mxu0 %v23192_v31  ;;  %15207 = vmatprep.subr.bf16.mxu0 %v21974_v1  ;;  %v1739_v51 = vadd.f32 %v1635_v53, %v1452_v13  ;;  %v1741_v42 = vadd.f32 %v1638_v12, %v1454_v57  ;;  %v1742_v40 = vadd.f32 %v1637_v41, %v1455_v3  ;;  %v22098_v46 = vsel %vm7259_vm2, %v14091_v60, 0 }
 0x57a   :  { %14632 = vmatprep.mubr.f32.mxu1 %v23193_v8  ;;  %v1794_v5 = vmul.f32 %v23187_v49, %v22035_v37  ;;  %v1843_v56 = vmul.f32 %v23189_v43, %v21559_v15  ;;  %v1844_v0 = vmul.f32 %v23189_v43, %v21565_v14  ;;  %v1845_v39 = vmul.f32 %v23189_v43, %v22026_v61 }
 0x57b   :  { %v1846_v13 = vmul.f32 %v23189_v43, %v22028_v28  ;;  %v2129_v41 = vmul.f32 %v23190_v29, %v23184_v26  ;;  %v2130_v60 = vmul.f32 %v23190_v29, %v21573_v20  ;;  %v2131_v49 = vmul.f32 %v23190_v29, %v22033_v16  ;;  %v23194_v43 = vld [vmem:[#allocation68_spill] sm:$0xff] }
 0x57c   :  { %v1971_v57 = vrot.slane %v1843_v56, 1  ;;  %v1972_v15 = vrot.slane %v1844_v0, 1  ;;  %v1974_v3 = vrot.slane %v1845_v39, 1  ;;  %v2132_v14 = vmul.f32 %v23190_v29, %v22035_v37 }
 0x57d   :  { %v1975_v27 = vrot.slane %v1846_v13, 1  ;;  %v2257_v9 = vrot.slane %v2129_v41, 1  ;;  %v2258_v31 = vrot.slane %v2130_v60, 1  ;;  %v2260_v53 = vrot.slane %v2131_v49, 1  ;;  %v169_v41 = vld [vmem:[#allocation9 + $0x1b0] sm:$0xff] }
 0x57e   :  { %v1973_v26 = vsel %vm491_vm0, %v1971_v57, %v1972_v15  ;;  %v2078_v12 = vadd.f32 %v1972_v15, %v1792_v45  ;;  %v2261_v8 = vrot.slane %v2132_v14, 1  ;;  %v22121_v20 = vadd.f32 %v1739_v51, %v21993_v30  ;;  %v225_v57 = vld [vmem:[#allocation10 + $0x1b0] sm:$0xff]  ;;  %v226_v15 = vld [vmem:[#allocation10 + $0x1b8] sm:$0x3f] }
 0x57f   :  { %14633 = vmatmul.mubr.f32.vlgmr.msra.gmra.mrb[0].mxu1 %v23194_v43  ;;  %v23195_v56 = vand.u32 4294901760, %v21920_v50  ;;  %v1976_v0 = vsel %vm491_vm0, %v1974_v3, %v1975_v27  ;;  %v2077_v39 = vadd.f32 %v1973_v26, %v1791_v4  ;;  %v2080_v29 = vadd.f32 %v1975_v27, %v1794_v5  ;;  %v170_v50 = vld [vmem:[#allocation9 + $0x1b8] sm:$0x3f]  ;;  %v23196_v27 = vld [vmem:[#allocation25_spill] sm:$0xff] }
 0x580   :  { %v2259_v13 = vsel %vm491_vm0, %v2257_v9, %v2258_v31  ;;  %v2079_v60 = vadd.f32 %v1976_v0, %v1793_v35  ;;  %v2262_v45 = vsel %vm491_vm0, %v2260_v53, %v2261_v8  ;;  %v2364_v49 = vadd.f32 %v2258_v31, %v2078_v12 }
 0x581   :  { %14850 = vmatmul.mubr.f32.vlgmr.msra.gmra.mrb[0].mxu0 %v23195_v56  ;;  %v22131_v30 = vand.u32 4294901760, %v22098_v46  ;;  %v2363_v51 = vadd.f32 %v2259_v13, %v2077_v39  ;;  %v2366_v4 = vadd.f32 %v2261_v8, %v2080_v29  ;;  %v22135_v5 = vadd.f32 %v1740_v17, %v21990_v21 }
 0x582   :  { %15209 = vmatpush3.bf16.msra.mxu0 %v21974_v1  ;;  %14856 = vmatprep.mubr.f32.mxu0 %v21901_v32  ;;  %v22138_v1 = vadd.f32 %v1741_v42, %v21995_v62  ;;  %v2365_v35 = vadd.f32 %v2262_v45, %v2079_v60  ;;  %v22141_v3 = vadd.f32 %v1742_v40, %v21997_v25  ;;  %v23197_v42 = vld [vmem:[#allocation26_spill] sm:$0xff] }
 0x583   :  { %15211 = vmatprep.subr.bf16.mxu0 %v21958_v38  ;;  %v22144_v14 = vadd.f32 %v2364_v49, %v22043_v19  ;;  %v2520_v9 = vmul.f32 %v23196_v27, %v22026_v61  ;;  %v22149_v31 = vadd.f32 %v2363_v51, %v22041_v10  ;;  %v22152_v21 = vadd.f32 %v2366_v4, %v22045_v58 }
 0x584   :  { %v2521_v62 = vmul.f32 %v23196_v27, %v22028_v28  ;;  %v2522_v17 = vmul.f32 %v23196_v27, %v169_v41  ;;  %v22158_v25 = vadd.f32 %v2365_v35, %v22051_v63  ;;  %v2523_v19 = vmul.f32 %v23196_v27, %v170_v50 }
 0x585   :  { %v2573_v40 = vmul.f32 %v23197_v42, %v22033_v16  ;;  %v2574_v10 = vmul.f32 %v23197_v42, %v22035_v37  ;;  %v2575_v53 = vmul.f32 %v23197_v42, %v225_v57  ;;  %v2576_v58 = vmul.f32 %v23197_v42, %v226_v15 }
 0x586   :  { %v2678_v43 = vmul.f32 %v23166_v24, %v22026_v61  ;;  %v2679_v26 = vmul.f32 %v23166_v24, %v22028_v28  ;;  %v2680_v8 = vmul.f32 %v23166_v24, %v169_v41  ;;  %v2681_v56 = vmul.f32 %v23166_v24, %v170_v50 }
 0x587   :  { %v2625_v63 = vadd.f32 %v2573_v40, %v2520_v9  ;;  %v2626_v12 = vadd.f32 %v2574_v10, %v2521_v62  ;;  %v2627_v0 = vadd.f32 %v2575_v53, %v2522_v17  ;;  %v2628_v39 = vadd.f32 %v2576_v58, %v2523_v19 }
 0x588   :  { %v2806_v29 = vrot.slane %v2678_v43, 1  ;;  %v2807_v13 = vrot.slane %v2679_v26, 1  ;;  %v2809_v60 = vrot.slane %v2680_v8, 1  ;;  %v2810_v45 = vrot.slane %v2681_v56, 1 }
 0x589   :  { %14857 = vmatmul.mubr.f32.vlgmr.msra.gmra.mrb[0].mxu0 %v21912_v36  ;;  %v2964_v49 = vmul.f32 %v23196_v27, %v22033_v16  ;;  %v2965_v51 = vmul.f32 %v23196_v27, %v22035_v37  ;;  %v2966_v9 = vmul.f32 %v23196_v27, %v225_v57  ;;  %v2967_v62 = vmul.f32 %v23196_v27, %v226_v15 }
 0x58a   :  { %15213 = vmatpush3.bf16.msra.mxu0 %v21958_v38  ;;  %14863 = vmatprep.mubr.f32.mxu0 %v21901_v32  ;;  %v2808_v4 = vsel %vm491_vm0, %v2806_v29, %v2807_v13  ;;  %v2913_v35 = vadd.f32 %v2807_v13, %v2626_v12  ;;  %v2811_v17 = vsel %vm491_vm0, %v2809_v60, %v2810_v45 }
 0x58b   :  { %v2912_v38 = vadd.f32 %v2808_v4, %v2625_v63  ;;  %v2915_v19 = vadd.f32 %v2810_v45, %v2628_v39  ;;  %v3016_v32 = vmul.f32 %v23197_v42, %v22026_v61  ;;  %v2914_v40 = vadd.f32 %v2811_v17, %v2627_v0 }
 0x58c   :  { %v3017_v10 = vmul.f32 %v23197_v42, %v22028_v28  ;;  %v3018_v53 = vmul.f32 %v23197_v42, %v169_v41  ;;  %v3019_v58 = vmul.f32 %v23197_v42, %v170_v50  ;;  %v3302_v26 = vmul.f32 %v23166_v24, %v22033_v16 }
 0x58d   :  { %v3144_v43 = vrot.slane %v3016_v32, 1  ;;  %v3303_v27 = vmul.f32 %v23166_v24, %v22035_v37  ;;  %v3304_v63 = vmul.f32 %v23166_v24, %v225_v57  ;;  %v3305_v56 = vmul.f32 %v23166_v24, %v226_v15 }
 0x58e   :  { %v3145_v12 = vrot.slane %v3017_v10, 1  ;;  %v3147_v8 = vrot.slane %v3018_v53, 1  ;;  %v3148_v61 = vrot.slane %v3019_v58, 1  ;;  %v3430_v0 = vrot.slane %v3302_v26, 1 }
 0x58f   :  { %v3431_v28 = vrot.slane %v3303_v27, 1  ;;  %v3433_v39 = vrot.slane %v3304_v63, 1  ;;  %v3588_v41 = vadd.f32 %v2912_v38, %v22121_v20  ;;  %v3434_v60 = vrot.slane %v3305_v56, 1 }
 0x590   :  { %v3146_v50 = vsel %vm491_vm0, %v3144_v43, %v3145_v12  ;;  %v3149_v16 = vsel %vm491_vm0, %v3147_v8, %v3148_v61  ;;  %v3251_v42 = vadd.f32 %v3145_v12, %v2965_v51  ;;  %v3253_v37 = vadd.f32 %v3148_v61, %v2967_v62  ;;  %v23198_v8 = vld [vmem:[#allocation23_spill] sm:$0xff] }
 0x591   :  { %14864 = vmatmul.mubr.f32.vlgmr.msra.gmra.mrb[0].mxu0 %v21912_v36  ;;  %v3250_v29 = vadd.f32 %v3146_v50, %v2964_v49  ;;  %v3252_v57 = vadd.f32 %v3149_v16, %v2966_v9  ;;  %v3432_v13 = vsel %vm491_vm0, %v3430_v0, %v3431_v28  ;;  %v3589_v24 = vadd.f32 %v2913_v35, %v22135_v5 }
 0x592   :  { %v3537_v45 = vadd.f32 %v3431_v28, %v3251_v42  ;;  %v3590_v15 = vadd.f32 %v2914_v40, %v22138_v1  ;;  %v3591_v20 = vadd.f32 %v2915_v19, %v22141_v3  ;;  %v3435_v36 = vsel %vm491_vm0, %v3433_v39, %v3434_v60 }
 0x593   :  { %v3536_v4 = vadd.f32 %v3432_v13, %v3250_v29  ;;  %v3539_v17 = vadd.f32 %v3434_v60, %v3253_v37  ;;  %v3693_v38 = vadd.f32 %v23167_v52, %v3588_v41  ;;  %v3538_v51 = vadd.f32 %v3435_v36, %v3252_v57  ;;  %v23199_v41 = vld [vmem:[#allocation24_spill] sm:$0xff] }
 0x594   :  { %v3641_v49 = vadd.f32 %v3537_v45, %v22144_v14  ;;  %v3694_v9 = vadd.f32 %v23167_v52, %v3589_v24  ;;  %v3695_v62 = vadd.f32 %v23167_v52, %v3590_v15  ;;  %v3696_v1 = vadd.f32 %v23167_v52, %v3591_v20 }
 0x595   :  { %v3640_v32 = vadd.f32 %v3536_v4, %v22149_v31  ;;  %v3643_v5 = vadd.f32 %v3539_v17, %v22152_v21  ;;  %v22212_v3 = vmax.f32 %v3693_v38, 0.0  ;;  %v3642_v35 = vadd.f32 %v3538_v51, %v22158_v25 }
 0x596   :  { %v22215_v19 = vmax.f32 %v3694_v9, 0.0  ;;  %v22217_v40 = vmax.f32 %v3695_v62, 0.0  ;;  %v3798_v14 = vadd.f32 %v23167_v52, %v3641_v49  ;;  %v22220_v10 = vmax.f32 %v3696_v1, 0.0 }
 0x597   :  { %v3797_v53 = vadd.f32 %v23167_v52, %v3640_v32  ;;  %v3800_v31 = vadd.f32 %v23167_v52, %v3643_v5  ;;  %v3899_v21 = vmul.f32 %v23120_v2, %v21658_v33  ;;  %v3799_v58 = vadd.f32 %v23167_v52, %v3642_v35 }
 0x598   :  { %v22227_v43 = vmax.f32 %v3798_v14, 0.0  ;;  %v3900_v25 = vmul.f32 %v23120_v2, %v21661_v48  ;;  %v3901_v26 = vmul.f32 %v23120_v2, %v21663_v44  ;;  %v3902_v12 = vmul.f32 %v23120_v2, %v21666_v59 }
 0x599   :  { %v22233_v27 = vmax.f32 %v3797_v53, 0.0  ;;  %v22235_v63 = vmax.f32 %v3800_v31, 0.0  ;;  %v3948_v61 = vmul.f32 %v23198_v8, %v21679_v11  ;;  %v22241_v56 = vmax.f32 %v3799_v58, 0.0 }
 0x59a   :  { %v3949_v52 = vmul.f32 %v23198_v8, %v21673_v6  ;;  %v3950_v0 = vmul.f32 %v23198_v8, %v21687_v47  ;;  %v3951_v28 = vmul.f32 %v23198_v8, %v21681_v34  ;;  %v4045_v50 = vmul.f32 %v23199_v41, %v21658_v33 }
 0x59b   :  { %v3996_v39 = vadd.f32 %v3948_v61, %v3899_v21  ;;  %v4046_v16 = vmul.f32 %v23199_v41, %v21661_v48  ;;  %v4047_v42 = vmul.f32 %v23199_v41, %v21663_v44  ;;  %v4048_v13 = vmul.f32 %v23199_v41, %v21666_v59 }
 0x59c   :  { %v3997_v37 = vadd.f32 %v3949_v52, %v3900_v25  ;;  %v3998_v29 = vadd.f32 %v3950_v0, %v3901_v26  ;;  %v3999_v57 = vadd.f32 %v3951_v28, %v3902_v12  ;;  %v4163_v60 = vrot.slane %v4045_v50, 1 }
 0x59d   :  { %v4164_v45 = vrot.slane %v4046_v16, 1  ;;  %v4166_v24 = vrot.slane %v4047_v42, 1  ;;  %v4309_v15 = vmul.f32 %v23120_v2, %v21679_v11  ;;  %v4167_v20 = vrot.slane %v4048_v13, 1 }
 0x59e   :  { %v4310_v36 = vmul.f32 %v23120_v2, %v21673_v6  ;;  %v4311_v4 = vmul.f32 %v23120_v2, %v21687_v47  ;;  %v4312_v17 = vmul.f32 %v23120_v2, %v21681_v34  ;;  %v4357_v49 = vmul.f32 %v23198_v8, %v21658_v33 }
 0x59f   :  { %v4165_v38 = vsel %vm491_vm0, %v4163_v60, %v4164_v45  ;;  %v22266_v51 = vadd.f32 %v4164_v45, %v3997_v37  ;;  %v4358_v9 = vmul.f32 %v23198_v8, %v21661_v48  ;;  %v4168_v62 = vsel %vm491_vm0, %v4166_v24, %v4167_v20 }
 0x5a0   :  { %v22273_v32 = vadd.f32 %v4165_v38, %v3996_v39  ;;  %v22275_v5 = vadd.f32 %v4167_v20, %v3999_v57  ;;  %v4359_v1 = vmul.f32 %v23198_v8, %v21663_v44  ;;  %v22279_v2 = vadd.f32 %v4168_v62, %v3998_v29  ;;  %v23202_v38 = vld [vmem:[#allocation49_spill] sm:$0xff] }
 0x5a1   :  { %v4360_v35 = vmul.f32 %v23198_v8, %v21666_v59  ;;  %v4475_v14 = vrot.slane %v4357_v49, 1  ;;  %v4476_v53 = vrot.slane %v4358_v9, 1  ;;  %v4621_v48 = vmul.f32 %v23199_v41, %v21679_v11 }
 0x5a2   :  { %v4478_v33 = vrot.slane %v4359_v1, 1  ;;  %v4622_v31 = vmul.f32 %v23199_v41, %v21673_v6  ;;  %v4623_v21 = vmul.f32 %v23199_v41, %v21687_v47  ;;  %v4624_v12 = vmul.f32 %v23199_v41, %v21681_v34  ;;  %v23200_v6 = vld [vmem:[#allocation47_spill] sm:$0xff] }
 0x5a3   :  { %v4477_v58 = vsel %vm491_vm0, %v4475_v14, %v4476_v53  ;;  %v4479_v25 = vrot.slane %v4360_v35, 1  ;;  %v4574_v26 = vadd.f32 %v4476_v53, %v4310_v36  ;;  %v4739_v61 = vrot.slane %v4621_v48, 1 }
 0x5a4   :  { %v4573_v8 = vadd.f32 %v4477_v58, %v4309_v15  ;;  %v4740_v52 = vrot.slane %v4622_v31, 1  ;;  %v4742_v0 = vrot.slane %v4623_v21, 1  ;;  %v4743_v39 = vrot.slane %v4624_v12, 1  ;;  %v23201_v15 = vld [vmem:[#allocation48_spill] sm:$0xff] }
 0x5a5   :  { %v4480_v28 = vsel %vm491_vm0, %v4478_v33, %v4479_v25  ;;  %v4576_v11 = vadd.f32 %v4479_v25, %v4312_v17  ;;  %v4886_v50 = vmul.f32 %v23200_v6, %v21663_v44  ;;  %v4887_v29 = vmul.f32 %v23200_v6, %v21666_v59 }
 0x5a6   :  { %v4575_v16 = vadd.f32 %v4480_v28, %v4311_v4  ;;  %v4741_v42 = vsel %vm491_vm0, %v4739_v61, %v4740_v52  ;;  %v22296_v37 = vadd.f32 %v4740_v52, %v4574_v26  ;;  %v4744_v41 = vsel %vm491_vm0, %v4742_v0, %v4743_v39 }
 0x5a7   :  { %v22301_v57 = vadd.f32 %v4741_v42, %v4573_v8  ;;  %v22303_v13 = vadd.f32 %v4743_v39, %v4576_v11  ;;  %v4888_v60 = vmul.f32 %v23200_v6, %v22212_v3  ;;  %v4889_v24 = vmul.f32 %v23200_v6, %v22215_v19 }
 0x5a8   :  { %v22307_v45 = vadd.f32 %v4744_v41, %v4575_v16  ;;  %v4935_v20 = vmul.f32 %v23201_v15, %v21687_v47  ;;  %v4936_v36 = vmul.f32 %v23201_v15, %v21681_v34  ;;  %v4937_v4 = vmul.f32 %v23201_v15, %v22233_v27 }
 0x5a9   :  { %v4938_v17 = vmul.f32 %v23201_v15, %v22227_v43  ;;  %v5032_v49 = vmul.f32 %v23202_v38, %v21663_v44  ;;  %v5033_v9 = vmul.f32 %v23202_v38, %v21666_v59  ;;  %v5034_v35 = vmul.f32 %v23202_v38, %v22212_v3 }
 0x5aa   :  { %v4983_v62 = vadd.f32 %v4935_v20, %v4886_v50  ;;  %v4984_v1 = vadd.f32 %v4936_v36, %v4887_v29  ;;  %v5035_v14 = vmul.f32 %v23202_v38, %v22215_v19  ;;  %v4985_v53 = vadd.f32 %v4937_v4, %v4888_v60 }
 0x5ab   :  { %v4986_v33 = vadd.f32 %v4938_v17, %v4889_v24  ;;  %v5150_v48 = vrot.slane %v5032_v49, 1  ;;  %v5151_v31 = vrot.slane %v5033_v9, 1  ;;  %v5153_v21 = vrot.slane %v5034_v35, 1 }
 0x5ac   :  { %v5154_v58 = vrot.slane %v5035_v14, 1  ;;  %v5296_v25 = vmul.f32 %v23200_v6, %v21687_v47  ;;  %v5297_v26 = vmul.f32 %v23200_v6, %v21681_v34  ;;  %v5298_v61 = vmul.f32 %v23200_v6, %v22233_v27 }
 0x5ad   :  { %v5152_v12 = vsel %vm491_vm0, %v5150_v48, %v5151_v31  ;;  %v5249_v8 = vadd.f32 %v5151_v31, %v4984_v1  ;;  %v5299_v52 = vmul.f32 %v23200_v6, %v22227_v43  ;;  %v5344_v39 = vmul.f32 %v23201_v15, %v21663_v44 }
 0x5ae   :  { %v5155_v0 = vsel %vm491_vm0, %v5153_v21, %v5154_v58  ;;  %v5248_v28 = vadd.f32 %v5152_v12, %v4983_v62  ;;  %v5251_v11 = vadd.f32 %v5154_v58, %v4986_v33  ;;  %v5345_v16 = vmul.f32 %v23201_v15, %v21666_v59 }
 0x5af   :  { %v5250_v50 = vadd.f32 %v5155_v0, %v4985_v53  ;;  %v5346_v42 = vmul.f32 %v23201_v15, %v22212_v3  ;;  %v5347_v29 = vmul.f32 %v23201_v15, %v22215_v19  ;;  %v5462_v41 = vrot.slane %v5344_v39, 1 }
 0x5b0   :  { %v5608_v6 = vmul.f32 %v23202_v38, %v21687_v47  ;;  %v5609_v60 = vmul.f32 %v23202_v38, %v21681_v34  ;;  %v5610_v44 = vmul.f32 %v23202_v38, %v22233_v27  ;;  %v5463_v24 = vrot.slane %v5345_v16, 1 }
 0x5b1   :  { %v5465_v20 = vrot.slane %v5346_v42, 1  ;;  %v5466_v36 = vrot.slane %v5347_v29, 1  ;;  %v5611_v59 = vmul.f32 %v23202_v38, %v22227_v43  ;;  %v22354_v15 = vadd.f32 %v5248_v28, %v22273_v32 }
 0x5b2   :  { %v5726_v4 = vrot.slane %v5608_v6, 1  ;;  %v5727_v17 = vrot.slane %v5609_v60, 1  ;;  %v5729_v49 = vrot.slane %v5610_v44, 1  ;;  %v5464_v47 = vsel %vm491_vm0, %v5462_v41, %v5463_v24 }
 0x5b3   :  { %v5467_v9 = vsel %vm491_vm0, %v5465_v20, %v5466_v36  ;;  %v5561_v34 = vadd.f32 %v5463_v24, %v5297_v26  ;;  %v5563_v62 = vadd.f32 %v5466_v36, %v5299_v52  ;;  %v5560_v1 = vadd.f32 %v5464_v47, %v5296_v25 }
 0x5b4   :  { %v5562_v35 = vadd.f32 %v5467_v9, %v5298_v61  ;;  %v5728_v14 = vsel %vm491_vm0, %v5726_v4, %v5727_v17  ;;  %v5730_v53 = vrot.slane %v5611_v59, 1  ;;  %v22360_v38 = vadd.f32 %v5249_v8, %v22266_v51 }
 0x5b5   :  { %v5825_v33 = vadd.f32 %v5727_v17, %v5561_v34  ;;  %v22363_v48 = vadd.f32 %v5250_v50, %v22279_v2  ;;  %v22366_v32 = vadd.f32 %v5251_v11, %v22275_v5  ;;  %v5824_v21 = vadd.f32 %v5728_v14, %v5560_v1 }
 0x5b6   :  { %v5731_v31 = vsel %vm491_vm0, %v5729_v49, %v5730_v53  ;;  %v5827_v58 = vadd.f32 %v5730_v53, %v5563_v62  ;;  %v5969_v25 = vmul.f32 %v22939_v18, %v22212_v3  ;;  %v5970_v51 = vmul.f32 %v22939_v18, %v22215_v19 }
 0x5b7   :  { %v5826_v26 = vadd.f32 %v5731_v31, %v5562_v35  ;;  %v22372_v12 = vadd.f32 %v5825_v33, %v22296_v37  ;;  %v5971_v2 = vmul.f32 %v22939_v18, %v22217_v40  ;;  %v22379_v5 = vadd.f32 %v5824_v21, %v22301_v57 }
 0x5b8   :  { %v22382_v8 = vadd.f32 %v5827_v58, %v22303_v13  ;;  %v5972_v61 = vmul.f32 %v22939_v18, %v22220_v10  ;;  %v6018_v52 = vmul.f32 %v22940_v22, %v22233_v27  ;;  %v6019_v0 = vmul.f32 %v22940_v22, %v22227_v43 }
 0x5b9   :  { %v22389_v37 = vadd.f32 %v5826_v26, %v22307_v45  ;;  %v6020_v28 = vmul.f32 %v22940_v22, %v22241_v56  ;;  %v6021_v57 = vmul.f32 %v22940_v22, %v22235_v63  ;;  %v6115_v11 = vmul.f32 %v22983_v23, %v22212_v3 }
 0x5ba   :  { %v6066_v13 = vadd.f32 %v6018_v52, %v5969_v25  ;;  %v6116_v39 = vmul.f32 %v22983_v23, %v22215_v19  ;;  %v6117_v45 = vmul.f32 %v22983_v23, %v22217_v40  ;;  %v6067_v50 = vadd.f32 %v6019_v0, %v5970_v51 }
 0x5bb   :  { %v6068_v16 = vadd.f32 %v6020_v28, %v5971_v2  ;;  %v6069_v42 = vadd.f32 %v6021_v57, %v5972_v61  ;;  %v6118_v29 = vmul.f32 %v22983_v23, %v22220_v10  ;;  %v6233_v41 = vrot.slane %v6115_v11, 1 }
 0x5bc   :  { %v6234_v6 = vrot.slane %v6116_v39, 1  ;;  %v6236_v60 = vrot.slane %v6117_v45, 1  ;;  %v6379_v44 = vmul.f32 %v22939_v18, %v22233_v27  ;;  %v6380_v20 = vmul.f32 %v22939_v18, %v22227_v43 }
 0x5bd   :  { %v6237_v24 = vrot.slane %v6118_v29, 1  ;;  %v6381_v36 = vmul.f32 %v22939_v18, %v22241_v56  ;;  %v6382_v59 = vmul.f32 %v22939_v18, %v22235_v63  ;;  %v6427_v49 = vmul.f32 %v22940_v22, %v22212_v3 }
 0x5be   :  { %v6235_v4 = vsel %vm491_vm0, %v6233_v41, %v6234_v6  ;;  %v6332_v17 = vadd.f32 %v6234_v6, %v6067_v50  ;;  %v6428_v47 = vmul.f32 %v22940_v22, %v22215_v19  ;;  %v6429_v1 = vmul.f32 %v22940_v22, %v22217_v40 }
 0x5bf   :  { %v6238_v9 = vsel %vm491_vm0, %v6236_v60, %v6237_v24  ;;  %v6331_v34 = vadd.f32 %v6235_v4, %v6066_v13  ;;  %v6334_v62 = vadd.f32 %v6237_v24, %v6069_v42  ;;  %v6430_v18 = vmul.f32 %v22940_v22, %v22220_v10 }
 0x5c0   :  { %v6333_v35 = vadd.f32 %v6238_v9, %v6068_v16  ;;  %v6545_v14 = vrot.slane %v6427_v49, 1  ;;  %v6546_v53 = vrot.slane %v6428_v47, 1  ;;  %v6548_v33 = vrot.slane %v6429_v1, 1 }
 0x5c1   :  { %v6691_v3 = vmul.f32 %v22983_v23, %v22233_v27  ;;  %v6692_v19 = vmul.f32 %v22983_v23, %v22227_v43  ;;  %v6693_v31 = vmul.f32 %v22983_v23, %v22241_v56  ;;  %v6549_v58 = vrot.slane %v6430_v18, 1 }
 0x5c2   :  { %v6547_v21 = vsel %vm491_vm0, %v6545_v14, %v6546_v53  ;;  %v6644_v40 = vadd.f32 %v6546_v53, %v6380_v20  ;;  %v6694_v25 = vmul.f32 %v22983_v23, %v22235_v63  ;;  %v6955_v43 = vadd.f32 %v6331_v34, %v22354_v15 }
 0x5c3   :  { %v6643_v22 = vadd.f32 %v6547_v21, %v6379_v44  ;;  %v6809_v10 = vrot.slane %v6691_v3, 1  ;;  %v6810_v26 = vrot.slane %v6692_v19, 1  ;;  %v6812_v51 = vrot.slane %v6693_v31, 1 }
 0x5c4   :  { %v6550_v2 = vsel %vm491_vm0, %v6548_v33, %v6549_v58  ;;  %v6646_v27 = vadd.f32 %v6549_v58, %v6382_v59  ;;  %v6813_v61 = vrot.slane %v6694_v25, 1  ;;  %v6956_v28 = vadd.f32 %v6332_v17, %v22360_v38 }
 0x5c5   :  { %v6645_v52 = vadd.f32 %v6550_v2, %v6381_v36  ;;  %v6811_v56 = vsel %vm491_vm0, %v6809_v10, %v6810_v26  ;;  %v6908_v0 = vadd.f32 %v6810_v26, %v6644_v40  ;;  %v6957_v63 = vadd.f32 %v6333_v35, %v22363_v48  ;;  %v7248_v35 = vld [vmem:[%s22510_s6] sm:$0xff] }
 0x5c6   :  { %v6814_v57 = vsel %vm491_vm0, %v6812_v51, %v6813_v61  ;;  %v6907_v13 = vadd.f32 %v6811_v56, %v6643_v22  ;;  %v6910_v23 = vadd.f32 %v6813_v61, %v6646_v27  ;;  %v6958_v39 = vadd.f32 %v6334_v62, %v22366_v32 }
 0x5c7   :  { %v6909_v11 = vadd.f32 %v6814_v57, %v6645_v52  ;;  %v7004_v45 = vadd.f32 %v6908_v0, %v22372_v12  ;;  %v7052_v50 = vadd.f32 %v22984_v55, %v6955_v43  ;;  %v7053_v42 = vadd.f32 %v22984_v55, %v6956_v28  ;;  %v13477_v0 = vld [vmem:[%s22511_s7] sm:$0xff] }
 0x5c8   :  { %v7003_v15 = vadd.f32 %v6907_v13, %v22379_v5  ;;  %v7006_v16 = vadd.f32 %v6910_v23, %v22382_v8  ;;  %v7054_v38 = vadd.f32 %v22984_v55, %v6957_v63  ;;  %v7055_v41 = vadd.f32 %v22984_v55, %v6958_v39  ;;  %v13478_v39 = vld [vmem:[%s22511_s7 + $0x8] sm:$0x3]  ;;  %s15625_s7 = smov [#allocation12]  }
 0x5c9   :  { %v7005_v29 = vadd.f32 %v6909_v11, %v22389_v37  ;;  %v7100_v48 = vmax.f32 %v7052_v50, 0.0  ;;  %v7149_v6 = vadd.f32 %v22984_v55, %v7004_v45  ;;  %v7101_v32 = vmax.f32 %v7053_v42, 0.0  ;;  %v7249_v37 = vld [vmem:[%s22510_s6 + $0x8] sm:$0x3] }
 0x5ca   :  { %v7102_v60 = vmax.f32 %v7054_v38, 0.0  ;;  %v7148_v12 = vadd.f32 %v22984_v55, %v7003_v15  ;;  %v7151_v44 = vadd.f32 %v22984_v55, %v7006_v16  ;;  %v7103_v5 = vmax.f32 %v7055_v41, 0.0 }
 0x5cb   :  { %v7150_v8 = vadd.f32 %v22984_v55, %v7005_v29  ;;  %v7197_v24 = vmax.f32 %v7149_v6, 0.0  ;;  %v13027_v20 = vsub.f32 %v22048_v54, %v22093_v7  ;;  %v13037_v4 = vsub.f32 %v22098_v46, %v22131_v30 }
 0x5cc   :  { %v7196_v36 = vmax.f32 %v7148_v12, 0.0  ;;  %v7199_v59 = vmax.f32 %v7151_v44, 0.0  ;;  %v15624_v9 = vmov 0   ;;  %v13493_v28 = vsel %vm13491_vm3, %v13477_v0, 0 }
 0x5cd   :  { %v7198_v17 = vmax.f32 %v7150_v8, 0.0  ;;  %v7245_v49 = vmax.f32 %v7101_v32, %v7197_v24  ;;  %v13028_v47 = vand.u32 4294901760, %v13027_v20  ;;  %15425 = vset.pattern.permute.xlu0 %v15624_v9  ;;  %15426 = vset.pattern.permute.xlu1 %v15624_v9  ;;  %v13038_v1 = vand.u32 4294901760, %v13037_v4 }
 0x5ce   :  { %v7244_v55 = vmax.f32 %v7100_v48, %v7196_v36  ;;  %v7247_v34 = vmax.f32 %v7103_v5, %v7199_v59  ;;  %13470 = vperm.xlu0 %15425, %v7249_v37   ;;  %v22471_v57 = vand.u32 4294901760, %v13493_v28  ;;  %v13496_v45 = vsel %vm13491_vm3, %v13478_v39, 0 }
 0x5cf   :  { %v7246_v62 = vmax.f32 %v7102_v60, %v7198_v17  ;;  %v13029_v54 = vsub.f32 %v13027_v20, %v13028_v47  ;;  %v13039_v19 = vsub.f32 %v13037_v4, %v13038_v1  ;;  %v13579_v50 = vand.u32 4294901760, %v13496_v45 }
 0x5d0   :  { %v12946_v18 = vmax.f32 %v7245_v49, %v7247_v34  ;;  %v13570_v13 = vsub.f32 %v13493_v28, %v22471_v57 }
 0x5d1   :  { %v12945_v14 = vmax.f32 %v7244_v55, %v7246_v62  ;;  %v13030_v53 = vand.u32 4294901760, %v13029_v54  ;;  %v13040_v40 = vand.u32 4294901760, %v13039_v19  ;;  %v13580_v42 = vsub.f32 %v13496_v45, %v13579_v50 }
 0x5d2   :  { %v12957_v46 = vsel %vm7266_vm1, %v12946_v18, 0  ;;  %13465 = vperm.xlu0 %15425, %v7248_v35   ;;  %v13571_v23 = vand.u32 4294901760, %v13570_v13 }
 0x5d3   :  { %v12960_v33 = vand.u32 4294901760, %v12945_v14  ;;  %v12963_v3 = vand.u32 4294901760, %v12957_v46  ;;  %14870 = vmatprep.mubr.f32.mxu0 %v13030_v53  ;;  %v13581_v60 = vand.u32 4294901760, %v13580_v42 }
 0x5d4   :  { %v13572_v63 = vsub.f32 %v13570_v13, %v13571_v23 }
 0x5d5   :  { %v15214_v31 = vpack.c.bf16 %v12963_v3, %v12960_v33  ;;  %v13048_v21 = vsub.f32 %v12945_v14, %v12960_v33  ;;  %v13055_v58 = vsub.f32 %v12957_v46, %v12963_v3 }
 0x5d6   :  { %v13573_v11 = vand.u32 4294901760, %v13572_v63 }
 0x5d7   :  { %15215 = vmatprep.subr.bf16.mxu0 %v15214_v31  ;;  %v13049_v25 = vand.u32 4294901760, %v13048_v21  ;;  %v13056_v22 = vand.u32 4294901760, %v13055_v58  ;;  %v15222_v61 = vpack.c.bf16 %v13055_v58, %v13048_v21 }
 0x5d8   :  { %15217 = vmatpush3.bf16.msra.mxu0 %v15214_v31  ;;  %14912 = vmatprep.mubr.f32.mxu1 %v13573_v11 }
 0x5d9   :  { %v13050_v10 = vsub.f32 %v13048_v21, %v13049_v25  ;;  %v13057_v26 = vsub.f32 %v13055_v58, %v13056_v22  ;;  %v15230_v43 = vpack.c.bf16 %v13056_v22, %v13049_v25 }
 0x5db   :  { %14871 = vmatmul.mubr.f32.vlgmr.msra.gmra.mrb[0].mxu0 %v13040_v40  ;;  %v13051_v51 = vand.u32 4294901760, %v13050_v10  ;;  %v13058_v2 = vand.u32 4294901760, %v13057_v26 }
 0x5dc   :  { %14877 = vmatprep.mubr.f32.mxu0 %v22093_v7 }
 0x5dd   :  { %v15218_v27 = vpack.c.bf16 %v13058_v2, %v13051_v51 }
 0x5df   :  { %15219 = vmatprep.subr.bf16.mxu0 %v15218_v27 }
 0x5e0   :  { %15221 = vmatpush3.bf16.msra.mxu0 %v15218_v27 }
 0x5e1   :  { %15223 = vmatprep.subr.bf16.mxu0 %v15222_v61 }
 0x5e3   :  { %14878 = vmatmul.mubr.f32.vlgmr.msra.gmra.mrb[0].mxu0 %v22131_v30 }
 0x5e4   :  { %15225 = vmatpush3.bf16.msra.mxu0 %v15222_v61  ;;  %14884 = vmatprep.mubr.f32.mxu0 %v13027_v20  ;;  %v13582_v20 = vsub.f32 %v13580_v42, %v13581_v60 }
 0x5e5   :  { %15227 = vmatprep.subr.bf16.mxu0 %v15214_v31 }
 0x5eb   :  { %14885 = vmatmul.mubr.f32.vlgmr.msra.gmra.mrb[0].mxu0 %v13037_v4  ;;  %v13583_v4 = vand.u32 4294901760, %v13582_v20 }
 0x5ec   :  { %15229 = vmatpush3.bf16.msra.mxu0 %v15214_v31  ;;  %14891 = vmatprep.mubr.f32.mxu0 %v13028_v47 }
 0x5ed   :  { %15231 = vmatprep.subr.bf16.mxu0 %v15230_v43 }
 0x5f3   :  { %14892 = vmatmul.mubr.f32.vlgmr.msra.gmra.mrb[0].mxu0 %v13038_v1 }
 0x5f4   :  { %15233 = vmatpush3.bf16.msra.mxu0 %v15230_v43  ;;  %14898 = vmatprep.mubr.f32.mxu0 %v22093_v7 }
 0x5f5   :  { %15235 = vmatprep.subr.bf16.mxu0 %v15214_v31 }
 0x5fb   :  { %14899 = vmatmul.mubr.f32.vlgmr.msra.gmra.mrb[0].mxu0 %v22131_v30 }
 0x5fc   :  { %15237 = vmatpush3.bf16.msra.mxu0 %v15214_v31  ;;  %14905 = vmatprep.mubr.f32.mxu0 %v22093_v7  ;;  %v13480_v7 = vld [vmem:[%s22512_s8 + $0x8] sm:$0x3] }
 0x5fd   :  { %13488 = vperm.xlu1 %15426, %v13480_v7  }
 0x603   :  { %14906 = vmatmul.mubr.f32.vlgmr.msra.gmra.mrb[0].mxu0 %v22131_v30  ;;  %v13479_v30 = vld [vmem:[%s22512_s8] sm:$0xff]  ;;  %s14038_s8 = sshll.u32 %s15625_s7, 4  ;;  %s14039_s8 = int_to_ptr.vmem [resolvable:$true] %s14038_s8 }
 0x604   :  { %13483 = vperm.xlu1 %15426, %v13479_v30   ;;  %s15585_s28 = scalar_lea.vmem %s14039_s8, 256  ;;  %p15590_p4 = scmp.lt.s32.totalorder %s14039_s8, %s14039_s8 }
 0x605   :  { %p15586_p3 = scmp.ne.s32.totalorder %s14039_s8, %s15585_s28  ;;  %p15591_p5 = scmp.lt.s32.totalorder %s15585_s28, %s15585_s28 }
 0x607   :  { %p15592_p6 = por %p15591_p5, %p15590_p4 }
 0x609   :  { %p15593_p7 = pnand %p15592_p6, %p15586_p3 }
 0x64d   :  { %v13471_v15 = vpop.permute.xlu0 %13470 }
 0x651   :  { %v13466_v48 = vpop.permute.xlu0 %13465 }
 0x652   :  { %v14634_v52 = vpop.f32.mrb[0].mxu1 }
 0x653   :  { %v10097_v56 = vpop.f32.mrb[1].mxu1 }
 0x67c   :  { %v13489_v35 = vpop.permute.xlu1 %13488 }
 0x683   :  { %v13484_v53 = vpop.permute.xlu1 %13483 }
 0x6d6   :  { %v14907_v16 = vpop.f32.mrb[0].mxu0 }
 0x6d7   :  { %v15262_v38 = vadd.f32 %v14907_v16, %v14634_v52  ;;  %v13451_v29 = vpop.f32.mrb[1].mxu0 }
 0x6d8   :  { %v15263_v41 = vadd.f32 %v13451_v29, %v10097_v56 }
 0x6d9   :  { %v13474_v6 = vadd.f32 %v15262_v38, %v13471_v15 }
 0x6da   :  { %v13473_v32 = vadd.f32 %v15263_v41, %v13466_v48 }
 0x6db   :  { %v13476_v12 = vmax.f32 %v13474_v6, 0.0 }
 0x6dc   :  { %v13475_v44 = vmax.f32 %v13473_v32, 0.0 }
 0x6dd   :  { %v13500_v5 = vsel %vm13498_vm4, %v13476_v12, 0 }
 0x6de   :  { %v13506_v8 = vand.u32 4294901760, %v13500_v5  ;;  %v13503_v24 = vand.u32 4294901760, %v13475_v44 }
 0x6e0   :  { %v13598_v37 = vsub.f32 %v13500_v5, %v13506_v8  ;;  %v15238_v36 = vpack.c.bf16 %v13506_v8, %v13503_v24  ;;  %v13591_v59 = vsub.f32 %v13475_v44, %v13503_v24 }
 0x6e2   :  { %15239 = vmatprep.subr.bf16.mxu1 %v15238_v36  ;;  %v13592_v17 = vand.u32 4294901760, %v13591_v59  ;;  %v13599_v49 = vand.u32 4294901760, %v13598_v37  ;;  %v15246_v47 = vpack.c.bf16 %v13598_v37, %v13591_v59 }
 0x6e3   :  { %15241 = vmatpush3.bf16.msra.mxu1 %v15238_v36 }
 0x6e4   :  { %v13593_v9 = vsub.f32 %v13591_v59, %v13592_v17  ;;  %v13600_v55 = vsub.f32 %v13598_v37, %v13599_v49  ;;  %v15254_v34 = vpack.c.bf16 %v13599_v49, %v13592_v17 }
 0x6e6   :  { %14913 = vmatmul.mubr.f32.vlgmr.msra.gmra.mrb[2].mxu1 %v13583_v4  ;;  %v13594_v62 = vand.u32 4294901760, %v13593_v9  ;;  %v13601_v54 = vand.u32 4294901760, %v13600_v55 }
 0x6e7   :  { %14919 = vmatprep.mubr.f32.mxu1 %v22471_v57 }
 0x6e8   :  { %v15242_v1 = vpack.c.bf16 %v13601_v54, %v13594_v62 }
 0x6ea   :  { %15243 = vmatprep.subr.bf16.mxu1 %v15242_v1 }
 0x6eb   :  { %15245 = vmatpush3.bf16.msra.mxu1 %v15242_v1 }
 0x6ec   :  { %15247 = vmatprep.subr.bf16.mxu1 %v15246_v47 }
 0x6ee   :  { %14920 = vmatmul.mubr.f32.vlgmr.msra.gmra.mrb[2].mxu1 %v13579_v50 }
 0x6ef   :  { %15249 = vmatpush3.bf16.msra.mxu1 %v15246_v47  ;;  %14926 = vmatprep.mubr.f32.mxu1 %v13570_v13 }
 0x6f0   :  { %15251 = vmatprep.subr.bf16.mxu1 %v15238_v36 }
 0x6f6   :  { %14927 = vmatmul.mubr.f32.vlgmr.msra.gmra.mrb[2].mxu1 %v13580_v42 }
 0x6f7   :  { %15253 = vmatpush3.bf16.msra.mxu1 %v15238_v36  ;;  %14933 = vmatprep.mubr.f32.mxu1 %v13571_v23 }
 0x6f8   :  { %15255 = vmatprep.subr.bf16.mxu1 %v15254_v34 }
 0x6fe   :  { %14934 = vmatmul.mubr.f32.vlgmr.msra.gmra.mrb[2].mxu1 %v13581_v60 }
 0x6ff   :  { %15257 = vmatpush3.bf16.msra.mxu1 %v15254_v34  ;;  %14940 = vmatprep.mubr.f32.mxu1 %v22471_v57 }
 0x700   :  { %15259 = vmatprep.subr.bf16.mxu1 %v15238_v36 }
 0x706   :  { %14941 = vmatmul.mubr.f32.vlgmr.msra.gmra.mrb[2].mxu1 %v13579_v50 }
 0x707   :  { %15261 = vmatpush3.bf16.msra.mxu1 %v15238_v36  ;;  %14947 = vmatprep.mubr.f32.mxu1 %v22471_v57 }
 0x70e   :  { %14948 = vmatmul.mubr.f32.vlgmr.msra.gmra.mrb[2].mxu1 %v13579_v50 }
 0x7e1   :  { %v14949_v18 = vpop.f32.mrb[2].mxu1 }
 0x7e2   :  { %v15264_v14 = vadd.f32 %v14949_v18, %v13489_v35  ;;  %v13994_v46 = vpop.f32.mrb[3].mxu1 }
 0x7e3   :  { %v15265_v33 = vadd.f32 %v13994_v46, %v13484_v53 }
 0x7e4   :  { %v14004_v3 = vsel %vm13498_vm4, %v15264_v14, -inf }
 0x7e5   :  { %v14005_v19 = vmax.f32 %v15265_v33, %v14004_v3 }
 0x7e7   :  { %v14006_v31 = vrot.slane %v14005_v19, 4 }
 0x7e9   :  { %v14007_v21 = vmax.f32 %v14005_v19, %v14006_v31 }
 0x7eb   :  { %v14008_v58 = vrot.slane %v14007_v21, 2 }
 0x7ed   :  { %v14009_v40 = vmax.f32 %v14007_v21, %v14008_v58 }
 0x7ef   :  { %v14010_v25 = vrot.slane %v14009_v40, 1 }
 0x7f1   :  { %v14011_v22 = vmax.f32 %v14009_v40, %v14010_v25 }
 0x7f3   :  { %v14012_v10 = vsub.f32 %v15265_v33, %v14011_v22  ;;  %v14013_v26 = vsub.f32 %v15264_v14, %v14011_v22 }
 0x7f5   :  { %v14014_v51 = vmul.f32 1.442695, %v14012_v10  ;;  %v14016_v2 = vmul.f32 1.442695, %v14013_v26 }
 0x7f7   :  { %15427 = vpow2.f32 %v14014_v51 }
 0x7f8   :  { %15429 = vpow2.f32 %v14016_v2 }
 0x801   :  { %v15428_v27 = vpop.eup %15427 }
 0x802   :  { %v15430_v61 = vpop.eup %15429 }
 0x803   :  { %v14018_v43 = vsel %vm13498_vm4, %v15430_v61, 0.0 }
 0x804   :  { %v14019_v52 = vadd.f32 %v15428_v27, %v14018_v43 }
 0x806   :  { %v14020_v56 = vrot.slane %v14019_v52, 4 }
 0x808   :  { %v14021_v0 = vadd.f32 %v14020_v56, %v14019_v52 }
 0x80a   :  { %v14022_v28 = vrot.slane %v14021_v0, 2 }
 0x80c   :  { %v14023_v57 = vadd.f32 %v14022_v28, %v14021_v0 }
 0x80e   :  { %v14024_v13 = vrot.slane %v14023_v57, 1 }
 0x810   :  { %v14025_v23 = vadd.f32 %v14024_v13, %v14023_v57 }
 0x812   :  { %15431 = vlog2.f32 %v14025_v23 }
 0x81c   :  { %v15432_v63 = vpop.eup %15431 }
 0x81d   :  { %v14027_v11 = vmul.f32 0.6931472, %v15432_v63 }
 0x81f   :  { %v14028_v7 = vadd.f32 %v14027_v11, %v14011_v22 }
 0x821   :  { %v14029_v30 = vsub.f32 %v15265_v33, %v14028_v7  ;;  %v14030_v39 = vsub.f32 %v15264_v14, %v14028_v7 }
 0x823   :  { %14031 = vst [vmem:[#allocation12] sm:$0xff] %v14029_v30  ;;  %14032 = vst [vmem:[#allocation12 + $0x8] sm:$0x3] %v14030_v39 }
 0x824   :  { %15596 = shalt.err (!%p15593_p7)
}
 0x825   :  { %s15597_s30 = scalar_lea.hbm %s22513_s9, 256 }
 0x826   :  { %p15598_p8 = scmp.ne.s32.totalorder %s22513_s9, %s15597_s30  ;;  %p15601_p9 = scmp.lt.u32.totalorder %s15597_s30, %s22513_s9 }
 0x828   :  { %p15603_p10 = pnand %p15601_p9, %p15598_p8 }
 0x82a   :  { %15606 = shalt.err (!%p15603_p10)
}
 0x82b   :  { %14044 = dma.vmem_to_hbm [thread:$0]  %s14039_s8, 256, %s22513_s9, [#allocation4], %s15621_s10, %s15621_s10, %s15622_s11  }
 0x82c   :  { %15615 = dma.done.wait [#allocation4], 256  }
 0x82d   :  { %15616 = vsyncadd [#allocation4], 4294967040 }
 0x82e   :  { %14048 = vsyncpa [#allocation3], 1 }
 0x82f   :  { %14049 = vsyncpa [#allocation11], 1 }
 0x830   :  { %14050 = vsyncpa [#allocation4], 1 }
 0x831   :  { %14051 = vsyncpa [#allocation5], 1 }
 0x832   :  { %14052 = vsyncpa [#allocation7], 1 }

</bundles_post_ra>
